<compile_context>
chip_gen: v6e
topology: v6e:2x2x1
jax: 0.10.0
libtpu: 0.0.40
codegen_flags: <defaults>
</compile_context>

<pallas_src>
import functools

import jax
import jax.numpy as jnp
import numpy as np
from jax import lax
from jax.experimental import pallas as pl
from jax.experimental.pallas import tpu as pltpu

VOCAB = 50            # synthetic vocab size (real model uses len(vocab_model))
PAD = 0               # padding_idx
EMBED = 200
EMBED_PAD = 256       # layer-0 input features padded to a lane multiple
HIDDEN = 64
NUM_LAYERS = 2
NUM_CLASSES = 2
TT = 8                # timesteps per grid step (static unroll; keep <= 16)
# TODO(synk): dropout=0.5 between LSTM layers is training-only; inference (eval) semantics implemented.
# TODO(synk): no pack_padded_sequence handling -- padded tokens still update h/c, matching a plain
#             self.lstm(input_embed) call on padded input.
# TODO(synk): v5e matmul_push_rhs W_hh residency and v7x 2-TensorCore direction split not applied;
#             single fused block-diagonal recurrence is used on all generations.


# ---------------------------------------------------------------------------
# Shared recurrence block (fused input projection + bidirectional LSTM steps)
# ---------------------------------------------------------------------------
def _bilstm_block(xa_ref, xb_ref, wa_ref, wb_ref, whh_ref, b_ref,
                  h_sc, c_sc, gxa_sc, gxb_sc, out_ref,
                  *, tt, h, t_valid, t_pad, need_mask):
    """One grid step: project the forward block (xa) and the reversed-time block (xb) for all
    tt timesteps, then run tt serial LSTM cell updates for BOTH directions at once.

    Layouts: gates are 8H=512 lanes, per-gate interleaved [g_fwd(64)|g_bwd(64)] x {i,f,g,o};
    hidden/cell state is (bp, 2H=128) = [fwd | bwd]."""
    blk = pl.program_id(0)

    @pl.when(blk == 0)
    def _():
        h_sc[...] = jnp.zeros_like(h_sc)
        c_sc[...] = jnp.zeros_like(c_sc)

    tb, bp, d = xa_ref.shape
    g8 = 8 * h
    # Hoisted block projection for both directions (bias folded into gxa).
    gxa_sc[...] = jnp.dot(xa_ref[...].reshape(tb * bp, d), wa_ref[...],
                          preferred_element_type=jnp.float32).reshape(tb, bp, g8) + b_ref[...]
    gxb_sc[...] = jnp.dot(xb_ref[...].reshape(tb * bp, d), wb_ref[...],
                          preferred_element_type=jnp.float32).reshape(tb, bp, g8)

    if need_mask:
        lane_is_fwd = lax.broadcasted_iota(jnp.int32, (bp, 2 * h), 1) < h

    for i in range(tt):   # static unroll, tt small -> static slices, LLO visibility
        rec = jnp.dot(h_sc[...], whh_ref[...], preferred_element_type=jnp.float32)
        gates = gxa_sc[i] + gxb_sc[tt - 1 - i] + rec            # (bp, 512)
        c_prev = c_sc[...]
        gi = jax.nn.sigmoid(gates[:, 0 * 2 * h:1 * 2 * h])      # full 128-lane gate slices
        gf = jax.nn.sigmoid(gates[:, 1 * 2 * h:2 * 2 * h])
        gg = jnp.tanh(gates[:, 2 * 2 * h:3 * 2 * h])
        go = jax.nn.sigmoid(gates[:, 3 * 2 * h:4 * 2 * h])
        c_new = gf * c_prev + gi * gg
        h_new = go * jnp.tanh(c_new)
        if need_mask:
            # Forward step p is valid iff p < T; backward step p maps to time t_pad-1-p,
            # valid iff p >= t_pad - T. Keep previous state on padded steps.
            p = blk * tt + i
            keep = jnp.where(lane_is_fwd, p < t_valid, p >= (t_pad - t_valid))
            h_new = jnp.where(keep, h_new, h_sc[...])
            c_new = jnp.where(keep, c_new, c_prev)
        h_sc[...] = h_new
        c_sc[...] = c_new
        if out_ref is not None:
            out_ref[i] = h_new                                  # single lane-dense (bp,128) store


def _bilstm_seq_kernel(xa_ref, xb_ref, wa_ref, wb_ref, whh_ref, b_ref, out_ref,
                       h_sc, c_sc, gxa_sc, gxb_sc, *, tt, h, t_valid, t_pad, need_mask):
    _bilstm_block(xa_ref, xb_ref, wa_ref, wb_ref, whh_ref, b_ref,
                  h_sc, c_sc, gxa_sc, gxb_sc, out_ref,
                  tt=tt, h=h, t_valid=t_valid, t_pad=t_pad, need_mask=need_mask)


def _bilstm_head_kernel(xa_ref, xb_ref, wa_ref, wb_ref, whh_ref, b_ref,
                        fc1w_ref, fc1b_ref, fc2w_ref, fc2b_ref, out_ref,
                        h_sc, c_sc, gxa_sc, gxb_sc,
                        *, tt, h, t_valid, t_pad, need_mask, nc):
    _bilstm_block(xa_ref, xb_ref, wa_ref, wb_ref, whh_ref, b_ref,
                  h_sc, c_sc, gxa_sc, gxb_sc, None,
                  tt=tt, h=h, t_valid=t_valid, t_pad=t_pad, need_mask=need_mask)

    @pl.when(pl.program_id(0) == pl.num_programs(0) - 1)
    def _():
        # torch: lstm_out = cat([h_n[-1] (bwd final), h_n[-2] (fwd final)]); the swap is folded
        # into the fc1 weight packing, so h_sc = [hf_final | hb_final] feeds fc1 directly.
        x = h_sc[...]
        h1 = jnp.dot(x, fc1w_ref[...], preferred_element_type=jnp.float32) + fc1b_ref[...]
        h1 = jnp.maximum(h1, 0.0)
        logits = jnp.dot(h1, fc2w_ref[...], preferred_element_type=jnp.float32) + fc2b_ref[...]
        col = lax.broadcasted_iota(jnp.int32, logits.shape, 1)
        logits = jnp.where(col < nc, logits, jnp.float32(-1e30))       # mask lane padding
        m = jnp.max(logits, axis=-1, keepdims=True)
        lse = m + jnp.log(jnp.sum(jnp.exp(logits - m), axis=-1, keepdims=True))
        out_ref[...] = logits - lse


def run_bilstm_layer(x, wa, wb, whh, bias, *, h, tt, t_valid, head=None):
    """x: (t_pad, bp, D) layer input. Forward reads block b, backward reads block nb-1-b.
    Returns (t_pad, bp, 2H) combined [hf | hb(reversed time)] sequence, or (bp, 2H) log-probs
    if `head` (fc1w, fc1b, fc2w, fc2b) is given."""
    t_pad, bp, d = x.shape
    nb = t_pad // tt
    need_mask = (t_valid != t_pad)
    in_specs = [
        pl.BlockSpec((tt, bp, d), lambda b: (b, 0, 0)),               # forward time block
        pl.BlockSpec((tt, bp, d), lambda b: (nb - 1 - b, 0, 0)),      # backward time block
        pl.BlockSpec(wa.shape, lambda b: (0, 0)),
        pl.BlockSpec(wb.shape, lambda b: (0, 0)),
        pl.BlockSpec(whh.shape, lambda b: (0, 0)),
        pl.BlockSpec(bias.shape, lambda b: (0, 0)),
    ]
    scratch = [pltpu.VMEM((bp, 2 * h), jnp.float32),        # h = [hf | hb]
               pltpu.VMEM((bp, 2 * h), jnp.float32),        # c = [cf | cb]
               pltpu.VMEM((tt, bp, 8 * h), jnp.float32),    # projected gates (fwd block)
               pltpu.VMEM((tt, bp, 8 * h), jnp.float32)]    # projected gates (bwd block)
    common = dict(tt=tt, h=h, t_valid=t_valid, t_pad=t_pad, need_mask=need_mask)

    if head is None:
        kernel = functools.partial(_bilstm_seq_kernel, **common)
        out_shape = jax.ShapeDtypeStruct((t_pad, bp, 2 * h), jnp.float32)
        out_specs = pl.BlockSpec((tt, bp, 2 * h), lambda b: (b, 0, 0))   # lane-dense 128-wide
        args = (x, x, wa, wb, whh, bias)
    else:
        kernel = functools.partial(_bilstm_head_kernel, **common, nc=NUM_CLASSES)
        out_shape = jax.ShapeDtypeStruct((bp, 2 * h), jnp.float32)       # logits padded to 128
        out_specs = pl.BlockSpec((bp, 2 * h), lambda b: (0, 0))
        in_specs = in_specs + [pl.BlockSpec(w.shape, lambda b: (0, 0)) for w in head]
        args = (x, x, wa, wb, whh, bias) + tuple(head)

    return pl.pallas_call(
        kernel,
        out_shape=out_shape,
        grid_spec=pltpu.PrefetchScalarGridSpec(
            num_scalar_prefetch=0, grid=(nb,),
            in_specs=in_specs, out_specs=out_specs,
            scratch_shapes=scratch),
        compiler_params=pltpu.CompilerParams(dimension_semantics=("arbitrary",)),
    )(*args)


# ---------------------------------------------------------------------------
# Model forward (glue + kernels)
# ---------------------------------------------------------------------------
def imdb_forward_pallas(tokens, kp):
    B, T = tokens.shape
    bp = max(8, ((B + 7) // 8) * 8)                       # batch -> sublane multiple
    t_pad = max(TT, ((T + TT - 1) // TT) * TT)            # time -> block multiple (masked in-kernel)
    tokens_p = jnp.pad(tokens, ((0, bp - B), (0, t_pad - T)), constant_values=PAD)

    # Time-major embedding gather: transpose only the tiny int token matrix, never the embeddings.
    emb = jnp.take(kp["emb"], tokens_p.T, axis=0).astype(jnp.float32)   # (t_pad, bp, 256)

    H = HIDDEN
    # layer 0: fused projection + bidirectional recurrence -> (t_pad, bp, 128) [hf | hb(rev)]
    cmb0 = run_bilstm_layer(emb, kp["l0_wa"], kp["l0_wb"], kp["l0_whh"], kp["l0_b"],
                            h=H, tt=TT, t_valid=T)
    # layer 1: fused projection + recurrence + classifier head -> (bp, 128) log-probs
    logp = run_bilstm_layer(cmb0, kp["l1_wa"], kp["l1_wb"], kp["l1_whh"], kp["l1_b"],
                            h=H, tt=TT, t_valid=T,
                            head=(kp["fc1_w"], kp["fc1_b"], kp["fc2_w"], kp["fc2_b"]))
    return logp[:B, :NUM_CLASSES]


# ---------------------------------------------------------------------------
# Pure-JAX reference (torch-shaped params, for numerical cross-check)
# ---------------------------------------------------------------------------
def _lstm_seq_ref(x_seq, lp):
    T, B, _ = x_seq.shape
    h = jnp.zeros((B, HIDDEN), jnp.float32)
    c = jnp.zeros((B, HIDDEN), jnp.float32)
    hs = []
    for t in range(T):
        gates = x_seq[t] @ lp["w_ih"].T + h @ lp["w_hh"].T + lp["b_ih"] + lp["b_hh"]
        i, f, g, o = jnp.split(gates, 4, axis=-1)
        c = jax.nn.sigmoid(f) * c + jax.nn.sigmoid(i) * jnp.tanh(g)
        h = jax.nn.sigmoid(o) * jnp.tanh(c)
        hs.append(h)
    return jnp.stack(hs, axis=0)


def imdb_forward_ref(tokens, params):
    emb = jnp.take(params["embedding"], tokens, axis=0)
    layer_in = jnp.transpose(emb, (1, 0, 2)).astype(jnp.float32)
    finals = {}
    for layer in range(NUM_LAYERS):
        outs = []
        for name, rev in (("fwd", False), ("bwd", True)):
            key = f"l{layer}_{name}"
            xin = jnp.flip(layer_in, axis=0) if rev else layer_in
            h_seq = _lstm_seq_ref(xin, params[key])
            finals[key] = h_seq[-1]
            outs.append(jnp.flip(h_seq, axis=0) if rev else h_seq)
        layer_in = jnp.concatenate(outs, axis=-1)
    lstm_out = jnp.concatenate(
        [finals[f"l{NUM_LAYERS-1}_bwd"], finals[f"l{NUM_LAYERS-1}_fwd"]], axis=-1)
    h1 = jnp.maximum(lstm_out @ params["fc1_w"].T + params["fc1_b"], 0.0)
    logits = h1 @ params["fc2_w"].T + params["fc2_b"]
    return jax.nn.log_softmax(logits, axis=-1)


# ---------------------------------------------------------------------------
# Parameter init (torch.nn.LSTM / Linear shapes) + packing into kernel layouts
# ---------------------------------------------------------------------------
def init_params(key):
    params = {}
    ks = iter(jax.random.split(key, 64))
    emb = jax.random.normal(next(ks), (VOCAB, EMBED), jnp.float32) * 0.1
    params["embedding"] = emb.at[PAD].set(0.0)                         # padding_idx row = 0

    bound = 1.0 / np.sqrt(HIDDEN)
    for layer in range(NUM_LAYERS):
        d_in = EMBED if layer == 0 else 2 * HIDDEN
        for name in ("fwd", "bwd"):
            params[f"l{layer}_{name}"] = dict(
                w_ih=jax.random.uniform(next(ks), (4 * HIDDEN, d_in), jnp.float32, -bound, bound),
                w_hh=jax.random.uniform(next(ks), (4 * HIDDEN, HIDDEN), jnp.float32, -bound, bound),
                b_ih=jax.random.uniform(next(ks), (4 * HIDDEN,), jnp.float32, -bound, bound),
                b_hh=jax.random.uniform(next(ks), (4 * HIDDEN,), jnp.float32, -bound, bound),
            )

    b1 = 1.0 / np.sqrt(2 * HIDDEN)
    params["fc1_w"] = jax.random.uniform(next(ks), (HIDDEN, 2 * HIDDEN), jnp.float32, -b1, b1)
    params["fc1_b"] = jax.random.uniform(next(ks), (HIDDEN,), jnp.float32, -b1, b1)
    b2 = 1.0 / np.sqrt(HIDDEN)
    params["fc2_w"] = jax.random.uniform(next(ks), (NUM_CLASSES, HIDDEN), jnp.float32, -b2, b2)
    params["fc2_b"] = jax.random.uniform(next(ks), (NUM_CLASSES,), jnp.float32, -b2, b2)
    return params


def prepare_params(p):
    """Pack torch-shaped params into the per-gate-interleaved 512-lane layouts the kernels use.

    Gate column layout (512 lanes): [i_f|i_b, f_f|f_b, g_f|g_b, o_f|o_b] (64 lanes each)."""
    H = HIDDEN
    kp = {"emb": jnp.pad(p["embedding"], ((0, 0), (0, EMBED_PAD - EMBED)))}

    def gate_slices(w):               # torch (4H, D) -> list of 4 transposed (D, H) gate blocks
        return [w[g * H:(g + 1) * H].T for g in range(4)]

    def pack(n_rows, *placements):
        """placements: (row_start, half 0=fwd/1=bwd, list of 4 (rows,H) per-gate blocks)."""
        out = jnp.zeros((n_rows, 8 * H), jnp.float32)
        for row0, half, blocks in placements:
            for g in range(4):
                c0 = 2 * H * g + half * H
                out = out.at[row0:row0 + blocks[g].shape[0], c0:c0 + H].set(blocks[g])
        return out

    def pack_bias(lf, lb):
        bf = lf["b_ih"] + lf["b_hh"]
        bb = lb["b_ih"] + lb["b_hh"]
        out = jnp.zeros((1, 8 * H), jnp.float32)
        for g in range(4):
            out = out.at[0, 2 * H * g:2 * H * g + H].set(bf[g * H:(g + 1) * H])
            out = out.at[0, 2 * H * g + H:2 * H * (g + 1)].set(bb[g * H:(g + 1) * H])
        return out

    l0f, l0b = p["l0_fwd"], p["l0_bwd"]
    l1f, l1b = p["l1_fwd"], p["l1_bwd"]

    # layer 0: wa multiplies the forward-time block (feeds fwd gate columns only),
    #          wb multiplies the backward-time block (bwd columns only). Rows padded 200 -> 256.
    kp["l0_wa"] = pack(EMBED_PAD, (0, 0, gate_slices(l0f["w_ih"])))
    kp["l0_wb"] = pack(EMBED_PAD, (0, 1, gate_slices(l0b["w_ih"])))
    kp["l0_b"] = pack_bias(l0f, l0b)

    # recurrent weights: state rows [hf(64) | hb(64)] -> fwd / bwd gate columns (block diagonal).
    kp["l0_whh"] = pack(2 * H, (0, 0, gate_slices(l0f["w_hh"])), (H, 1, gate_slices(l0b["w_hh"])))
    kp["l1_whh"] = pack(2 * H, (0, 0, gate_slices(l1f["w_hh"])), (H, 1, gate_slices(l1b["w_hh"])))

    # layer 1 input: layer-0 output cmb[j] = [hf0(j) | hb0(Tpad-1-j)].
    #   xa = cmb at the fwd time t_f : lanes[:64]=hf0(t_f) -> fwd gates, lanes[64:]=hb0(t_b) -> bwd gates
    #   xb = cmb at the bwd time t_b : lanes[:64]=hf0(t_b) -> bwd gates, lanes[64:]=hb0(t_f) -> fwd gates
    sf = gate_slices(l1f["w_ih"])     # (128, 64) each; rows :64 = hf features, rows 64: = hb features
    sb = gate_slices(l1b["w_ih"])
    kp["l1_wa"] = pack(2 * H, (0, 0, [s[:H] for s in sf]), (H, 1, [s[H:] for s in sb]))
    kp["l1_wb"] = pack(2 * H, (0, 1, [s[:H] for s in sb]), (H, 0, [s[H:] for s in sf]))
    kp["l1_b"] = pack_bias(l1f, l1b)

    # head: fold torch's [h_n[-1](bwd) | h_n[-2](fwd)] concat into fc1 (kernel feeds [hf | hb]).
    fc1t = p["fc1_w"].T                                                # (2H, H)
    kp["fc1_w"] = jnp.concatenate([fc1t[H:], fc1t[:H]], axis=0)
    kp["fc1_b"] = p["fc1_b"].reshape(1, H)
    kp["fc2_w"] = jnp.zeros((H, 2 * H), jnp.float32).at[:, :NUM_CLASSES].set(p["fc2_w"].T)
    kp["fc2_b"] = jnp.zeros((1, 2 * H), jnp.float32).at[0, :NUM_CLASSES].set(p["fc2_b"])
    return kp


if __name__ == "__main__":
    key = jax.random.PRNGKey(0)
    key_p, key_t = jax.random.split(key)
    params = init_params(key_p)
    packed = prepare_params(params)

    fwd = jax.jit(imdb_forward_pallas)

    B = 2
    for T in (8, 11):   # exact time-block multiple AND the padded/masked path
        tokens = jax.random.randint(jax.random.fold_in(key_t, T), (B, T), 0, VOCAB,
                                    dtype=jnp.int32)
        out = jax.block_until_ready(fwd(tokens, packed))
        ref = jax.block_until_ready(imdb_forward_ref(tokens, params))
        np.testing.assert_allclose(np.asarray(out), np.asarray(ref), atol=2e-4, rtol=2e-4)
        assert out.shape == (B, NUM_CLASSES)

    print("KERNEL_OK")
</pallas_src>

<mosaic_0001>
module attributes {stable_mosaic.version = 11 : i64} {
  func.func @_bilstm_head_kernel(%arg0: i32, %arg1: memref<8x8x128xf32, #tpu.memory_space<vmem>>, %arg2: memref<8x8x128xf32, #tpu.memory_space<vmem>>, %arg3: memref<128x512xf32, #tpu.memory_space<vmem>>, %arg4: memref<128x512xf32, #tpu.memory_space<vmem>>, %arg5: memref<128x512xf32, #tpu.memory_space<vmem>>, %arg6: memref<1x512xf32, #tpu.memory_space<vmem>>, %arg7: memref<128x64xf32, #tpu.memory_space<vmem>>, %arg8: memref<1x64xf32, #tpu.memory_space<vmem>>, %arg9: memref<64x128xf32, #tpu.memory_space<vmem>>, %arg10: memref<1x128xf32, #tpu.memory_space<vmem>>, %arg11: memref<8x128xf32, #tpu.memory_space<vmem>>, %arg12: memref<8x128xf32, #tpu.memory_space<vmem>>, %arg13: memref<8x128xf32, #tpu.memory_space<vmem>>, %arg14: memref<8x8x512xf32, #tpu.memory_space<vmem>>, %arg15: memref<8x8x512xf32, #tpu.memory_space<vmem>>) attributes {dimension_semantics = [#tpu.dimension_semantics<arbitrary>], iteration_bounds = array<i64: 1>, scalar_prefetch = 0 : i64, scratch_operands = 4 : i64, tpu.core_type = #tpu.core_type<tc>, window_params = [{transform_indices = @transform_0, window_bounds = array<i64: 8, 8, 128>}, {transform_indices = @transform_1, window_bounds = array<i64: 8, 8, 128>}, {pipeline_mode = #tpu.pipeline_mode<synchronous>, transform_indices = @transform_2, window_bounds = array<i64: 128, 512>}, {pipeline_mode = #tpu.pipeline_mode<synchronous>, transform_indices = @transform_3, window_bounds = array<i64: 128, 512>}, {pipeline_mode = #tpu.pipeline_mode<synchronous>, transform_indices = @transform_4, window_bounds = array<i64: 128, 512>}, {pipeline_mode = #tpu.pipeline_mode<synchronous>, transform_indices = @transform_5, window_bounds = array<i64: 1, 512>}, {pipeline_mode = #tpu.pipeline_mode<synchronous>, transform_indices = @transform_6, window_bounds = array<i64: 128, 64>}, {pipeline_mode = #tpu.pipeline_mode<synchronous>, transform_indices = @transform_7, window_bounds = array<i64: 1, 64>}, {pipeline_mode = #tpu.pipeline_mode<synchronous>, transform_indices = @transform_8, window_bounds = array<i64: 64, 128>}, {pipeline_mode = #tpu.pipeline_mode<synchronous>, transform_indices = @transform_9, window_bounds = array<i64: 1, 128>}, {pipeline_mode = #tpu.pipeline_mode<synchronous>, transform_indices = @transform_10, window_bounds = array<i64: 8, 128>}]} {
    %c0_i32 = arith.constant 0 : i32
    %0 = arith.cmpi eq, %arg0, %c0_i32 : i32
    %1 = arith.extui %0 : i1 to i32
    %c0_i32_0 = arith.constant 0 : i32
    %2 = arith.cmpi ne, %1, %c0_i32_0 : i32
    scf.if %2 {
      %cst_174 = arith.constant 0.000000e+00 : f32
      %318 = vector.broadcast %cst_174 : f32 to vector<8x128xf32>
      %c0_175 = arith.constant 0 : index
      %c0_176 = arith.constant 0 : index
      %319 = vector.load %arg12[%c0_175, %c0_176] : memref<8x128xf32, #tpu.memory_space<vmem>>, vector<8x128xf32>
      tpu.vector_store %arg12[%c0_175, %c0_176], %318 {strides = array<i32>} : memref<8x128xf32, #tpu.memory_space<vmem>>, vector<8x128xf32>,
      %cst_177 = arith.constant 0.000000e+00 : f32
      %320 = vector.broadcast %cst_177 : f32 to vector<8x128xf32>
      %c0_178 = arith.constant 0 : index
      %c0_179 = arith.constant 0 : index
      %321 = vector.load %arg13[%c0_178, %c0_179] : memref<8x128xf32, #tpu.memory_space<vmem>>, vector<8x128xf32>
      tpu.vector_store %arg13[%c0_178, %c0_179], %320 {strides = array<i32>} : memref<8x128xf32, #tpu.memory_space<vmem>>, vector<8x128xf32>,
    } else {
    }
    %c0 = arith.constant 0 : index
    %c0_1 = arith.constant 0 : index
    %c0_2 = arith.constant 0 : index
    %3 = vector.load %arg1[%c0, %c0_1, %c0_2] : memref<8x8x128xf32, #tpu.memory_space<vmem>>, vector<8x8x128xf32>
    %4 = vector.shape_cast %3 : vector<8x8x128xf32> to vector<64x128xf32>
    %c0_3 = arith.constant 0 : index
    %c0_4 = arith.constant 0 : index
    %5 = vector.load %arg3[%c0_3, %c0_4] : memref<128x512xf32, #tpu.memory_space<vmem>>, vector<128x512xf32>
    %cst = arith.constant dense<0.000000e+00> : vector<64x512xf32>
    %6 = tpu.matmul %4, %5, %cst {dimension_numbers = #tpu.dot_dimension_numbers<[1], [0], [0], [1], [0, 0, 1, 1], [], []>} : vector<64x128xf32>, vector<128x512xf32>, vector<64x512xf32> -> vector<64x512xf32>
    %7 = vector.shape_cast %6 : vector<64x512xf32> to vector<8x8x512xf32>
    %c0_5 = arith.constant 0 : index
    %c0_6 = arith.constant 0 : index
    %8 = vector.load %arg6[%c0_5, %c0_6] : memref<1x512xf32, #tpu.memory_space<vmem>>, vector<1x512xf32>
    %9 = vector.shape_cast %8 : vector<1x512xf32> to vector<1x1x512xf32>
    %10 = vector.broadcast %9 : vector<1x1x512xf32> to vector<8x8x512xf32>
    %11 = arith.addf %7, %10 : vector<8x8x512xf32>
    %c0_7 = arith.constant 0 : index
    %c0_8 = arith.constant 0 : index
    %c0_9 = arith.constant 0 : index
    %12 = vector.load %arg14[%c0_7, %c0_8, %c0_9] : memref<8x8x512xf32, #tpu.memory_space<vmem>>, vector<8x8x512xf32>
    tpu.vector_store %arg14[%c0_7, %c0_8, %c0_9], %11 {strides = array<i32>} : memref<8x8x512xf32, #tpu.memory_space<vmem>>, vector<8x8x512xf32>,
    %c0_10 = arith.constant 0 : index
    %c0_11 = arith.constant 0 : index
    %c0_12 = arith.constant 0 : index
    %13 = vector.load %arg2[%c0_10, %c0_11, %c0_12] : memref<8x8x128xf32, #tpu.memory_space<vmem>>, vector<8x8x128xf32>
    %14 = vector.shape_cast %13 : vector<8x8x128xf32> to vector<64x128xf32>
    %c0_13 = arith.constant 0 : index
    %c0_14 = arith.constant 0 : index
    %15 = vector.load %arg4[%c0_13, %c0_14] : memref<128x512xf32, #tpu.memory_space<vmem>>, vector<128x512xf32>
    %cst_15 = arith.constant dense<0.000000e+00> : vector<64x512xf32>
    %16 = tpu.matmul %14, %15, %cst_15 {dimension_numbers = #tpu.dot_dimension_numbers<[1], [0], [0], [1], [0, 0, 1, 1], [], []>} : vector<64x128xf32>, vector<128x512xf32>, vector<64x512xf32> -> vector<64x512xf32>
    %17 = vector.shape_cast %16 : vector<64x512xf32> to vector<8x8x512xf32>
    %c0_16 = arith.constant 0 : index
    %c0_17 = arith.constant 0 : index
    %c0_18 = arith.constant 0 : index
    %18 = vector.load %arg15[%c0_16, %c0_17, %c0_18] : memref<8x8x512xf32, #tpu.memory_space<vmem>>, vector<8x8x512xf32>
    tpu.vector_store %arg15[%c0_16, %c0_17, %c0_18], %17 {strides = array<i32>} : memref<8x8x512xf32, #tpu.memory_space<vmem>>, vector<8x8x512xf32>,
    %c0_19 = arith.constant 0 : index
    %c0_20 = arith.constant 0 : index
    %19 = vector.load %arg12[%c0_19, %c0_20] : memref<8x128xf32, #tpu.memory_space<vmem>>, vector<8x128xf32>
    %c0_21 = arith.constant 0 : index
    %c0_22 = arith.constant 0 : index
    %20 = vector.load %arg5[%c0_21, %c0_22] : memref<128x512xf32, #tpu.memory_space<vmem>>, vector<128x512xf32>
    %cst_23 = arith.constant dense<0.000000e+00> : vector<8x512xf32>
    %21 = tpu.matmul %19, %20, %cst_23 {dimension_numbers = #tpu.dot_dimension_numbers<[1], [0], [0], [1], [0, 0, 1, 1], [], []>} : vector<8x128xf32>, vector<128x512xf32>, vector<8x512xf32> -> vector<8x512xf32>
    %c0_24 = arith.constant 0 : index
    %c0_25 = arith.constant 0 : index
    %c0_26 = arith.constant 0 : index
    %22 = vector.load %arg14[%c0_24, %c0_25, %c0_26] : memref<8x8x512xf32, #tpu.memory_space<vmem>>, vector<1x8x512xf32>
    %23 = vector.shape_cast %22 : vector<1x8x512xf32> to vector<8x512xf32>
    %c7 = arith.constant 7 : index
    %c0_27 = arith.constant 0 : index
    %c0_28 = arith.constant 0 : index
    %24 = vector.load %arg15[%c7, %c0_27, %c0_28] : memref<8x8x512xf32, #tpu.memory_space<vmem>>, vector<1x8x512xf32>
    %25 = vector.shape_cast %24 : vector<1x8x512xf32> to vector<8x512xf32>
    %26 = arith.addf %23, %25 : vector<8x512xf32>
    %27 = arith.addf %26, %21 : vector<8x512xf32>
    %c0_29 = arith.constant 0 : index
    %c0_30 = arith.constant 0 : index
    %28 = vector.load %arg13[%c0_29, %c0_30] : memref<8x128xf32, #tpu.memory_space<vmem>>, vector<8x128xf32>
    %29 = vector.extract_strided_slice %27 {offsets = [0, 0], sizes = [8, 128], strides = [1, 1]} : vector<8x512xf32> to vector<8x128xf32>
    %30 = arith.negf %29 : vector<8x128xf32>
    %31 = math.exp %30 : vector<8x128xf32>
    %cst_31 = arith.constant 1.000000e+00 : f32
    %32 = vector.broadcast %cst_31 : f32 to vector<8x128xf32>
    %33 = arith.addf %32, %31 : vector<8x128xf32>
    %34 = arith.divf %32, %33 : vector<8x128xf32>
    %35 = vector.extract_strided_slice %27 {offsets = [0, 128], sizes = [8, 128], strides = [1, 1]} : vector<8x512xf32> to vector<8x128xf32>
    %36 = arith.negf %35 : vector<8x128xf32>
    %37 = math.exp %36 : vector<8x128xf32>
    %cst_32 = arith.constant 1.000000e+00 : f32
    %38 = vector.broadcast %cst_32 : f32 to vector<8x128xf32>
    %39 = arith.addf %38, %37 : vector<8x128xf32>
    %40 = arith.divf %38, %39 : vector<8x128xf32>
    %41 = vector.extract_strided_slice %27 {offsets = [0, 256], sizes = [8, 128], strides = [1, 1]} : vector<8x512xf32> to vector<8x128xf32>
    %42 = math.tanh %41 : vector<8x128xf32>
    %43 = vector.extract_strided_slice %27 {offsets = [0, 384], sizes = [8, 128], strides = [1, 1]} : vector<8x512xf32> to vector<8x128xf32>
    %44 = arith.negf %43 : vector<8x128xf32>
    %45 = math.exp %44 : vector<8x128xf32>
    %cst_33 = arith.constant 1.000000e+00 : f32
    %46 = vector.broadcast %cst_33 : f32 to vector<8x128xf32>
    %47 = arith.addf %46, %45 : vector<8x128xf32>
    %48 = arith.divf %46, %47 : vector<8x128xf32>
    %49 = arith.mulf %40, %28 : vector<8x128xf32>
    %50 = arith.mulf %34, %42 : vector<8x128xf32>
    %51 = arith.addf %49, %50 : vector<8x128xf32>
    %52 = math.tanh %51 : vector<8x128xf32>
    %53 = arith.mulf %48, %52 : vector<8x128xf32>
    %c0_34 = arith.constant 0 : index
    %c0_35 = arith.constant 0 : index
    %54 = vector.load %arg12[%c0_34, %c0_35] : memref<8x128xf32, #tpu.memory_space<vmem>>, vector<8x128xf32>
    tpu.vector_store %arg12[%c0_34, %c0_35], %53 {strides = array<i32>} : memref<8x128xf32, #tpu.memory_space<vmem>>, vector<8x128xf32>,
    %c0_36 = arith.constant 0 : index
    %c0_37 = arith.constant 0 : index
    %55 = vector.load %arg13[%c0_36, %c0_37] : memref<8x128xf32, #tpu.memory_space<vmem>>, vector<8x128xf32>
    tpu.vector_store %arg13[%c0_36, %c0_37], %51 {strides = array<i32>} : memref<8x128xf32, #tpu.memory_space<vmem>>, vector<8x128xf32>,
    %c0_38 = arith.constant 0 : index
    %c0_39 = arith.constant 0 : index
    %56 = vector.load %arg12[%c0_38, %c0_39] : memref<8x128xf32, #tpu.memory_space<vmem>>, vector<8x128xf32>
    %c0_40 = arith.constant 0 : index
    %c0_41 = arith.constant 0 : index
    %57 = vector.load %arg5[%c0_40, %c0_41] : memref<128x512xf32, #tpu.memory_space<vmem>>, vector<128x512xf32>
    %cst_42 = arith.constant dense<0.000000e+00> : vector<8x512xf32>
    %58 = tpu.matmul %56, %57, %cst_42 {dimension_numbers = #tpu.dot_dimension_numbers<[1], [0], [0], [1], [0, 0, 1, 1], [], []>} : vector<8x128xf32>, vector<128x512xf32>, vector<8x512xf32> -> vector<8x512xf32>
    %c1 = arith.constant 1 : index
    %c0_43 = arith.constant 0 : index
    %c0_44 = arith.constant 0 : index
    %59 = vector.load %arg14[%c1, %c0_43, %c0_44] : memref<8x8x512xf32, #tpu.memory_space<vmem>>, vector<1x8x512xf32>
    %60 = vector.shape_cast %59 : vector<1x8x512xf32> to vector<8x512xf32>
    %c6 = arith.constant 6 : index
    %c0_45 = arith.constant 0 : index
    %c0_46 = arith.constant 0 : index
    %61 = vector.load %arg15[%c6, %c0_45, %c0_46] : memref<8x8x512xf32, #tpu.memory_space<vmem>>, vector<1x8x512xf32>
    %62 = vector.shape_cast %61 : vector<1x8x512xf32> to vector<8x512xf32>
    %63 = arith.addf %60, %62 : vector<8x512xf32>
    %64 = arith.addf %63, %58 : vector<8x512xf32>
    %c0_47 = arith.constant 0 : index
    %c0_48 = arith.constant 0 : index
    %65 = vector.load %arg13[%c0_47, %c0_48] : memref<8x128xf32, #tpu.memory_space<vmem>>, vector<8x128xf32>
    %66 = vector.extract_strided_slice %64 {offsets = [0, 0], sizes = [8, 128], strides = [1, 1]} : vector<8x512xf32> to vector<8x128xf32>
    %67 = arith.negf %66 : vector<8x128xf32>
    %68 = math.exp %67 : vector<8x128xf32>
    %cst_49 = arith.constant 1.000000e+00 : f32
    %69 = vector.broadcast %cst_49 : f32 to vector<8x128xf32>
    %70 = arith.addf %69, %68 : vector<8x128xf32>
    %71 = arith.divf %69, %70 : vector<8x128xf32>
    %72 = vector.extract_strided_slice %64 {offsets = [0, 128], sizes = [8, 128], strides = [1, 1]} : vector<8x512xf32> to vector<8x128xf32>
    %73 = arith.negf %72 : vector<8x128xf32>
    %74 = math.exp %73 : vector<8x128xf32>
    %cst_50 = arith.constant 1.000000e+00 : f32
    %75 = vector.broadcast %cst_50 : f32 to vector<8x128xf32>
    %76 = arith.addf %75, %74 : vector<8x128xf32>
    %77 = arith.divf %75, %76 : vector<8x128xf32>
    %78 = vector.extract_strided_slice %64 {offsets = [0, 256], sizes = [8, 128], strides = [1, 1]} : vector<8x512xf32> to vector<8x128xf32>
    %79 = math.tanh %78 : vector<8x128xf32>
    %80 = vector.extract_strided_slice %64 {offsets = [0, 384], sizes = [8, 128], strides = [1, 1]} : vector<8x512xf32> to vector<8x128xf32>
    %81 = arith.negf %80 : vector<8x128xf32>
    %82 = math.exp %81 : vector<8x128xf32>
    %cst_51 = arith.constant 1.000000e+00 : f32
    %83 = vector.broadcast %cst_51 : f32 to vector<8x128xf32>
    %84 = arith.addf %83, %82 : vector<8x128xf32>
    %85 = arith.divf %83, %84 : vector<8x128xf32>
    %86 = arith.mulf %77, %65 : vector<8x128xf32>
    %87 = arith.mulf %71, %79 : vector<8x128xf32>
    %88 = arith.addf %86, %87 : vector<8x128xf32>
    %89 = math.tanh %88 : vector<8x128xf32>
    %90 = arith.mulf %85, %89 : vector<8x128xf32>
    %c0_52 = arith.constant 0 : index
    %c0_53 = arith.constant 0 : index
    %91 = vector.load %arg12[%c0_52, %c0_53] : memref<8x128xf32, #tpu.memory_space<vmem>>, vector<8x128xf32>
    tpu.vector_store %arg12[%c0_52, %c0_53], %90 {strides = array<i32>} : memref<8x128xf32, #tpu.memory_space<vmem>>, vector<8x128xf32>,
    %c0_54 = arith.constant 0 : index
    %c0_55 = arith.constant 0 : index
    %92 = vector.load %arg13[%c0_54, %c0_55] : memref<8x128xf32, #tpu.memory_space<vmem>>, vector<8x128xf32>
    tpu.vector_store %arg13[%c0_54, %c0_55], %88 {strides = array<i32>} : memref<8x128xf32, #tpu.memory_space<vmem>>, vector<8x128xf32>,
    %c0_56 = arith.constant 0 : index
    %c0_57 = arith.constant 0 : index
    %93 = vector.load %arg12[%c0_56, %c0_57] : memref<8x128xf32, #tpu.memory_space<vmem>>, vector<8x128xf32>
    %c0_58 = arith.constant 0 : index
    %c0_59 = arith.constant 0 : index
    %94 = vector.load %arg5[%c0_58, %c0_59] : memref<128x512xf32, #tpu.memory_space<vmem>>, vector<128x512xf32>
    %cst_60 = arith.constant dense<0.000000e+00> : vector<8x512xf32>
    %95 = tpu.matmul %93, %94, %cst_60 {dimension_numbers = #tpu.dot_dimension_numbers<[1], [0], [0], [1], [0, 0, 1, 1], [], []>} : vector<8x128xf32>, vector<128x512xf32>, vector<8x512xf32> -> vector<8x512xf32>
    %c2 = arith.constant 2 : index
    %c0_61 = arith.constant 0 : index
    %c0_62 = arith.constant 0 : index
    %96 = vector.load %arg14[%c2, %c0_61, %c0_62] : memref<8x8x512xf32, #tpu.memory_space<vmem>>, vector<1x8x512xf32>
    %97 = vector.shape_cast %96 : vector<1x8x512xf32> to vector<8x512xf32>
    %c5 = arith.constant 5 : index
    %c0_63 = arith.constant 0 : index
    %c0_64 = arith.constant 0 : index
    %98 = vector.load %arg15[%c5, %c0_63, %c0_64] : memref<8x8x512xf32, #tpu.memory_space<vmem>>, vector<1x8x512xf32>
    %99 = vector.shape_cast %98 : vector<1x8x512xf32> to vector<8x512xf32>
    %100 = arith.addf %97, %99 : vector<8x512xf32>
    %101 = arith.addf %100, %95 : vector<8x512xf32>
    %c0_65 = arith.constant 0 : index
    %c0_66 = arith.constant 0 : index
    %102 = vector.load %arg13[%c0_65, %c0_66] : memref<8x128xf32, #tpu.memory_space<vmem>>, vector<8x128xf32>
    %103 = vector.extract_strided_slice %101 {offsets = [0, 0], sizes = [8, 128], strides = [1, 1]} : vector<8x512xf32> to vector<8x128xf32>
    %104 = arith.negf %103 : vector<8x128xf32>
    %105 = math.exp %104 : vector<8x128xf32>
    %cst_67 = arith.constant 1.000000e+00 : f32
    %106 = vector.broadcast %cst_67 : f32 to vector<8x128xf32>
    %107 = arith.addf %106, %105 : vector<8x128xf32>
    %108 = arith.divf %106, %107 : vector<8x128xf32>
    %109 = vector.extract_strided_slice %101 {offsets = [0, 128], sizes = [8, 128], strides = [1, 1]} : vector<8x512xf32> to vector<8x128xf32>
    %110 = arith.negf %109 : vector<8x128xf32>
    %111 = math.exp %110 : vector<8x128xf32>
    %cst_68 = arith.constant 1.000000e+00 : f32
    %112 = vector.broadcast %cst_68 : f32 to vector<8x128xf32>
    %113 = arith.addf %112, %111 : vector<8x128xf32>
    %114 = arith.divf %112, %113 : vector<8x128xf32>
    %115 = vector.extract_strided_slice %101 {offsets = [0, 256], sizes = [8, 128], strides = [1, 1]} : vector<8x512xf32> to vector<8x128xf32>
    %116 = math.tanh %115 : vector<8x128xf32>
    %117 = vector.extract_strided_slice %101 {offsets = [0, 384], sizes = [8, 128], strides = [1, 1]} : vector<8x512xf32> to vector<8x128xf32>
    %118 = arith.negf %117 : vector<8x128xf32>
    %119 = math.exp %118 : vector<8x128xf32>
    %cst_69 = arith.constant 1.000000e+00 : f32
    %120 = vector.broadcast %cst_69 : f32 to vector<8x128xf32>
    %121 = arith.addf %120, %119 : vector<8x128xf32>
    %122 = arith.divf %120, %121 : vector<8x128xf32>
    %123 = arith.mulf %114, %102 : vector<8x128xf32>
    %124 = arith.mulf %108, %116 : vector<8x128xf32>
    %125 = arith.addf %123, %124 : vector<8x128xf32>
    %126 = math.tanh %125 : vector<8x128xf32>
    %127 = arith.mulf %122, %126 : vector<8x128xf32>
    %c0_70 = arith.constant 0 : index
    %c0_71 = arith.constant 0 : index
    %128 = vector.load %arg12[%c0_70, %c0_71] : memref<8x128xf32, #tpu.memory_space<vmem>>, vector<8x128xf32>
    tpu.vector_store %arg12[%c0_70, %c0_71], %127 {strides = array<i32>} : memref<8x128xf32, #tpu.memory_space<vmem>>, vector<8x128xf32>,
    %c0_72 = arith.constant 0 : index
    %c0_73 = arith.constant 0 : index
    %129 = vector.load %arg13[%c0_72, %c0_73] : memref<8x128xf32, #tpu.memory_space<vmem>>, vector<8x128xf32>
    tpu.vector_store %arg13[%c0_72, %c0_73], %125 {strides = array<i32>} : memref<8x128xf32, #tpu.memory_space<vmem>>, vector<8x128xf32>,
    %c0_74 = arith.constant 0 : index
    %c0_75 = arith.constant 0 : index
    %130 = vector.load %arg12[%c0_74, %c0_75] : memref<8x128xf32, #tpu.memory_space<vmem>>, vector<8x128xf32>
    %c0_76 = arith.constant 0 : index
    %c0_77 = arith.constant 0 : index
    %131 = vector.load %arg5[%c0_76, %c0_77] : memref<128x512xf32, #tpu.memory_space<vmem>>, vector<128x512xf32>
    %cst_78 = arith.constant dense<0.000000e+00> : vector<8x512xf32>
    %132 = tpu.matmul %130, %131, %cst_78 {dimension_numbers = #tpu.dot_dimension_numbers<[1], [0], [0], [1], [0, 0, 1, 1], [], []>} : vector<8x128xf32>, vector<128x512xf32>, vector<8x512xf32> -> vector<8x512xf32>
    %c3 = arith.constant 3 : index
    %c0_79 = arith.constant 0 : index
    %c0_80 = arith.constant 0 : index
    %133 = vector.load %arg14[%c3, %c0_79, %c0_80] : memref<8x8x512xf32, #tpu.memory_space<vmem>>, vector<1x8x512xf32>
    %134 = vector.shape_cast %133 : vector<1x8x512xf32> to vector<8x512xf32>
    %c4 = arith.constant 4 : index
    %c0_81 = arith.constant 0 : index
    %c0_82 = arith.constant 0 : index
    %135 = vector.load %arg15[%c4, %c0_81, %c0_82] : memref<8x8x512xf32, #tpu.memory_space<vmem>>, vector<1x8x512xf32>
    %136 = vector.shape_cast %135 : vector<1x8x512xf32> to vector<8x512xf32>
    %137 = arith.addf %134, %136 : vector<8x512xf32>
    %138 = arith.addf %137, %132 : vector<8x512xf32>
    %c0_83 = arith.constant 0 : index
    %c0_84 = arith.constant 0 : index
    %139 = vector.load %arg13[%c0_83, %c0_84] : memref<8x128xf32, #tpu.memory_space<vmem>>, vector<8x128xf32>
    %140 = vector.extract_strided_slice %138 {offsets = [0, 0], sizes = [8, 128], strides = [1, 1]} : vector<8x512xf32> to vector<8x128xf32>
    %141 = arith.negf %140 : vector<8x128xf32>
    %142 = math.exp %141 : vector<8x128xf32>
    %cst_85 = arith.constant 1.000000e+00 : f32
    %143 = vector.broadcast %cst_85 : f32 to vector<8x128xf32>
    %144 = arith.addf %143, %142 : vector<8x128xf32>
    %145 = arith.divf %143, %144 : vector<8x128xf32>
    %146 = vector.extract_strided_slice %138 {offsets = [0, 128], sizes = [8, 128], strides = [1, 1]} : vector<8x512xf32> to vector<8x128xf32>
    %147 = arith.negf %146 : vector<8x128xf32>
    %148 = math.exp %147 : vector<8x128xf32>
    %cst_86 = arith.constant 1.000000e+00 : f32
    %149 = vector.broadcast %cst_86 : f32 to vector<8x128xf32>
    %150 = arith.addf %149, %148 : vector<8x128xf32>
    %151 = arith.divf %149, %150 : vector<8x128xf32>
    %152 = vector.extract_strided_slice %138 {offsets = [0, 256], sizes = [8, 128], strides = [1, 1]} : vector<8x512xf32> to vector<8x128xf32>
    %153 = math.tanh %152 : vector<8x128xf32>
    %154 = vector.extract_strided_slice %138 {offsets = [0, 384], sizes = [8, 128], strides = [1, 1]} : vector<8x512xf32> to vector<8x128xf32>
    %155 = arith.negf %154 : vector<8x128xf32>
    %156 = math.exp %155 : vector<8x128xf32>
    %cst_87 = arith.constant 1.000000e+00 : f32
    %157 = vector.broadcast %cst_87 : f32 to vector<8x128xf32>
    %158 = arith.addf %157, %156 : vector<8x128xf32>
    %159 = arith.divf %157, %158 : vector<8x128xf32>
    %160 = arith.mulf %151, %139 : vector<8x128xf32>
    %161 = arith.mulf %145, %153 : vector<8x128xf32>
    %162 = arith.addf %160, %161 : vector<8x128xf32>
    %163 = math.tanh %162 : vector<8x128xf32>
    %164 = arith.mulf %159, %163 : vector<8x128xf32>
    %c0_88 = arith.constant 0 : index
    %c0_89 = arith.constant 0 : index
    %165 = vector.load %arg12[%c0_88, %c0_89] : memref<8x128xf32, #tpu.memory_space<vmem>>, vector<8x128xf32>
    tpu.vector_store %arg12[%c0_88, %c0_89], %164 {strides = array<i32>} : memref<8x128xf32, #tpu.memory_space<vmem>>, vector<8x128xf32>,
    %c0_90 = arith.constant 0 : index
    %c0_91 = arith.constant 0 : index
    %166 = vector.load %arg13[%c0_90, %c0_91] : memref<8x128xf32, #tpu.memory_space<vmem>>, vector<8x128xf32>
    tpu.vector_store %arg13[%c0_90, %c0_91], %162 {strides = array<i32>} : memref<8x128xf32, #tpu.memory_space<vmem>>, vector<8x128xf32>,
    %c0_92 = arith.constant 0 : index
    %c0_93 = arith.constant 0 : index
    %167 = vector.load %arg12[%c0_92, %c0_93] : memref<8x128xf32, #tpu.memory_space<vmem>>, vector<8x128xf32>
    %c0_94 = arith.constant 0 : index
    %c0_95 = arith.constant 0 : index
    %168 = vector.load %arg5[%c0_94, %c0_95] : memref<128x512xf32, #tpu.memory_space<vmem>>, vector<128x512xf32>
    %cst_96 = arith.constant dense<0.000000e+00> : vector<8x512xf32>
    %169 = tpu.matmul %167, %168, %cst_96 {dimension_numbers = #tpu.dot_dimension_numbers<[1], [0], [0], [1], [0, 0, 1, 1], [], []>} : vector<8x128xf32>, vector<128x512xf32>, vector<8x512xf32> -> vector<8x512xf32>
    %c4_97 = arith.constant 4 : index
    %c0_98 = arith.constant 0 : index
    %c0_99 = arith.constant 0 : index
    %170 = vector.load %arg14[%c4_97, %c0_98, %c0_99] : memref<8x8x512xf32, #tpu.memory_space<vmem>>, vector<1x8x512xf32>
    %171 = vector.shape_cast %170 : vector<1x8x512xf32> to vector<8x512xf32>
    %c3_100 = arith.constant 3 : index
    %c0_101 = arith.constant 0 : index
    %c0_102 = arith.constant 0 : index
    %172 = vector.load %arg15[%c3_100, %c0_101, %c0_102] : memref<8x8x512xf32, #tpu.memory_space<vmem>>, vector<1x8x512xf32>
    %173 = vector.shape_cast %172 : vector<1x8x512xf32> to vector<8x512xf32>
    %174 = arith.addf %171, %173 : vector<8x512xf32>
    %175 = arith.addf %174, %169 : vector<8x512xf32>
    %c0_103 = arith.constant 0 : index
    %c0_104 = arith.constant 0 : index
    %176 = vector.load %arg13[%c0_103, %c0_104] : memref<8x128xf32, #tpu.memory_space<vmem>>, vector<8x128xf32>
    %177 = vector.extract_strided_slice %175 {offsets = [0, 0], sizes = [8, 128], strides = [1, 1]} : vector<8x512xf32> to vector<8x128xf32>
    %178 = arith.negf %177 : vector<8x128xf32>
    %179 = math.exp %178 : vector<8x128xf32>
    %cst_105 = arith.constant 1.000000e+00 : f32
    %180 = vector.broadcast %cst_105 : f32 to vector<8x128xf32>
    %181 = arith.addf %180, %179 : vector<8x128xf32>
    %182 = arith.divf %180, %181 : vector<8x128xf32>
    %183 = vector.extract_strided_slice %175 {offsets = [0, 128], sizes = [8, 128], strides = [1, 1]} : vector<8x512xf32> to vector<8x128xf32>
    %184 = arith.negf %183 : vector<8x128xf32>
    %185 = math.exp %184 : vector<8x128xf32>
    %cst_106 = arith.constant 1.000000e+00 : f32
    %186 = vector.broadcast %cst_106 : f32 to vector<8x128xf32>
    %187 = arith.addf %186, %185 : vector<8x128xf32>
    %188 = arith.divf %186, %187 : vector<8x128xf32>
    %189 = vector.extract_strided_slice %175 {offsets = [0, 256], sizes = [8, 128], strides = [1, 1]} : vector<8x512xf32> to vector<8x128xf32>
    %190 = math.tanh %189 : vector<8x128xf32>
    %191 = vector.extract_strided_slice %175 {offsets = [0, 384], sizes = [8, 128], strides = [1, 1]} : vector<8x512xf32> to vector<8x128xf32>
    %192 = arith.negf %191 : vector<8x128xf32>
    %193 = math.exp %192 : vector<8x128xf32>
    %cst_107 = arith.constant 1.000000e+00 : f32
    %194 = vector.broadcast %cst_107 : f32 to vector<8x128xf32>
    %195 = arith.addf %194, %193 : vector<8x128xf32>
    %196 = arith.divf %194, %195 : vector<8x128xf32>
    %197 = arith.mulf %188, %176 : vector<8x128xf32>
    %198 = arith.mulf %182, %190 : vector<8x128xf32>
    %199 = arith.addf %197, %198 : vector<8x128xf32>
    %200 = math.tanh %199 : vector<8x128xf32>
    %201 = arith.mulf %196, %200 : vector<8x128xf32>
    %c0_108 = arith.constant 0 : index
    %c0_109 = arith.constant 0 : index
    %202 = vector.load %arg12[%c0_108, %c0_109] : memref<8x128xf32, #tpu.memory_space<vmem>>, vector<8x128xf32>
    tpu.vector_store %arg12[%c0_108, %c0_109], %201 {strides = array<i32>} : memref<8x128xf32, #tpu.memory_space<vmem>>, vector<8x128xf32>,
    %c0_110 = arith.constant 0 : index
    %c0_111 = arith.constant 0 : index
    %203 = vector.load %arg13[%c0_110, %c0_111] : memref<8x128xf32, #tpu.memory_space<vmem>>, vector<8x128xf32>
    tpu.vector_store %arg13[%c0_110, %c0_111], %199 {strides = array<i32>} : memref<8x128xf32, #tpu.memory_space<vmem>>, vector<8x128xf32>,
    %c0_112 = arith.constant 0 : index
    %c0_113 = arith.constant 0 : index
    %204 = vector.load %arg12[%c0_112, %c0_113] : memref<8x128xf32, #tpu.memory_space<vmem>>, vector<8x128xf32>
    %c0_114 = arith.constant 0 : index
    %c0_115 = arith.constant 0 : index
    %205 = vector.load %arg5[%c0_114, %c0_115] : memref<128x512xf32, #tpu.memory_space<vmem>>, vector<128x512xf32>
    %cst_116 = arith.constant dense<0.000000e+00> : vector<8x512xf32>
    %206 = tpu.matmul %204, %205, %cst_116 {dimension_numbers = #tpu.dot_dimension_numbers<[1], [0], [0], [1], [0, 0, 1, 1], [], []>} : vector<8x128xf32>, vector<128x512xf32>, vector<8x512xf32> -> vector<8x512xf32>
    %c5_117 = arith.constant 5 : index
    %c0_118 = arith.constant 0 : index
    %c0_119 = arith.constant 0 : index
    %207 = vector.load %arg14[%c5_117, %c0_118, %c0_119] : memref<8x8x512xf32, #tpu.memory_space<vmem>>, vector<1x8x512xf32>
    %208 = vector.shape_cast %207 : vector<1x8x512xf32> to vector<8x512xf32>
    %c2_120 = arith.constant 2 : index
    %c0_121 = arith.constant 0 : index
    %c0_122 = arith.constant 0 : index
    %209 = vector.load %arg15[%c2_120, %c0_121, %c0_122] : memref<8x8x512xf32, #tpu.memory_space<vmem>>, vector<1x8x512xf32>
    %210 = vector.shape_cast %209 : vector<1x8x512xf32> to vector<8x512xf32>
    %211 = arith.addf %208, %210 : vector<8x512xf32>
    %212 = arith.addf %211, %206 : vector<8x512xf32>
    %c0_123 = arith.constant 0 : index
    %c0_124 = arith.constant 0 : index
    %213 = vector.load %arg13[%c0_123, %c0_124] : memref<8x128xf32, #tpu.memory_space<vmem>>, vector<8x128xf32>
    %214 = vector.extract_strided_slice %212 {offsets = [0, 0], sizes = [8, 128], strides = [1, 1]} : vector<8x512xf32> to vector<8x128xf32>
    %215 = arith.negf %214 : vector<8x128xf32>
    %216 = math.exp %215 : vector<8x128xf32>
    %cst_125 = arith.constant 1.000000e+00 : f32
    %217 = vector.broadcast %cst_125 : f32 to vector<8x128xf32>
    %218 = arith.addf %217, %216 : vector<8x128xf32>
    %219 = arith.divf %217, %218 : vector<8x128xf32>
    %220 = vector.extract_strided_slice %212 {offsets = [0, 128], sizes = [8, 128], strides = [1, 1]} : vector<8x512xf32> to vector<8x128xf32>
    %221 = arith.negf %220 : vector<8x128xf32>
    %222 = math.exp %221 : vector<8x128xf32>
    %cst_126 = arith.constant 1.000000e+00 : f32
    %223 = vector.broadcast %cst_126 : f32 to vector<8x128xf32>
    %224 = arith.addf %223, %222 : vector<8x128xf32>
    %225 = arith.divf %223, %224 : vector<8x128xf32>
    %226 = vector.extract_strided_slice %212 {offsets = [0, 256], sizes = [8, 128], strides = [1, 1]} : vector<8x512xf32> to vector<8x128xf32>
    %227 = math.tanh %226 : vector<8x128xf32>
    %228 = vector.extract_strided_slice %212 {offsets = [0, 384], sizes = [8, 128], strides = [1, 1]} : vector<8x512xf32> to vector<8x128xf32>
    %229 = arith.negf %228 : vector<8x128xf32>
    %230 = math.exp %229 : vector<8x128xf32>
    %cst_127 = arith.constant 1.000000e+00 : f32
    %231 = vector.broadcast %cst_127 : f32 to vector<8x128xf32>
    %232 = arith.addf %231, %230 : vector<8x128xf32>
    %233 = arith.divf %231, %232 : vector<8x128xf32>
    %234 = arith.mulf %225, %213 : vector<8x128xf32>
    %235 = arith.mulf %219, %227 : vector<8x128xf32>
    %236 = arith.addf %234, %235 : vector<8x128xf32>
    %237 = math.tanh %236 : vector<8x128xf32>
    %238 = arith.mulf %233, %237 : vector<8x128xf32>
    %c0_128 = arith.constant 0 : index
    %c0_129 = arith.constant 0 : index
    %239 = vector.load %arg12[%c0_128, %c0_129] : memref<8x128xf32, #tpu.memory_space<vmem>>, vector<8x128xf32>
    tpu.vector_store %arg12[%c0_128, %c0_129], %238 {strides = array<i32>} : memref<8x128xf32, #tpu.memory_space<vmem>>, vector<8x128xf32>,
    %c0_130 = arith.constant 0 : index
    %c0_131 = arith.constant 0 : index
    %240 = vector.load %arg13[%c0_130, %c0_131] : memref<8x128xf32, #tpu.memory_space<vmem>>, vector<8x128xf32>
    tpu.vector_store %arg13[%c0_130, %c0_131], %236 {strides = array<i32>} : memref<8x128xf32, #tpu.memory_space<vmem>>, vector<8x128xf32>,
    %c0_132 = arith.constant 0 : index
    %c0_133 = arith.constant 0 : index
    %241 = vector.load %arg12[%c0_132, %c0_133] : memref<8x128xf32, #tpu.memory_space<vmem>>, vector<8x128xf32>
    %c0_134 = arith.constant 0 : index
    %c0_135 = arith.constant 0 : index
    %242 = vector.load %arg5[%c0_134, %c0_135] : memref<128x512xf32, #tpu.memory_space<vmem>>, vector<128x512xf32>
    %cst_136 = arith.constant dense<0.000000e+00> : vector<8x512xf32>
    %243 = tpu.matmul %241, %242, %cst_136 {dimension_numbers = #tpu.dot_dimension_numbers<[1], [0], [0], [1], [0, 0, 1, 1], [], []>} : vector<8x128xf32>, vector<128x512xf32>, vector<8x512xf32> -> vector<8x512xf32>
    %c6_137 = arith.constant 6 : index
    %c0_138 = arith.constant 0 : index
    %c0_139 = arith.constant 0 : index
    %244 = vector.load %arg14[%c6_137, %c0_138, %c0_139] : memref<8x8x512xf32, #tpu.memory_space<vmem>>, vector<1x8x512xf32>
    %245 = vector.shape_cast %244 : vector<1x8x512xf32> to vector<8x512xf32>
    %c1_140 = arith.constant 1 : index
    %c0_141 = arith.constant 0 : index
    %c0_142 = arith.constant 0 : index
    %246 = vector.load %arg15[%c1_140, %c0_141, %c0_142] : memref<8x8x512xf32, #tpu.memory_space<vmem>>, vector<1x8x512xf32>
    %247 = vector.shape_cast %246 : vector<1x8x512xf32> to vector<8x512xf32>
    %248 = arith.addf %245, %247 : vector<8x512xf32>
    %249 = arith.addf %248, %243 : vector<8x512xf32>
    %c0_143 = arith.constant 0 : index
    %c0_144 = arith.constant 0 : index
    %250 = vector.load %arg13[%c0_143, %c0_144] : memref<8x128xf32, #tpu.memory_space<vmem>>, vector<8x128xf32>
    %251 = vector.extract_strided_slice %249 {offsets = [0, 0], sizes = [8, 128], strides = [1, 1]} : vector<8x512xf32> to vector<8x128xf32>
    %252 = arith.negf %251 : vector<8x128xf32>
    %253 = math.exp %252 : vector<8x128xf32>
    %cst_145 = arith.constant 1.000000e+00 : f32
    %254 = vector.broadcast %cst_145 : f32 to vector<8x128xf32>
    %255 = arith.addf %254, %253 : vector<8x128xf32>
    %256 = arith.divf %254, %255 : vector<8x128xf32>
    %257 = vector.extract_strided_slice %249 {offsets = [0, 128], sizes = [8, 128], strides = [1, 1]} : vector<8x512xf32> to vector<8x128xf32>
    %258 = arith.negf %257 : vector<8x128xf32>
    %259 = math.exp %258 : vector<8x128xf32>
    %cst_146 = arith.constant 1.000000e+00 : f32
    %260 = vector.broadcast %cst_146 : f32 to vector<8x128xf32>
    %261 = arith.addf %260, %259 : vector<8x128xf32>
    %262 = arith.divf %260, %261 : vector<8x128xf32>
    %263 = vector.extract_strided_slice %249 {offsets = [0, 256], sizes = [8, 128], strides = [1, 1]} : vector<8x512xf32> to vector<8x128xf32>
    %264 = math.tanh %263 : vector<8x128xf32>
    %265 = vector.extract_strided_slice %249 {offsets = [0, 384], sizes = [8, 128], strides = [1, 1]} : vector<8x512xf32> to vector<8x128xf32>
    %266 = arith.negf %265 : vector<8x128xf32>
    %267 = math.exp %266 : vector<8x128xf32>
    %cst_147 = arith.constant 1.000000e+00 : f32
    %268 = vector.broadcast %cst_147 : f32 to vector<8x128xf32>
    %269 = arith.addf %268, %267 : vector<8x128xf32>
    %270 = arith.divf %268, %269 : vector<8x128xf32>
    %271 = arith.mulf %262, %250 : vector<8x128xf32>
    %272 = arith.mulf %256, %264 : vector<8x128xf32>
    %273 = arith.addf %271, %272 : vector<8x128xf32>
    %274 = math.tanh %273 : vector<8x128xf32>
    %275 = arith.mulf %270, %274 : vector<8x128xf32>
    %c0_148 = arith.constant 0 : index
    %c0_149 = arith.constant 0 : index
    %276 = vector.load %arg12[%c0_148, %c0_149] : memref<8x128xf32, #tpu.memory_space<vmem>>, vector<8x128xf32>
    tpu.vector_store %arg12[%c0_148, %c0_149], %275 {strides = array<i32>} : memref<8x128xf32, #tpu.memory_space<vmem>>, vector<8x128xf32>,
    %c0_150 = arith.constant 0 : index
    %c0_151 = arith.constant 0 : index
    %277 = vector.load %arg13[%c0_150, %c0_151] : memref<8x128xf32, #tpu.memory_space<vmem>>, vector<8x128xf32>
    tpu.vector_store %arg13[%c0_150, %c0_151], %273 {strides = array<i32>} : memref<8x128xf32, #tpu.memory_space<vmem>>, vector<8x128xf32>,
    %c0_152 = arith.constant 0 : index
    %c0_153 = arith.constant 0 : index
    %278 = vector.load %arg12[%c0_152, %c0_153] : memref<8x128xf32, #tpu.memory_space<vmem>>, vector<8x128xf32>
    %c0_154 = arith.constant 0 : index
    %c0_155 = arith.constant 0 : index
    %279 = vector.load %arg5[%c0_154, %c0_155] : memref<128x512xf32, #tpu.memory_space<vmem>>, vector<128x512xf32>
    %cst_156 = arith.constant dense<0.000000e+00> : vector<8x512xf32>
    %280 = tpu.matmul %278, %279, %cst_156 {dimension_numbers = #tpu.dot_dimension_numbers<[1], [0], [0], [1], [0, 0, 1, 1], [], []>} : vector<8x128xf32>, vector<128x512xf32>, vector<8x512xf32> -> vector<8x512xf32>
    %c7_157 = arith.constant 7 : index
    %c0_158 = arith.constant 0 : index
    %c0_159 = arith.constant 0 : index
    %281 = vector.load %arg14[%c7_157, %c0_158, %c0_159] : memref<8x8x512xf32, #tpu.memory_space<vmem>>, vector<1x8x512xf32>
    %282 = vector.shape_cast %281 : vector<1x8x512xf32> to vector<8x512xf32>
    %c0_160 = arith.constant 0 : index
    %c0_161 = arith.constant 0 : index
    %c0_162 = arith.constant 0 : index
    %283 = vector.load %arg15[%c0_160, %c0_161, %c0_162] : memref<8x8x512xf32, #tpu.memory_space<vmem>>, vector<1x8x512xf32>
    %284 = vector.shape_cast %283 : vector<1x8x512xf32> to vector<8x512xf32>
    %285 = arith.addf %282, %284 : vector<8x512xf32>
    %286 = arith.addf %285, %280 : vector<8x512xf32>
    %c0_163 = arith.constant 0 : index
    %c0_164 = arith.constant 0 : index
    %287 = vector.load %arg13[%c0_163, %c0_164] : memref<8x128xf32, #tpu.memory_space<vmem>>, vector<8x128xf32>
    %288 = vector.extract_strided_slice %286 {offsets = [0, 0], sizes = [8, 128], strides = [1, 1]} : vector<8x512xf32> to vector<8x128xf32>
    %289 = arith.negf %288 : vector<8x128xf32>
    %290 = math.exp %289 : vector<8x128xf32>
    %cst_165 = arith.constant 1.000000e+00 : f32
    %291 = vector.broadcast %cst_165 : f32 to vector<8x128xf32>
    %292 = arith.addf %291, %290 : vector<8x128xf32>
    %293 = arith.divf %291, %292 : vector<8x128xf32>
    %294 = vector.extract_strided_slice %286 {offsets = [0, 128], sizes = [8, 128], strides = [1, 1]} : vector<8x512xf32> to vector<8x128xf32>
    %295 = arith.negf %294 : vector<8x128xf32>
    %296 = math.exp %295 : vector<8x128xf32>
    %cst_166 = arith.constant 1.000000e+00 : f32
    %297 = vector.broadcast %cst_166 : f32 to vector<8x128xf32>
    %298 = arith.addf %297, %296 : vector<8x128xf32>
    %299 = arith.divf %297, %298 : vector<8x128xf32>
    %300 = vector.extract_strided_slice %286 {offsets = [0, 256], sizes = [8, 128], strides = [1, 1]} : vector<8x512xf32> to vector<8x128xf32>
    %301 = math.tanh %300 : vector<8x128xf32>
    %302 = vector.extract_strided_slice %286 {offsets = [0, 384], sizes = [8, 128], strides = [1, 1]} : vector<8x512xf32> to vector<8x128xf32>
    %303 = arith.negf %302 : vector<8x128xf32>
    %304 = math.exp %303 : vector<8x128xf32>
    %cst_167 = arith.constant 1.000000e+00 : f32
    %305 = vector.broadcast %cst_167 : f32 to vector<8x128xf32>
    %306 = arith.addf %305, %304 : vector<8x128xf32>
    %307 = arith.divf %305, %306 : vector<8x128xf32>
    %308 = arith.mulf %299, %287 : vector<8x128xf32>
    %309 = arith.mulf %293, %301 : vector<8x128xf32>
    %310 = arith.addf %308, %309 : vector<8x128xf32>
    %311 = math.tanh %310 : vector<8x128xf32>
    %312 = arith.mulf %307, %311 : vector<8x128xf32>
    %c0_168 = arith.constant 0 : index
    %c0_169 = arith.constant 0 : index
    %313 = vector.load %arg12[%c0_168, %c0_169] : memref<8x128xf32, #tpu.memory_space<vmem>>, vector<8x128xf32>
    tpu.vector_store %arg12[%c0_168, %c0_169], %312 {strides = array<i32>} : memref<8x128xf32, #tpu.memory_space<vmem>>, vector<8x128xf32>,
    %c0_170 = arith.constant 0 : index
    %c0_171 = arith.constant 0 : index
    %314 = vector.load %arg13[%c0_170, %c0_171] : memref<8x128xf32, #tpu.memory_space<vmem>>, vector<8x128xf32>
    tpu.vector_store %arg13[%c0_170, %c0_171], %310 {strides = array<i32>} : memref<8x128xf32, #tpu.memory_space<vmem>>, vector<8x128xf32>,
    %c0_i32_172 = arith.constant 0 : i32
    %315 = arith.cmpi eq, %arg0, %c0_i32_172 : i32
    %316 = arith.extui %315 : i1 to i32
    %c0_i32_173 = arith.constant 0 : i32
    %317 = arith.cmpi ne, %316, %c0_i32_173 : i32
    scf.if %317 {
      %c0_174 = arith.constant 0 : index
      %c0_175 = arith.constant 0 : index
      %318 = vector.load %arg12[%c0_174, %c0_175] : memref<8x128xf32, #tpu.memory_space<vmem>>, vector<8x128xf32>
      %c0_176 = arith.constant 0 : index
      %c0_177 = arith.constant 0 : index
      %319 = vector.load %arg7[%c0_176, %c0_177] : memref<128x64xf32, #tpu.memory_space<vmem>>, vector<128x64xf32>
      %cst_178 = arith.constant dense<0.000000e+00> : vector<8x64xf32>
      %320 = tpu.matmul %318, %319, %cst_178 {dimension_numbers = #tpu.dot_dimension_numbers<[1], [0], [0], [1], [0, 0, 1, 1], [], []>} : vector<8x128xf32>, vector<128x64xf32>, vector<8x64xf32> -> vector<8x64xf32>
      %c0_179 = arith.constant 0 : index
      %c0_180 = arith.constant 0 : index
      %321 = vector.load %arg8[%c0_179, %c0_180] : memref<1x64xf32, #tpu.memory_space<vmem>>, vector<1x64xf32>
      %322 = vector.broadcast %321 : vector<1x64xf32> to vector<8x64xf32>
      %323 = arith.addf %320, %322 : vector<8x64xf32>
      %cst_181 = arith.constant 0.000000e+00 : f32
      %324 = vector.broadcast %cst_181 : f32 to vector<8x64xf32>
      %325 = arith.maximumf %323, %324 : vector<8x64xf32>
      %c0_182 = arith.constant 0 : index
      %c0_183 = arith.constant 0 : index
      %326 = vector.load %arg9[%c0_182, %c0_183] : memref<64x128xf32, #tpu.memory_space<vmem>>, vector<64x128xf32>
      %cst_184 = arith.constant dense<0.000000e+00> : vector<8x128xf32>
      %327 = tpu.matmul %325, %326, %cst_184 {dimension_numbers = #tpu.dot_dimension_numbers<[1], [0], [0], [1], [0, 0, 1, 1], [], []>} : vector<8x64xf32>, vector<64x128xf32>, vector<8x128xf32> -> vector<8x128xf32>
      %c0_185 = arith.constant 0 : index
      %c0_186 = arith.constant 0 : index
      %328 = vector.load %arg10[%c0_185, %c0_186] : memref<1x128xf32, #tpu.memory_space<vmem>>, vector<1x128xf32>
      %329 = vector.broadcast %328 : vector<1x128xf32> to vector<8x128xf32>
      %330 = arith.addf %327, %329 : vector<8x128xf32>
      %331 = tpu.iota {dimensions = array<i32: 1>} : vector<8x128xi32>
      %c2_i32 = arith.constant 2 : i32
      %332 = vector.broadcast %c2_i32 : i32 to vector<8x128xi32>
      %333 = arith.cmpi slt, %331, %332 : vector<8x128xi32>
      %cst_187 = arith.constant -1.000000e+30 : f32
      %334 = vector.broadcast %cst_187 : f32 to vector<8x128xf32>
      %335 = arith.select %333, %330, %334 : vector<8x128xi1>, vector<8x128xf32>
      %cst_188 = arith.constant dense<0xFF800000> : vector<8xf32>
      %336 = vector.multi_reduction <maximumf>, %335, %cst_188 [1] : vector<8x128xf32> to vector<8xf32>
      %337 = vector.shape_cast %336 : vector<8xf32> to vector<8x1xf32>
      %338 = vector.broadcast %337 : vector<8x1xf32> to vector<8x128xf32>
      %339 = arith.subf %335, %338 : vector<8x128xf32>
      %340 = math.exp %339 : vector<8x128xf32>
      %cst_189 = arith.constant dense<0.000000e+00> : vector<8xf32>
      %341 = vector.multi_reduction <add>, %340, %cst_189 [1] : vector<8x128xf32> to vector<8xf32>
      %342 = vector.shape_cast %341 : vector<8xf32> to vector<8x1xf32>
      %343 = math.log %342 : vector<8x1xf32>
      %344 = arith.addf %337, %343 : vector<8x1xf32>
      %345 = vector.broadcast %344 : vector<8x1xf32> to vector<8x128xf32>
      %346 = arith.subf %335, %345 : vector<8x128xf32>
      %c0_190 = arith.constant 0 : index
      %c0_191 = arith.constant 0 : index
      %347 = vector.load %arg11[%c0_190, %c0_191] : memref<8x128xf32, #tpu.memory_space<vmem>>, vector<8x128xf32>
      tpu.vector_store %arg11[%c0_190, %c0_191], %346 {strides = array<i32>} : memref<8x128xf32, #tpu.memory_space<vmem>>, vector<8x128xf32>,
    } else {
    }
    return
  }
  func.func @transform_0(%arg0: i32) -> (i32, i32, i32) {
    %c0_i32 = arith.constant 0 : i32
    %c0_i32_0 = arith.constant 0 : i32
    %c0_i32_1 = arith.constant 0 : i32
    return %arg0, %c0_i32, %c0_i32_0 : i32, i32, i32
  }
  func.func @transform_1(%arg0: i32) -> (i32, i32, i32) {
    %c0_i32 = arith.constant 0 : i32
    %0 = arith.subi %c0_i32, %arg0 : i32
    %c0_i32_0 = arith.constant 0 : i32
    %c0_i32_1 = arith.constant 0 : i32
    %c0_i32_2 = arith.constant 0 : i32
    return %0, %c0_i32_0, %c0_i32_1 : i32, i32, i32
  }
  func.func @transform_2(%arg0: i32) -> (i32, i32) {
    %c0_i32 = arith.constant 0 : i32
    %c0_i32_0 = arith.constant 0 : i32
    %c0_i32_1 = arith.constant 0 : i32
    return %c0_i32, %c0_i32_0 : i32, i32
  }
  func.func @transform_3(%arg0: i32) -> (i32, i32) {
    %c0_i32 = arith.constant 0 : i32
    %c0_i32_0 = arith.constant 0 : i32
    %c0_i32_1 = arith.constant 0 : i32
    return %c0_i32, %c0_i32_0 : i32, i32
  }
  func.func @transform_4(%arg0: i32) -> (i32, i32) {
    %c0_i32 = arith.constant 0 : i32
    %c0_i32_0 = arith.constant 0 : i32
    %c0_i32_1 = arith.constant 0 : i32
    return %c0_i32, %c0_i32_0 : i32, i32
  }
  func.func @transform_5(%arg0: i32) -> (i32, i32) {
    %c0_i32 = arith.constant 0 : i32
    %c0_i32_0 = arith.constant 0 : i32
    %c0_i32_1 = arith.constant 0 : i32
    return %c0_i32, %c0_i32_0 : i32, i32
  }
  func.func @transform_6(%arg0: i32) -> (i32, i32) {
    %c0_i32 = arith.constant 0 : i32
    %c0_i32_0 = arith.constant 0 : i32
    %c0_i32_1 = arith.constant 0 : i32
    return %c0_i32, %c0_i32_0 : i32, i32
  }
  func.func @transform_7(%arg0: i32) -> (i32, i32) {
    %c0_i32 = arith.constant 0 : i32
    %c0_i32_0 = arith.constant 0 : i32
    %c0_i32_1 = arith.constant 0 : i32
    return %c0_i32, %c0_i32_0 : i32, i32
  }
  func.func @transform_8(%arg0: i32) -> (i32, i32) {
    %c0_i32 = arith.constant 0 : i32
    %c0_i32_0 = arith.constant 0 : i32
    %c0_i32_1 = arith.constant 0 : i32
    return %c0_i32, %c0_i32_0 : i32, i32
  }
  func.func @transform_9(%arg0: i32) -> (i32, i32) {
    %c0_i32 = arith.constant 0 : i32
    %c0_i32_0 = arith.constant 0 : i32
    %c0_i32_1 = arith.constant 0 : i32
    return %c0_i32, %c0_i32_0 : i32, i32
  }
  func.func @transform_10(%arg0: i32) -> (i32, i32) {
    %c0_i32 = arith.constant 0 : i32
    %c0_i32_0 = arith.constant 0 : i32
    %c0_i32_1 = arith.constant 0 : i32
    return %c0_i32, %c0_i32_0 : i32, i32
  }
}

module attributes {stable_mosaic.version = 11 : i64} {
  func.func @_bilstm_seq_kernel(%arg0: i32, %arg1: memref<8x8x256xf32, #tpu.memory_space<vmem>>, %arg2: memref<8x8x256xf32, #tpu.memory_space<vmem>>, %arg3: memref<256x512xf32, #tpu.memory_space<vmem>>, %arg4: memref<256x512xf32, #tpu.memory_space<vmem>>, %arg5: memref<128x512xf32, #tpu.memory_space<vmem>>, %arg6: memref<1x512xf32, #tpu.memory_space<vmem>>, %arg7: memref<8x8x128xf32, #tpu.memory_space<vmem>>, %arg8: memref<8x128xf32, #tpu.memory_space<vmem>>, %arg9: memref<8x128xf32, #tpu.memory_space<vmem>>, %arg10: memref<8x8x512xf32, #tpu.memory_space<vmem>>, %arg11: memref<8x8x512xf32, #tpu.memory_space<vmem>>) attributes {dimension_semantics = [#tpu.dimension_semantics<arbitrary>], iteration_bounds = array<i64: 1>, scalar_prefetch = 0 : i64, scratch_operands = 4 : i64, tpu.core_type = #tpu.core_type<tc>, window_params = [{transform_indices = @transform_0, window_bounds = array<i64: 8, 8, 256>}, {transform_indices = @transform_1, window_bounds = array<i64: 8, 8, 256>}, {pipeline_mode = #tpu.pipeline_mode<synchronous>, transform_indices = @transform_2, window_bounds = array<i64: 256, 512>}, {pipeline_mode = #tpu.pipeline_mode<synchronous>, transform_indices = @transform_3, window_bounds = array<i64: 256, 512>}, {pipeline_mode = #tpu.pipeline_mode<synchronous>, transform_indices = @transform_4, window_bounds = array<i64: 128, 512>}, {pipeline_mode = #tpu.pipeline_mode<synchronous>, transform_indices = @transform_5, window_bounds = array<i64: 1, 512>}, {transform_indices = @transform_6, window_bounds = array<i64: 8, 8, 128>}]} {
    %c0_i32 = arith.constant 0 : i32
    %0 = arith.cmpi eq, %arg0, %c0_i32 : i32
    %1 = arith.extui %0 : i1 to i32
    %c0_i32_0 = arith.constant 0 : i32
    %2 = arith.cmpi ne, %1, %c0_i32_0 : i32
    scf.if %2 {
      %cst_196 = arith.constant 0.000000e+00 : f32
      %339 = vector.broadcast %cst_196 : f32 to vector<8x128xf32>
      %c0_197 = arith.constant 0 : index
      %c0_198 = arith.constant 0 : index
      %340 = vector.load %arg8[%c0_197, %c0_198] : memref<8x128xf32, #tpu.memory_space<vmem>>, vector<8x128xf32>
      tpu.vector_store %arg8[%c0_197, %c0_198], %339 {strides = array<i32>} : memref<8x128xf32, #tpu.memory_space<vmem>>, vector<8x128xf32>,
      %cst_199 = arith.constant 0.000000e+00 : f32
      %341 = vector.broadcast %cst_199 : f32 to vector<8x128xf32>
      %c0_200 = arith.constant 0 : index
      %c0_201 = arith.constant 0 : index
      %342 = vector.load %arg9[%c0_200, %c0_201] : memref<8x128xf32, #tpu.memory_space<vmem>>, vector<8x128xf32>
      tpu.vector_store %arg9[%c0_200, %c0_201], %341 {strides = array<i32>} : memref<8x128xf32, #tpu.memory_space<vmem>>, vector<8x128xf32>,
    } else {
    }
    %c0 = arith.constant 0 : index
    %c0_1 = arith.constant 0 : index
    %c0_2 = arith.constant 0 : index
    %3 = vector.load %arg1[%c0, %c0_1, %c0_2] : memref<8x8x256xf32, #tpu.memory_space<vmem>>, vector<8x8x256xf32>
    %4 = vector.shape_cast %3 : vector<8x8x256xf32> to vector<64x256xf32>
    %c0_3 = arith.constant 0 : index
    %c0_4 = arith.constant 0 : index
    %5 = vector.load %arg3[%c0_3, %c0_4] : memref<256x512xf32, #tpu.memory_space<vmem>>, vector<256x512xf32>
    %cst = arith.constant dense<0.000000e+00> : vector<64x512xf32>
    %6 = tpu.matmul %4, %5, %cst {dimension_numbers = #tpu.dot_dimension_numbers<[1], [0], [0], [1], [0, 0, 1, 1], [], []>} : vector<64x256xf32>, vector<256x512xf32>, vector<64x512xf32> -> vector<64x512xf32>
    %7 = vector.shape_cast %6 : vector<64x512xf32> to vector<8x8x512xf32>
    %c0_5 = arith.constant 0 : index
    %c0_6 = arith.constant 0 : index
    %8 = vector.load %arg6[%c0_5, %c0_6] : memref<1x512xf32, #tpu.memory_space<vmem>>, vector<1x512xf32>
    %9 = vector.shape_cast %8 : vector<1x512xf32> to vector<1x1x512xf32>
    %10 = vector.broadcast %9 : vector<1x1x512xf32> to vector<8x8x512xf32>
    %11 = arith.addf %7, %10 : vector<8x8x512xf32>
    %c0_7 = arith.constant 0 : index
    %c0_8 = arith.constant 0 : index
    %c0_9 = arith.constant 0 : index
    %12 = vector.load %arg10[%c0_7, %c0_8, %c0_9] : memref<8x8x512xf32, #tpu.memory_space<vmem>>, vector<8x8x512xf32>
    tpu.vector_store %arg10[%c0_7, %c0_8, %c0_9], %11 {strides = array<i32>} : memref<8x8x512xf32, #tpu.memory_space<vmem>>, vector<8x8x512xf32>,
    %c0_10 = arith.constant 0 : index
    %c0_11 = arith.constant 0 : index
    %c0_12 = arith.constant 0 : index
    %13 = vector.load %arg2[%c0_10, %c0_11, %c0_12] : memref<8x8x256xf32, #tpu.memory_space<vmem>>, vector<8x8x256xf32>
    %14 = vector.shape_cast %13 : vector<8x8x256xf32> to vector<64x256xf32>
    %c0_13 = arith.constant 0 : index
    %c0_14 = arith.constant 0 : index
    %15 = vector.load %arg4[%c0_13, %c0_14] : memref<256x512xf32, #tpu.memory_space<vmem>>, vector<256x512xf32>
    %cst_15 = arith.constant dense<0.000000e+00> : vector<64x512xf32>
    %16 = tpu.matmul %14, %15, %cst_15 {dimension_numbers = #tpu.dot_dimension_numbers<[1], [0], [0], [1], [0, 0, 1, 1], [], []>} : vector<64x256xf32>, vector<256x512xf32>, vector<64x512xf32> -> vector<64x512xf32>
    %17 = vector.shape_cast %16 : vector<64x512xf32> to vector<8x8x512xf32>
    %c0_16 = arith.constant 0 : index
    %c0_17 = arith.constant 0 : index
    %c0_18 = arith.constant 0 : index
    %18 = vector.load %arg11[%c0_16, %c0_17, %c0_18] : memref<8x8x512xf32, #tpu.memory_space<vmem>>, vector<8x8x512xf32>
    tpu.vector_store %arg11[%c0_16, %c0_17, %c0_18], %17 {strides = array<i32>} : memref<8x8x512xf32, #tpu.memory_space<vmem>>, vector<8x8x512xf32>,
    %c0_19 = arith.constant 0 : index
    %c0_20 = arith.constant 0 : index
    %19 = vector.load %arg8[%c0_19, %c0_20] : memref<8x128xf32, #tpu.memory_space<vmem>>, vector<8x128xf32>
    %c0_21 = arith.constant 0 : index
    %c0_22 = arith.constant 0 : index
    %20 = vector.load %arg5[%c0_21, %c0_22] : memref<128x512xf32, #tpu.memory_space<vmem>>, vector<128x512xf32>
    %cst_23 = arith.constant dense<0.000000e+00> : vector<8x512xf32>
    %21 = tpu.matmul %19, %20, %cst_23 {dimension_numbers = #tpu.dot_dimension_numbers<[1], [0], [0], [1], [0, 0, 1, 1], [], []>} : vector<8x128xf32>, vector<128x512xf32>, vector<8x512xf32> -> vector<8x512xf32>
    %c0_24 = arith.constant 0 : index
    %c0_25 = arith.constant 0 : index
    %c0_26 = arith.constant 0 : index
    %22 = vector.load %arg10[%c0_24, %c0_25, %c0_26] : memref<8x8x512xf32, #tpu.memory_space<vmem>>, vector<1x8x512xf32>
    %23 = vector.shape_cast %22 : vector<1x8x512xf32> to vector<8x512xf32>
    %c7 = arith.constant 7 : index
    %c0_27 = arith.constant 0 : index
    %c0_28 = arith.constant 0 : index
    %24 = vector.load %arg11[%c7, %c0_27, %c0_28] : memref<8x8x512xf32, #tpu.memory_space<vmem>>, vector<1x8x512xf32>
    %25 = vector.shape_cast %24 : vector<1x8x512xf32> to vector<8x512xf32>
    %26 = arith.addf %23, %25 : vector<8x512xf32>
    %27 = arith.addf %26, %21 : vector<8x512xf32>
    %c0_29 = arith.constant 0 : index
    %c0_30 = arith.constant 0 : index
    %28 = vector.load %arg9[%c0_29, %c0_30] : memref<8x128xf32, #tpu.memory_space<vmem>>, vector<8x128xf32>
    %29 = vector.extract_strided_slice %27 {offsets = [0, 0], sizes = [8, 128], strides = [1, 1]} : vector<8x512xf32> to vector<8x128xf32>
    %30 = arith.negf %29 : vector<8x128xf32>
    %31 = math.exp %30 : vector<8x128xf32>
    %cst_31 = arith.constant 1.000000e+00 : f32
    %32 = vector.broadcast %cst_31 : f32 to vector<8x128xf32>
    %33 = arith.addf %32, %31 : vector<8x128xf32>
    %34 = arith.divf %32, %33 : vector<8x128xf32>
    %35 = vector.extract_strided_slice %27 {offsets = [0, 128], sizes = [8, 128], strides = [1, 1]} : vector<8x512xf32> to vector<8x128xf32>
    %36 = arith.negf %35 : vector<8x128xf32>
    %37 = math.exp %36 : vector<8x128xf32>
    %cst_32 = arith.constant 1.000000e+00 : f32
    %38 = vector.broadcast %cst_32 : f32 to vector<8x128xf32>
    %39 = arith.addf %38, %37 : vector<8x128xf32>
    %40 = arith.divf %38, %39 : vector<8x128xf32>
    %41 = vector.extract_strided_slice %27 {offsets = [0, 256], sizes = [8, 128], strides = [1, 1]} : vector<8x512xf32> to vector<8x128xf32>
    %42 = math.tanh %41 : vector<8x128xf32>
    %43 = vector.extract_strided_slice %27 {offsets = [0, 384], sizes = [8, 128], strides = [1, 1]} : vector<8x512xf32> to vector<8x128xf32>
    %44 = arith.negf %43 : vector<8x128xf32>
    %45 = math.exp %44 : vector<8x128xf32>
    %cst_33 = arith.constant 1.000000e+00 : f32
    %46 = vector.broadcast %cst_33 : f32 to vector<8x128xf32>
    %47 = arith.addf %46, %45 : vector<8x128xf32>
    %48 = arith.divf %46, %47 : vector<8x128xf32>
    %49 = arith.mulf %40, %28 : vector<8x128xf32>
    %50 = arith.mulf %34, %42 : vector<8x128xf32>
    %51 = arith.addf %49, %50 : vector<8x128xf32>
    %52 = math.tanh %51 : vector<8x128xf32>
    %53 = arith.mulf %48, %52 : vector<8x128xf32>
    %c0_34 = arith.constant 0 : index
    %c0_35 = arith.constant 0 : index
    %54 = vector.load %arg8[%c0_34, %c0_35] : memref<8x128xf32, #tpu.memory_space<vmem>>, vector<8x128xf32>
    tpu.vector_store %arg8[%c0_34, %c0_35], %53 {strides = array<i32>} : memref<8x128xf32, #tpu.memory_space<vmem>>, vector<8x128xf32>,
    %c0_36 = arith.constant 0 : index
    %c0_37 = arith.constant 0 : index
    %55 = vector.load %arg9[%c0_36, %c0_37] : memref<8x128xf32, #tpu.memory_space<vmem>>, vector<8x128xf32>
    tpu.vector_store %arg9[%c0_36, %c0_37], %51 {strides = array<i32>} : memref<8x128xf32, #tpu.memory_space<vmem>>, vector<8x128xf32>,
    %c0_38 = arith.constant 0 : index
    %c0_39 = arith.constant 0 : index
    %c0_40 = arith.constant 0 : index
    %56 = vector.load %arg7[%c0_38, %c0_39, %c0_40] : memref<8x8x128xf32, #tpu.memory_space<vmem>>, vector<1x8x128xf32>
    %57 = vector.shape_cast %56 : vector<1x8x128xf32> to vector<8x128xf32>
    %58 = vector.shape_cast %53 : vector<8x128xf32> to vector<1x8x128xf32>
    tpu.vector_store %arg7[%c0_38, %c0_39, %c0_40], %58 {strides = array<i32>} : memref<8x8x128xf32, #tpu.memory_space<vmem>>, vector<1x8x128xf32>,
    %c0_41 = arith.constant 0 : index
    %c0_42 = arith.constant 0 : index
    %59 = vector.load %arg8[%c0_41, %c0_42] : memref<8x128xf32, #tpu.memory_space<vmem>>, vector<8x128xf32>
    %c0_43 = arith.constant 0 : index
    %c0_44 = arith.constant 0 : index
    %60 = vector.load %arg5[%c0_43, %c0_44] : memref<128x512xf32, #tpu.memory_space<vmem>>, vector<128x512xf32>
    %cst_45 = arith.constant dense<0.000000e+00> : vector<8x512xf32>
    %61 = tpu.matmul %59, %60, %cst_45 {dimension_numbers = #tpu.dot_dimension_numbers<[1], [0], [0], [1], [0, 0, 1, 1], [], []>} : vector<8x128xf32>, vector<128x512xf32>, vector<8x512xf32> -> vector<8x512xf32>
    %c1 = arith.constant 1 : index
    %c0_46 = arith.constant 0 : index
    %c0_47 = arith.constant 0 : index
    %62 = vector.load %arg10[%c1, %c0_46, %c0_47] : memref<8x8x512xf32, #tpu.memory_space<vmem>>, vector<1x8x512xf32>
    %63 = vector.shape_cast %62 : vector<1x8x512xf32> to vector<8x512xf32>
    %c6 = arith.constant 6 : index
    %c0_48 = arith.constant 0 : index
    %c0_49 = arith.constant 0 : index
    %64 = vector.load %arg11[%c6, %c0_48, %c0_49] : memref<8x8x512xf32, #tpu.memory_space<vmem>>, vector<1x8x512xf32>
    %65 = vector.shape_cast %64 : vector<1x8x512xf32> to vector<8x512xf32>
    %66 = arith.addf %63, %65 : vector<8x512xf32>
    %67 = arith.addf %66, %61 : vector<8x512xf32>
    %c0_50 = arith.constant 0 : index
    %c0_51 = arith.constant 0 : index
    %68 = vector.load %arg9[%c0_50, %c0_51] : memref<8x128xf32, #tpu.memory_space<vmem>>, vector<8x128xf32>
    %69 = vector.extract_strided_slice %67 {offsets = [0, 0], sizes = [8, 128], strides = [1, 1]} : vector<8x512xf32> to vector<8x128xf32>
    %70 = arith.negf %69 : vector<8x128xf32>
    %71 = math.exp %70 : vector<8x128xf32>
    %cst_52 = arith.constant 1.000000e+00 : f32
    %72 = vector.broadcast %cst_52 : f32 to vector<8x128xf32>
    %73 = arith.addf %72, %71 : vector<8x128xf32>
    %74 = arith.divf %72, %73 : vector<8x128xf32>
    %75 = vector.extract_strided_slice %67 {offsets = [0, 128], sizes = [8, 128], strides = [1, 1]} : vector<8x512xf32> to vector<8x128xf32>
    %76 = arith.negf %75 : vector<8x128xf32>
    %77 = math.exp %76 : vector<8x128xf32>
    %cst_53 = arith.constant 1.000000e+00 : f32
    %78 = vector.broadcast %cst_53 : f32 to vector<8x128xf32>
    %79 = arith.addf %78, %77 : vector<8x128xf32>
    %80 = arith.divf %78, %79 : vector<8x128xf32>
    %81 = vector.extract_strided_slice %67 {offsets = [0, 256], sizes = [8, 128], strides = [1, 1]} : vector<8x512xf32> to vector<8x128xf32>
    %82 = math.tanh %81 : vector<8x128xf32>
    %83 = vector.extract_strided_slice %67 {offsets = [0, 384], sizes = [8, 128], strides = [1, 1]} : vector<8x512xf32> to vector<8x128xf32>
    %84 = arith.negf %83 : vector<8x128xf32>
    %85 = math.exp %84 : vector<8x128xf32>
    %cst_54 = arith.constant 1.000000e+00 : f32
    %86 = vector.broadcast %cst_54 : f32 to vector<8x128xf32>
    %87 = arith.addf %86, %85 : vector<8x128xf32>
    %88 = arith.divf %86, %87 : vector<8x128xf32>
    %89 = arith.mulf %80, %68 : vector<8x128xf32>
    %90 = arith.mulf %74, %82 : vector<8x128xf32>
    %91 = arith.addf %89, %90 : vector<8x128xf32>
    %92 = math.tanh %91 : vector<8x128xf32>
    %93 = arith.mulf %88, %92 : vector<8x128xf32>
    %c0_55 = arith.constant 0 : index
    %c0_56 = arith.constant 0 : index
    %94 = vector.load %arg8[%c0_55, %c0_56] : memref<8x128xf32, #tpu.memory_space<vmem>>, vector<8x128xf32>
    tpu.vector_store %arg8[%c0_55, %c0_56], %93 {strides = array<i32>} : memref<8x128xf32, #tpu.memory_space<vmem>>, vector<8x128xf32>,
    %c0_57 = arith.constant 0 : index
    %c0_58 = arith.constant 0 : index
    %95 = vector.load %arg9[%c0_57, %c0_58] : memref<8x128xf32, #tpu.memory_space<vmem>>, vector<8x128xf32>
    tpu.vector_store %arg9[%c0_57, %c0_58], %91 {strides = array<i32>} : memref<8x128xf32, #tpu.memory_space<vmem>>, vector<8x128xf32>,
    %c1_59 = arith.constant 1 : index
    %c0_60 = arith.constant 0 : index
    %c0_61 = arith.constant 0 : index
    %96 = vector.load %arg7[%c1_59, %c0_60, %c0_61] : memref<8x8x128xf32, #tpu.memory_space<vmem>>, vector<1x8x128xf32>
    %97 = vector.shape_cast %96 : vector<1x8x128xf32> to vector<8x128xf32>
    %98 = vector.shape_cast %93 : vector<8x128xf32> to vector<1x8x128xf32>
    tpu.vector_store %arg7[%c1_59, %c0_60, %c0_61], %98 {strides = array<i32>} : memref<8x8x128xf32, #tpu.memory_space<vmem>>, vector<1x8x128xf32>,
    %c0_62 = arith.constant 0 : index
    %c0_63 = arith.constant 0 : index
    %99 = vector.load %arg8[%c0_62, %c0_63] : memref<8x128xf32, #tpu.memory_space<vmem>>, vector<8x128xf32>
    %c0_64 = arith.constant 0 : index
    %c0_65 = arith.constant 0 : index
    %100 = vector.load %arg5[%c0_64, %c0_65] : memref<128x512xf32, #tpu.memory_space<vmem>>, vector<128x512xf32>
    %cst_66 = arith.constant dense<0.000000e+00> : vector<8x512xf32>
    %101 = tpu.matmul %99, %100, %cst_66 {dimension_numbers = #tpu.dot_dimension_numbers<[1], [0], [0], [1], [0, 0, 1, 1], [], []>} : vector<8x128xf32>, vector<128x512xf32>, vector<8x512xf32> -> vector<8x512xf32>
    %c2 = arith.constant 2 : index
    %c0_67 = arith.constant 0 : index
    %c0_68 = arith.constant 0 : index
    %102 = vector.load %arg10[%c2, %c0_67, %c0_68] : memref<8x8x512xf32, #tpu.memory_space<vmem>>, vector<1x8x512xf32>
    %103 = vector.shape_cast %102 : vector<1x8x512xf32> to vector<8x512xf32>
    %c5 = arith.constant 5 : index
    %c0_69 = arith.constant 0 : index
    %c0_70 = arith.constant 0 : index
    %104 = vector.load %arg11[%c5, %c0_69, %c0_70] : memref<8x8x512xf32, #tpu.memory_space<vmem>>, vector<1x8x512xf32>
    %105 = vector.shape_cast %104 : vector<1x8x512xf32> to vector<8x512xf32>
    %106 = arith.addf %103, %105 : vector<8x512xf32>
    %107 = arith.addf %106, %101 : vector<8x512xf32>
    %c0_71 = arith.constant 0 : index
    %c0_72 = arith.constant 0 : index
    %108 = vector.load %arg9[%c0_71, %c0_72] : memref<8x128xf32, #tpu.memory_space<vmem>>, vector<8x128xf32>
    %109 = vector.extract_strided_slice %107 {offsets = [0, 0], sizes = [8, 128], strides = [1, 1]} : vector<8x512xf32> to vector<8x128xf32>
    %110 = arith.negf %109 : vector<8x128xf32>
    %111 = math.exp %110 : vector<8x128xf32>
    %cst_73 = arith.constant 1.000000e+00 : f32
    %112 = vector.broadcast %cst_73 : f32 to vector<8x128xf32>
    %113 = arith.addf %112, %111 : vector<8x128xf32>
    %114 = arith.divf %112, %113 : vector<8x128xf32>
    %115 = vector.extract_strided_slice %107 {offsets = [0, 128], sizes = [8, 128], strides = [1, 1]} : vector<8x512xf32> to vector<8x128xf32>
    %116 = arith.negf %115 : vector<8x128xf32>
    %117 = math.exp %116 : vector<8x128xf32>
    %cst_74 = arith.constant 1.000000e+00 : f32
    %118 = vector.broadcast %cst_74 : f32 to vector<8x128xf32>
    %119 = arith.addf %118, %117 : vector<8x128xf32>
    %120 = arith.divf %118, %119 : vector<8x128xf32>
    %121 = vector.extract_strided_slice %107 {offsets = [0, 256], sizes = [8, 128], strides = [1, 1]} : vector<8x512xf32> to vector<8x128xf32>
    %122 = math.tanh %121 : vector<8x128xf32>
    %123 = vector.extract_strided_slice %107 {offsets = [0, 384], sizes = [8, 128], strides = [1, 1]} : vector<8x512xf32> to vector<8x128xf32>
    %124 = arith.negf %123 : vector<8x128xf32>
    %125 = math.exp %124 : vector<8x128xf32>
    %cst_75 = arith.constant 1.000000e+00 : f32
    %126 = vector.broadcast %cst_75 : f32 to vector<8x128xf32>
    %127 = arith.addf %126, %125 : vector<8x128xf32>
    %128 = arith.divf %126, %127 : vector<8x128xf32>
    %129 = arith.mulf %120, %108 : vector<8x128xf32>
    %130 = arith.mulf %114, %122 : vector<8x128xf32>
    %131 = arith.addf %129, %130 : vector<8x128xf32>
    %132 = math.tanh %131 : vector<8x128xf32>
    %133 = arith.mulf %128, %132 : vector<8x128xf32>
    %c0_76 = arith.constant 0 : index
    %c0_77 = arith.constant 0 : index
    %134 = vector.load %arg8[%c0_76, %c0_77] : memref<8x128xf32, #tpu.memory_space<vmem>>, vector<8x128xf32>
    tpu.vector_store %arg8[%c0_76, %c0_77], %133 {strides = array<i32>} : memref<8x128xf32, #tpu.memory_space<vmem>>, vector<8x128xf32>,
    %c0_78 = arith.constant 0 : index
    %c0_79 = arith.constant 0 : index
    %135 = vector.load %arg9[%c0_78, %c0_79] : memref<8x128xf32, #tpu.memory_space<vmem>>, vector<8x128xf32>
    tpu.vector_store %arg9[%c0_78, %c0_79], %131 {strides = array<i32>} : memref<8x128xf32, #tpu.memory_space<vmem>>, vector<8x128xf32>,
    %c2_80 = arith.constant 2 : index
    %c0_81 = arith.constant 0 : index
    %c0_82 = arith.constant 0 : index
    %136 = vector.load %arg7[%c2_80, %c0_81, %c0_82] : memref<8x8x128xf32, #tpu.memory_space<vmem>>, vector<1x8x128xf32>
    %137 = vector.shape_cast %136 : vector<1x8x128xf32> to vector<8x128xf32>
    %138 = vector.shape_cast %133 : vector<8x128xf32> to vector<1x8x128xf32>
    tpu.vector_store %arg7[%c2_80, %c0_81, %c0_82], %138 {strides = array<i32>} : memref<8x8x128xf32, #tpu.memory_space<vmem>>, vector<1x8x128xf32>,
    %c0_83 = arith.constant 0 : index
    %c0_84 = arith.constant 0 : index
    %139 = vector.load %arg8[%c0_83, %c0_84] : memref<8x128xf32, #tpu.memory_space<vmem>>, vector<8x128xf32>
    %c0_85 = arith.constant 0 : index
    %c0_86 = arith.constant 0 : index
    %140 = vector.load %arg5[%c0_85, %c0_86] : memref<128x512xf32, #tpu.memory_space<vmem>>, vector<128x512xf32>
    %cst_87 = arith.constant dense<0.000000e+00> : vector<8x512xf32>
    %141 = tpu.matmul %139, %140, %cst_87 {dimension_numbers = #tpu.dot_dimension_numbers<[1], [0], [0], [1], [0, 0, 1, 1], [], []>} : vector<8x128xf32>, vector<128x512xf32>, vector<8x512xf32> -> vector<8x512xf32>
    %c3 = arith.constant 3 : index
    %c0_88 = arith.constant 0 : index
    %c0_89 = arith.constant 0 : index
    %142 = vector.load %arg10[%c3, %c0_88, %c0_89] : memref<8x8x512xf32, #tpu.memory_space<vmem>>, vector<1x8x512xf32>
    %143 = vector.shape_cast %142 : vector<1x8x512xf32> to vector<8x512xf32>
    %c4 = arith.constant 4 : index
    %c0_90 = arith.constant 0 : index
    %c0_91 = arith.constant 0 : index
    %144 = vector.load %arg11[%c4, %c0_90, %c0_91] : memref<8x8x512xf32, #tpu.memory_space<vmem>>, vector<1x8x512xf32>
    %145 = vector.shape_cast %144 : vector<1x8x512xf32> to vector<8x512xf32>
    %146 = arith.addf %143, %145 : vector<8x512xf32>
    %147 = arith.addf %146, %141 : vector<8x512xf32>
    %c0_92 = arith.constant 0 : index
    %c0_93 = arith.constant 0 : index
    %148 = vector.load %arg9[%c0_92, %c0_93] : memref<8x128xf32, #tpu.memory_space<vmem>>, vector<8x128xf32>
    %149 = vector.extract_strided_slice %147 {offsets = [0, 0], sizes = [8, 128], strides = [1, 1]} : vector<8x512xf32> to vector<8x128xf32>
    %150 = arith.negf %149 : vector<8x128xf32>
    %151 = math.exp %150 : vector<8x128xf32>
    %cst_94 = arith.constant 1.000000e+00 : f32
    %152 = vector.broadcast %cst_94 : f32 to vector<8x128xf32>
    %153 = arith.addf %152, %151 : vector<8x128xf32>
    %154 = arith.divf %152, %153 : vector<8x128xf32>
    %155 = vector.extract_strided_slice %147 {offsets = [0, 128], sizes = [8, 128], strides = [1, 1]} : vector<8x512xf32> to vector<8x128xf32>
    %156 = arith.negf %155 : vector<8x128xf32>
    %157 = math.exp %156 : vector<8x128xf32>
    %cst_95 = arith.constant 1.000000e+00 : f32
    %158 = vector.broadcast %cst_95 : f32 to vector<8x128xf32>
    %159 = arith.addf %158, %157 : vector<8x128xf32>
    %160 = arith.divf %158, %159 : vector<8x128xf32>
    %161 = vector.extract_strided_slice %147 {offsets = [0, 256], sizes = [8, 128], strides = [1, 1]} : vector<8x512xf32> to vector<8x128xf32>
    %162 = math.tanh %161 : vector<8x128xf32>
    %163 = vector.extract_strided_slice %147 {offsets = [0, 384], sizes = [8, 128], strides = [1, 1]} : vector<8x512xf32> to vector<8x128xf32>
    %164 = arith.negf %163 : vector<8x128xf32>
    %165 = math.exp %164 : vector<8x128xf32>
    %cst_96 = arith.constant 1.000000e+00 : f32
    %166 = vector.broadcast %cst_96 : f32 to vector<8x128xf32>
    %167 = arith.addf %166, %165 : vector<8x128xf32>
    %168 = arith.divf %166, %167 : vector<8x128xf32>
    %169 = arith.mulf %160, %148 : vector<8x128xf32>
    %170 = arith.mulf %154, %162 : vector<8x128xf32>
    %171 = arith.addf %169, %170 : vector<8x128xf32>
    %172 = math.tanh %171 : vector<8x128xf32>
    %173 = arith.mulf %168, %172 : vector<8x128xf32>
    %c0_97 = arith.constant 0 : index
    %c0_98 = arith.constant 0 : index
    %174 = vector.load %arg8[%c0_97, %c0_98] : memref<8x128xf32, #tpu.memory_space<vmem>>, vector<8x128xf32>
    tpu.vector_store %arg8[%c0_97, %c0_98], %173 {strides = array<i32>} : memref<8x128xf32, #tpu.memory_space<vmem>>, vector<8x128xf32>,
    %c0_99 = arith.constant 0 : index
    %c0_100 = arith.constant 0 : index
    %175 = vector.load %arg9[%c0_99, %c0_100] : memref<8x128xf32, #tpu.memory_space<vmem>>, vector<8x128xf32>
    tpu.vector_store %arg9[%c0_99, %c0_100], %171 {strides = array<i32>} : memref<8x128xf32, #tpu.memory_space<vmem>>, vector<8x128xf32>,
    %c3_101 = arith.constant 3 : index
    %c0_102 = arith.constant 0 : index
    %c0_103 = arith.constant 0 : index
    %176 = vector.load %arg7[%c3_101, %c0_102, %c0_103] : memref<8x8x128xf32, #tpu.memory_space<vmem>>, vector<1x8x128xf32>
    %177 = vector.shape_cast %176 : vector<1x8x128xf32> to vector<8x128xf32>
    %178 = vector.shape_cast %173 : vector<8x128xf32> to vector<1x8x128xf32>
    tpu.vector_store %arg7[%c3_101, %c0_102, %c0_103], %178 {strides = array<i32>} : memref<8x8x128xf32, #tpu.memory_space<vmem>>, vector<1x8x128xf32>,
    %c0_104 = arith.constant 0 : index
    %c0_105 = arith.constant 0 : index
    %179 = vector.load %arg8[%c0_104, %c0_105] : memref<8x128xf32, #tpu.memory_space<vmem>>, vector<8x128xf32>
    %c0_106 = arith.constant 0 : index
    %c0_107 = arith.constant 0 : index
    %180 = vector.load %arg5[%c0_106, %c0_107] : memref<128x512xf32, #tpu.memory_space<vmem>>, vector<128x512xf32>
    %cst_108 = arith.constant dense<0.000000e+00> : vector<8x512xf32>
    %181 = tpu.matmul %179, %180, %cst_108 {dimension_numbers = #tpu.dot_dimension_numbers<[1], [0], [0], [1], [0, 0, 1, 1], [], []>} : vector<8x128xf32>, vector<128x512xf32>, vector<8x512xf32> -> vector<8x512xf32>
    %c4_109 = arith.constant 4 : index
    %c0_110 = arith.constant 0 : index
    %c0_111 = arith.constant 0 : index
    %182 = vector.load %arg10[%c4_109, %c0_110, %c0_111] : memref<8x8x512xf32, #tpu.memory_space<vmem>>, vector<1x8x512xf32>
    %183 = vector.shape_cast %182 : vector<1x8x512xf32> to vector<8x512xf32>
    %c3_112 = arith.constant 3 : index
    %c0_113 = arith.constant 0 : index
    %c0_114 = arith.constant 0 : index
    %184 = vector.load %arg11[%c3_112, %c0_113, %c0_114] : memref<8x8x512xf32, #tpu.memory_space<vmem>>, vector<1x8x512xf32>
    %185 = vector.shape_cast %184 : vector<1x8x512xf32> to vector<8x512xf32>
    %186 = arith.addf %183, %185 : vector<8x512xf32>
    %187 = arith.addf %186, %181 : vector<8x512xf32>
    %c0_115 = arith.constant 0 : index
    %c0_116 = arith.constant 0 : index
    %188 = vector.load %arg9[%c0_115, %c0_116] : memref<8x128xf32, #tpu.memory_space<vmem>>, vector<8x128xf32>
    %189 = vector.extract_strided_slice %187 {offsets = [0, 0], sizes = [8, 128], strides = [1, 1]} : vector<8x512xf32> to vector<8x128xf32>
    %190 = arith.negf %189 : vector<8x128xf32>
    %191 = math.exp %190 : vector<8x128xf32>
    %cst_117 = arith.constant 1.000000e+00 : f32
    %192 = vector.broadcast %cst_117 : f32 to vector<8x128xf32>
    %193 = arith.addf %192, %191 : vector<8x128xf32>
    %194 = arith.divf %192, %193 : vector<8x128xf32>
    %195 = vector.extract_strided_slice %187 {offsets = [0, 128], sizes = [8, 128], strides = [1, 1]} : vector<8x512xf32> to vector<8x128xf32>
    %196 = arith.negf %195 : vector<8x128xf32>
    %197 = math.exp %196 : vector<8x128xf32>
    %cst_118 = arith.constant 1.000000e+00 : f32
    %198 = vector.broadcast %cst_118 : f32 to vector<8x128xf32>
    %199 = arith.addf %198, %197 : vector<8x128xf32>
    %200 = arith.divf %198, %199 : vector<8x128xf32>
    %201 = vector.extract_strided_slice %187 {offsets = [0, 256], sizes = [8, 128], strides = [1, 1]} : vector<8x512xf32> to vector<8x128xf32>
    %202 = math.tanh %201 : vector<8x128xf32>
    %203 = vector.extract_strided_slice %187 {offsets = [0, 384], sizes = [8, 128], strides = [1, 1]} : vector<8x512xf32> to vector<8x128xf32>
    %204 = arith.negf %203 : vector<8x128xf32>
    %205 = math.exp %204 : vector<8x128xf32>
    %cst_119 = arith.constant 1.000000e+00 : f32
    %206 = vector.broadcast %cst_119 : f32 to vector<8x128xf32>
    %207 = arith.addf %206, %205 : vector<8x128xf32>
    %208 = arith.divf %206, %207 : vector<8x128xf32>
    %209 = arith.mulf %200, %188 : vector<8x128xf32>
    %210 = arith.mulf %194, %202 : vector<8x128xf32>
    %211 = arith.addf %209, %210 : vector<8x128xf32>
    %212 = math.tanh %211 : vector<8x128xf32>
    %213 = arith.mulf %208, %212 : vector<8x128xf32>
    %c0_120 = arith.constant 0 : index
    %c0_121 = arith.constant 0 : index
    %214 = vector.load %arg8[%c0_120, %c0_121] : memref<8x128xf32, #tpu.memory_space<vmem>>, vector<8x128xf32>
    tpu.vector_store %arg8[%c0_120, %c0_121], %213 {strides = array<i32>} : memref<8x128xf32, #tpu.memory_space<vmem>>, vector<8x128xf32>,
    %c0_122 = arith.constant 0 : index
    %c0_123 = arith.constant 0 : index
    %215 = vector.load %arg9[%c0_122, %c0_123] : memref<8x128xf32, #tpu.memory_space<vmem>>, vector<8x128xf32>
    tpu.vector_store %arg9[%c0_122, %c0_123], %211 {strides = array<i32>} : memref<8x128xf32, #tpu.memory_space<vmem>>, vector<8x128xf32>,
    %c4_124 = arith.constant 4 : index
    %c0_125 = arith.constant 0 : index
    %c0_126 = arith.constant 0 : index
    %216 = vector.load %arg7[%c4_124, %c0_125, %c0_126] : memref<8x8x128xf32, #tpu.memory_space<vmem>>, vector<1x8x128xf32>
    %217 = vector.shape_cast %216 : vector<1x8x128xf32> to vector<8x128xf32>
    %218 = vector.shape_cast %213 : vector<8x128xf32> to vector<1x8x128xf32>
    tpu.vector_store %arg7[%c4_124, %c0_125, %c0_126], %218 {strides = array<i32>} : memref<8x8x128xf32, #tpu.memory_space<vmem>>, vector<1x8x128xf32>,
    %c0_127 = arith.constant 0 : index
    %c0_128 = arith.constant 0 : index
    %219 = vector.load %arg8[%c0_127, %c0_128] : memref<8x128xf32, #tpu.memory_space<vmem>>, vector<8x128xf32>
    %c0_129 = arith.constant 0 : index
    %c0_130 = arith.constant 0 : index
    %220 = vector.load %arg5[%c0_129, %c0_130] : memref<128x512xf32, #tpu.memory_space<vmem>>, vector<128x512xf32>
    %cst_131 = arith.constant dense<0.000000e+00> : vector<8x512xf32>
    %221 = tpu.matmul %219, %220, %cst_131 {dimension_numbers = #tpu.dot_dimension_numbers<[1], [0], [0], [1], [0, 0, 1, 1], [], []>} : vector<8x128xf32>, vector<128x512xf32>, vector<8x512xf32> -> vector<8x512xf32>
    %c5_132 = arith.constant 5 : index
    %c0_133 = arith.constant 0 : index
    %c0_134 = arith.constant 0 : index
    %222 = vector.load %arg10[%c5_132, %c0_133, %c0_134] : memref<8x8x512xf32, #tpu.memory_space<vmem>>, vector<1x8x512xf32>
    %223 = vector.shape_cast %222 : vector<1x8x512xf32> to vector<8x512xf32>
    %c2_135 = arith.constant 2 : index
    %c0_136 = arith.constant 0 : index
    %c0_137 = arith.constant 0 : index
    %224 = vector.load %arg11[%c2_135, %c0_136, %c0_137] : memref<8x8x512xf32, #tpu.memory_space<vmem>>, vector<1x8x512xf32>
    %225 = vector.shape_cast %224 : vector<1x8x512xf32> to vector<8x512xf32>
    %226 = arith.addf %223, %225 : vector<8x512xf32>
    %227 = arith.addf %226, %221 : vector<8x512xf32>
    %c0_138 = arith.constant 0 : index
    %c0_139 = arith.constant 0 : index
    %228 = vector.load %arg9[%c0_138, %c0_139] : memref<8x128xf32, #tpu.memory_space<vmem>>, vector<8x128xf32>
    %229 = vector.extract_strided_slice %227 {offsets = [0, 0], sizes = [8, 128], strides = [1, 1]} : vector<8x512xf32> to vector<8x128xf32>
    %230 = arith.negf %229 : vector<8x128xf32>
    %231 = math.exp %230 : vector<8x128xf32>
    %cst_140 = arith.constant 1.000000e+00 : f32
    %232 = vector.broadcast %cst_140 : f32 to vector<8x128xf32>
    %233 = arith.addf %232, %231 : vector<8x128xf32>
    %234 = arith.divf %232, %233 : vector<8x128xf32>
    %235 = vector.extract_strided_slice %227 {offsets = [0, 128], sizes = [8, 128], strides = [1, 1]} : vector<8x512xf32> to vector<8x128xf32>
    %236 = arith.negf %235 : vector<8x128xf32>
    %237 = math.exp %236 : vector<8x128xf32>
    %cst_141 = arith.constant 1.000000e+00 : f32
    %238 = vector.broadcast %cst_141 : f32 to vector<8x128xf32>
    %239 = arith.addf %238, %237 : vector<8x128xf32>
    %240 = arith.divf %238, %239 : vector<8x128xf32>
    %241 = vector.extract_strided_slice %227 {offsets = [0, 256], sizes = [8, 128], strides = [1, 1]} : vector<8x512xf32> to vector<8x128xf32>
    %242 = math.tanh %241 : vector<8x128xf32>
    %243 = vector.extract_strided_slice %227 {offsets = [0, 384], sizes = [8, 128], strides = [1, 1]} : vector<8x512xf32> to vector<8x128xf32>
    %244 = arith.negf %243 : vector<8x128xf32>
    %245 = math.exp %244 : vector<8x128xf32>
    %cst_142 = arith.constant 1.000000e+00 : f32
    %246 = vector.broadcast %cst_142 : f32 to vector<8x128xf32>
    %247 = arith.addf %246, %245 : vector<8x128xf32>
    %248 = arith.divf %246, %247 : vector<8x128xf32>
    %249 = arith.mulf %240, %228 : vector<8x128xf32>
    %250 = arith.mulf %234, %242 : vector<8x128xf32>
    %251 = arith.addf %249, %250 : vector<8x128xf32>
    %252 = math.tanh %251 : vector<8x128xf32>
    %253 = arith.mulf %248, %252 : vector<8x128xf32>
    %c0_143 = arith.constant 0 : index
    %c0_144 = arith.constant 0 : index
    %254 = vector.load %arg8[%c0_143, %c0_144] : memref<8x128xf32, #tpu.memory_space<vmem>>, vector<8x128xf32>
    tpu.vector_store %arg8[%c0_143, %c0_144], %253 {strides = array<i32>} : memref<8x128xf32, #tpu.memory_space<vmem>>, vector<8x128xf32>,
    %c0_145 = arith.constant 0 : index
    %c0_146 = arith.constant 0 : index
    %255 = vector.load %arg9[%c0_145, %c0_146] : memref<8x128xf32, #tpu.memory_space<vmem>>, vector<8x128xf32>
    tpu.vector_store %arg9[%c0_145, %c0_146], %251 {strides = array<i32>} : memref<8x128xf32, #tpu.memory_space<vmem>>, vector<8x128xf32>,
    %c5_147 = arith.constant 5 : index
    %c0_148 = arith.constant 0 : index
    %c0_149 = arith.constant 0 : index
    %256 = vector.load %arg7[%c5_147, %c0_148, %c0_149] : memref<8x8x128xf32, #tpu.memory_space<vmem>>, vector<1x8x128xf32>
    %257 = vector.shape_cast %256 : vector<1x8x128xf32> to vector<8x128xf32>
    %258 = vector.shape_cast %253 : vector<8x128xf32> to vector<1x8x128xf32>
    tpu.vector_store %arg7[%c5_147, %c0_148, %c0_149], %258 {strides = array<i32>} : memref<8x8x128xf32, #tpu.memory_space<vmem>>, vector<1x8x128xf32>,
    %c0_150 = arith.constant 0 : index
    %c0_151 = arith.constant 0 : index
    %259 = vector.load %arg8[%c0_150, %c0_151] : memref<8x128xf32, #tpu.memory_space<vmem>>, vector<8x128xf32>
    %c0_152 = arith.constant 0 : index
    %c0_153 = arith.constant 0 : index
    %260 = vector.load %arg5[%c0_152, %c0_153] : memref<128x512xf32, #tpu.memory_space<vmem>>, vector<128x512xf32>
    %cst_154 = arith.constant dense<0.000000e+00> : vector<8x512xf32>
    %261 = tpu.matmul %259, %260, %cst_154 {dimension_numbers = #tpu.dot_dimension_numbers<[1], [0], [0], [1], [0, 0, 1, 1], [], []>} : vector<8x128xf32>, vector<128x512xf32>, vector<8x512xf32> -> vector<8x512xf32>
    %c6_155 = arith.constant 6 : index
    %c0_156 = arith.constant 0 : index
    %c0_157 = arith.constant 0 : index
    %262 = vector.load %arg10[%c6_155, %c0_156, %c0_157] : memref<8x8x512xf32, #tpu.memory_space<vmem>>, vector<1x8x512xf32>
    %263 = vector.shape_cast %262 : vector<1x8x512xf32> to vector<8x512xf32>
    %c1_158 = arith.constant 1 : index
    %c0_159 = arith.constant 0 : index
    %c0_160 = arith.constant 0 : index
    %264 = vector.load %arg11[%c1_158, %c0_159, %c0_160] : memref<8x8x512xf32, #tpu.memory_space<vmem>>, vector<1x8x512xf32>
    %265 = vector.shape_cast %264 : vector<1x8x512xf32> to vector<8x512xf32>
    %266 = arith.addf %263, %265 : vector<8x512xf32>
    %267 = arith.addf %266, %261 : vector<8x512xf32>
    %c0_161 = arith.constant 0 : index
    %c0_162 = arith.constant 0 : index
    %268 = vector.load %arg9[%c0_161, %c0_162] : memref<8x128xf32, #tpu.memory_space<vmem>>, vector<8x128xf32>
    %269 = vector.extract_strided_slice %267 {offsets = [0, 0], sizes = [8, 128], strides = [1, 1]} : vector<8x512xf32> to vector<8x128xf32>
    %270 = arith.negf %269 : vector<8x128xf32>
    %271 = math.exp %270 : vector<8x128xf32>
    %cst_163 = arith.constant 1.000000e+00 : f32
    %272 = vector.broadcast %cst_163 : f32 to vector<8x128xf32>
    %273 = arith.addf %272, %271 : vector<8x128xf32>
    %274 = arith.divf %272, %273 : vector<8x128xf32>
    %275 = vector.extract_strided_slice %267 {offsets = [0, 128], sizes = [8, 128], strides = [1, 1]} : vector<8x512xf32> to vector<8x128xf32>
    %276 = arith.negf %275 : vector<8x128xf32>
    %277 = math.exp %276 : vector<8x128xf32>
    %cst_164 = arith.constant 1.000000e+00 : f32
    %278 = vector.broadcast %cst_164 : f32 to vector<8x128xf32>
    %279 = arith.addf %278, %277 : vector<8x128xf32>
    %280 = arith.divf %278, %279 : vector<8x128xf32>
    %281 = vector.extract_strided_slice %267 {offsets = [0, 256], sizes = [8, 128], strides = [1, 1]} : vector<8x512xf32> to vector<8x128xf32>
    %282 = math.tanh %281 : vector<8x128xf32>
    %283 = vector.extract_strided_slice %267 {offsets = [0, 384], sizes = [8, 128], strides = [1, 1]} : vector<8x512xf32> to vector<8x128xf32>
    %284 = arith.negf %283 : vector<8x128xf32>
    %285 = math.exp %284 : vector<8x128xf32>
    %cst_165 = arith.constant 1.000000e+00 : f32
    %286 = vector.broadcast %cst_165 : f32 to vector<8x128xf32>
    %287 = arith.addf %286, %285 : vector<8x128xf32>
    %288 = arith.divf %286, %287 : vector<8x128xf32>
    %289 = arith.mulf %280, %268 : vector<8x128xf32>
    %290 = arith.mulf %274, %282 : vector<8x128xf32>
    %291 = arith.addf %289, %290 : vector<8x128xf32>
    %292 = math.tanh %291 : vector<8x128xf32>
    %293 = arith.mulf %288, %292 : vector<8x128xf32>
    %c0_166 = arith.constant 0 : index
    %c0_167 = arith.constant 0 : index
    %294 = vector.load %arg8[%c0_166, %c0_167] : memref<8x128xf32, #tpu.memory_space<vmem>>, vector<8x128xf32>
    tpu.vector_store %arg8[%c0_166, %c0_167], %293 {strides = array<i32>} : memref<8x128xf32, #tpu.memory_space<vmem>>, vector<8x128xf32>,
    %c0_168 = arith.constant 0 : index
    %c0_169 = arith.constant 0 : index
    %295 = vector.load %arg9[%c0_168, %c0_169] : memref<8x128xf32, #tpu.memory_space<vmem>>, vector<8x128xf32>
    tpu.vector_store %arg9[%c0_168, %c0_169], %291 {strides = array<i32>} : memref<8x128xf32, #tpu.memory_space<vmem>>, vector<8x128xf32>,
    %c6_170 = arith.constant 6 : index
    %c0_171 = arith.constant 0 : index
    %c0_172 = arith.constant 0 : index
    %296 = vector.load %arg7[%c6_170, %c0_171, %c0_172] : memref<8x8x128xf32, #tpu.memory_space<vmem>>, vector<1x8x128xf32>
    %297 = vector.shape_cast %296 : vector<1x8x128xf32> to vector<8x128xf32>
    %298 = vector.shape_cast %293 : vector<8x128xf32> to vector<1x8x128xf32>
    tpu.vector_store %arg7[%c6_170, %c0_171, %c0_172], %298 {strides = array<i32>} : memref<8x8x128xf32, #tpu.memory_space<vmem>>, vector<1x8x128xf32>,
    %c0_173 = arith.constant 0 : index
    %c0_174 = arith.constant 0 : index
    %299 = vector.load %arg8[%c0_173, %c0_174] : memref<8x128xf32, #tpu.memory_space<vmem>>, vector<8x128xf32>
    %c0_175 = arith.constant 0 : index
    %c0_176 = arith.constant 0 : index
    %300 = vector.load %arg5[%c0_175, %c0_176] : memref<128x512xf32, #tpu.memory_space<vmem>>, vector<128x512xf32>
    %cst_177 = arith.constant dense<0.000000e+00> : vector<8x512xf32>
    %301 = tpu.matmul %299, %300, %cst_177 {dimension_numbers = #tpu.dot_dimension_numbers<[1], [0], [0], [1], [0, 0, 1, 1], [], []>} : vector<8x128xf32>, vector<128x512xf32>, vector<8x512xf32> -> vector<8x512xf32>
    %c7_178 = arith.constant 7 : index
    %c0_179 = arith.constant 0 : index
    %c0_180 = arith.constant 0 : index
    %302 = vector.load %arg10[%c7_178, %c0_179, %c0_180] : memref<8x8x512xf32, #tpu.memory_space<vmem>>, vector<1x8x512xf32>
    %303 = vector.shape_cast %302 : vector<1x8x512xf32> to vector<8x512xf32>
    %c0_181 = arith.constant 0 : index
    %c0_182 = arith.constant 0 : index
    %c0_183 = arith.constant 0 : index
    %304 = vector.load %arg11[%c0_181, %c0_182, %c0_183] : memref<8x8x512xf32, #tpu.memory_space<vmem>>, vector<1x8x512xf32>
    %305 = vector.shape_cast %304 : vector<1x8x512xf32> to vector<8x512xf32>
    %306 = arith.addf %303, %305 : vector<8x512xf32>
    %307 = arith.addf %306, %301 : vector<8x512xf32>
    %c0_184 = arith.constant 0 : index
    %c0_185 = arith.constant 0 : index
    %308 = vector.load %arg9[%c0_184, %c0_185] : memref<8x128xf32, #tpu.memory_space<vmem>>, vector<8x128xf32>
    %309 = vector.extract_strided_slice %307 {offsets = [0, 0], sizes = [8, 128], strides = [1, 1]} : vector<8x512xf32> to vector<8x128xf32>
    %310 = arith.negf %309 : vector<8x128xf32>
    %311 = math.exp %310 : vector<8x128xf32>
    %cst_186 = arith.constant 1.000000e+00 : f32
    %312 = vector.broadcast %cst_186 : f32 to vector<8x128xf32>
    %313 = arith.addf %312, %311 : vector<8x128xf32>
    %314 = arith.divf %312, %313 : vector<8x128xf32>
    %315 = vector.extract_strided_slice %307 {offsets = [0, 128], sizes = [8, 128], strides = [1, 1]} : vector<8x512xf32> to vector<8x128xf32>
    %316 = arith.negf %315 : vector<8x128xf32>
    %317 = math.exp %316 : vector<8x128xf32>
    %cst_187 = arith.constant 1.000000e+00 : f32
    %318 = vector.broadcast %cst_187 : f32 to vector<8x128xf32>
    %319 = arith.addf %318, %317 : vector<8x128xf32>
    %320 = arith.divf %318, %319 : vector<8x128xf32>
    %321 = vector.extract_strided_slice %307 {offsets = [0, 256], sizes = [8, 128], strides = [1, 1]} : vector<8x512xf32> to vector<8x128xf32>
    %322 = math.tanh %321 : vector<8x128xf32>
    %323 = vector.extract_strided_slice %307 {offsets = [0, 384], sizes = [8, 128], strides = [1, 1]} : vector<8x512xf32> to vector<8x128xf32>
    %324 = arith.negf %323 : vector<8x128xf32>
    %325 = math.exp %324 : vector<8x128xf32>
    %cst_188 = arith.constant 1.000000e+00 : f32
    %326 = vector.broadcast %cst_188 : f32 to vector<8x128xf32>
    %327 = arith.addf %326, %325 : vector<8x128xf32>
    %328 = arith.divf %326, %327 : vector<8x128xf32>
    %329 = arith.mulf %320, %308 : vector<8x128xf32>
    %330 = arith.mulf %314, %322 : vector<8x128xf32>
    %331 = arith.addf %329, %330 : vector<8x128xf32>
    %332 = math.tanh %331 : vector<8x128xf32>
    %333 = arith.mulf %328, %332 : vector<8x128xf32>
    %c0_189 = arith.constant 0 : index
    %c0_190 = arith.constant 0 : index
    %334 = vector.load %arg8[%c0_189, %c0_190] : memref<8x128xf32, #tpu.memory_space<vmem>>, vector<8x128xf32>
    tpu.vector_store %arg8[%c0_189, %c0_190], %333 {strides = array<i32>} : memref<8x128xf32, #tpu.memory_space<vmem>>, vector<8x128xf32>,
    %c0_191 = arith.constant 0 : index
    %c0_192 = arith.constant 0 : index
    %335 = vector.load %arg9[%c0_191, %c0_192] : memref<8x128xf32, #tpu.memory_space<vmem>>, vector<8x128xf32>
    tpu.vector_store %arg9[%c0_191, %c0_192], %331 {strides = array<i32>} : memref<8x128xf32, #tpu.memory_space<vmem>>, vector<8x128xf32>,
    %c7_193 = arith.constant 7 : index
    %c0_194 = arith.constant 0 : index
    %c0_195 = arith.constant 0 : index
    %336 = vector.load %arg7[%c7_193, %c0_194, %c0_195] : memref<8x8x128xf32, #tpu.memory_space<vmem>>, vector<1x8x128xf32>
    %337 = vector.shape_cast %336 : vector<1x8x128xf32> to vector<8x128xf32>
    %338 = vector.shape_cast %333 : vector<8x128xf32> to vector<1x8x128xf32>
    tpu.vector_store %arg7[%c7_193, %c0_194, %c0_195], %338 {strides = array<i32>} : memref<8x8x128xf32, #tpu.memory_space<vmem>>, vector<1x8x128xf32>,
    return
  }
  func.func @transform_0(%arg0: i32) -> (i32, i32, i32) {
    %c0_i32 = arith.constant 0 : i32
    %c0_i32_0 = arith.constant 0 : i32
    %c0_i32_1 = arith.constant 0 : i32
    return %arg0, %c0_i32, %c0_i32_0 : i32, i32, i32
  }
  func.func @transform_1(%arg0: i32) -> (i32, i32, i32) {
    %c0_i32 = arith.constant 0 : i32
    %0 = arith.subi %c0_i32, %arg0 : i32
    %c0_i32_0 = arith.constant 0 : i32
    %c0_i32_1 = arith.constant 0 : i32
    %c0_i32_2 = arith.constant 0 : i32
    return %0, %c0_i32_0, %c0_i32_1 : i32, i32, i32
  }
  func.func @transform_2(%arg0: i32) -> (i32, i32) {
    %c0_i32 = arith.constant 0 : i32
    %c0_i32_0 = arith.constant 0 : i32
    %c0_i32_1 = arith.constant 0 : i32
    return %c0_i32, %c0_i32_0 : i32, i32
  }
  func.func @transform_3(%arg0: i32) -> (i32, i32) {
    %c0_i32 = arith.constant 0 : i32
    %c0_i32_0 = arith.constant 0 : i32
    %c0_i32_1 = arith.constant 0 : i32
    return %c0_i32, %c0_i32_0 : i32, i32
  }
  func.func @transform_4(%arg0: i32) -> (i32, i32) {
    %c0_i32 = arith.constant 0 : i32
    %c0_i32_0 = arith.constant 0 : i32
    %c0_i32_1 = arith.constant 0 : i32
    return %c0_i32, %c0_i32_0 : i32, i32
  }
  func.func @transform_5(%arg0: i32) -> (i32, i32) {
    %c0_i32 = arith.constant 0 : i32
    %c0_i32_0 = arith.constant 0 : i32
    %c0_i32_1 = arith.constant 0 : i32
    return %c0_i32, %c0_i32_0 : i32, i32
  }
  func.func @transform_6(%arg0: i32) -> (i32, i32, i32) {
    %c0_i32 = arith.constant 0 : i32
    %c0_i32_0 = arith.constant 0 : i32
    %c0_i32_1 = arith.constant 0 : i32
    return %arg0, %c0_i32, %c0_i32_0 : i32, i32, i32
  }
}

</mosaic_0001>

<bundles_post_ra>
// kernel: imdb_forward_pallas.2
= control target key start
LH: loop header
LB: loop body
LE: loop exit
PB: predicated region body
PF: predicated region fallthrough
CT: control target
= control target key end

     0   :  { %11 = vsyncpa [#allocation7], 0  ;;  %s4669_s0 = inlined_call_operand.vmem [shape: f32[8,8,256], index: 0, kind: input, shape index: {}, may-alias: {0,1}]   ;;  %s4670_s1 = inlined_call_operand.vmem [shape: f32[8,8,256], index: 1, kind: input, shape index: {}, may-alias: {0,1}]   ;;  %s4671_s2 = inlined_call_operand.vmem [shape: f32[256,512], index: 2, kind: input, shape index: {}]   ;;  %s4672_s3 = inlined_call_operand.hbm [shape: f32[256,512], index: 3, kind: input, shape index: {}]   ;;  %s4673_s4 = inlined_call_operand.hbm [shape: f32[128,512], index: 4, kind: input, shape index: {}]   ;;  %s4674_s5 = inlined_call_operand.vmem [shape: f32[1,512], index: 5, kind: input, shape index: {}]   ;;  %s4675_s6 = inlined_call_operand.vmem [shape: f32[8,8,128], index: 6, kind: output, shape index: {}]  }
   0x1   :  { %12 = vsyncpa [#allocation9], 0  ;;  %s3189_s21 = smov [#allocation6]  }
   0x2   :  { %s33_s22 = sshll.u32 %s3189_s21, 4  ;;  %s34_s22 = int_to_ptr.vmem [resolvable:$true] %s33_s22 }
   0x3   :  { %s3153_s23 = scalar_lea.vmem %s34_s22, 16384  ;;  %p3158_p1 = scmp.lt.s32.totalorder %s34_s22, %s34_s22 }
   0x4   :  { %p3154_p0 = scmp.ne.s32.totalorder %s34_s22, %s3153_s23  ;;  %p3159_p2 = scmp.lt.s32.totalorder %s3153_s23, %s3153_s23 }
   0x6   :  { %p3160_p3 = por %p3159_p2, %p3158_p1 }
   0x8   :  { %p3161_p4 = pnand %p3160_p3, %p3154_p0 }
   0xa   :  { %3164 = shalt.err (!%p3161_p4)
}
   0xb   :  { %s3190_s24 = smov 512   ;;  %s3191_s25 = smov 32  }
   0xc   :  { %39 = dma.hbm_to_vmem [thread:$0]  %s4672_s3, 16384, %s34_s22, [#allocation7], %s3190_s24, %s3190_s24, %s3191_s25  }
   0xd   :  { %s3192_s28 = smov [#allocation8]  }
   0xe   :  { %s45_s29 = sshll.u32 %s3192_s28, 4  ;;  %s46_s29 = int_to_ptr.vmem [resolvable:$true] %s45_s29 }
   0xf   :  { %s3173_s30 = scalar_lea.vmem %s46_s29, 8192  ;;  %p3178_p6 = scmp.lt.s32.totalorder %s46_s29, %s46_s29 }
  0x10   :  { %p3174_p5 = scmp.ne.s32.totalorder %s46_s29, %s3173_s30  ;;  %p3179_p7 = scmp.lt.s32.totalorder %s3173_s30, %s3173_s30 }
  0x12   :  { %p3180_p8 = por %p3179_p7, %p3178_p6 }
  0x14   :  { %p3181_p9 = pnand %p3180_p8, %p3174_p5 }
  0x16   :  { %3184 = shalt.err (!%p3181_p9)
}
  0x17   :  { %51 = dma.hbm_to_vmem [thread:$0]  %s4673_s4, 8192, %s46_s29, [#allocation9], %s3190_s24, %s3190_s24, %s3191_s25  }
  0x18   :  { %3185 = dma.done.wait [#allocation7], 16384  }
  0x19   :  { %3186 = vsyncadd [#allocation7], 4294950912 }
  0x1a   :  { %3187 = dma.done.wait [#allocation9], 8192  }
  0x1b   :  { %3188 = vsyncadd [#allocation9], 4294959104  ;;  %v159_v0 = vld [vmem:[%s4671_s2 + $0x1e8] sm:$0xff]  ;;  %v161_v1 = vld [vmem:[%s4671_s2 + $0x1f8] sm:$0xff] }
  0x1c   :  { %v158_v2 = vld [vmem:[%s4671_s2 + $0x1e0] sm:$0xff]  ;;  %226 = vmatprep.subr.mxu0 %v159_v0  ;;  %339 = vmatprep.subr.mxu1 %v161_v1  ;;  %v160_v3 = vld [vmem:[%s4671_s2 + $0x1f0] sm:$0xff]  ;;  %v155_v4 = vld [vmem:[%s4671_s2 + $0x1c8] sm:$0xff] }
  0x1d   :  { %v157_v5 = vld [vmem:[%s4671_s2 + $0x1d8] sm:$0xff]  ;;  %227 = vmatpush1.msra.mxu0 %v158_v2  ;;  %340 = vmatpush1.msra.mxu1 %v160_v3  ;;  %v154_v6 = vld [vmem:[%s4671_s2 + $0x1c0] sm:$0xff]  ;;  %v156_v7 = vld [vmem:[%s4671_s2 + $0x1d0] sm:$0xff] }
  0x1e   :  { %v151_v8 = vld [vmem:[%s4671_s2 + $0x1a8] sm:$0xff]  ;;  %228 = vmatprep.subr.mxu0 %v155_v4  ;;  %341 = vmatprep.subr.mxu1 %v157_v5  ;;  %v153_v9 = vld [vmem:[%s4671_s2 + $0x1b8] sm:$0xff]  ;;  %v150_v10 = vld [vmem:[%s4671_s2 + $0x1a0] sm:$0xff] }
  0x1f   :  { %v152_v11 = vld [vmem:[%s4671_s2 + $0x1b0] sm:$0xff]  ;;  %229 = vmatpush1.msra.mxu0 %v154_v6  ;;  %342 = vmatpush1.msra.mxu1 %v156_v7  ;;  %v147_v12 = vld [vmem:[%s4671_s2 + $0x188] sm:$0xff]  ;;  %v149_v13 = vld [vmem:[%s4671_s2 + $0x198] sm:$0xff] }
  0x20   :  { %230 = vmatprep.subr.mxu0 %v151_v8  ;;  %343 = vmatprep.subr.mxu1 %v153_v9  ;;  %v146_v14 = vld [vmem:[%s4671_s2 + $0x180] sm:$0xff]  ;;  %v148_v15 = vld [vmem:[%s4671_s2 + $0x190] sm:$0xff]  ;;  %v143_v16 = vld [vmem:[%s4671_s2 + $0x168] sm:$0xff] }
  0x21   :  { %231 = vmatpush1.msra.mxu0 %v150_v10  ;;  %344 = vmatpush1.msra.mxu1 %v152_v11  ;;  %v145_v17 = vld [vmem:[%s4671_s2 + $0x178] sm:$0xff]  ;;  %v142_v18 = vld [vmem:[%s4671_s2 + $0x160] sm:$0xff]  ;;  %v144_v19 = vld [vmem:[%s4671_s2 + $0x170] sm:$0xff] }
  0x22   :  { %232 = vmatprep.subr.mxu0 %v147_v12  ;;  %345 = vmatprep.subr.mxu1 %v149_v13  ;;  %v139_v20 = vld [vmem:[%s4671_s2 + $0x148] sm:$0xff]  ;;  %v141_v21 = vld [vmem:[%s4671_s2 + $0x158] sm:$0xff]  ;;  %v138_v22 = vld [vmem:[%s4671_s2 + $0x140] sm:$0xff] }
  0x23   :  { %233 = vmatpush1.msra.mxu0 %v146_v14  ;;  %346 = vmatpush1.msra.mxu1 %v148_v15  ;;  %v140_v23 = vld [vmem:[%s4671_s2 + $0x150] sm:$0xff]  ;;  %v135_v24 = vld [vmem:[%s4671_s2 + $0x128] sm:$0xff]  ;;  %v137_v25 = vld [vmem:[%s4671_s2 + $0x138] sm:$0xff] }
  0x24   :  { %234 = vmatprep.subr.mxu0 %v143_v16  ;;  %347 = vmatprep.subr.mxu1 %v145_v17  ;;  %v134_v26 = vld [vmem:[%s4671_s2 + $0x120] sm:$0xff]  ;;  %v136_v27 = vld [vmem:[%s4671_s2 + $0x130] sm:$0xff]  ;;  %v131_v28 = vld [vmem:[%s4671_s2 + $0x108] sm:$0xff] }
  0x25   :  { %235 = vmatpush1.msra.mxu0 %v142_v18  ;;  %348 = vmatpush1.msra.mxu1 %v144_v19  ;;  %v133_v29 = vld [vmem:[%s4671_s2 + $0x118] sm:$0xff]  ;;  %v130_v30 = vld [vmem:[%s4671_s2 + $0x100] sm:$0xff]  ;;  %v132_v31 = vld [vmem:[%s4671_s2 + $0x110] sm:$0xff] }
  0x26   :  { %236 = vmatprep.subr.mxu0 %v139_v20  ;;  %349 = vmatprep.subr.mxu1 %v141_v21  ;;  %v127_v32 = vld [vmem:[%s4671_s2 + $0xe8] sm:$0xff]  ;;  %v129_v33 = vld [vmem:[%s4671_s2 + $0xf8] sm:$0xff]  ;;  %v126_v34 = vld [vmem:[%s4671_s2 + $0xe0] sm:$0xff] }
  0x27   :  { %237 = vmatpush1.msra.mxu0 %v138_v22  ;;  %350 = vmatpush1.msra.mxu1 %v140_v23  ;;  %v128_v35 = vld [vmem:[%s4671_s2 + $0xf0] sm:$0xff]  ;;  %v123_v36 = vld [vmem:[%s4671_s2 + $0xc8] sm:$0xff]  ;;  %v125_v37 = vld [vmem:[%s4671_s2 + $0xd8] sm:$0xff] }
  0x28   :  { %238 = vmatprep.subr.mxu0 %v135_v24  ;;  %351 = vmatprep.subr.mxu1 %v137_v25  ;;  %v122_v38 = vld [vmem:[%s4671_s2 + $0xc0] sm:$0xff]  ;;  %v124_v39 = vld [vmem:[%s4671_s2 + $0xd0] sm:$0xff]  ;;  %v119_v40 = vld [vmem:[%s4671_s2 + $0xa8] sm:$0xff] }
  0x29   :  { %239 = vmatpush1.msra.mxu0 %v134_v26  ;;  %352 = vmatpush1.msra.mxu1 %v136_v27  ;;  %v121_v41 = vld [vmem:[%s4671_s2 + $0xb8] sm:$0xff]  ;;  %v118_v42 = vld [vmem:[%s4671_s2 + $0xa0] sm:$0xff]  ;;  %v120_v43 = vld [vmem:[%s4671_s2 + $0xb0] sm:$0xff] }
  0x2a   :  { %240 = vmatprep.subr.mxu0 %v131_v28  ;;  %353 = vmatprep.subr.mxu1 %v133_v29  ;;  %v115_v44 = vld [vmem:[%s4671_s2 + $0x88] sm:$0xff]  ;;  %v117_v45 = vld [vmem:[%s4671_s2 + $0x98] sm:$0xff]  ;;  %v114_v46 = vld [vmem:[%s4671_s2 + $0x80] sm:$0xff] }
  0x2b   :  { %241 = vmatpush1.msra.mxu0 %v130_v30  ;;  %354 = vmatpush1.msra.mxu1 %v132_v31  ;;  %v116_v47 = vld [vmem:[%s4671_s2 + $0x90] sm:$0xff]  ;;  %v111_v48 = vld [vmem:[%s4671_s2 + $0x68] sm:$0xff]  ;;  %v113_v49 = vld [vmem:[%s4671_s2 + $0x78] sm:$0xff] }
  0x2c   :  { %242 = vmatprep.subr.mxu0 %v127_v32  ;;  %355 = vmatprep.subr.mxu1 %v129_v33  ;;  %v110_v50 = vld [vmem:[%s4671_s2 + $0x60] sm:$0xff]  ;;  %v112_v51 = vld [vmem:[%s4671_s2 + $0x70] sm:$0xff]  ;;  %v107_v52 = vld [vmem:[%s4671_s2 + $0x48] sm:$0xff] }
  0x2d   :  { %243 = vmatpush1.msra.mxu0 %v126_v34  ;;  %356 = vmatpush1.msra.mxu1 %v128_v35  ;;  %v109_v53 = vld [vmem:[%s4671_s2 + $0x58] sm:$0xff]  ;;  %v106_v54 = vld [vmem:[%s4671_s2 + $0x40] sm:$0xff]  ;;  %v108_v55 = vld [vmem:[%s4671_s2 + $0x50] sm:$0xff] }
  0x2e   :  { %244 = vmatprep.subr.mxu0 %v123_v36  ;;  %357 = vmatprep.subr.mxu1 %v125_v37  ;;  %v103_v56 = vld [vmem:[%s4671_s2 + $0x28] sm:$0xff]  ;;  %v105_v57 = vld [vmem:[%s4671_s2 + $0x38] sm:$0xff]  ;;  %v102_v58 = vld [vmem:[%s4671_s2 + $0x20] sm:$0xff] }
  0x2f   :  { %245 = vmatpush1.msra.mxu0 %v122_v38  ;;  %358 = vmatpush1.msra.mxu1 %v124_v39  ;;  %v104_v59 = vld [vmem:[%s4671_s2 + $0x30] sm:$0xff]  ;;  %v99_v60 = vld [vmem:[%s4671_s2 + $0x8] sm:$0xff]  ;;  %v101_v61 = vld [vmem:[%s4671_s2 + $0x18] sm:$0xff] }
  0x30   :  { %246 = vmatprep.subr.mxu0 %v119_v40  ;;  %359 = vmatprep.subr.mxu1 %v121_v41  ;;  %v98_v62 = vld [vmem:[%s4671_s2] sm:$0xff]  ;;  %v100_v63 = vld [vmem:[%s4671_s2 + $0x10] sm:$0xff]  ;;  %v223_v0 = vld [vmem:[%s4671_s2 + $0x3e8] sm:$0xff] }
  0x31   :  { %247 = vmatpush1.msra.mxu0 %v118_v42  ;;  %360 = vmatpush1.msra.mxu1 %v120_v43  ;;  %v225_v1 = vld [vmem:[%s4671_s2 + $0x3f8] sm:$0xff]  ;;  %v222_v2 = vld [vmem:[%s4671_s2 + $0x3e0] sm:$0xff]  ;;  %v224_v3 = vld [vmem:[%s4671_s2 + $0x3f0] sm:$0xff] }
  0x32   :  { %248 = vmatprep.subr.mxu0 %v115_v44  ;;  %361 = vmatprep.subr.mxu1 %v117_v45  ;;  %v219_v4 = vld [vmem:[%s4671_s2 + $0x3c8] sm:$0xff]  ;;  %v221_v5 = vld [vmem:[%s4671_s2 + $0x3d8] sm:$0xff]  ;;  %v218_v6 = vld [vmem:[%s4671_s2 + $0x3c0] sm:$0xff] }
  0x33   :  { %249 = vmatpush1.msra.mxu0 %v114_v46  ;;  %362 = vmatpush1.msra.mxu1 %v116_v47  ;;  %v220_v7 = vld [vmem:[%s4671_s2 + $0x3d0] sm:$0xff]  ;;  %v215_v8 = vld [vmem:[%s4671_s2 + $0x3a8] sm:$0xff]  ;;  %v217_v9 = vld [vmem:[%s4671_s2 + $0x3b8] sm:$0xff] }
  0x34   :  { %250 = vmatprep.subr.mxu0 %v111_v48  ;;  %363 = vmatprep.subr.mxu1 %v113_v49  ;;  %v214_v10 = vld [vmem:[%s4671_s2 + $0x3a0] sm:$0xff]  ;;  %v216_v11 = vld [vmem:[%s4671_s2 + $0x3b0] sm:$0xff]  ;;  %v211_v12 = vld [vmem:[%s4671_s2 + $0x388] sm:$0xff] }
  0x35   :  { %251 = vmatpush1.msra.mxu0 %v110_v50  ;;  %364 = vmatpush1.msra.mxu1 %v112_v51  ;;  %v213_v13 = vld [vmem:[%s4671_s2 + $0x398] sm:$0xff]  ;;  %v210_v14 = vld [vmem:[%s4671_s2 + $0x380] sm:$0xff]  ;;  %v212_v15 = vld [vmem:[%s4671_s2 + $0x390] sm:$0xff] }
  0x36   :  { %252 = vmatprep.subr.mxu0 %v107_v52  ;;  %365 = vmatprep.subr.mxu1 %v109_v53  ;;  %v207_v16 = vld [vmem:[%s4671_s2 + $0x368] sm:$0xff]  ;;  %v209_v17 = vld [vmem:[%s4671_s2 + $0x378] sm:$0xff]  ;;  %v206_v18 = vld [vmem:[%s4671_s2 + $0x360] sm:$0xff] }
  0x37   :  { %253 = vmatpush1.msra.mxu0 %v106_v54  ;;  %366 = vmatpush1.msra.mxu1 %v108_v55  ;;  %v208_v19 = vld [vmem:[%s4671_s2 + $0x370] sm:$0xff]  ;;  %v203_v20 = vld [vmem:[%s4671_s2 + $0x348] sm:$0xff]  ;;  %v205_v21 = vld [vmem:[%s4671_s2 + $0x358] sm:$0xff] }
  0x38   :  { %254 = vmatprep.subr.mxu0 %v103_v56  ;;  %367 = vmatprep.subr.mxu1 %v105_v57  ;;  %v202_v22 = vld [vmem:[%s4671_s2 + $0x340] sm:$0xff]  ;;  %v204_v23 = vld [vmem:[%s4671_s2 + $0x350] sm:$0xff]  ;;  %v199_v24 = vld [vmem:[%s4671_s2 + $0x328] sm:$0xff] }
  0x39   :  { %255 = vmatpush1.msra.mxu0 %v102_v58  ;;  %368 = vmatpush1.msra.mxu1 %v104_v59  ;;  %v201_v25 = vld [vmem:[%s4671_s2 + $0x338] sm:$0xff]  ;;  %v198_v26 = vld [vmem:[%s4671_s2 + $0x320] sm:$0xff]  ;;  %v200_v27 = vld [vmem:[%s4671_s2 + $0x330] sm:$0xff] }
  0x3a   :  { %256 = vmatprep.subr.mxu0 %v99_v60  ;;  %369 = vmatprep.subr.mxu1 %v101_v61  ;;  %v195_v28 = vld [vmem:[%s4671_s2 + $0x308] sm:$0xff]  ;;  %v197_v29 = vld [vmem:[%s4671_s2 + $0x318] sm:$0xff]  ;;  %v194_v30 = vld [vmem:[%s4671_s2 + $0x300] sm:$0xff] }
  0x3b   :  { %257 = vmatpush1.msra.mxu0 %v98_v62  ;;  %370 = vmatpush1.msra.mxu1 %v100_v63  ;;  %v196_v31 = vld [vmem:[%s4671_s2 + $0x310] sm:$0xff]  ;;  %v191_v32 = vld [vmem:[%s4671_s2 + $0x2e8] sm:$0xff]  ;;  %v193_v33 = vld [vmem:[%s4671_s2 + $0x2f8] sm:$0xff] }
  0x3c   :  { %258 = vmatprep.subr.mxu0 %v223_v0  ;;  %371 = vmatprep.subr.mxu1 %v225_v1  ;;  %v190_v34 = vld [vmem:[%s4671_s2 + $0x2e0] sm:$0xff]  ;;  %v192_v35 = vld [vmem:[%s4671_s2 + $0x2f0] sm:$0xff]  ;;  %v187_v36 = vld [vmem:[%s4671_s2 + $0x2c8] sm:$0xff] }
  0x3d   :  { %259 = vmatpush2.msra.mxu0 %v222_v2  ;;  %372 = vmatpush2.msra.mxu1 %v224_v3  ;;  %v189_v37 = vld [vmem:[%s4671_s2 + $0x2d8] sm:$0xff]  ;;  %v186_v38 = vld [vmem:[%s4671_s2 + $0x2c0] sm:$0xff]  ;;  %v188_v39 = vld [vmem:[%s4671_s2 + $0x2d0] sm:$0xff] }
  0x3e   :  { %260 = vmatprep.subr.mxu0 %v219_v4  ;;  %373 = vmatprep.subr.mxu1 %v221_v5  ;;  %v183_v40 = vld [vmem:[%s4671_s2 + $0x2a8] sm:$0xff]  ;;  %v185_v41 = vld [vmem:[%s4671_s2 + $0x2b8] sm:$0xff]  ;;  %v182_v42 = vld [vmem:[%s4671_s2 + $0x2a0] sm:$0xff] }
  0x3f   :  { %261 = vmatpush2.msra.mxu0 %v218_v6  ;;  %374 = vmatpush2.msra.mxu1 %v220_v7  ;;  %v184_v43 = vld [vmem:[%s4671_s2 + $0x2b0] sm:$0xff]  ;;  %v179_v44 = vld [vmem:[%s4671_s2 + $0x288] sm:$0xff]  ;;  %v181_v45 = vld [vmem:[%s4671_s2 + $0x298] sm:$0xff] }
  0x40   :  { %262 = vmatprep.subr.mxu0 %v215_v8  ;;  %375 = vmatprep.subr.mxu1 %v217_v9  ;;  %v178_v46 = vld [vmem:[%s4671_s2 + $0x280] sm:$0xff]  ;;  %v180_v47 = vld [vmem:[%s4671_s2 + $0x290] sm:$0xff]  ;;  %v175_v48 = vld [vmem:[%s4671_s2 + $0x268] sm:$0xff] }
  0x41   :  { %263 = vmatpush2.msra.mxu0 %v214_v10  ;;  %376 = vmatpush2.msra.mxu1 %v216_v11  ;;  %v177_v49 = vld [vmem:[%s4671_s2 + $0x278] sm:$0xff]  ;;  %v174_v50 = vld [vmem:[%s4671_s2 + $0x260] sm:$0xff]  ;;  %v176_v51 = vld [vmem:[%s4671_s2 + $0x270] sm:$0xff] }
  0x42   :  { %264 = vmatprep.subr.mxu0 %v211_v12  ;;  %377 = vmatprep.subr.mxu1 %v213_v13  ;;  %v171_v52 = vld [vmem:[%s4671_s2 + $0x248] sm:$0xff]  ;;  %v173_v53 = vld [vmem:[%s4671_s2 + $0x258] sm:$0xff]  ;;  %v170_v54 = vld [vmem:[%s4671_s2 + $0x240] sm:$0xff] }
  0x43   :  { %265 = vmatpush2.msra.mxu0 %v210_v14  ;;  %378 = vmatpush2.msra.mxu1 %v212_v15  ;;  %v172_v55 = vld [vmem:[%s4671_s2 + $0x250] sm:$0xff]  ;;  %v167_v56 = vld [vmem:[%s4671_s2 + $0x228] sm:$0xff]  ;;  %v169_v57 = vld [vmem:[%s4671_s2 + $0x238] sm:$0xff] }
  0x44   :  { %266 = vmatprep.subr.mxu0 %v207_v16  ;;  %379 = vmatprep.subr.mxu1 %v209_v17  ;;  %v166_v58 = vld [vmem:[%s4671_s2 + $0x220] sm:$0xff]  ;;  %v168_v59 = vld [vmem:[%s4671_s2 + $0x230] sm:$0xff]  ;;  %v163_v60 = vld [vmem:[%s4671_s2 + $0x208] sm:$0xff] }
  0x45   :  { %267 = vmatpush2.msra.mxu0 %v206_v18  ;;  %380 = vmatpush2.msra.mxu1 %v208_v19  ;;  %v165_v61 = vld [vmem:[%s4671_s2 + $0x218] sm:$0xff]  ;;  %v162_v62 = vld [vmem:[%s4671_s2 + $0x200] sm:$0xff]  ;;  %v83_v63 = vld [vmem:[%s4669_s0 + $0x8] sm:$0xff] }
  0x46   :  { %268 = vmatprep.subr.mxu0 %v203_v20  ;;  %381 = vmatprep.subr.mxu1 %v205_v21  ;;  %v164_v0 = vld [vmem:[%s4671_s2 + $0x210] sm:$0xff]  ;;  %v82_v1 = vld [vmem:[%s4669_s0] sm:$0xff]  ;;  %v615_v2 = vld [vmem:[#allocation6 + $0x1e8] sm:$0xff] }
  0x47   :  { %269 = vmatpush2.msra.mxu0 %v202_v22  ;;  %382 = vmatpush2.msra.mxu1 %v204_v23  ;;  %v617_v3 = vld [vmem:[#allocation6 + $0x1f8] sm:$0xff]  ;;  %v614_v4 = vld [vmem:[#allocation6 + $0x1e0] sm:$0xff]  ;;  %v616_v5 = vld [vmem:[#allocation6 + $0x1f0] sm:$0xff] }
  0x48   :  { %270 = vmatprep.subr.mxu0 %v199_v24  ;;  %383 = vmatprep.subr.mxu1 %v201_v25  ;;  %v611_v6 = vld [vmem:[#allocation6 + $0x1c8] sm:$0xff]  ;;  %v613_v7 = vld [vmem:[#allocation6 + $0x1d8] sm:$0xff]  ;;  %v610_v8 = vld [vmem:[#allocation6 + $0x1c0] sm:$0xff] }
  0x49   :  { %271 = vmatpush2.msra.mxu0 %v198_v26  ;;  %384 = vmatpush2.msra.mxu1 %v200_v27  ;;  %v612_v9 = vld [vmem:[#allocation6 + $0x1d0] sm:$0xff]  ;;  %v607_v10 = vld [vmem:[#allocation6 + $0x1a8] sm:$0xff]  ;;  %v609_v11 = vld [vmem:[#allocation6 + $0x1b8] sm:$0xff] }
  0x4a   :  { %272 = vmatprep.subr.mxu0 %v195_v28  ;;  %385 = vmatprep.subr.mxu1 %v197_v29  ;;  %v606_v12 = vld [vmem:[#allocation6 + $0x1a0] sm:$0xff]  ;;  %v608_v13 = vld [vmem:[#allocation6 + $0x1b0] sm:$0xff]  ;;  %v603_v14 = vld [vmem:[#allocation6 + $0x188] sm:$0xff] }
  0x4b   :  { %273 = vmatpush2.msra.mxu0 %v194_v30  ;;  %386 = vmatpush2.msra.mxu1 %v196_v31  ;;  %v605_v15 = vld [vmem:[#allocation6 + $0x198] sm:$0xff]  ;;  %v602_v16 = vld [vmem:[#allocation6 + $0x180] sm:$0xff]  ;;  %v604_v17 = vld [vmem:[#allocation6 + $0x190] sm:$0xff] }
  0x4c   :  { %274 = vmatprep.subr.mxu0 %v191_v32  ;;  %387 = vmatprep.subr.mxu1 %v193_v33  ;;  %v599_v18 = vld [vmem:[#allocation6 + $0x168] sm:$0xff]  ;;  %v601_v19 = vld [vmem:[#allocation6 + $0x178] sm:$0xff]  ;;  %v598_v20 = vld [vmem:[#allocation6 + $0x160] sm:$0xff] }
  0x4d   :  { %275 = vmatpush2.msra.mxu0 %v190_v34  ;;  %388 = vmatpush2.msra.mxu1 %v192_v35  ;;  %v600_v21 = vld [vmem:[#allocation6 + $0x170] sm:$0xff]  ;;  %v595_v22 = vld [vmem:[#allocation6 + $0x148] sm:$0xff]  ;;  %v597_v23 = vld [vmem:[#allocation6 + $0x158] sm:$0xff] }
  0x4e   :  { %276 = vmatprep.subr.mxu0 %v187_v36  ;;  %389 = vmatprep.subr.mxu1 %v189_v37  ;;  %v594_v24 = vld [vmem:[#allocation6 + $0x140] sm:$0xff]  ;;  %v596_v25 = vld [vmem:[#allocation6 + $0x150] sm:$0xff]  ;;  %v591_v26 = vld [vmem:[#allocation6 + $0x128] sm:$0xff] }
  0x4f   :  { %277 = vmatpush2.msra.mxu0 %v186_v38  ;;  %390 = vmatpush2.msra.mxu1 %v188_v39  ;;  %v593_v27 = vld [vmem:[#allocation6 + $0x138] sm:$0xff]  ;;  %v590_v28 = vld [vmem:[#allocation6 + $0x120] sm:$0xff]  ;;  %v592_v29 = vld [vmem:[#allocation6 + $0x130] sm:$0xff] }
  0x50   :  { %278 = vmatprep.subr.mxu0 %v183_v40  ;;  %391 = vmatprep.subr.mxu1 %v185_v41  ;;  %v587_v30 = vld [vmem:[#allocation6 + $0x108] sm:$0xff]  ;;  %v589_v31 = vld [vmem:[#allocation6 + $0x118] sm:$0xff]  ;;  %v586_v32 = vld [vmem:[#allocation6 + $0x100] sm:$0xff] }
  0x51   :  { %279 = vmatpush2.msra.mxu0 %v182_v42  ;;  %392 = vmatpush2.msra.mxu1 %v184_v43  ;;  %v588_v33 = vld [vmem:[#allocation6 + $0x110] sm:$0xff]  ;;  %v583_v34 = vld [vmem:[#allocation6 + $0xe8] sm:$0xff]  ;;  %v585_v35 = vld [vmem:[#allocation6 + $0xf8] sm:$0xff] }
  0x52   :  { %280 = vmatprep.subr.mxu0 %v179_v44  ;;  %393 = vmatprep.subr.mxu1 %v181_v45  ;;  %v582_v36 = vld [vmem:[#allocation6 + $0xe0] sm:$0xff]  ;;  %v584_v37 = vld [vmem:[#allocation6 + $0xf0] sm:$0xff]  ;;  %v579_v38 = vld [vmem:[#allocation6 + $0xc8] sm:$0xff] }
  0x53   :  { %281 = vmatpush2.msra.mxu0 %v178_v46  ;;  %394 = vmatpush2.msra.mxu1 %v180_v47  ;;  %v581_v39 = vld [vmem:[#allocation6 + $0xd8] sm:$0xff]  ;;  %v578_v40 = vld [vmem:[#allocation6 + $0xc0] sm:$0xff]  ;;  %v580_v41 = vld [vmem:[#allocation6 + $0xd0] sm:$0xff] }
  0x54   :  { %282 = vmatprep.subr.mxu0 %v175_v48  ;;  %395 = vmatprep.subr.mxu1 %v177_v49  ;;  %v575_v42 = vld [vmem:[#allocation6 + $0xa8] sm:$0xff]  ;;  %v577_v43 = vld [vmem:[#allocation6 + $0xb8] sm:$0xff]  ;;  %v574_v44 = vld [vmem:[#allocation6 + $0xa0] sm:$0xff] }
  0x55   :  { %283 = vmatpush2.msra.mxu0 %v174_v50  ;;  %396 = vmatpush2.msra.mxu1 %v176_v51  ;;  %v576_v45 = vld [vmem:[#allocation6 + $0xb0] sm:$0xff]  ;;  %v571_v46 = vld [vmem:[#allocation6 + $0x88] sm:$0xff]  ;;  %v573_v47 = vld [vmem:[#allocation6 + $0x98] sm:$0xff] }
  0x56   :  { %284 = vmatprep.subr.mxu0 %v171_v52  ;;  %397 = vmatprep.subr.mxu1 %v173_v53  ;;  %v570_v48 = vld [vmem:[#allocation6 + $0x80] sm:$0xff]  ;;  %v572_v49 = vld [vmem:[#allocation6 + $0x90] sm:$0xff]  ;;  %v567_v50 = vld [vmem:[#allocation6 + $0x68] sm:$0xff] }
  0x57   :  { %285 = vmatpush2.msra.mxu0 %v170_v54  ;;  %398 = vmatpush2.msra.mxu1 %v172_v55  ;;  %v569_v51 = vld [vmem:[#allocation6 + $0x78] sm:$0xff]  ;;  %v566_v52 = vld [vmem:[#allocation6 + $0x60] sm:$0xff]  ;;  %v568_v53 = vld [vmem:[#allocation6 + $0x70] sm:$0xff] }
  0x58   :  { %286 = vmatprep.subr.mxu0 %v167_v56  ;;  %399 = vmatprep.subr.mxu1 %v169_v57  ;;  %v563_v54 = vld [vmem:[#allocation6 + $0x48] sm:$0xff]  ;;  %v565_v55 = vld [vmem:[#allocation6 + $0x58] sm:$0xff]  ;;  %v562_v56 = vld [vmem:[#allocation6 + $0x40] sm:$0xff] }
  0x59   :  { %287 = vmatpush2.msra.mxu0 %v166_v58  ;;  %400 = vmatpush2.msra.mxu1 %v168_v59  ;;  %v564_v57 = vld [vmem:[#allocation6 + $0x50] sm:$0xff]  ;;  %v559_v58 = vld [vmem:[#allocation6 + $0x28] sm:$0xff]  ;;  %v561_v59 = vld [vmem:[#allocation6 + $0x38] sm:$0xff] }
  0x5a   :  { %288 = vmatprep.subr.mxu0 %v163_v60  ;;  %401 = vmatprep.subr.mxu1 %v165_v61  ;;  %v558_v60 = vld [vmem:[#allocation6 + $0x20] sm:$0xff]  ;;  %v560_v61 = vld [vmem:[#allocation6 + $0x30] sm:$0xff] }
  0x5b   :  { %289 = vmatpush2.msra.mxu0 %v162_v62  ;;  %290 = vmatprep.mubr.f32.mxu0 %v83_v63  ;;  %v555_v62 = vld [vmem:[#allocation6 + $0x8] sm:$0xff] }
  0x5c   :  { %402 = vmatpush2.msra.mxu1 %v164_v0  ;;  %291 = vmatmul.mubr.f32.vlgmr.msra.gmra.mxu0 %v82_v1  ;;  %v554_v0 = vld [vmem:[#allocation6] sm:$0xff] }
  0x5d   :  { %403 = vmatprep.mubr.f32.mxu1 %v83_v63  ;;  %682 = vmatprep.subr.mxu0 %v615_v2  ;;  %v557_v63 = vld [vmem:[#allocation6 + $0x18] sm:$0xff]  ;;  %v679_v2 = vld [vmem:[#allocation6 + $0x3e8] sm:$0xff] }
  0x5e   :  { %795 = vmatprep.subr.mxu1 %v617_v3  ;;  %404 = vmatmul.mubr.f32.vlgmr.msra.gmra.mxu1 %v82_v1  ;;  %v556_v1 = vld [vmem:[#allocation6 + $0x10] sm:$0xff]  ;;  %v681_v3 = vld [vmem:[#allocation6 + $0x3f8] sm:$0xff] }
  0x5f   :  { %683 = vmatpush1.msra.mxu0 %v614_v4  ;;  %796 = vmatpush1.msra.mxu1 %v616_v5  ;;  %v678_v4 = vld [vmem:[#allocation6 + $0x3e0] sm:$0xff]  ;;  %v680_v5 = vld [vmem:[#allocation6 + $0x3f0] sm:$0xff] }
  0x60   :  { %684 = vmatprep.subr.mxu0 %v611_v6  ;;  %797 = vmatprep.subr.mxu1 %v613_v7  ;;  %v85_v6 = vld [vmem:[%s4669_s0 + $0x18] sm:$0xff]  ;;  %v675_v7 = vld [vmem:[#allocation6 + $0x3c8] sm:$0xff] }
  0x61   :  { %685 = vmatpush1.msra.mxu0 %v610_v8  ;;  %798 = vmatpush1.msra.mxu1 %v612_v9  ;;  %v677_v8 = vld [vmem:[#allocation6 + $0x3d8] sm:$0xff]  ;;  %v84_v9 = vld [vmem:[%s4669_s0 + $0x10] sm:$0xff] }
  0x62   :  { %686 = vmatprep.subr.mxu0 %v607_v10  ;;  %799 = vmatprep.subr.mxu1 %v609_v11  ;;  %v674_v10 = vld [vmem:[#allocation6 + $0x3c0] sm:$0xff]  ;;  %v676_v11 = vld [vmem:[#allocation6 + $0x3d0] sm:$0xff] }
  0x63   :  { %687 = vmatpush1.msra.mxu0 %v606_v12  ;;  %800 = vmatpush1.msra.mxu1 %v608_v13  ;;  %v671_v12 = vld [vmem:[#allocation6 + $0x3a8] sm:$0xff]  ;;  %v673_v13 = vld [vmem:[#allocation6 + $0x3b8] sm:$0xff] }
  0x64   :  { %688 = vmatprep.subr.mxu0 %v603_v14  ;;  %801 = vmatprep.subr.mxu1 %v605_v15  ;;  %v670_v14 = vld [vmem:[#allocation6 + $0x3a0] sm:$0xff]  ;;  %v672_v15 = vld [vmem:[#allocation6 + $0x3b0] sm:$0xff] }
  0x65   :  { %689 = vmatpush1.msra.mxu0 %v602_v16  ;;  %802 = vmatpush1.msra.mxu1 %v604_v17  ;;  %v87_v16 = vld [vmem:[%s4669_s0 + $0x28] sm:$0xff] }
  0x66   :  { %690 = vmatprep.subr.mxu0 %v599_v18  ;;  %803 = vmatprep.subr.mxu1 %v601_v19  ;;  %v667_v17 = vld [vmem:[#allocation6 + $0x388] sm:$0xff]  ;;  %v669_v18 = vld [vmem:[#allocation6 + $0x398] sm:$0xff]  ;;  %v86_v19 = vld [vmem:[%s4669_s0 + $0x20] sm:$0xff] }
  0x67   :  { %691 = vmatpush1.msra.mxu0 %v598_v20  ;;  %804 = vmatpush1.msra.mxu1 %v600_v21  ;;  %v666_v20 = vld [vmem:[#allocation6 + $0x380] sm:$0xff]  ;;  %v668_v21 = vld [vmem:[#allocation6 + $0x390] sm:$0xff] }
  0x68   :  { %692 = vmatprep.subr.mxu0 %v595_v22  ;;  %805 = vmatprep.subr.mxu1 %v597_v23  ;;  %v663_v22 = vld [vmem:[#allocation6 + $0x368] sm:$0xff]  ;;  %v665_v23 = vld [vmem:[#allocation6 + $0x378] sm:$0xff] }
  0x69   :  { %693 = vmatpush1.msra.mxu0 %v594_v24  ;;  %806 = vmatpush1.msra.mxu1 %v596_v25  ;;  %v662_v24 = vld [vmem:[#allocation6 + $0x360] sm:$0xff]  ;;  %v664_v25 = vld [vmem:[#allocation6 + $0x370] sm:$0xff] }
  0x6a   :  { %694 = vmatprep.subr.mxu0 %v591_v26  ;;  %807 = vmatprep.subr.mxu1 %v593_v27  ;;  %v89_v26 = vld [vmem:[%s4669_s0 + $0x38] sm:$0xff]  ;;  %v659_v27 = vld [vmem:[#allocation6 + $0x348] sm:$0xff] }
  0x6b   :  { %695 = vmatpush1.msra.mxu0 %v590_v28  ;;  %808 = vmatpush1.msra.mxu1 %v592_v29  ;;  %v661_v28 = vld [vmem:[#allocation6 + $0x358] sm:$0xff]  ;;  %v88_v29 = vld [vmem:[%s4669_s0 + $0x30] sm:$0xff] }
  0x6c   :  { %696 = vmatprep.subr.mxu0 %v587_v30  ;;  %809 = vmatprep.subr.mxu1 %v589_v31  ;;  %v658_v30 = vld [vmem:[#allocation6 + $0x340] sm:$0xff]  ;;  %v660_v31 = vld [vmem:[#allocation6 + $0x350] sm:$0xff] }
  0x6d   :  { %697 = vmatpush1.msra.mxu0 %v586_v32  ;;  %810 = vmatpush1.msra.mxu1 %v588_v33  ;;  %v655_v32 = vld [vmem:[#allocation6 + $0x328] sm:$0xff]  ;;  %v657_v33 = vld [vmem:[#allocation6 + $0x338] sm:$0xff] }
  0x6e   :  { %698 = vmatprep.subr.mxu0 %v583_v34  ;;  %811 = vmatprep.subr.mxu1 %v585_v35  ;;  %v654_v34 = vld [vmem:[#allocation6 + $0x320] sm:$0xff]  ;;  %v656_v35 = vld [vmem:[#allocation6 + $0x330] sm:$0xff] }
  0x6f   :  { %699 = vmatpush1.msra.mxu0 %v582_v36  ;;  %812 = vmatpush1.msra.mxu1 %v584_v37  ;;  %v91_v36 = vld [vmem:[%s4669_s0 + $0x48] sm:$0xff] }
  0x70   :  { %700 = vmatprep.subr.mxu0 %v579_v38  ;;  %813 = vmatprep.subr.mxu1 %v581_v39  ;;  %v651_v37 = vld [vmem:[#allocation6 + $0x308] sm:$0xff]  ;;  %v653_v38 = vld [vmem:[#allocation6 + $0x318] sm:$0xff]  ;;  %v90_v39 = vld [vmem:[%s4669_s0 + $0x40] sm:$0xff] }
  0x71   :  { %701 = vmatpush1.msra.mxu0 %v578_v40  ;;  %814 = vmatpush1.msra.mxu1 %v580_v41  ;;  %v650_v40 = vld [vmem:[#allocation6 + $0x300] sm:$0xff]  ;;  %v652_v41 = vld [vmem:[#allocation6 + $0x310] sm:$0xff] }
  0x72   :  { %702 = vmatprep.subr.mxu0 %v575_v42  ;;  %815 = vmatprep.subr.mxu1 %v577_v43  ;;  %v647_v42 = vld [vmem:[#allocation6 + $0x2e8] sm:$0xff]  ;;  %v649_v43 = vld [vmem:[#allocation6 + $0x2f8] sm:$0xff] }
  0x73   :  { %703 = vmatpush1.msra.mxu0 %v574_v44  ;;  %816 = vmatpush1.msra.mxu1 %v576_v45  ;;  %v646_v44 = vld [vmem:[#allocation6 + $0x2e0] sm:$0xff]  ;;  %v648_v45 = vld [vmem:[#allocation6 + $0x2f0] sm:$0xff] }
  0x74   :  { %704 = vmatprep.subr.mxu0 %v571_v46  ;;  %817 = vmatprep.subr.mxu1 %v573_v47  ;;  %v93_v46 = vld [vmem:[%s4669_s0 + $0x58] sm:$0xff]  ;;  %v643_v47 = vld [vmem:[#allocation6 + $0x2c8] sm:$0xff] }
  0x75   :  { %705 = vmatpush1.msra.mxu0 %v570_v48  ;;  %818 = vmatpush1.msra.mxu1 %v572_v49  ;;  %v645_v48 = vld [vmem:[#allocation6 + $0x2d8] sm:$0xff]  ;;  %v92_v49 = vld [vmem:[%s4669_s0 + $0x50] sm:$0xff] }
  0x76   :  { %706 = vmatprep.subr.mxu0 %v567_v50  ;;  %819 = vmatprep.subr.mxu1 %v569_v51  ;;  %v642_v50 = vld [vmem:[#allocation6 + $0x2c0] sm:$0xff]  ;;  %v644_v51 = vld [vmem:[#allocation6 + $0x2d0] sm:$0xff] }
  0x77   :  { %707 = vmatpush1.msra.mxu0 %v566_v52  ;;  %820 = vmatpush1.msra.mxu1 %v568_v53  ;;  %v639_v52 = vld [vmem:[#allocation6 + $0x2a8] sm:$0xff]  ;;  %v641_v53 = vld [vmem:[#allocation6 + $0x2b8] sm:$0xff] }
  0x78   :  { %708 = vmatprep.subr.mxu0 %v563_v54  ;;  %821 = vmatprep.subr.mxu1 %v565_v55  ;;  %v638_v54 = vld [vmem:[#allocation6 + $0x2a0] sm:$0xff]  ;;  %v640_v55 = vld [vmem:[#allocation6 + $0x2b0] sm:$0xff] }
  0x79   :  { %709 = vmatpush1.msra.mxu0 %v562_v56  ;;  %822 = vmatpush1.msra.mxu1 %v564_v57  ;;  %v95_v56 = vld [vmem:[%s4669_s0 + $0x68] sm:$0xff] }
  0x7a   :  { %710 = vmatprep.subr.mxu0 %v559_v58  ;;  %823 = vmatprep.subr.mxu1 %v561_v59  ;;  %v635_v57 = vld [vmem:[#allocation6 + $0x288] sm:$0xff]  ;;  %v637_v58 = vld [vmem:[#allocation6 + $0x298] sm:$0xff]  ;;  %v94_v59 = vld [vmem:[%s4669_s0 + $0x60] sm:$0xff] }
  0x7b   :  { %711 = vmatpush1.msra.mxu0 %v558_v60  ;;  %824 = vmatpush1.msra.mxu1 %v560_v61  ;;  %v634_v60 = vld [vmem:[#allocation6 + $0x280] sm:$0xff]  ;;  %v636_v61 = vld [vmem:[#allocation6 + $0x290] sm:$0xff] }
  0x7c   :  { %712 = vmatprep.subr.mxu0 %v555_v62  ;;  %825 = vmatprep.subr.mxu1 %v557_v63  ;;  %v631_v62 = vld [vmem:[#allocation6 + $0x268] sm:$0xff]  ;;  %v633_v63 = vld [vmem:[#allocation6 + $0x278] sm:$0xff] }
  0x7d   :  { %713 = vmatpush1.msra.mxu0 %v554_v0  ;;  %826 = vmatpush1.msra.mxu1 %v556_v1  ;;  %v630_v0 = vld [vmem:[#allocation6 + $0x260] sm:$0xff]  ;;  %v632_v1 = vld [vmem:[#allocation6 + $0x270] sm:$0xff] }
  0x7e   :  { %714 = vmatprep.subr.mxu0 %v679_v2  ;;  %827 = vmatprep.subr.mxu1 %v681_v3  ;;  %v97_v2 = vld [vmem:[%s4669_s0 + $0x78] sm:$0xff]  ;;  %v627_v3 = vld [vmem:[#allocation6 + $0x248] sm:$0xff] }
  0x7f   :  { %715 = vmatpush2.msra.mxu0 %v678_v4  ;;  %828 = vmatpush2.msra.mxu1 %v680_v5  ;;  %v629_v4 = vld [vmem:[#allocation6 + $0x258] sm:$0xff]  ;;  %v96_v5 = vld [vmem:[%s4669_s0 + $0x70] sm:$0xff] }
  0x80   :  { %296 = vmatprep.mubr.f32.mxu0 %v85_v6  ;;  %716 = vmatprep.subr.mxu0 %v675_v7  ;;  %v628_v7 = vld [vmem:[#allocation6 + $0x250] sm:$0xff] }
  0x81   :  { %829 = vmatprep.subr.mxu1 %v677_v8  ;;  %297 = vmatmul.mubr.f32.gmra.mxu0 %v84_v9  ;;  %v623_v8 = vld [vmem:[#allocation6 + $0x228] sm:$0xff] }
  0x82   :  { %409 = vmatprep.mubr.f32.mxu1 %v85_v6  ;;  %717 = vmatpush2.msra.mxu0 %v674_v10  ;;  %v626_v6 = vld [vmem:[#allocation6 + $0x240] sm:$0xff] }
  0x83   :  { %830 = vmatpush2.msra.mxu1 %v676_v11  ;;  %718 = vmatprep.subr.mxu0 %v671_v12  ;;  %v622_v10 = vld [vmem:[#allocation6 + $0x220] sm:$0xff]  ;;  %v624_v11 = vld [vmem:[#allocation6 + $0x230] sm:$0xff]  ;;  %v619_v12 = vld [vmem:[#allocation6 + $0x208] sm:$0xff] }
  0x84   :  { %410 = vmatmul.mubr.f32.gmra.mxu1 %v84_v9  ;;  %831 = vmatprep.subr.mxu1 %v673_v13  ;;  %v625_v9 = vld [vmem:[#allocation6 + $0x238] sm:$0xff] }
  0x85   :  { %719 = vmatpush2.msra.mxu0 %v670_v14  ;;  %832 = vmatpush2.msra.mxu1 %v672_v15  ;;  %v621_v13 = vld [vmem:[#allocation6 + $0x218] sm:$0xff]  ;;  %v618_v14 = vld [vmem:[#allocation6 + $0x200] sm:$0xff]  ;;  %v539_v15 = vld [vmem:[%s4670_s1 + $0x8] sm:$0xff] }
  0x86   :  { %302 = vmatprep.mubr.f32.mxu0 %v87_v16  ;;  %720 = vmatprep.subr.mxu0 %v667_v17  ;;  %v538_v17 = vld [vmem:[%s4670_s1] sm:$0xff] }
  0x87   :  { %833 = vmatprep.subr.mxu1 %v669_v18  ;;  %303 = vmatmul.mubr.f32.gmra.mxu0 %v86_v19  ;;  %v3673_v18 = vld [vmem:[#allocation8 + $0x1e8] sm:$0xff] }
  0x88   :  { %415 = vmatprep.mubr.f32.mxu1 %v87_v16  ;;  %721 = vmatpush2.msra.mxu0 %v666_v20  ;;  %v620_v16 = vld [vmem:[#allocation6 + $0x210] sm:$0xff]  ;;  %v3677_v20 = vld [vmem:[#allocation8 + $0x1e0] sm:$0xff] }
  0x89   :  { %834 = vmatpush2.msra.mxu1 %v668_v21  ;;  %722 = vmatprep.subr.mxu0 %v663_v22  ;;  %v3679_v21 = vld [vmem:[#allocation8 + $0x1f0] sm:$0xff]  ;;  %v3681_v22 = vld [vmem:[#allocation8 + $0x1c8] sm:$0xff] }
  0x8a   :  { %416 = vmatmul.mubr.f32.gmra.mxu1 %v86_v19  ;;  %835 = vmatprep.subr.mxu1 %v665_v23  ;;  %v3675_v19 = vld [vmem:[#allocation8 + $0x1f8] sm:$0xff] }
  0x8b   :  { %723 = vmatpush2.msra.mxu0 %v662_v24  ;;  %836 = vmatpush2.msra.mxu1 %v664_v25  ;;  %v3683_v23 = vld [vmem:[#allocation8 + $0x1d8] sm:$0xff]  ;;  %v3692_v25 = vld [vmem:[#allocation8 + $0x1c0] sm:$0xff] }
  0x8c   :  { %308 = vmatprep.mubr.f32.mxu0 %v89_v26  ;;  %724 = vmatprep.subr.mxu0 %v659_v27  ;;  %v541_v24 = vld [vmem:[%s4670_s1 + $0x18] sm:$0xff]  ;;  %v540_v27 = vld [vmem:[%s4670_s1 + $0x10] sm:$0xff] }
  0x8d   :  { %837 = vmatprep.subr.mxu1 %v661_v28  ;;  %309 = vmatmul.mubr.f32.gmra.mxu0 %v88_v29  ;;  %v3701_v28 = vld [vmem:[#allocation8 + $0x1a8] sm:$0xff] }
  0x8e   :  { %421 = vmatprep.mubr.f32.mxu1 %v89_v26  ;;  %725 = vmatpush2.msra.mxu0 %v658_v30  ;;  %v3694_v26 = vld [vmem:[#allocation8 + $0x1d0] sm:$0xff]  ;;  %v3707_v30 = vld [vmem:[#allocation8 + $0x1a0] sm:$0xff] }
  0x8f   :  { %838 = vmatpush2.msra.mxu1 %v660_v31  ;;  %726 = vmatprep.subr.mxu0 %v655_v32  ;;  %v3709_v31 = vld [vmem:[#allocation8 + $0x1b0] sm:$0xff]  ;;  %v3711_v32 = vld [vmem:[#allocation8 + $0x188] sm:$0xff] }
  0x90   :  { %422 = vmatmul.mubr.f32.gmra.mxu1 %v88_v29  ;;  %839 = vmatprep.subr.mxu1 %v657_v33  ;;  %v3703_v29 = vld [vmem:[#allocation8 + $0x1b8] sm:$0xff] }
  0x91   :  { %727 = vmatpush2.msra.mxu0 %v654_v34  ;;  %840 = vmatpush2.msra.mxu1 %v656_v35  ;;  %v3713_v33 = vld [vmem:[#allocation8 + $0x198] sm:$0xff]  ;;  %v543_v34 = vld [vmem:[%s4670_s1 + $0x28] sm:$0xff]  ;;  %v3722_v35 = vld [vmem:[#allocation8 + $0x180] sm:$0xff] }
  0x92   :  { %314 = vmatprep.mubr.f32.mxu0 %v91_v36  ;;  %728 = vmatprep.subr.mxu0 %v651_v37  ;;  %v542_v37 = vld [vmem:[%s4670_s1 + $0x20] sm:$0xff] }
  0x93   :  { %841 = vmatprep.subr.mxu1 %v653_v38  ;;  %315 = vmatmul.mubr.f32.gmra.mxu0 %v90_v39  ;;  %v3731_v38 = vld [vmem:[#allocation8 + $0x168] sm:$0xff] }
  0x94   :  { %427 = vmatprep.mubr.f32.mxu1 %v91_v36  ;;  %729 = vmatpush2.msra.mxu0 %v650_v40  ;;  %v3724_v36 = vld [vmem:[#allocation8 + $0x190] sm:$0xff]  ;;  %4769 = vst [vmem:[#allocation12_spill] sm:$0xff] %v3731_v38  ;;  %v3737_v40 = vld [vmem:[#allocation8 + $0x160] sm:$0xff] }
  0x95   :  { %842 = vmatpush2.msra.mxu1 %v652_v41  ;;  %730 = vmatprep.subr.mxu0 %v647_v42  ;;  %4771 = vst [vmem:[#allocation14_spill] sm:$0xff] %v3737_v40  ;;  %v3739_v41 = vld [vmem:[#allocation8 + $0x170] sm:$0xff]  ;;  %v3741_v42 = vld [vmem:[#allocation8 + $0x148] sm:$0xff] }
  0x96   :  { %428 = vmatmul.mubr.f32.gmra.mxu1 %v90_v39  ;;  %843 = vmatprep.subr.mxu1 %v649_v43  ;;  %v3733_v39 = vld [vmem:[#allocation8 + $0x178] sm:$0xff]  ;;  %4772 = vst [vmem:[#allocation15_spill] sm:$0xff] %v3739_v41  ;;  %4773 = vst [vmem:[#allocation16_spill] sm:$0xff] %v3741_v42 }
  0x97   :  { %731 = vmatpush2.msra.mxu0 %v646_v44  ;;  %844 = vmatpush2.msra.mxu1 %v648_v45  ;;  %4770 = vst [vmem:[#allocation13_spill] sm:$0xff] %v3733_v39  ;;  %v3743_v43 = vld [vmem:[#allocation8 + $0x158] sm:$0xff]  ;;  %v3752_v45 = vld [vmem:[#allocation8 + $0x140] sm:$0xff] }
  0x98   :  { %320 = vmatprep.mubr.f32.mxu0 %v93_v46  ;;  %732 = vmatprep.subr.mxu0 %v643_v47  ;;  %4774 = vst [vmem:[#allocation17_spill] sm:$0xff] %v3743_v43  ;;  %v545_v44 = vld [vmem:[%s4670_s1 + $0x38] sm:$0xff]  ;;  %4775 = vst [vmem:[#allocation18_spill] sm:$0xff] %v3752_v45  ;;  %v544_v47 = vld [vmem:[%s4670_s1 + $0x30] sm:$0xff] }
  0x99   :  { %845 = vmatprep.subr.mxu1 %v645_v48  ;;  %321 = vmatmul.mubr.f32.gmra.mxu0 %v92_v49  ;;  %v3761_v48 = vld [vmem:[#allocation8 + $0x128] sm:$0xff] }
  0x9a   :  { %433 = vmatprep.mubr.f32.mxu1 %v93_v46  ;;  %733 = vmatpush2.msra.mxu0 %v642_v50  ;;  %v3754_v46 = vld [vmem:[#allocation8 + $0x150] sm:$0xff]  ;;  %4777 = vst [vmem:[#allocation20_spill] sm:$0xff] %v3761_v48  ;;  %v3767_v50 = vld [vmem:[#allocation8 + $0x120] sm:$0xff] }
  0x9b   :  { %846 = vmatpush2.msra.mxu1 %v644_v51  ;;  %734 = vmatprep.subr.mxu0 %v639_v52  ;;  %4776 = vst [vmem:[#allocation19_spill] sm:$0xff] %v3754_v46  ;;  %4779 = vst [vmem:[#allocation22_spill] sm:$0xff] %v3767_v50  ;;  %v3769_v51 = vld [vmem:[#allocation8 + $0x130] sm:$0xff]  ;;  %v3771_v52 = vld [vmem:[#allocation8 + $0x108] sm:$0xff] }
  0x9c   :  { %434 = vmatmul.mubr.f32.gmra.mxu1 %v92_v49  ;;  %847 = vmatprep.subr.mxu1 %v641_v53  ;;  %v3763_v49 = vld [vmem:[#allocation8 + $0x138] sm:$0xff]  ;;  %4780 = vst [vmem:[#allocation23_spill] sm:$0xff] %v3769_v51  ;;  %4781 = vst [vmem:[#allocation24_spill] sm:$0xff] %v3771_v52 }
  0x9d   :  { %735 = vmatpush2.msra.mxu0 %v638_v54  ;;  %848 = vmatpush2.msra.mxu1 %v640_v55  ;;  %4778 = vst [vmem:[#allocation21_spill] sm:$0xff] %v3763_v49  ;;  %v3773_v53 = vld [vmem:[#allocation8 + $0x118] sm:$0xff]  ;;  %v547_v54 = vld [vmem:[%s4670_s1 + $0x48] sm:$0xff]  ;;  %v3782_v55 = vld [vmem:[#allocation8 + $0x100] sm:$0xff] }
  0x9e   :  { %326 = vmatprep.mubr.f32.mxu0 %v95_v56  ;;  %736 = vmatprep.subr.mxu0 %v635_v57  ;;  %4782 = vst [vmem:[#allocation25_spill] sm:$0xff] %v3773_v53  ;;  %4783 = vst [vmem:[#allocation26_spill] sm:$0xff] %v3782_v55  ;;  %v546_v57 = vld [vmem:[%s4670_s1 + $0x40] sm:$0xff] }
  0x9f   :  { %849 = vmatprep.subr.mxu1 %v637_v58  ;;  %327 = vmatmul.mubr.f32.gmra.mxu0 %v94_v59  ;;  %v3791_v58 = vld [vmem:[#allocation8 + $0xe8] sm:$0xff] }
  0xa0   :  { %439 = vmatprep.mubr.f32.mxu1 %v95_v56  ;;  %737 = vmatpush2.msra.mxu0 %v634_v60  ;;  %v3784_v56 = vld [vmem:[#allocation8 + $0x110] sm:$0xff]  ;;  %4785 = vst [vmem:[#allocation28_spill] sm:$0xff] %v3791_v58  ;;  %v3797_v60 = vld [vmem:[#allocation8 + $0xe0] sm:$0xff] }
  0xa1   :  { %850 = vmatpush2.msra.mxu1 %v636_v61  ;;  %738 = vmatprep.subr.mxu0 %v631_v62  ;;  %4784 = vst [vmem:[#allocation27_spill] sm:$0xff] %v3784_v56  ;;  %4787 = vst [vmem:[#allocation30_spill] sm:$0xff] %v3797_v60  ;;  %v3799_v61 = vld [vmem:[#allocation8 + $0xf0] sm:$0xff]  ;;  %v3801_v62 = vld [vmem:[#allocation8 + $0xc8] sm:$0xff] }
  0xa2   :  { %440 = vmatmul.mubr.f32.gmra.mxu1 %v94_v59  ;;  %851 = vmatprep.subr.mxu1 %v633_v63  ;;  %v3793_v59 = vld [vmem:[#allocation8 + $0xf8] sm:$0xff]  ;;  %4788 = vst [vmem:[#allocation31_spill] sm:$0xff] %v3799_v61  ;;  %4789 = vst [vmem:[#allocation32_spill] sm:$0xff] %v3801_v62 }
  0xa3   :  { %739 = vmatpush2.msra.mxu0 %v630_v0  ;;  %852 = vmatpush2.msra.mxu1 %v632_v1  ;;  %4786 = vst [vmem:[#allocation29_spill] sm:$0xff] %v3793_v59  ;;  %v3803_v63 = vld [vmem:[#allocation8 + $0xd8] sm:$0xff]  ;;  %v3812_v1 = vld [vmem:[#allocation8 + $0xc0] sm:$0xff] }
  0xa4   :  { %332 = vmatprep.mubr.f32.mxu0 %v97_v2  ;;  %740 = vmatprep.subr.mxu0 %v627_v3  ;;  %4790 = vst [vmem:[#allocation33_spill] sm:$0xff] %v3803_v63  ;;  %v549_v0 = vld [vmem:[%s4670_s1 + $0x58] sm:$0xff]  ;;  %4791 = vst [vmem:[#allocation34_spill] sm:$0xff] %v3812_v1  ;;  %v548_v3 = vld [vmem:[%s4670_s1 + $0x50] sm:$0xff] }
  0xa5   :  { %853 = vmatprep.subr.mxu1 %v629_v4  ;;  %333 = vmatmul.mubr.f32.gmra.mxu0 %v96_v5  ;;  %v3821_v4 = vld [vmem:[#allocation8 + $0xa8] sm:$0xff] }
  0xa6   :  { %445 = vmatprep.mubr.f32.mxu1 %v97_v2  ;;  %741 = vmatpush2.msra.mxu0 %v626_v6  ;;  %v3814_v2 = vld [vmem:[#allocation8 + $0xd0] sm:$0xff]  ;;  %4793 = vst [vmem:[#allocation36_spill] sm:$0xff] %v3821_v4  ;;  %v3827_v6 = vld [vmem:[#allocation8 + $0xa0] sm:$0xff] }
  0xa7   :  { %854 = vmatpush2.msra.mxu1 %v628_v7  ;;  %742 = vmatprep.subr.mxu0 %v623_v8  ;;  %4792 = vst [vmem:[#allocation35_spill] sm:$0xff] %v3814_v2  ;;  %4795 = vst [vmem:[#allocation38_spill] sm:$0xff] %v3827_v6  ;;  %v3829_v7 = vld [vmem:[#allocation8 + $0xb0] sm:$0xff]  ;;  %v3831_v8 = vld [vmem:[#allocation8 + $0x88] sm:$0xff] }
  0xa8   :  { %446 = vmatmul.mubr.f32.gmra.mxu1 %v96_v5  ;;  %855 = vmatprep.subr.mxu1 %v625_v9  ;;  %v3823_v5 = vld [vmem:[#allocation8 + $0xb8] sm:$0xff]  ;;  %4796 = vst [vmem:[#allocation39_spill] sm:$0xff] %v3829_v7  ;;  %4797 = vst [vmem:[#allocation40_spill] sm:$0xff] %v3831_v8 }
  0xa9   :  { %743 = vmatpush2.msra.mxu0 %v622_v10  ;;  %856 = vmatpush2.msra.mxu1 %v624_v11  ;;  %4794 = vst [vmem:[#allocation37_spill] sm:$0xff] %v3823_v5  ;;  %v3833_v9 = vld [vmem:[#allocation8 + $0x98] sm:$0xff]  ;;  %v551_v10 = vld [vmem:[%s4670_s1 + $0x68] sm:$0xff]  ;;  %v3842_v11 = vld [vmem:[#allocation8 + $0x80] sm:$0xff] }
  0xaa   :  { %744 = vmatprep.subr.mxu0 %v619_v12  ;;  %857 = vmatprep.subr.mxu1 %v621_v13  ;;  %4798 = vst [vmem:[#allocation41_spill] sm:$0xff] %v3833_v9  ;;  %4799 = vst [vmem:[#allocation42_spill] sm:$0xff] %v3842_v11  ;;  %v3844_v12 = vld [vmem:[#allocation8 + $0x90] sm:$0xff]  ;;  %v550_v13 = vld [vmem:[%s4670_s1 + $0x60] sm:$0xff] }
  0xab   :  { %745 = vmatpush2.msra.mxu0 %v618_v14  ;;  %746 = vmatprep.mubr.f32.mxu0 %v539_v15  ;;  %4800 = vst [vmem:[#allocation43_spill] sm:$0xff] %v3844_v12  ;;  %v3851_v14 = vld [vmem:[#allocation8 + $0x68] sm:$0xff] }
  0xac   :  { %858 = vmatpush2.msra.mxu1 %v620_v16  ;;  %859 = vmatprep.mubr.f32.mxu1 %v539_v15  ;;  %4801 = vst [vmem:[#allocation44_spill] sm:$0xff] %v3851_v14  ;;  %v3853_v15 = vld [vmem:[#allocation8 + $0x78] sm:$0xff]  ;;  %v3857_v16 = vld [vmem:[#allocation8 + $0x60] sm:$0xff] }
  0xad   :  { %747 = vmatmul.mubr.f32.vlgmr.msra.gmra.mxu0 %v538_v17  ;;  %860 = vmatmul.mubr.f32.vlgmr.msra.gmra.mxu1 %v538_v17  ;;  %4802 = vst [vmem:[#allocation45_spill] sm:$0xff] %v3853_v15  ;;  %4803 = vst [vmem:[#allocation46_spill] sm:$0xff] %v3857_v16  ;;  %v3859_v17 = vld [vmem:[#allocation8 + $0x70] sm:$0xff] }
  0xae   :  { %1005 = vmatprep.subr.mxu0 %v3673_v18  ;;  %1076 = vmatprep.subr.mxu1 %v3675_v19  ;;  %4804 = vst [vmem:[#allocation47_spill] sm:$0xff] %v3859_v17 }
  0xaf   :  { %1006 = vmatpush1.msra.mxu0 %v3677_v20  ;;  %1077 = vmatpush1.msra.mxu1 %v3679_v21 }
  0xb0   :  { %1007 = vmatprep.subr.mxu0 %v3681_v22  ;;  %1078 = vmatprep.subr.mxu1 %v3683_v23 }
  0xb1   :  { %752 = vmatprep.mubr.f32.mxu0 %v541_v24  ;;  %865 = vmatprep.mubr.f32.mxu1 %v541_v24  ;;  %v3861_v24 = vld [vmem:[#allocation8 + $0x48] sm:$0xff] }
  0xb2   :  { %1008 = vmatpush1.msra.mxu0 %v3692_v25  ;;  %1079 = vmatpush1.msra.mxu1 %v3694_v26  ;;  %4805 = vst [vmem:[#allocation48_spill] sm:$0xff] %v3861_v24 }
  0xb3   :  { %753 = vmatmul.mubr.f32.gmra.mxu0 %v540_v27  ;;  %866 = vmatmul.mubr.f32.gmra.mxu1 %v540_v27  ;;  %v3863_v27 = vld [vmem:[#allocation8 + $0x58] sm:$0xff] }
  0xb4   :  { %1009 = vmatprep.subr.mxu0 %v3701_v28  ;;  %1080 = vmatprep.subr.mxu1 %v3703_v29  ;;  %4806 = vst [vmem:[#allocation49_spill] sm:$0xff] %v3863_v27 }
  0xb5   :  { %1010 = vmatpush1.msra.mxu0 %v3707_v30  ;;  %1081 = vmatpush1.msra.mxu1 %v3709_v31 }
  0xb6   :  { %1011 = vmatprep.subr.mxu0 %v3711_v32  ;;  %1082 = vmatprep.subr.mxu1 %v3713_v33 }
  0xb7   :  { %758 = vmatprep.mubr.f32.mxu0 %v543_v34  ;;  %871 = vmatprep.mubr.f32.mxu1 %v543_v34  ;;  %v553_v34 = vld [vmem:[%s4670_s1 + $0x78] sm:$0xff] }
  0xb8   :  { %1012 = vmatpush1.msra.mxu0 %v3722_v35  ;;  %1083 = vmatpush1.msra.mxu1 %v3724_v36 }
  0xb9   :  { %759 = vmatmul.mubr.f32.gmra.mxu0 %v542_v37  ;;  %872 = vmatmul.mubr.f32.gmra.mxu1 %v542_v37  ;;  %v3872_v37 = vld [vmem:[#allocation8 + $0x40] sm:$0xff] }
  0xba   :  { %1013 = vmatprep.subr.mxu0 %v3731_v38  ;;  %1084 = vmatprep.subr.mxu1 %v3733_v39  ;;  %4807 = vst [vmem:[#allocation50_spill] sm:$0xff] %v3872_v37 }
  0xbb   :  { %1014 = vmatpush1.msra.mxu0 %v3737_v40  ;;  %1085 = vmatpush1.msra.mxu1 %v3739_v41 }
  0xbc   :  { %1015 = vmatprep.subr.mxu0 %v3741_v42  ;;  %1086 = vmatprep.subr.mxu1 %v3743_v43 }
  0xbd   :  { %764 = vmatprep.mubr.f32.mxu0 %v545_v44  ;;  %877 = vmatprep.mubr.f32.mxu1 %v545_v44  ;;  %v3874_v44 = vld [vmem:[#allocation8 + $0x50] sm:$0xff] }
  0xbe   :  { %1016 = vmatpush1.msra.mxu0 %v3752_v45  ;;  %1087 = vmatpush1.msra.mxu1 %v3754_v46  ;;  %4808 = vst [vmem:[#allocation51_spill] sm:$0xff] %v3874_v44 }
  0xbf   :  { %765 = vmatmul.mubr.f32.gmra.mxu0 %v544_v47  ;;  %878 = vmatmul.mubr.f32.gmra.mxu1 %v544_v47  ;;  %v552_v47 = vld [vmem:[%s4670_s1 + $0x70] sm:$0xff] }
  0xc0   :  { %1017 = vmatprep.subr.mxu0 %v3761_v48  ;;  %1088 = vmatprep.subr.mxu1 %v3763_v49 }
  0xc1   :  { %1018 = vmatpush1.msra.mxu0 %v3767_v50  ;;  %1089 = vmatpush1.msra.mxu1 %v3769_v51 }
  0xc2   :  { %1019 = vmatprep.subr.mxu0 %v3771_v52  ;;  %1090 = vmatprep.subr.mxu1 %v3773_v53 }
  0xc3   :  { %770 = vmatprep.mubr.f32.mxu0 %v547_v54  ;;  %883 = vmatprep.mubr.f32.mxu1 %v547_v54  ;;  %v3881_v54 = vld [vmem:[#allocation8 + $0x28] sm:$0xff] }
  0xc4   :  { %1020 = vmatpush1.msra.mxu0 %v3782_v55  ;;  %1091 = vmatpush1.msra.mxu1 %v3784_v56  ;;  %4809 = vst [vmem:[#allocation52_spill] sm:$0xff] %v3881_v54 }
  0xc5   :  { %771 = vmatmul.mubr.f32.gmra.mxu0 %v546_v57  ;;  %884 = vmatmul.mubr.f32.gmra.mxu1 %v546_v57  ;;  %v3883_v57 = vld [vmem:[#allocation8 + $0x38] sm:$0xff] }
  0xc6   :  { %1021 = vmatprep.subr.mxu0 %v3791_v58  ;;  %1092 = vmatprep.subr.mxu1 %v3793_v59  ;;  %4810 = vst [vmem:[#allocation53_spill] sm:$0xff] %v3883_v57 }
  0xc7   :  { %1022 = vmatpush1.msra.mxu0 %v3797_v60  ;;  %1093 = vmatpush1.msra.mxu1 %v3799_v61 }
  0xc8   :  { %1023 = vmatprep.subr.mxu0 %v3801_v62  ;;  %1094 = vmatprep.subr.mxu1 %v3803_v63 }
  0xc9   :  { %776 = vmatprep.mubr.f32.mxu0 %v549_v0  ;;  %889 = vmatprep.mubr.f32.mxu1 %v549_v0  ;;  %v3887_v0 = vld [vmem:[#allocation8 + $0x20] sm:$0xff] }
  0xca   :  { %1024 = vmatpush1.msra.mxu0 %v3812_v1  ;;  %1095 = vmatpush1.msra.mxu1 %v3814_v2  ;;  %4811 = vst [vmem:[#allocation54_spill] sm:$0xff] %v3887_v0 }
  0xcb   :  { %777 = vmatmul.mubr.f32.gmra.mxu0 %v548_v3  ;;  %890 = vmatmul.mubr.f32.gmra.mxu1 %v548_v3  ;;  %v3889_v3 = vld [vmem:[#allocation8 + $0x30] sm:$0xff] }
  0xcc   :  { %1025 = vmatprep.subr.mxu0 %v3821_v4  ;;  %1096 = vmatprep.subr.mxu1 %v3823_v5  ;;  %4812 = vst [vmem:[#allocation55_spill] sm:$0xff] %v3889_v3 }
  0xcd   :  { %1026 = vmatpush1.msra.mxu0 %v3827_v6  ;;  %1097 = vmatpush1.msra.mxu1 %v3829_v7 }
  0xce   :  { %1027 = vmatprep.subr.mxu0 %v3831_v8  ;;  %1098 = vmatprep.subr.mxu1 %v3833_v9 }
  0xcf   :  { %782 = vmatprep.mubr.f32.mxu0 %v551_v10  ;;  %895 = vmatprep.mubr.f32.mxu1 %v551_v10  ;;  %v3891_v10 = vld [vmem:[#allocation8 + $0x8] sm:$0xff] }
  0xd0   :  { %1028 = vmatpush1.msra.mxu0 %v3842_v11  ;;  %1099 = vmatpush1.msra.mxu1 %v3844_v12  ;;  %4813 = vst [vmem:[#allocation56_spill] sm:$0xff] %v3891_v10 }
  0xd1   :  { %783 = vmatmul.mubr.f32.gmra.mxu0 %v550_v13  ;;  %896 = vmatmul.mubr.f32.gmra.mxu1 %v550_v13  ;;  %v3893_v13 = vld [vmem:[#allocation8 + $0x18] sm:$0xff] }
  0xd2   :  { %1029 = vmatprep.subr.mxu0 %v3851_v14  ;;  %1100 = vmatprep.subr.mxu1 %v3853_v15  ;;  %4814 = vst [vmem:[#allocation57_spill] sm:$0xff] %v3893_v13 }
  0xd3   :  { %1030 = vmatpush1.msra.mxu0 %v3857_v16  ;;  %1101 = vmatpush1.msra.mxu1 %v3859_v17 }
  0xd4   :  { %1031 = vmatprep.subr.mxu0 %v3861_v24  ;;  %1102 = vmatprep.subr.mxu1 %v3863_v27 }
  0xd5   :  { %788 = vmatprep.mubr.f32.mxu0 %v553_v34  ;;  %901 = vmatprep.mubr.f32.mxu1 %v553_v34  ;;  %v3897_v34 = vld [vmem:[#allocation8] sm:$0xff] }
  0xd6   :  { %1032 = vmatpush1.msra.mxu0 %v3872_v37  ;;  %1103 = vmatpush1.msra.mxu1 %v3874_v44  ;;  %4815 = vst [vmem:[#allocation58_spill] sm:$0xff] %v3897_v34  ;;  %v3901_v44 = vld [vmem:[#allocation8 + $0x10] sm:$0xff] }
  0xd7   :  { %789 = vmatmul.mubr.f32.gmra.mxu0 %v552_v47  ;;  %902 = vmatmul.mubr.f32.gmra.mxu1 %v552_v47  ;;  %4816 = vst [vmem:[#allocation59_spill] sm:$0xff] %v3901_v44  ;;  %v4678_v47 = vmov 0.0  }
  0xd8   :  { %1033 = vmatprep.subr.mxu0 %v3881_v54  ;;  %1104 = vmatprep.subr.mxu1 %v3883_v57 }
  0xd9   :  { %1034 = vmatpush1.msra.mxu0 %v3887_v0  ;;  %1105 = vmatpush1.msra.mxu1 %v3889_v3 }
  0xda   :  { %1035 = vmatprep.subr.mxu0 %v3891_v10  ;;  %1106 = vmatprep.subr.mxu1 %v3893_v13 }
  0xdb   :  { %1036 = vmatpush1.msra.mxu0 %v3897_v34  ;;  %1069 = vmatprep.mubr.f32.mxu0 %v4678_v47 }
  0xdc   :  { %1107 = vmatpush1.msra.mxu1 %v3901_v44  ;;  %1140 = vmatprep.mubr.f32.mxu1 %v4678_v47 }
  0xdd   :  { %1070 = vmatmul.mubr.f32.vlgmr.msra.gmra.mxu0 %v4678_v47  ;;  %1141 = vmatmul.mubr.f32.vlgmr.msra.gmra.mxu1 %v4678_v47  ;;  %v4817_v47 = vld [vmem:[#allocation51_spill] sm:$0xff] }
  0xde   :  { %1257 = vmatprep.subr.mxu0 %v3673_v18  ;;  %1328 = vmatprep.subr.mxu1 %v3675_v19 }
  0xdf   :  { %1258 = vmatpush1.msra.mxu0 %v3677_v20  ;;  %1329 = vmatpush1.msra.mxu1 %v3679_v21 }
  0xe0   :  { %1259 = vmatprep.subr.mxu0 %v3681_v22  ;;  %1330 = vmatprep.subr.mxu1 %v3683_v23 }
  0xe1   :  { %1260 = vmatpush1.msra.mxu0 %v3692_v25  ;;  %1331 = vmatpush1.msra.mxu1 %v3694_v26 }
  0xe2   :  { %1261 = vmatprep.subr.mxu0 %v3701_v28  ;;  %1332 = vmatprep.subr.mxu1 %v3703_v29 }
  0xe3   :  { %1262 = vmatpush1.msra.mxu0 %v3707_v30  ;;  %1333 = vmatpush1.msra.mxu1 %v3709_v31 }
  0xe4   :  { %1263 = vmatprep.subr.mxu0 %v3711_v32  ;;  %1334 = vmatprep.subr.mxu1 %v3713_v33 }
  0xe5   :  { %1264 = vmatpush1.msra.mxu0 %v3722_v35  ;;  %1335 = vmatpush1.msra.mxu1 %v3724_v36 }
  0xe6   :  { %1265 = vmatprep.subr.mxu0 %v3731_v38  ;;  %1336 = vmatprep.subr.mxu1 %v3733_v39 }
  0xe7   :  { %1266 = vmatpush1.msra.mxu0 %v3737_v40  ;;  %1337 = vmatpush1.msra.mxu1 %v3739_v41 }
  0xe8   :  { %1267 = vmatprep.subr.mxu0 %v3741_v42  ;;  %1338 = vmatprep.subr.mxu1 %v3743_v43 }
  0xe9   :  { %1268 = vmatpush1.msra.mxu0 %v3752_v45  ;;  %1339 = vmatpush1.msra.mxu1 %v3754_v46 }
  0xea   :  { %1269 = vmatprep.subr.mxu0 %v3761_v48  ;;  %1340 = vmatprep.subr.mxu1 %v3763_v49 }
  0xeb   :  { %1270 = vmatpush1.msra.mxu0 %v3767_v50  ;;  %1341 = vmatpush1.msra.mxu1 %v3769_v51 }
  0xec   :  { %1271 = vmatprep.subr.mxu0 %v3771_v52  ;;  %1342 = vmatprep.subr.mxu1 %v3773_v53 }
  0xed   :  { %1272 = vmatpush1.msra.mxu0 %v3782_v55  ;;  %1343 = vmatpush1.msra.mxu1 %v3784_v56 }
  0xee   :  { %1273 = vmatprep.subr.mxu0 %v3791_v58  ;;  %1344 = vmatprep.subr.mxu1 %v3793_v59  ;;  %v452_v58 = vld [vmem:[%s4674_s5] sm:$0xf] }
  0xef   :  { %1274 = vmatpush1.msra.mxu0 %v3797_v60  ;;  %1345 = vmatpush1.msra.mxu1 %v3799_v61 }
  0xf0   :  { %1275 = vmatprep.subr.mxu0 %v3801_v62  ;;  %1346 = vmatprep.subr.mxu1 %v3803_v63 }
  0xf1   :  { %1276 = vmatpush1.msra.mxu0 %v3812_v1  ;;  %1347 = vmatpush1.msra.mxu1 %v3814_v2 }
  0xf2   :  { %1277 = vmatprep.subr.mxu0 %v3821_v4  ;;  %1348 = vmatprep.subr.mxu1 %v3823_v5 }
  0xf3   :  { %1278 = vmatpush1.msra.mxu0 %v3827_v6  ;;  %1349 = vmatpush1.msra.mxu1 %v3829_v7  ;;  %v454_v6 = vlaneseq }
  0xf4   :  { %1279 = vmatprep.subr.mxu0 %v3831_v8  ;;  %1350 = vmatprep.subr.mxu1 %v3833_v9 }
  0xf5   :  { %1280 = vmatpush1.msra.mxu0 %v3842_v11  ;;  %1351 = vmatpush1.msra.mxu1 %v3844_v12  ;;  %v455_v2 = vshrl.u32 %v454_v6, 7 }
  0xf6   :  { %1281 = vmatprep.subr.mxu0 %v3851_v14  ;;  %1352 = vmatprep.subr.mxu1 %v3853_v15 }
  0xf7   :  { %1282 = vmatpush1.msra.mxu0 %v3857_v16  ;;  %1353 = vmatpush1.msra.mxu1 %v3859_v17  ;;  %v464_v62 = vsub.s32 2, %v455_v2  ;;  %v456_v60 = vsub.s32 0, %v455_v2  ;;  %v468_v59 = vsub.s32 3, %v455_v2  ;;  %v460_v55 = vsub.s32 1, %v455_v2 }
  0xf8   :  { %1283 = vmatprep.subr.mxu0 %v3861_v24  ;;  %1354 = vmatprep.subr.mxu1 %v3863_v27  ;;  %v4818_v24 = vmov 0.0  }
  0xf9   :  { %1284 = vmatpush1.msra.mxu0 %v3872_v37  ;;  %1355 = vmatpush1.msra.mxu1 %v4817_v47  ;;  %v4020_v53 = vrot.slane %v452_v58, %v464_v62  ;;  %v4022_v51 = vrot.slane %v452_v58, %v456_v60  ;;  %v4024_v50 = vrot.slane %v452_v58, %v468_v59 }
  0xfa   :  { %1285 = vmatprep.subr.mxu0 %v3881_v54  ;;  %1356 = vmatprep.subr.mxu1 %v3883_v57  ;;  %v4027_v46 = vrot.slane %v452_v58, %v460_v55 }
  0xfb   :  { %1286 = vmatpush1.msra.mxu0 %v3887_v0  ;;  %1357 = vmatpush1.msra.mxu1 %v3889_v3 }
  0xfc   :  { %1287 = vmatprep.subr.mxu0 %v3891_v10  ;;  %1358 = vmatprep.subr.mxu1 %v3893_v13 }
  0xfd   :  { %1288 = vmatpush1.msra.mxu0 %v3897_v34  ;;  %1321 = vmatprep.mubr.f32.mxu0 %v4818_v24 }
  0xfe   :  { %1359 = vmatpush1.msra.mxu1 %v3901_v44  ;;  %1392 = vmatprep.mubr.f32.mxu1 %v4818_v24 }
  0xff   :  { %1511 = vmatprep.subr.mxu0 %v3673_v18  ;;  %1582 = vmatprep.subr.mxu1 %v3675_v19 }
 0x11c   :  { %v3979_v57 = vpop.f32.mrf.mxu0 }
 0x11e   :  { %v3981_v0 = vpop.f32.mrf.mxu1  ;;  %v3983_v3 = vpop.f32.mrf.mxu0 }
 0x120   :  { %v3987_v13 = vpop.f32.mrf.mxu1 }
 0x141   :  { %v3985_v10 = vpop.f32.mrf.mxu0 }
 0x143   :  { %v3989_v34 = vpop.f32.mrf.mxu0 }
 0x144   :  { %v3991_v54 = vpop.f32.mrf.mxu1 }
 0x146   :  { %v3993_v44 = vpop.f32.mrf.mxu1 }
 0x147   :  { %v3995_v24 = vpop.f32.mrf.mxu0 }
 0x149   :  { %v3997_v18 = vpop.f32.mrf.mxu0 }
 0x14a   :  { %v3999_v19 = vpop.f32.mrf.mxu1 }
 0x14c   :  { %v4001_v47 = vpop.f32.mrf.mxu1 }
 0x14d   :  { %v4003_v37 = vpop.f32.mrf.mxu0 }
 0x14f   :  { %v4005_v27 = vpop.f32.mrf.mxu0 }
 0x150   :  { %v4007_v17 = vpop.f32.mrf.mxu1 }
 0x152   :  { %v4009_v16 = vpop.f32.mrf.mxu1 }
 0x153   :  { %v4011_v15 = vpop.f32.mrf.mxu0 }
 0x155   :  { %v4013_v14 = vpop.f32.mrf.mxu0 }
 0x156   :  { %v429_v12 = vpop.f32.mrf.mxu1 }
 0x158   :  { %v4015_v11 = vpop.f32.mrf.mxu1 }
 0x159   :  { %v322_v9 = vpop.f32.mrf.mxu0 }
 0x15b   :  { %v324_v8 = vpop.f32.mrf.mxu0 }
 0x15c   :  { %v435_v7 = vpop.f32.mrf.mxu1 }
 0x15e   :  { %v437_v5 = vpop.f32.mrf.mxu1 }
 0x15f   :  { %v328_v4 = vpop.f32.mrf.mxu0 }
 0x161   :  { %v330_v63 = vpop.f32.mrf.mxu0 }
 0x162   :  { %v441_v1 = vpop.f32.mrf.mxu1 }
 0x164   :  { %v443_v61 = vpop.f32.mrf.mxu1 }
 0x165   :  { %v334_v56 = vpop.f32.mrf.mxu0 }
 0x166   :  { %v502_v45 = vadd.f32 %v4022_v51, %v334_v56  ;;  %v498_v56 = vadd.f32 %v4022_v51, %v328_v4 }
 0x167   :  { %v336_v48 = vpop.f32.mrf.mxu0 }
 0x168   :  { %v447_v52 = vpop.f32.mrf.mxu1  ;;  %v503_v62 = vadd.f32 %v4027_v46, %v336_v48  ;;  %v499_v48 = vadd.f32 %v4027_v46, %v330_v63  ;;  %v497_v63 = vadd.f32 %v4024_v50, %v437_v5  ;;  %v491_v5 = vadd.f32 %v4027_v46, %v4013_v14 }
 0x169   :  { %v504_v6 = vadd.f32 %v4020_v53, %v447_v52  ;;  %v500_v52 = vadd.f32 %v4020_v53, %v441_v1  ;;  %v496_v1 = vadd.f32 %v4020_v53, %v435_v7 }
 0x16a   :  { %v449_v49 = vpop.f32.mrf.mxu1 }
 0x16b   :  { %v505_v43 = vadd.f32 %v4024_v50, %v449_v49  ;;  %v501_v49 = vadd.f32 %v4024_v50, %v443_v61 }
 0x16d   :  { %v748_v42 = vpop.f32.mrf.mxu0  ;;  %v861_v41 = vpop.f32.mrf.mxu1 }
 0x16e   :  { %v4032_v2 = vadd.f32 %v748_v42, %v502_v45  ;;  %v4034_v60 = vadd.f32 %v861_v41, %v504_v6 }
 0x16f   :  { %v750_v59 = vpop.f32.mrf.mxu0  ;;  %v863_v40 = vpop.f32.mrf.mxu1 }
 0x170   :  { %4819 = vst [vmem:[#allocation60_spill] sm:$0xff] %v4032_v2  ;;  %4820 = vst [vmem:[#allocation61_spill] sm:$0xff] %v4034_v60  ;;  %v4037_v39 = vadd.f32 %v750_v59, %v503_v62  ;;  %v4039_v55 = vadd.f32 %v863_v40, %v505_v43  ;;  %v494_v43 = vadd.f32 %v4022_v51, %v322_v9  ;;  %v4336_v2 = vld [vmem:[#allocation8 + $0xb8] sm:$0xff] }
 0x171   :  { %v495_v59 = vadd.f32 %v4027_v46, %v324_v8  ;;  %v492_v9 = vadd.f32 %v4020_v53, %v429_v12  ;;  %v493_v8 = vadd.f32 %v4024_v50, %v4015_v11  ;;  %v486_v12 = vadd.f32 %v4022_v51, %v4003_v37 }
 0x172   :  { %4821 = vst [vmem:[#allocation62_spill] sm:$0xff] %v4037_v39  ;;  %4822 = vst [vmem:[#allocation63_spill] sm:$0xff] %v4039_v55  ;;  %v487_v11 = vadd.f32 %v4027_v46, %v4005_v27 }
 0x173   :  { %v754_v58 = vpop.f32.mrf.mxu0  ;;  %v867_v38 = vpop.f32.mrf.mxu1 }
 0x174   :  { %v4044_v42 = vadd.f32 %v754_v58, %v498_v56  ;;  %v4046_v41 = vadd.f32 %v867_v38, %v500_v52 }
 0x175   :  { %v756_v45 = vpop.f32.mrf.mxu0  ;;  %v869_v6 = vpop.f32.mrf.mxu1 }
 0x176   :  { %4823 = vst [vmem:[#allocation64_spill] sm:$0xff] %v4044_v42  ;;  %4824 = vst [vmem:[#allocation65_spill] sm:$0xff] %v4046_v41  ;;  %v4049_v62 = vadd.f32 %v756_v45, %v499_v48  ;;  %v4051_v40 = vadd.f32 %v869_v6, %v501_v49  ;;  %v490_v49 = vadd.f32 %v4022_v51, %v4011_v15  ;;  %v4340_v41 = vld [vmem:[#allocation8 + $0xa0] sm:$0xff]  ;;  %v4348_v42 = vld [vmem:[#allocation8 + $0x98] sm:$0xff] }
 0x177   :  { %v488_v15 = vadd.f32 %v4020_v53, %v4007_v17  ;;  %v482_v17 = vadd.f32 %v4022_v51, %v3995_v24 }
 0x178   :  { %4825 = vst [vmem:[#allocation66_spill] sm:$0xff] %v4049_v62  ;;  %4826 = vst [vmem:[#allocation67_spill] sm:$0xff] %v4051_v40  ;;  %v4342_v40 = vld [vmem:[#allocation8 + $0xb0] sm:$0xff]  ;;  %v4346_v62 = vld [vmem:[#allocation8 + $0x88] sm:$0xff] }
 0x179   :  { %v760_v4 = vpop.f32.mrf.mxu0  ;;  %v873_v61 = vpop.f32.mrf.mxu1 }
 0x17a   :  { %v4056_v56 = vadd.f32 %v760_v4, %v494_v43  ;;  %v4058_v38 = vadd.f32 %v873_v61, %v496_v1 }
 0x17b   :  { %v762_v52 = vpop.f32.mrf.mxu0  ;;  %v875_v58 = vpop.f32.mrf.mxu1 }
 0x17c   :  { %4827 = vst [vmem:[#allocation68_spill] sm:$0xff] %v4056_v56  ;;  %4828 = vst [vmem:[#allocation69_spill] sm:$0xff] %v4058_v38  ;;  %v4060_v60 = vadd.f32 %v762_v52, %v495_v59  ;;  %v4062_v7 = vadd.f32 %v875_v58, %v497_v63  ;;  %v489_v52 = vadd.f32 %v4024_v50, %v4009_v16  ;;  %v4352_v38 = vld [vmem:[#allocation8 + $0x80] sm:$0xff]  ;;  %v4360_v56 = vld [vmem:[#allocation8 + $0x78] sm:$0xff] }
 0x17d   :  { %v483_v16 = vadd.f32 %v4027_v46, %v3997_v18 }
 0x17e   :  { %4829 = vst [vmem:[#allocation70_spill] sm:$0xff] %v4060_v60  ;;  %4830 = vst [vmem:[#allocation71_spill] sm:$0xff] %v4062_v7  ;;  %v4354_v7 = vld [vmem:[#allocation8 + $0x90] sm:$0xff]  ;;  %v4358_v60 = vld [vmem:[#allocation8 + $0x68] sm:$0xff] }
 0x17f   :  { %v766_v48 = vpop.f32.mrf.mxu0  ;;  %v879_v45 = vpop.f32.mrf.mxu1 }
 0x180   :  { %v4071_v6 = vadd.f32 %v766_v48, %v490_v49  ;;  %v4073_v1 = vadd.f32 %v879_v45, %v492_v9 }
 0x181   :  { %v768_v43 = vpop.f32.mrf.mxu0  ;;  %v881_v4 = vpop.f32.mrf.mxu1 }
 0x182   :  { %4831 = vst [vmem:[#allocation72_spill] sm:$0xff] %v4071_v6  ;;  %4832 = vst [vmem:[#allocation73_spill] sm:$0xff] %v4073_v1  ;;  %v4075_v61 = vadd.f32 %v768_v43, %v491_v5  ;;  %v4077_v59 = vadd.f32 %v881_v4, %v493_v8  ;;  %v484_v5 = vadd.f32 %v4020_v53, %v3999_v19  ;;  %v4364_v1 = vld [vmem:[#allocation8 + $0x60] sm:$0xff]  ;;  %v4372_v6 = vld [vmem:[#allocation8 + $0x58] sm:$0xff] }
 0x183   :  { %v485_v43 = vadd.f32 %v4024_v50, %v4001_v47  ;;  %v478_v19 = vadd.f32 %v4022_v51, %v3985_v10  ;;  %v479_v47 = vadd.f32 %v4027_v46, %v3989_v34  ;;  %v475_v34 = vadd.f32 %v4027_v46, %v3983_v3 }
 0x184   :  { %4833 = vst [vmem:[#allocation74_spill] sm:$0xff] %v4075_v61  ;;  %4834 = vst [vmem:[#allocation75_spill] sm:$0xff] %v4077_v59  ;;  %v476_v46 = vadd.f32 %v4020_v53, %v3981_v0  ;;  %v4366_v59 = vld [vmem:[#allocation8 + $0x70] sm:$0xff]  ;;  %v4370_v61 = vld [vmem:[#allocation8 + $0x48] sm:$0xff] }
 0x185   :  { %v772_v14 = vpop.f32.mrf.mxu0  ;;  %v885_v63 = vpop.f32.mrf.mxu1 }
 0x186   :  { %v4087_v58 = vadd.f32 %v772_v14, %v486_v12  ;;  %v4089_v49 = vadd.f32 %v885_v63, %v488_v15 }
 0x187   :  { %v774_v9 = vpop.f32.mrf.mxu0  ;;  %v887_v48 = vpop.f32.mrf.mxu1 }
 0x188   :  { %4835 = vst [vmem:[#allocation76_spill] sm:$0xff] %v4087_v58  ;;  %4836 = vst [vmem:[#allocation77_spill] sm:$0xff] %v4089_v49  ;;  %v4091_v45 = vadd.f32 %v774_v9, %v487_v11  ;;  %v4093_v37 = vadd.f32 %v887_v48, %v489_v52  ;;  %v480_v11 = vadd.f32 %v4020_v53, %v3991_v54  ;;  %v4376_v49 = vld [vmem:[#allocation8 + $0x40] sm:$0xff]  ;;  %v4384_v58 = vld [vmem:[#allocation8 + $0x38] sm:$0xff] }
 0x189   :  { %v481_v9 = vadd.f32 %v4024_v50, %v3993_v44 }
 0x18a   :  { %4837 = vst [vmem:[#allocation78_spill] sm:$0xff] %v4091_v45  ;;  %4838 = vst [vmem:[#allocation79_spill] sm:$0xff] %v4093_v37  ;;  %v4378_v37 = vld [vmem:[#allocation8 + $0x50] sm:$0xff]  ;;  %v4382_v45 = vld [vmem:[#allocation8 + $0x28] sm:$0xff] }
 0x18b   :  { %v778_v27 = vpop.f32.mrf.mxu0  ;;  %v891_v8 = vpop.f32.mrf.mxu1 }
 0x18c   :  { %v4103_v4 = vadd.f32 %v778_v27, %v482_v17  ;;  %v4105_v12 = vadd.f32 %v891_v8, %v484_v5 }
 0x18d   :  { %v780_v15 = vpop.f32.mrf.mxu0  ;;  %v893_v14 = vpop.f32.mrf.mxu1 }
 0x18e   :  { %v4107_v63 = vadd.f32 %v780_v15, %v483_v16  ;;  %v4109_v24 = vadd.f32 %v893_v14, %v485_v43  ;;  %v474_v43 = vadd.f32 %v4022_v51, %v3979_v57 }
 0x191   :  { %v784_v18 = vpop.f32.mrf.mxu0  ;;  %v897_v52 = vpop.f32.mrf.mxu1 }
 0x192   :  { %v4119_v48 = vadd.f32 %v784_v18, %v478_v19  ;;  %v4121_v17 = vadd.f32 %v897_v52, %v480_v11 }
 0x193   :  { %v786_v5 = vpop.f32.mrf.mxu0  ;;  %v899_v27 = vpop.f32.mrf.mxu1 }
 0x194   :  { %v4123_v8 = vadd.f32 %v786_v5, %v479_v47  ;;  %v4125_v10 = vadd.f32 %v899_v27, %v481_v9  ;;  %v477_v27 = vadd.f32 %v4024_v50, %v3987_v13 }
 0x197   :  { %v790_v16 = vpop.f32.mrf.mxu0  ;;  %v903_v15 = vpop.f32.mrf.mxu1 }
 0x198   :  { %v1156_v44 = vadd.f32 %v790_v16, %v474_v43  ;;  %v1158_v3 = vadd.f32 %v903_v15, %v476_v46  ;;  %v4853_v15 = vld [vmem:[#allocation26_spill] sm:$0xff]  ;;  %v4859_v46 = vld [vmem:[#allocation32_spill] sm:$0xff] }
 0x199   :  { %v792_v54 = vpop.f32.mrf.mxu0  ;;  %v905_v11 = vpop.f32.mrf.mxu1 }
 0x19a   :  { %v1157_v19 = vadd.f32 %v792_v54, %v475_v34  ;;  %v1159_v57 = vadd.f32 %v905_v11, %v477_v27  ;;  %v4856_v27 = vld [vmem:[#allocation29_spill] sm:$0xff] }
 0x19d   :  { %v1071_v14 = vpop.f32.mrf.mxu0  ;;  %v1142_v9 = vpop.f32.mrf.mxu1 }
 0x19e   :  { %v1160_v18 = vadd.f32 %v1156_v44, %v1071_v14  ;;  %v1162_v43 = vadd.f32 %v1158_v3, %v1142_v9  ;;  %v4854_v9 = vld [vmem:[#allocation27_spill] sm:$0xff]  ;;  %v4860_v3 = vld [vmem:[#allocation33_spill] sm:$0xff] }
 0x19f   :  { %v1073_v52 = vpop.f32.mrf.mxu0  ;;  %v1144_v51 = vpop.f32.mrf.mxu1 }
 0x1a0   :  { %v2981_v55 = vmul.f32 -1.442695, %v1160_v18  ;;  %v1161_v47 = vadd.f32 %v1157_v19, %v1073_v52  ;;  %v1163_v39 = vadd.f32 %v1159_v57, %v1144_v51  ;;  %v4857_v51 = vld [vmem:[#allocation30_spill] sm:$0xff]  ;;  %v4858_v57 = vld [vmem:[#allocation31_spill] sm:$0xff] }
 0x1a2   :  { %3017 = vpow2.f32 %v2981_v55  ;;  %v2982_v5 = vmul.f32 -1.442695, %v1161_v47  ;;  %v2983_v16 = vmul.f32 -1.442695, %v1163_v39 }
 0x1a4   :  { %3019 = vpow2.f32 %v2982_v5  ;;  %v4855_v5 = vld [vmem:[#allocation28_spill] sm:$0xff] }
 0x1a5   :  { %3021 = vpow2.f32 %v2983_v16  ;;  %v4861_v16 = vld [vmem:[#allocation34_spill] sm:$0xff] }
 0x1af   :  { %v3018_v54 = vpop.eup %3017 }
 0x1b0   :  { %v1168_v34 = vadd.f32 1.0, %v3018_v54  ;;  %v4862_v54 = vld [vmem:[#allocation35_spill] sm:$0xff] }
 0x1b1   :  { %v3020_v44 = vpop.eup %3019 }
 0x1b2   :  { %3023 = vrcp.f32 %v1168_v34  ;;  %v1174_v55 = vadd.f32 1.0, %v3020_v44  ;;  %v3022_v14 = vpop.eup %3021  ;;  %v4864_v34 = vld [vmem:[#allocation37_spill] sm:$0xff]  ;;  %v4865_v44 = vld [vmem:[#allocation38_spill] sm:$0xff] }
 0x1b3   :  { %3025 = vtanh.f32 %v1162_v43  ;;  %v1181_v11 = vadd.f32 1.0, %v3022_v14  ;;  %v4863_v43 = vld [vmem:[#allocation36_spill] sm:$0xff] }
 0x1b4   :  { %3027 = vrcp.f32 %v1174_v55  ;;  %v4866_v55 = vld [vmem:[#allocation39_spill] sm:$0xff]  ;;  %v4867_v14 = vld [vmem:[#allocation40_spill] sm:$0xff] }
 0x1b5   :  { %3029 = vrcp.f32 %v1181_v11  ;;  %v4871_v11 = vld [vmem:[#allocation44_spill] sm:$0xff] }
 0x1bf   :  { %v3024_v19 = vpop.eup %3023 }
 0x1c0   :  { %v3026_v50 = vpop.eup %3025 }
 0x1c1   :  { %v3028_v13 = vpop.eup %3027  ;;  %v1185_v52 = vmul.f32 %v3026_v50, %v3024_v19  ;;  %v4868_v19 = vld [vmem:[#allocation41_spill] sm:$0xff]  ;;  %v4869_v50 = vld [vmem:[#allocation42_spill] sm:$0xff] }
 0x1c2   :  { %v1184_v18 = vmul.f32 0.0, %v3028_v13  ;;  %v3030_v39 = vpop.eup %3029  ;;  %v4870_v13 = vld [vmem:[#allocation43_spill] sm:$0xff] }
 0x1c4   :  { %v4135_v47 = vadd.f32 %v1185_v52, %v1184_v18  ;;  %v4872_v18 = vld [vmem:[#allocation45_spill] sm:$0xff]  ;;  %v4873_v52 = vld [vmem:[#allocation46_spill] sm:$0xff] }
 0x1c6   :  { %3031 = vtanh.f32 %v4135_v47 }
 0x1d3   :  { %v3032_v53 = vpop.eup %3031 }
 0x1d4   :  { %v1188_v0 = vmul.f32 %v3032_v53, %v3030_v39  ;;  %v4874_v39 = vld [vmem:[#allocation47_spill] sm:$0xff]  ;;  %v4875_v53 = vld [vmem:[#allocation48_spill] sm:$0xff] }
 0x1d6   :  { %1191 = vst [vmem:[%s4675_s6] sm:$0xff] %v1188_v0  ;;  %1322 = vmatmul.mubr.f32.vlgmr.msra.gmra.mxu0 %v1188_v0  ;;  %1393 = vmatmul.mubr.f32.vlgmr.msra.gmra.mxu1 %v1188_v0  ;;  %v4876_v0 = vld [vmem:[#allocation49_spill] sm:$0xff] }
 0x1d7   :  { %1512 = vmatpush1.msra.mxu0 %v3677_v20  ;;  %1583 = vmatpush1.msra.mxu1 %v3679_v21  ;;  %v4839_v20 = vld [vmem:[#allocation12_spill] sm:$0xff]  ;;  %v4840_v21 = vld [vmem:[#allocation13_spill] sm:$0xff] }
 0x1d8   :  { %1513 = vmatprep.subr.mxu0 %v3681_v22  ;;  %1584 = vmatprep.subr.mxu1 %v3683_v23  ;;  %v4841_v22 = vld [vmem:[#allocation14_spill] sm:$0xff]  ;;  %v4842_v23 = vld [vmem:[#allocation15_spill] sm:$0xff] }
 0x1d9   :  { %1514 = vmatpush1.msra.mxu0 %v3692_v25  ;;  %1585 = vmatpush1.msra.mxu1 %v3694_v26  ;;  %v4843_v25 = vld [vmem:[#allocation16_spill] sm:$0xff]  ;;  %v4844_v26 = vld [vmem:[#allocation17_spill] sm:$0xff]  ;;  %4890 = vst [vmem:[#allocation14_spill] sm:$0xff] %v4354_v7  ;;  %4891 = vst [vmem:[#allocation15_spill] sm:$0xff] %v4358_v60 }
 0x1da   :  { %1515 = vmatprep.subr.mxu0 %v3701_v28  ;;  %1586 = vmatprep.subr.mxu1 %v3703_v29  ;;  %v4845_v28 = vld [vmem:[#allocation18_spill] sm:$0xff]  ;;  %v4846_v29 = vld [vmem:[#allocation19_spill] sm:$0xff]  ;;  %4892 = vst [vmem:[#allocation16_spill] sm:$0xff] %v4360_v56  ;;  %4893 = vst [vmem:[#allocation17_spill] sm:$0xff] %v4364_v1 }
 0x1db   :  { %1516 = vmatpush1.msra.mxu0 %v3707_v30  ;;  %1587 = vmatpush1.msra.mxu1 %v3709_v31  ;;  %v4847_v30 = vld [vmem:[#allocation20_spill] sm:$0xff]  ;;  %v4848_v31 = vld [vmem:[#allocation21_spill] sm:$0xff]  ;;  %4894 = vst [vmem:[#allocation18_spill] sm:$0xff] %v4366_v59  ;;  %4895 = vst [vmem:[#allocation19_spill] sm:$0xff] %v4370_v61 }
 0x1dc   :  { %1517 = vmatprep.subr.mxu0 %v3711_v32  ;;  %1588 = vmatprep.subr.mxu1 %v3713_v33  ;;  %v4849_v32 = vld [vmem:[#allocation22_spill] sm:$0xff]  ;;  %v4850_v33 = vld [vmem:[#allocation23_spill] sm:$0xff]  ;;  %4896 = vst [vmem:[#allocation20_spill] sm:$0xff] %v4372_v6  ;;  %4897 = vst [vmem:[#allocation21_spill] sm:$0xff] %v4376_v49 }
 0x1dd   :  { %1518 = vmatpush1.msra.mxu0 %v3722_v35  ;;  %1589 = vmatpush1.msra.mxu1 %v3724_v36  ;;  %v4851_v35 = vld [vmem:[#allocation24_spill] sm:$0xff]  ;;  %v4852_v36 = vld [vmem:[#allocation25_spill] sm:$0xff]  ;;  %4898 = vst [vmem:[#allocation22_spill] sm:$0xff] %v4378_v37  ;;  %4899 = vst [vmem:[#allocation23_spill] sm:$0xff] %v4382_v45 }
 0x1de   :  { %1519 = vmatprep.subr.mxu0 %v4839_v20  ;;  %1590 = vmatprep.subr.mxu1 %v4840_v21  ;;  %v4877_v20 = vld [vmem:[#allocation50_spill] sm:$0xff]  ;;  %v4878_v21 = vld [vmem:[#allocation51_spill] sm:$0xff]  ;;  %4900 = vst [vmem:[#allocation24_spill] sm:$0xff] %v4384_v58 }
 0x1df   :  { %1520 = vmatpush1.msra.mxu0 %v4841_v22  ;;  %1591 = vmatpush1.msra.mxu1 %v4842_v23  ;;  %v4879_v22 = vld [vmem:[#allocation52_spill] sm:$0xff]  ;;  %v4880_v23 = vld [vmem:[#allocation53_spill] sm:$0xff] }
 0x1e0   :  { %1521 = vmatprep.subr.mxu0 %v4843_v25  ;;  %1592 = vmatprep.subr.mxu1 %v4844_v26  ;;  %v4881_v25 = vld [vmem:[#allocation54_spill] sm:$0xff]  ;;  %v4882_v26 = vld [vmem:[#allocation55_spill] sm:$0xff] }
 0x1e1   :  { %1522 = vmatpush1.msra.mxu0 %v4845_v28  ;;  %1593 = vmatpush1.msra.mxu1 %v4846_v29  ;;  %v4883_v28 = vld [vmem:[#allocation56_spill] sm:$0xff]  ;;  %v4884_v29 = vld [vmem:[#allocation57_spill] sm:$0xff] }
 0x1e2   :  { %1523 = vmatprep.subr.mxu0 %v4847_v30  ;;  %1594 = vmatprep.subr.mxu1 %v4848_v31  ;;  %v4885_v30 = vld [vmem:[#allocation58_spill] sm:$0xff]  ;;  %v4886_v31 = vmov 0.0  }
 0x1e3   :  { %1524 = vmatpush1.msra.mxu0 %v4849_v32  ;;  %1595 = vmatpush1.msra.mxu1 %v4850_v33  ;;  %v4887_v32 = vld [vmem:[#allocation59_spill] sm:$0xff] }
 0x1e4   :  { %1525 = vmatprep.subr.mxu0 %v4851_v35  ;;  %1596 = vmatprep.subr.mxu1 %v4852_v36 }
 0x1e5   :  { %1526 = vmatpush1.msra.mxu0 %v4853_v15  ;;  %1597 = vmatpush1.msra.mxu1 %v4854_v9 }
 0x1e6   :  { %1527 = vmatprep.subr.mxu0 %v4855_v5  ;;  %1598 = vmatprep.subr.mxu1 %v4856_v27 }
 0x1e7   :  { %1528 = vmatpush1.msra.mxu0 %v4857_v51  ;;  %1599 = vmatpush1.msra.mxu1 %v4858_v57 }
 0x1e8   :  { %1529 = vmatprep.subr.mxu0 %v4859_v46  ;;  %1600 = vmatprep.subr.mxu1 %v4860_v3 }
 0x1e9   :  { %1530 = vmatpush1.msra.mxu0 %v4861_v16  ;;  %1601 = vmatpush1.msra.mxu1 %v4862_v54 }
 0x1ea   :  { %1531 = vmatprep.subr.mxu0 %v4863_v43  ;;  %1602 = vmatprep.subr.mxu1 %v4864_v34 }
 0x1eb   :  { %1532 = vmatpush1.msra.mxu0 %v4865_v44  ;;  %1603 = vmatpush1.msra.mxu1 %v4866_v55 }
 0x1ec   :  { %1533 = vmatprep.subr.mxu0 %v4867_v14  ;;  %1604 = vmatprep.subr.mxu1 %v4868_v19 }
 0x1ed   :  { %1534 = vmatpush1.msra.mxu0 %v4869_v50  ;;  %1605 = vmatpush1.msra.mxu1 %v4870_v13 }
 0x1ee   :  { %1535 = vmatprep.subr.mxu0 %v4871_v11  ;;  %1606 = vmatprep.subr.mxu1 %v4872_v18  ;;  %v4218_v18 = vld [vmem:[#allocation8 + $0x1e8] sm:$0xff] }
 0x1ef   :  { %1536 = vmatpush1.msra.mxu0 %v4873_v52  ;;  %1607 = vmatpush1.msra.mxu1 %v4874_v39  ;;  %4888 = vst [vmem:[#allocation12_spill] sm:$0xff] %v4218_v18  ;;  %v4224_v52 = vld [vmem:[#allocation8 + $0x1e0] sm:$0xff]  ;;  %v4226_v39 = vld [vmem:[#allocation8 + $0x1f0] sm:$0xff] }
 0x1f0   :  { %1537 = vmatprep.subr.mxu0 %v4875_v53  ;;  %1608 = vmatprep.subr.mxu1 %v4876_v0  ;;  %v4230_v53 = vld [vmem:[#allocation8 + $0x1c8] sm:$0xff]  ;;  %v4232_v0 = vld [vmem:[#allocation8 + $0x1d8] sm:$0xff] }
 0x1f1   :  { %1538 = vmatpush1.msra.mxu0 %v4877_v20  ;;  %1609 = vmatpush1.msra.mxu1 %v4878_v21  ;;  %v4236_v20 = vld [vmem:[#allocation8 + $0x1c0] sm:$0xff]  ;;  %v4238_v21 = vld [vmem:[#allocation8 + $0x1d0] sm:$0xff] }
 0x1f2   :  { %1539 = vmatprep.subr.mxu0 %v4879_v22  ;;  %1610 = vmatprep.subr.mxu1 %v4880_v23  ;;  %v4242_v22 = vld [vmem:[#allocation8 + $0x1a8] sm:$0xff]  ;;  %v4244_v23 = vld [vmem:[#allocation8 + $0x1b8] sm:$0xff] }
 0x1f3   :  { %1540 = vmatpush1.msra.mxu0 %v4881_v25  ;;  %1611 = vmatpush1.msra.mxu1 %v4882_v26  ;;  %v4248_v25 = vld [vmem:[#allocation8 + $0x1a0] sm:$0xff]  ;;  %v4250_v26 = vld [vmem:[#allocation8 + $0x1b0] sm:$0xff] }
 0x1f4   :  { %1541 = vmatprep.subr.mxu0 %v4883_v28  ;;  %1612 = vmatprep.subr.mxu1 %v4884_v29  ;;  %v4254_v28 = vld [vmem:[#allocation8 + $0x188] sm:$0xff]  ;;  %v4256_v29 = vld [vmem:[#allocation8 + $0x198] sm:$0xff] }
 0x1f5   :  { %1542 = vmatpush1.msra.mxu0 %v4885_v30  ;;  %1575 = vmatprep.mubr.f32.mxu0 %v4886_v31  ;;  %v4260_v30 = vld [vmem:[#allocation8 + $0x180] sm:$0xff] }
 0x1f6   :  { %1613 = vmatpush1.msra.mxu1 %v4887_v32  ;;  %1646 = vmatprep.mubr.f32.mxu1 %v4886_v31  ;;  %v4262_v32 = vld [vmem:[#allocation8 + $0x190] sm:$0xff] }
 0x1f7   :  { %1765 = vmatprep.subr.mxu0 %v4218_v18 }
 0x296   :  { %v1323_v33 = vpop.f32.mrf.mxu0  ;;  %v1394_v5 = vpop.f32.mrf.mxu1 }
 0x297   :  { %v1413_v35 = vadd.f32 %v4119_v48, %v1323_v33  ;;  %v1415_v46 = vadd.f32 %v4121_v17, %v1394_v5  ;;  %v4266_v33 = vld [vmem:[#allocation8 + $0x168] sm:$0xff]  ;;  %v4280_v5 = vld [vmem:[#allocation8 + $0x158] sm:$0xff] }
 0x298   :  { %v1325_v36 = vpop.f32.mrf.mxu0  ;;  %v1396_v51 = vpop.f32.mrf.mxu1 }
 0x299   :  { %v2984_v15 = vmul.f32 -1.442695, %v1413_v35  ;;  %v1414_v9 = vadd.f32 %v4123_v8, %v1325_v36  ;;  %v1416_v57 = vadd.f32 %v4125_v10, %v1396_v51  ;;  %v4268_v35 = vld [vmem:[#allocation8 + $0x178] sm:$0xff]  ;;  %v4272_v36 = vld [vmem:[#allocation8 + $0x160] sm:$0xff]  ;;  %v4286_v51 = vld [vmem:[#allocation8 + $0x150] sm:$0xff] }
 0x29b   :  { %3033 = vpow2.f32 %v2984_v15  ;;  %v2985_v27 = vmul.f32 -1.442695, %v1414_v9  ;;  %v2986_v3 = vmul.f32 -1.442695, %v1416_v57  ;;  %v4274_v15 = vld [vmem:[#allocation8 + $0x170] sm:$0xff]  ;;  %v4278_v9 = vld [vmem:[#allocation8 + $0x148] sm:$0xff] }
 0x29c   :  { %v4290_v57 = vld [vmem:[#allocation8 + $0x128] sm:$0xff] }
 0x29d   :  { %3035 = vpow2.f32 %v2985_v27  ;;  %v4284_v27 = vld [vmem:[#allocation8 + $0x140] sm:$0xff] }
 0x29e   :  { %3037 = vtanh.f32 %v1415_v46  ;;  %v4292_v46 = vld [vmem:[#allocation8 + $0x138] sm:$0xff] }
 0x29f   :  { %3039 = vpow2.f32 %v2986_v3  ;;  %v4296_v3 = vld [vmem:[#allocation8 + $0x120] sm:$0xff] }
 0x2a8   :  { %v3034_v16 = vpop.eup %3033 }
 0x2a9   :  { %v1421_v54 = vadd.f32 1.0, %v3034_v16  ;;  %v4298_v16 = vld [vmem:[#allocation8 + $0x130] sm:$0xff] }
 0x2aa   :  { %v3036_v43 = vpop.eup %3035 }
 0x2ab   :  { %3041 = vrcp.f32 %v1421_v54  ;;  %v1427_v48 = vadd.f32 1.0, %v3036_v43  ;;  %v3038_v34 = vpop.eup %3037  ;;  %v4302_v54 = vld [vmem:[#allocation8 + $0x108] sm:$0xff]  ;;  %v4304_v43 = vld [vmem:[#allocation8 + $0x118] sm:$0xff] }
 0x2ac   :  { %v3040_v8 = vpop.eup %3039 }
 0x2ad   :  { %3043 = vrcp.f32 %v1427_v48  ;;  %v1434_v19 = vadd.f32 1.0, %v3040_v8  ;;  %v4306_v48 = vld [vmem:[#allocation8 + $0x100] sm:$0xff]  ;;  %v4312_v8 = vld [vmem:[#allocation8 + $0xe8] sm:$0xff] }
 0x2af   :  { %3045 = vrcp.f32 %v1434_v19  ;;  %v4322_v19 = vld [vmem:[#allocation8 + $0xc8] sm:$0xff] }
 0x2b8   :  { %v3042_v44 = vpop.eup %3041 }
 0x2b9   :  { %v1438_v55 = vmul.f32 %v3042_v44, %v3038_v34  ;;  %v4310_v34 = vld [vmem:[#allocation8 + $0x110] sm:$0xff]  ;;  %v4314_v44 = vld [vmem:[#allocation8 + $0xf8] sm:$0xff] }
 0x2ba   :  { %v3044_v14 = vpop.eup %3043 }
 0x2bb   :  { %v1437_v50 = vmul.f32 %v3044_v14, %v4135_v47  ;;  %v4220_v47 = vld [vmem:[#allocation8 + $0x1f8] sm:$0xff]  ;;  %v4320_v14 = vld [vmem:[#allocation8 + $0xf0] sm:$0xff] }
 0x2bc   :  { %v3046_v17 = vpop.eup %3045  ;;  %4889 = vst [vmem:[#allocation13_spill] sm:$0xff] %v4220_v47  ;;  %1836 = vmatprep.subr.mxu1 %v4220_v47 }
 0x2bd   :  { %v4210_v10 = vadd.f32 %v1438_v55, %v1437_v50  ;;  %v4318_v55 = vld [vmem:[#allocation8 + $0xe0] sm:$0xff]  ;;  %v4326_v50 = vld [vmem:[#allocation8 + $0xd8] sm:$0xff] }
 0x2bf   :  { %3047 = vtanh.f32 %v4210_v10 }
 0x2cc   :  { %v3048_v13 = vpop.eup %3047 }
 0x2cd   :  { %v1441_v11 = vmul.f32 %v3048_v13, %v3046_v17  ;;  %v4328_v17 = vld [vmem:[#allocation8 + $0xc0] sm:$0xff]  ;;  %v4330_v13 = vld [vmem:[#allocation8 + $0xd0] sm:$0xff] }
 0x2cf   :  { %2987 = vst [vmem:[%s4675_s6 + $0x8] sm:$0xff] %v1441_v11  ;;  %1576 = vmatmul.mubr.f32.vlgmr.msra.gmra.mxu0 %v1441_v11  ;;  %1647 = vmatmul.mubr.f32.vlgmr.msra.gmra.mxu1 %v1441_v11  ;;  %v4334_v11 = vld [vmem:[#allocation8 + $0xa8] sm:$0xff] }
 0x2d0   :  { %1829 = vmatprep.mubr.f32.mxu0 %v4886_v31  ;;  %1900 = vmatprep.mubr.f32.mxu1 %v4886_v31  ;;  %v4388_v31 = vld [vmem:[#allocation8 + $0x20] sm:$0xff] }
 0x2d1   :  { %1766 = vmatpush1.msra.mxu0 %v4224_v52  ;;  %1837 = vmatpush1.msra.mxu1 %v4226_v39  ;;  %4901 = vst [vmem:[#allocation25_spill] sm:$0xff] %v4388_v31 }
 0x2d2   :  { %1767 = vmatprep.subr.mxu0 %v4230_v53  ;;  %1838 = vmatprep.subr.mxu1 %v4232_v0 }
 0x2d3   :  { %1768 = vmatpush1.msra.mxu0 %v4236_v20  ;;  %1839 = vmatpush1.msra.mxu1 %v4238_v21 }
 0x2d4   :  { %1769 = vmatprep.subr.mxu0 %v4242_v22  ;;  %1840 = vmatprep.subr.mxu1 %v4244_v23 }
 0x2d5   :  { %1770 = vmatpush1.msra.mxu0 %v4248_v25  ;;  %1841 = vmatpush1.msra.mxu1 %v4250_v26 }
 0x2d6   :  { %1771 = vmatprep.subr.mxu0 %v4254_v28  ;;  %1842 = vmatprep.subr.mxu1 %v4256_v29 }
 0x2d7   :  { %1772 = vmatpush1.msra.mxu0 %v4260_v30  ;;  %1843 = vmatpush1.msra.mxu1 %v4262_v32 }
 0x2d8   :  { %1773 = vmatprep.subr.mxu0 %v4266_v33  ;;  %1844 = vmatprep.subr.mxu1 %v4268_v35 }
 0x2d9   :  { %1774 = vmatpush1.msra.mxu0 %v4272_v36  ;;  %1845 = vmatpush1.msra.mxu1 %v4274_v15 }
 0x2da   :  { %1775 = vmatprep.subr.mxu0 %v4278_v9  ;;  %1846 = vmatprep.subr.mxu1 %v4280_v5 }
 0x2db   :  { %1776 = vmatpush1.msra.mxu0 %v4284_v27  ;;  %1847 = vmatpush1.msra.mxu1 %v4286_v51 }
 0x2dc   :  { %1777 = vmatprep.subr.mxu0 %v4290_v57  ;;  %1848 = vmatprep.subr.mxu1 %v4292_v46 }
 0x2dd   :  { %1778 = vmatpush1.msra.mxu0 %v4296_v3  ;;  %1849 = vmatpush1.msra.mxu1 %v4298_v16 }
 0x2de   :  { %1779 = vmatprep.subr.mxu0 %v4302_v54  ;;  %1850 = vmatprep.subr.mxu1 %v4304_v43 }
 0x2df   :  { %1780 = vmatpush1.msra.mxu0 %v4306_v48  ;;  %1851 = vmatpush1.msra.mxu1 %v4310_v34 }
 0x2e0   :  { %1781 = vmatprep.subr.mxu0 %v4312_v8  ;;  %1852 = vmatprep.subr.mxu1 %v4314_v44 }
 0x2e1   :  { %1782 = vmatpush1.msra.mxu0 %v4318_v55  ;;  %1853 = vmatpush1.msra.mxu1 %v4320_v14 }
 0x2e2   :  { %1783 = vmatprep.subr.mxu0 %v4322_v19  ;;  %1854 = vmatprep.subr.mxu1 %v4326_v50 }
 0x2e3   :  { %1784 = vmatpush1.msra.mxu0 %v4328_v17  ;;  %1855 = vmatpush1.msra.mxu1 %v4330_v13 }
 0x2e4   :  { %1785 = vmatprep.subr.mxu0 %v4334_v11  ;;  %1856 = vmatprep.subr.mxu1 %v4336_v2 }
 0x2e5   :  { %1786 = vmatpush1.msra.mxu0 %v4340_v41  ;;  %1857 = vmatpush1.msra.mxu1 %v4342_v40 }
 0x2e6   :  { %1787 = vmatprep.subr.mxu0 %v4346_v62  ;;  %1858 = vmatprep.subr.mxu1 %v4348_v42 }
 0x2e7   :  { %1788 = vmatpush1.msra.mxu0 %v4352_v38  ;;  %1859 = vmatpush1.msra.mxu1 %v4354_v7 }
 0x2e8   :  { %1789 = vmatprep.subr.mxu0 %v4358_v60  ;;  %1860 = vmatprep.subr.mxu1 %v4360_v56  ;;  %v4390_v60 = vld [vmem:[#allocation8 + $0x30] sm:$0xff]  ;;  %v4394_v56 = vld [vmem:[#allocation8 + $0x8] sm:$0xff] }
 0x2e9   :  { %1790 = vmatpush1.msra.mxu0 %v4364_v1  ;;  %1861 = vmatpush1.msra.mxu1 %v4366_v59  ;;  %4902 = vst [vmem:[#allocation26_spill] sm:$0xff] %v4390_v60  ;;  %4903 = vst [vmem:[#allocation27_spill] sm:$0xff] %v4394_v56  ;;  %v4396_v1 = vld [vmem:[#allocation8 + $0x18] sm:$0xff]  ;;  %v4400_v59 = vld [vmem:[#allocation8] sm:$0xff] }
 0x2ea   :  { %1791 = vmatprep.subr.mxu0 %v4370_v61  ;;  %1862 = vmatprep.subr.mxu1 %v4372_v6  ;;  %4904 = vst [vmem:[#allocation28_spill] sm:$0xff] %v4396_v1  ;;  %4905 = vst [vmem:[#allocation29_spill] sm:$0xff] %v4400_v59  ;;  %v4402_v61 = vld [vmem:[#allocation8 + $0x10] sm:$0xff] }
 0x2eb   :  { %1792 = vmatpush1.msra.mxu0 %v4376_v49  ;;  %1863 = vmatpush1.msra.mxu1 %v4378_v37  ;;  %4906 = vst [vmem:[#allocation30_spill] sm:$0xff] %v4402_v61 }
 0x2ec   :  { %1793 = vmatprep.subr.mxu0 %v4382_v45  ;;  %1864 = vmatprep.subr.mxu1 %v4384_v58 }
 0x2ed   :  { %1794 = vmatpush1.msra.mxu0 %v4388_v31  ;;  %1865 = vmatpush1.msra.mxu1 %v4390_v60 }
 0x2ee   :  { %1795 = vmatprep.subr.mxu0 %v4394_v56  ;;  %1866 = vmatprep.subr.mxu1 %v4396_v1 }
 0x2ef   :  { %1796 = vmatpush1.msra.mxu0 %v4400_v59  ;;  %1867 = vmatpush1.msra.mxu1 %v4402_v61 }
 0x2f0   :  { %2019 = vmatprep.subr.mxu0 %v4218_v18  ;;  %2090 = vmatprep.subr.mxu1 %v4220_v47 }
 0x38f   :  { %v1577_v58 = vpop.f32.mrf.mxu0  ;;  %v1648_v60 = vpop.f32.mrf.mxu1 }
 0x390   :  { %v1667_v45 = vadd.f32 %v4103_v4, %v1577_v58  ;;  %v1669_v61 = vadd.f32 %v4105_v12, %v1648_v60  ;;  %v4909_v12 = vld [vmem:[#allocation16_spill] sm:$0xff] }
 0x391   :  { %v1579_v37 = vpop.f32.mrf.mxu0  ;;  %v1650_v1 = vpop.f32.mrf.mxu1 }
 0x392   :  { %v2988_v49 = vmul.f32 -1.442695, %v1667_v45  ;;  %v1668_v31 = vadd.f32 %v4107_v63, %v1579_v37  ;;  %v1670_v59 = vadd.f32 %v4109_v24, %v1650_v1  ;;  %v4910_v24 = vld [vmem:[#allocation17_spill] sm:$0xff] }
 0x394   :  { %3049 = vpow2.f32 %v2988_v49  ;;  %v2989_v56 = vmul.f32 -1.442695, %v1668_v31  ;;  %v2990_v6 = vmul.f32 -1.442695, %v1670_v59 }
 0x396   :  { %3051 = vpow2.f32 %v2989_v56 }
 0x397   :  { %3053 = vtanh.f32 %v1669_v61 }
 0x398   :  { %3055 = vpow2.f32 %v2990_v6  ;;  %v4908_v6 = vld [vmem:[#allocation15_spill] sm:$0xff] }
 0x3a1   :  { %v3050_v18 = vpop.eup %3049 }
 0x3a2   :  { %v1675_v7 = vadd.f32 1.0, %v3050_v18  ;;  %v4912_v18 = vld [vmem:[#allocation19_spill] sm:$0xff] }
 0x3a3   :  { %v3052_v47 = vpop.eup %3051 }
 0x3a4   :  { %3057 = vrcp.f32 %v1675_v7  ;;  %v1681_v58 = vadd.f32 1.0, %v3052_v47  ;;  %v3054_v45 = vpop.eup %3053  ;;  %v4907_v7 = vld [vmem:[#allocation14_spill] sm:$0xff]  ;;  %v4913_v47 = vld [vmem:[#allocation20_spill] sm:$0xff] }
 0x3a5   :  { %v3056_v37 = vpop.eup %3055 }
 0x3a6   :  { %3059 = vrcp.f32 %v1681_v58  ;;  %v1688_v56 = vadd.f32 1.0, %v3056_v37  ;;  %v4914_v58 = vld [vmem:[#allocation21_spill] sm:$0xff]  ;;  %v4916_v37 = vld [vmem:[#allocation23_spill] sm:$0xff] }
 0x3a8   :  { %3061 = vrcp.f32 %v1688_v56  ;;  %v4920_v56 = vld [vmem:[#allocation27_spill] sm:$0xff] }
 0x3b1   :  { %v3058_v49 = vpop.eup %3057 }
 0x3b2   :  { %v1692_v4 = vmul.f32 %v3058_v49, %v3054_v45  ;;  %v4915_v45 = vld [vmem:[#allocation22_spill] sm:$0xff]  ;;  %v4917_v49 = vld [vmem:[#allocation24_spill] sm:$0xff] }
 0x3b3   :  { %v3060_v63 = vpop.eup %3059 }
 0x3b4   :  { %v1691_v31 = vmul.f32 %v3060_v63, %v4210_v10  ;;  %v4911_v10 = vld [vmem:[#allocation18_spill] sm:$0xff] }
 0x3b5   :  { %v3062_v60 = vpop.eup %3061  ;;  %v4919_v63 = vld [vmem:[#allocation26_spill] sm:$0xff] }
 0x3b6   :  { %v4417_v1 = vadd.f32 %v1692_v4, %v1691_v31  ;;  %v4918_v4 = vld [vmem:[#allocation25_spill] sm:$0xff]  ;;  %v4921_v31 = vld [vmem:[#allocation28_spill] sm:$0xff] }
 0x3b8   :  { %3063 = vtanh.f32 %v4417_v1 }
 0x3c5   :  { %v3064_v61 = vpop.eup %3063 }
 0x3c6   :  { %v1695_v59 = vmul.f32 %v3064_v61, %v3062_v60  ;;  %v4922_v60 = vld [vmem:[#allocation29_spill] sm:$0xff]  ;;  %v4923_v61 = vmov 0.0  }
 0x3c8   :  { %2991 = vst [vmem:[%s4675_s6 + $0x10] sm:$0xff] %v1695_v59  ;;  %1830 = vmatmul.mubr.f32.vlgmr.msra.gmra.mxu0 %v1695_v59  ;;  %1901 = vmatmul.mubr.f32.vlgmr.msra.gmra.mxu1 %v1695_v59  ;;  %v4924_v59 = vld [vmem:[#allocation30_spill] sm:$0xff] }
 0x3c9   :  { %2020 = vmatpush1.msra.mxu0 %v4224_v52  ;;  %2091 = vmatpush1.msra.mxu1 %v4226_v39 }
 0x3ca   :  { %2021 = vmatprep.subr.mxu0 %v4230_v53  ;;  %2092 = vmatprep.subr.mxu1 %v4232_v0 }
 0x3cb   :  { %2022 = vmatpush1.msra.mxu0 %v4236_v20  ;;  %2093 = vmatpush1.msra.mxu1 %v4238_v21 }
 0x3cc   :  { %2023 = vmatprep.subr.mxu0 %v4242_v22  ;;  %2094 = vmatprep.subr.mxu1 %v4244_v23 }
 0x3cd   :  { %2024 = vmatpush1.msra.mxu0 %v4248_v25  ;;  %2095 = vmatpush1.msra.mxu1 %v4250_v26 }
 0x3ce   :  { %2025 = vmatprep.subr.mxu0 %v4254_v28  ;;  %2096 = vmatprep.subr.mxu1 %v4256_v29 }
 0x3cf   :  { %2026 = vmatpush1.msra.mxu0 %v4260_v30  ;;  %2097 = vmatpush1.msra.mxu1 %v4262_v32 }
 0x3d0   :  { %2027 = vmatprep.subr.mxu0 %v4266_v33  ;;  %2098 = vmatprep.subr.mxu1 %v4268_v35 }
 0x3d1   :  { %2028 = vmatpush1.msra.mxu0 %v4272_v36  ;;  %2099 = vmatpush1.msra.mxu1 %v4274_v15 }
 0x3d2   :  { %2029 = vmatprep.subr.mxu0 %v4278_v9  ;;  %2100 = vmatprep.subr.mxu1 %v4280_v5 }
 0x3d3   :  { %2030 = vmatpush1.msra.mxu0 %v4284_v27  ;;  %2101 = vmatpush1.msra.mxu1 %v4286_v51 }
 0x3d4   :  { %2031 = vmatprep.subr.mxu0 %v4290_v57  ;;  %2102 = vmatprep.subr.mxu1 %v4292_v46 }
 0x3d5   :  { %2032 = vmatpush1.msra.mxu0 %v4296_v3  ;;  %2103 = vmatpush1.msra.mxu1 %v4298_v16 }
 0x3d6   :  { %2033 = vmatprep.subr.mxu0 %v4302_v54  ;;  %2104 = vmatprep.subr.mxu1 %v4304_v43 }
 0x3d7   :  { %2034 = vmatpush1.msra.mxu0 %v4306_v48  ;;  %2105 = vmatpush1.msra.mxu1 %v4310_v34 }
 0x3d8   :  { %2035 = vmatprep.subr.mxu0 %v4312_v8  ;;  %2106 = vmatprep.subr.mxu1 %v4314_v44 }
 0x3d9   :  { %2036 = vmatpush1.msra.mxu0 %v4318_v55  ;;  %2107 = vmatpush1.msra.mxu1 %v4320_v14 }
 0x3da   :  { %2037 = vmatprep.subr.mxu0 %v4322_v19  ;;  %2108 = vmatprep.subr.mxu1 %v4326_v50 }
 0x3db   :  { %2038 = vmatpush1.msra.mxu0 %v4328_v17  ;;  %2109 = vmatpush1.msra.mxu1 %v4330_v13 }
 0x3dc   :  { %2039 = vmatprep.subr.mxu0 %v4334_v11  ;;  %2110 = vmatprep.subr.mxu1 %v4336_v2 }
 0x3dd   :  { %2040 = vmatpush1.msra.mxu0 %v4340_v41  ;;  %2111 = vmatpush1.msra.mxu1 %v4342_v40 }
 0x3de   :  { %2041 = vmatprep.subr.mxu0 %v4346_v62  ;;  %2112 = vmatprep.subr.mxu1 %v4348_v42 }
 0x3df   :  { %2042 = vmatpush1.msra.mxu0 %v4352_v38  ;;  %2113 = vmatpush1.msra.mxu1 %v4907_v7 }
 0x3e0   :  { %2043 = vmatprep.subr.mxu0 %v4908_v6  ;;  %2114 = vmatprep.subr.mxu1 %v4909_v12  ;;  %v4930_v12 = vld [vmem:[#allocation77_spill] sm:$0xff] }
 0x3e1   :  { %2044 = vmatpush1.msra.mxu0 %v4910_v24  ;;  %2115 = vmatpush1.msra.mxu1 %v4911_v10  ;;  %v4929_v24 = vld [vmem:[#allocation79_spill] sm:$0xff] }
 0x3e2   :  { %2045 = vmatprep.subr.mxu0 %v4912_v18  ;;  %2116 = vmatprep.subr.mxu1 %v4913_v47 }
 0x3e3   :  { %2046 = vmatpush1.msra.mxu0 %v4914_v58  ;;  %2117 = vmatpush1.msra.mxu1 %v4915_v45  ;;  %v4925_v45 = vld [vmem:[#allocation12_spill] sm:$0xff] }
 0x3e4   :  { %2047 = vmatprep.subr.mxu0 %v4916_v37  ;;  %2118 = vmatprep.subr.mxu1 %v4917_v49  ;;  %v4926_v37 = vld [vmem:[#allocation13_spill] sm:$0xff] }
 0x3e5   :  { %2048 = vmatpush1.msra.mxu0 %v4918_v4  ;;  %2119 = vmatpush1.msra.mxu1 %v4919_v63  ;;  %v4927_v4 = vld [vmem:[#allocation76_spill] sm:$0xff] }
 0x3e6   :  { %2049 = vmatprep.subr.mxu0 %v4920_v56  ;;  %2120 = vmatprep.subr.mxu1 %v4921_v31  ;;  %v4928_v56 = vld [vmem:[#allocation78_spill] sm:$0xff] }
 0x3e7   :  { %2050 = vmatpush1.msra.mxu0 %v4922_v60  ;;  %2083 = vmatprep.mubr.f32.mxu0 %v4923_v61 }
 0x3e8   :  { %2121 = vmatpush1.msra.mxu1 %v4924_v59  ;;  %2154 = vmatprep.mubr.f32.mxu1 %v4923_v61 }
 0x3e9   :  { %2273 = vmatprep.subr.mxu0 %v4925_v45  ;;  %2344 = vmatprep.subr.mxu1 %v4926_v37 }
 0x488   :  { %v1831_v49 = vpop.f32.mrf.mxu0  ;;  %v1902_v31 = vpop.f32.mrf.mxu1 }
 0x489   :  { %v1921_v58 = vadd.f32 %v4927_v4, %v1831_v49  ;;  %v1923_v61 = vadd.f32 %v4930_v12, %v1902_v31  ;;  %v4935_v31 = vld [vmem:[#allocation18_spill] sm:$0xff] }
 0x48a   :  { %v1833_v63 = vpop.f32.mrf.mxu0  ;;  %v1904_v10 = vpop.f32.mrf.mxu1 }
 0x48b   :  { %v2992_v47 = vmul.f32 -1.442695, %v1921_v58  ;;  %v1922_v18 = vadd.f32 %v4928_v56, %v1833_v63  ;;  %v1924_v59 = vadd.f32 %v4929_v24, %v1904_v10 }
 0x48d   :  { %3065 = vpow2.f32 %v2992_v47  ;;  %v2993_v60 = vmul.f32 -1.442695, %v1922_v18  ;;  %v2994_v6 = vmul.f32 -1.442695, %v1924_v59  ;;  %v4937_v59 = vld [vmem:[#allocation20_spill] sm:$0xff] }
 0x48f   :  { %3067 = vpow2.f32 %v2993_v60 }
 0x490   :  { %3069 = vtanh.f32 %v1923_v61  ;;  %v4936_v61 = vld [vmem:[#allocation19_spill] sm:$0xff] }
 0x491   :  { %3071 = vpow2.f32 %v2994_v6  ;;  %v4933_v6 = vld [vmem:[#allocation16_spill] sm:$0xff] }
 0x49a   :  { %v3066_v45 = vpop.eup %3065 }
 0x49b   :  { %v1929_v7 = vadd.f32 1.0, %v3066_v45 }
 0x49c   :  { %v3068_v37 = vpop.eup %3067 }
 0x49d   :  { %3073 = vrcp.f32 %v1929_v7  ;;  %v1935_v49 = vadd.f32 1.0, %v3068_v37  ;;  %v3070_v58 = vpop.eup %3069  ;;  %v4932_v7 = vld [vmem:[#allocation15_spill] sm:$0xff]  ;;  %v4934_v37 = vld [vmem:[#allocation17_spill] sm:$0xff] }
 0x49e   :  { %v3072_v4 = vpop.eup %3071 }
 0x49f   :  { %3075 = vrcp.f32 %v1935_v49  ;;  %v1942_v56 = vadd.f32 1.0, %v3072_v4  ;;  %v4938_v49 = vld [vmem:[#allocation21_spill] sm:$0xff]  ;;  %v4940_v4 = vld [vmem:[#allocation23_spill] sm:$0xff] }
 0x4a1   :  { %3077 = vrcp.f32 %v1942_v56  ;;  %v4944_v56 = vld [vmem:[#allocation27_spill] sm:$0xff] }
 0x4aa   :  { %v3074_v47 = vpop.eup %3073 }
 0x4ab   :  { %v1946_v63 = vmul.f32 %v3074_v47, %v3070_v58  ;;  %v4939_v58 = vld [vmem:[#allocation22_spill] sm:$0xff]  ;;  %v4941_v47 = vld [vmem:[#allocation24_spill] sm:$0xff] }
 0x4ac   :  { %v3076_v18 = vpop.eup %3075 }
 0x4ad   :  { %v1945_v60 = vmul.f32 %v3076_v18, %v4417_v1  ;;  %v4931_v1 = vld [vmem:[#allocation14_spill] sm:$0xff] }
 0x4ae   :  { %v3078_v12 = vpop.eup %3077  ;;  %v4943_v18 = vld [vmem:[#allocation26_spill] sm:$0xff] }
 0x4af   :  { %v4494_v24 = vadd.f32 %v1946_v63, %v1945_v60  ;;  %v4942_v63 = vld [vmem:[#allocation25_spill] sm:$0xff]  ;;  %v4945_v60 = vld [vmem:[#allocation28_spill] sm:$0xff] }
 0x4b1   :  { %3079 = vtanh.f32 %v4494_v24 }
 0x4be   :  { %v3080_v10 = vpop.eup %3079 }
 0x4bf   :  { %v1949_v45 = vmul.f32 %v3080_v10, %v3078_v12  ;;  %v4946_v12 = vld [vmem:[#allocation29_spill] sm:$0xff]  ;;  %v4947_v10 = vmov 0.0  }
 0x4c1   :  { %2995 = vst [vmem:[%s4675_s6 + $0x18] sm:$0xff] %v1949_v45  ;;  %2084 = vmatmul.mubr.f32.vlgmr.msra.gmra.mxu0 %v1949_v45  ;;  %2155 = vmatmul.mubr.f32.vlgmr.msra.gmra.mxu1 %v1949_v45  ;;  %v4948_v45 = vld [vmem:[#allocation30_spill] sm:$0xff] }
 0x4c2   :  { %2274 = vmatpush1.msra.mxu0 %v4224_v52  ;;  %2345 = vmatpush1.msra.mxu1 %v4226_v39 }
 0x4c3   :  { %2275 = vmatprep.subr.mxu0 %v4230_v53  ;;  %2346 = vmatprep.subr.mxu1 %v4232_v0 }
 0x4c4   :  { %2276 = vmatpush1.msra.mxu0 %v4236_v20  ;;  %2347 = vmatpush1.msra.mxu1 %v4238_v21 }
 0x4c5   :  { %2277 = vmatprep.subr.mxu0 %v4242_v22  ;;  %2348 = vmatprep.subr.mxu1 %v4244_v23 }
 0x4c6   :  { %2278 = vmatpush1.msra.mxu0 %v4248_v25  ;;  %2349 = vmatpush1.msra.mxu1 %v4250_v26 }
 0x4c7   :  { %2279 = vmatprep.subr.mxu0 %v4254_v28  ;;  %2350 = vmatprep.subr.mxu1 %v4256_v29 }
 0x4c8   :  { %2280 = vmatpush1.msra.mxu0 %v4260_v30  ;;  %2351 = vmatpush1.msra.mxu1 %v4262_v32 }
 0x4c9   :  { %2281 = vmatprep.subr.mxu0 %v4266_v33  ;;  %2352 = vmatprep.subr.mxu1 %v4268_v35 }
 0x4ca   :  { %2282 = vmatpush1.msra.mxu0 %v4272_v36  ;;  %2353 = vmatpush1.msra.mxu1 %v4274_v15 }
 0x4cb   :  { %2283 = vmatprep.subr.mxu0 %v4278_v9  ;;  %2354 = vmatprep.subr.mxu1 %v4280_v5 }
 0x4cc   :  { %2284 = vmatpush1.msra.mxu0 %v4284_v27  ;;  %2355 = vmatpush1.msra.mxu1 %v4286_v51 }
 0x4cd   :  { %2285 = vmatprep.subr.mxu0 %v4290_v57  ;;  %2356 = vmatprep.subr.mxu1 %v4292_v46 }
 0x4ce   :  { %2286 = vmatpush1.msra.mxu0 %v4296_v3  ;;  %2357 = vmatpush1.msra.mxu1 %v4298_v16 }
 0x4cf   :  { %2287 = vmatprep.subr.mxu0 %v4302_v54  ;;  %2358 = vmatprep.subr.mxu1 %v4304_v43 }
 0x4d0   :  { %2288 = vmatpush1.msra.mxu0 %v4306_v48  ;;  %2359 = vmatpush1.msra.mxu1 %v4310_v34 }
 0x4d1   :  { %2289 = vmatprep.subr.mxu0 %v4312_v8  ;;  %2360 = vmatprep.subr.mxu1 %v4314_v44 }
 0x4d2   :  { %2290 = vmatpush1.msra.mxu0 %v4318_v55  ;;  %2361 = vmatpush1.msra.mxu1 %v4320_v14 }
 0x4d3   :  { %2291 = vmatprep.subr.mxu0 %v4322_v19  ;;  %2362 = vmatprep.subr.mxu1 %v4326_v50 }
 0x4d4   :  { %2292 = vmatpush1.msra.mxu0 %v4328_v17  ;;  %2363 = vmatpush1.msra.mxu1 %v4330_v13 }
 0x4d5   :  { %2293 = vmatprep.subr.mxu0 %v4334_v11  ;;  %2364 = vmatprep.subr.mxu1 %v4336_v2 }
 0x4d6   :  { %2294 = vmatpush1.msra.mxu0 %v4340_v41  ;;  %2365 = vmatpush1.msra.mxu1 %v4342_v40 }
 0x4d7   :  { %2295 = vmatprep.subr.mxu0 %v4346_v62  ;;  %2366 = vmatprep.subr.mxu1 %v4348_v42 }
 0x4d8   :  { %2296 = vmatpush1.msra.mxu0 %v4352_v38  ;;  %2367 = vmatpush1.msra.mxu1 %v4931_v1 }
 0x4d9   :  { %2297 = vmatprep.subr.mxu0 %v4932_v7  ;;  %2368 = vmatprep.subr.mxu1 %v4933_v6  ;;  %v4954_v6 = vld [vmem:[#allocation73_spill] sm:$0xff] }
 0x4da   :  { %2298 = vmatpush1.msra.mxu0 %v4934_v37  ;;  %2369 = vmatpush1.msra.mxu1 %v4935_v31  ;;  %v4953_v37 = vld [vmem:[#allocation75_spill] sm:$0xff] }
 0x4db   :  { %2299 = vmatprep.subr.mxu0 %v4936_v61  ;;  %2370 = vmatprep.subr.mxu1 %v4937_v59 }
 0x4dc   :  { %2300 = vmatpush1.msra.mxu0 %v4938_v49  ;;  %2371 = vmatpush1.msra.mxu1 %v4939_v58  ;;  %v4949_v58 = vld [vmem:[#allocation12_spill] sm:$0xff] }
 0x4dd   :  { %2301 = vmatprep.subr.mxu0 %v4940_v4  ;;  %2372 = vmatprep.subr.mxu1 %v4941_v47  ;;  %v4950_v4 = vld [vmem:[#allocation13_spill] sm:$0xff] }
 0x4de   :  { %2302 = vmatpush1.msra.mxu0 %v4942_v63  ;;  %2373 = vmatpush1.msra.mxu1 %v4943_v18  ;;  %v4951_v63 = vld [vmem:[#allocation72_spill] sm:$0xff] }
 0x4df   :  { %2303 = vmatprep.subr.mxu0 %v4944_v56  ;;  %2374 = vmatprep.subr.mxu1 %v4945_v60  ;;  %v4952_v56 = vld [vmem:[#allocation74_spill] sm:$0xff] }
 0x4e0   :  { %2304 = vmatpush1.msra.mxu0 %v4946_v12  ;;  %2337 = vmatprep.mubr.f32.mxu0 %v4947_v10 }
 0x4e1   :  { %2375 = vmatpush1.msra.mxu1 %v4948_v45  ;;  %2408 = vmatprep.mubr.f32.mxu1 %v4947_v10 }
 0x4e2   :  { %2527 = vmatprep.subr.mxu0 %v4949_v58  ;;  %2598 = vmatprep.subr.mxu1 %v4950_v4 }
 0x581   :  { %v2085_v47 = vpop.f32.mrf.mxu0  ;;  %v2156_v60 = vpop.f32.mrf.mxu1 }
 0x582   :  { %v2175_v49 = vadd.f32 %v4951_v63, %v2085_v47  ;;  %v2177_v10 = vadd.f32 %v4954_v6, %v2156_v60 }
 0x583   :  { %v2087_v18 = vpop.f32.mrf.mxu0  ;;  %v2158_v31 = vpop.f32.mrf.mxu1 }
 0x584   :  { %v2996_v59 = vmul.f32 -1.442695, %v2175_v49  ;;  %v2176_v61 = vadd.f32 %v4952_v56, %v2087_v18  ;;  %v2178_v45 = vadd.f32 %v4953_v37, %v2158_v31 }
 0x586   :  { %3081 = vpow2.f32 %v2996_v59  ;;  %v2997_v12 = vmul.f32 -1.442695, %v2176_v61  ;;  %v2998_v7 = vmul.f32 -1.442695, %v2178_v45  ;;  %v2780_v45 = vld [vmem:[#allocation8 + $0x1f8] sm:$0xff] }
 0x588   :  { %3083 = vpow2.f32 %v2997_v12 }
 0x589   :  { %3085 = vtanh.f32 %v2177_v10  ;;  %v2778_v10 = vld [vmem:[#allocation8 + $0x1e8] sm:$0xff] }
 0x58a   :  { %3087 = vpow2.f32 %v2998_v7 }
 0x593   :  { %v3082_v58 = vpop.eup %3081 }
 0x594   :  { %v2183_v1 = vadd.f32 1.0, %v3082_v58  ;;  %v2777_v58 = vld [vmem:[#allocation8 + $0x1e0] sm:$0xff] }
 0x595   :  { %v3084_v4 = vpop.eup %3083 }
 0x596   :  { %3089 = vrcp.f32 %v2183_v1  ;;  %v2189_v47 = vadd.f32 1.0, %v3084_v4  ;;  %v3086_v49 = vpop.eup %3085  ;;  %v2779_v4 = vld [vmem:[#allocation8 + $0x1f0] sm:$0xff] }
 0x597   :  { %v3088_v63 = vpop.eup %3087 }
 0x598   :  { %3091 = vrcp.f32 %v2189_v47  ;;  %v2196_v56 = vadd.f32 1.0, %v3088_v63  ;;  %v2774_v47 = vld [vmem:[#allocation8 + $0x1c8] sm:$0xff]  ;;  %v2773_v63 = vld [vmem:[#allocation8 + $0x1c0] sm:$0xff] }
 0x59a   :  { %3093 = vrcp.f32 %v2196_v56  ;;  %v2769_v56 = vld [vmem:[#allocation8 + $0x1a0] sm:$0xff] }
 0x5a3   :  { %v3090_v59 = vpop.eup %3089 }
 0x5a4   :  { %v2200_v18 = vmul.f32 %v3090_v59, %v3086_v49  ;;  %v2776_v49 = vld [vmem:[#allocation8 + $0x1d8] sm:$0xff]  ;;  %v2775_v59 = vld [vmem:[#allocation8 + $0x1d0] sm:$0xff] }
 0x5a5   :  { %v3092_v61 = vpop.eup %3091 }
 0x5a6   :  { %v2199_v12 = vmul.f32 %v3092_v61, %v4494_v24  ;;  %v2772_v61 = vld [vmem:[#allocation8 + $0x1b8] sm:$0xff] }
 0x5a7   :  { %v3094_v6 = vpop.eup %3093 }
 0x5a8   :  { %v4571_v37 = vadd.f32 %v2200_v18, %v2199_v12  ;;  %v2770_v18 = vld [vmem:[#allocation8 + $0x1a8] sm:$0xff]  ;;  %v2771_v12 = vld [vmem:[#allocation8 + $0x1b0] sm:$0xff] }
 0x5aa   :  { %3095 = vtanh.f32 %v4571_v37 }
 0x5b7   :  { %v3096_v31 = vpop.eup %3095 }
 0x5b8   :  { %v2203_v60 = vmul.f32 %v3096_v31, %v3094_v6  ;;  %v2768_v6 = vld [vmem:[#allocation8 + $0x198] sm:$0xff]  ;;  %v2765_v31 = vld [vmem:[#allocation8 + $0x180] sm:$0xff] }
 0x5ba   :  { %2999 = vst [vmem:[%s4675_s6 + $0x20] sm:$0xff] %v2203_v60  ;;  %2338 = vmatmul.mubr.f32.vlgmr.msra.gmra.mxu0 %v2203_v60  ;;  %2409 = vmatmul.mubr.f32.vlgmr.msra.gmra.mxu1 %v2203_v60  ;;  %v2767_v60 = vld [vmem:[#allocation8 + $0x190] sm:$0xff] }
 0x5bb   :  { %2528 = vmatpush1.msra.mxu0 %v4224_v52  ;;  %2599 = vmatpush1.msra.mxu1 %v4226_v39  ;;  %v4955_v52 = vld [vmem:[#allocation14_spill] sm:$0xff]  ;;  %v4956_v39 = vld [vmem:[#allocation15_spill] sm:$0xff] }
 0x5bc   :  { %2529 = vmatprep.subr.mxu0 %v4230_v53  ;;  %2600 = vmatprep.subr.mxu1 %v4232_v0  ;;  %v4957_v53 = vld [vmem:[#allocation16_spill] sm:$0xff]  ;;  %v4958_v0 = vld [vmem:[#allocation17_spill] sm:$0xff] }
 0x5bd   :  { %2530 = vmatpush1.msra.mxu0 %v4236_v20  ;;  %2601 = vmatpush1.msra.mxu1 %v4238_v21  ;;  %v4959_v20 = vld [vmem:[#allocation18_spill] sm:$0xff]  ;;  %v4966_v21 = vld [vmem:[#allocation25_spill] sm:$0xff] }
 0x5be   :  { %2531 = vmatprep.subr.mxu0 %v4242_v22  ;;  %2602 = vmatprep.subr.mxu1 %v4244_v23  ;;  %v4967_v22 = vld [vmem:[#allocation26_spill] sm:$0xff]  ;;  %v4968_v23 = vld [vmem:[#allocation27_spill] sm:$0xff] }
 0x5bf   :  { %2532 = vmatpush1.msra.mxu0 %v4248_v25  ;;  %2603 = vmatpush1.msra.mxu1 %v4250_v26  ;;  %v4969_v25 = vld [vmem:[#allocation28_spill] sm:$0xff]  ;;  %v4970_v26 = vld [vmem:[#allocation29_spill] sm:$0xff] }
 0x5c0   :  { %2533 = vmatprep.subr.mxu0 %v4254_v28  ;;  %2604 = vmatprep.subr.mxu1 %v4256_v29  ;;  %v4971_v28 = vmov 0.0   ;;  %v4972_v29 = vld [vmem:[#allocation30_spill] sm:$0xff] }
 0x5c1   :  { %2534 = vmatpush1.msra.mxu0 %v4260_v30  ;;  %2605 = vmatpush1.msra.mxu1 %v4262_v32  ;;  %v4973_v32 = vld [vmem:[#allocation68_spill] sm:$0xff] }
 0x5c2   :  { %2535 = vmatprep.subr.mxu0 %v4266_v33  ;;  %2606 = vmatprep.subr.mxu1 %v4268_v35 }
 0x5c3   :  { %2536 = vmatpush1.msra.mxu0 %v4272_v36  ;;  %2607 = vmatpush1.msra.mxu1 %v4274_v15  ;;  %v4974_v15 = vld [vmem:[#allocation70_spill] sm:$0xff] }
 0x5c4   :  { %2537 = vmatprep.subr.mxu0 %v4278_v9  ;;  %2608 = vmatprep.subr.mxu1 %v4280_v5 }
 0x5c5   :  { %2538 = vmatpush1.msra.mxu0 %v4284_v27  ;;  %2609 = vmatpush1.msra.mxu1 %v4286_v51 }
 0x5c6   :  { %2539 = vmatprep.subr.mxu0 %v4290_v57  ;;  %2610 = vmatprep.subr.mxu1 %v4292_v46  ;;  %v4975_v57 = vld [vmem:[#allocation71_spill] sm:$0xff] }
 0x5c7   :  { %2540 = vmatpush1.msra.mxu0 %v4296_v3  ;;  %2611 = vmatpush1.msra.mxu1 %v4298_v16  ;;  %v4976_v3 = vld [vmem:[#allocation69_spill] sm:$0xff] }
 0x5c8   :  { %2541 = vmatprep.subr.mxu0 %v4302_v54  ;;  %2612 = vmatprep.subr.mxu1 %v4304_v43 }
 0x5c9   :  { %2542 = vmatpush1.msra.mxu0 %v4306_v48  ;;  %2613 = vmatpush1.msra.mxu1 %v4310_v34 }
 0x5ca   :  { %2543 = vmatprep.subr.mxu0 %v4312_v8  ;;  %2614 = vmatprep.subr.mxu1 %v4314_v44 }
 0x5cb   :  { %2544 = vmatpush1.msra.mxu0 %v4318_v55  ;;  %2615 = vmatpush1.msra.mxu1 %v4320_v14 }
 0x5cc   :  { %2545 = vmatprep.subr.mxu0 %v4322_v19  ;;  %2616 = vmatprep.subr.mxu1 %v4326_v50 }
 0x5cd   :  { %2546 = vmatpush1.msra.mxu0 %v4328_v17  ;;  %2617 = vmatpush1.msra.mxu1 %v4330_v13 }
 0x5ce   :  { %2547 = vmatprep.subr.mxu0 %v4334_v11  ;;  %2618 = vmatprep.subr.mxu1 %v4336_v2  ;;  %v4960_v2 = vld [vmem:[#allocation19_spill] sm:$0xff] }
 0x5cf   :  { %2548 = vmatpush1.msra.mxu0 %v4340_v41  ;;  %2619 = vmatpush1.msra.mxu1 %v4342_v40  ;;  %v4961_v41 = vld [vmem:[#allocation20_spill] sm:$0xff]  ;;  %v4962_v40 = vld [vmem:[#allocation21_spill] sm:$0xff] }
 0x5d0   :  { %2549 = vmatprep.subr.mxu0 %v4346_v62  ;;  %2620 = vmatprep.subr.mxu1 %v4348_v42  ;;  %v4963_v62 = vld [vmem:[#allocation22_spill] sm:$0xff]  ;;  %v4964_v42 = vld [vmem:[#allocation23_spill] sm:$0xff] }
 0x5d1   :  { %2550 = vmatpush1.msra.mxu0 %v4352_v38  ;;  %2621 = vmatpush1.msra.mxu1 %v4955_v52  ;;  %v4965_v38 = vld [vmem:[#allocation24_spill] sm:$0xff]  ;;  %v2762_v52 = vld [vmem:[#allocation8 + $0x168] sm:$0xff] }
 0x5d2   :  { %2551 = vmatprep.subr.mxu0 %v4956_v39  ;;  %2622 = vmatprep.subr.mxu1 %v4957_v53  ;;  %v2764_v39 = vld [vmem:[#allocation8 + $0x178] sm:$0xff]  ;;  %v2761_v53 = vld [vmem:[#allocation8 + $0x160] sm:$0xff] }
 0x5d3   :  { %2552 = vmatpush1.msra.mxu0 %v4958_v0  ;;  %2623 = vmatpush1.msra.mxu1 %v4959_v20  ;;  %v2763_v0 = vld [vmem:[#allocation8 + $0x170] sm:$0xff]  ;;  %v2758_v20 = vld [vmem:[#allocation8 + $0x148] sm:$0xff] }
 0x5d4   :  { %2553 = vmatprep.subr.mxu0 %v4960_v2  ;;  %2624 = vmatprep.subr.mxu1 %v4961_v41  ;;  %v2760_v2 = vld [vmem:[#allocation8 + $0x158] sm:$0xff]  ;;  %v2757_v41 = vld [vmem:[#allocation8 + $0x140] sm:$0xff] }
 0x5d5   :  { %2554 = vmatpush1.msra.mxu0 %v4962_v40  ;;  %2625 = vmatpush1.msra.mxu1 %v4963_v62  ;;  %v2759_v40 = vld [vmem:[#allocation8 + $0x150] sm:$0xff]  ;;  %v2754_v62 = vld [vmem:[#allocation8 + $0x128] sm:$0xff] }
 0x5d6   :  { %2555 = vmatprep.subr.mxu0 %v4964_v42  ;;  %2626 = vmatprep.subr.mxu1 %v4965_v38  ;;  %v2756_v42 = vld [vmem:[#allocation8 + $0x138] sm:$0xff]  ;;  %v2753_v38 = vld [vmem:[#allocation8 + $0x120] sm:$0xff] }
 0x5d7   :  { %2556 = vmatpush1.msra.mxu0 %v4966_v21  ;;  %2627 = vmatpush1.msra.mxu1 %v4967_v22  ;;  %v2755_v21 = vld [vmem:[#allocation8 + $0x130] sm:$0xff]  ;;  %v2750_v22 = vld [vmem:[#allocation8 + $0x108] sm:$0xff] }
 0x5d8   :  { %2557 = vmatprep.subr.mxu0 %v4968_v23  ;;  %2628 = vmatprep.subr.mxu1 %v4969_v25  ;;  %v2752_v23 = vld [vmem:[#allocation8 + $0x118] sm:$0xff]  ;;  %v2749_v25 = vld [vmem:[#allocation8 + $0x100] sm:$0xff] }
 0x5d9   :  { %2558 = vmatpush1.msra.mxu0 %v4970_v26  ;;  %2591 = vmatprep.mubr.f32.mxu0 %v4971_v28  ;;  %v2751_v26 = vld [vmem:[#allocation8 + $0x110] sm:$0xff] }
 0x5da   :  { %2629 = vmatpush1.msra.mxu1 %v4972_v29  ;;  %2662 = vmatprep.mubr.f32.mxu1 %v4971_v28  ;;  %v2748_v29 = vld [vmem:[#allocation8 + $0xf8] sm:$0xff] }
 0x5db   :  { %2781 = vmatprep.subr.mxu0 %v2778_v10  ;;  %2852 = vmatprep.subr.mxu1 %v2780_v45  ;;  %v2719_v10 = vld [vmem:[#allocation8 + $0x10] sm:$0xff] }
 0x67a   :  { %v2339_v30 = vpop.f32.mrf.mxu0  ;;  %v2410_v5 = vpop.f32.mrf.mxu1 }
 0x67b   :  { %v2429_v33 = vadd.f32 %v4973_v32, %v2339_v30  ;;  %v2431_v16 = vadd.f32 %v4976_v3, %v2410_v5  ;;  %v2745_v30 = vld [vmem:[#allocation8 + $0xe0] sm:$0xff]  ;;  %v2747_v32 = vld [vmem:[#allocation8 + $0xf0] sm:$0xff]  ;;  %v2740_v5 = vld [vmem:[#allocation8 + $0xb8] sm:$0xff] }
 0x67c   :  { %v2341_v35 = vpop.f32.mrf.mxu0  ;;  %v2412_v51 = vpop.f32.mrf.mxu1  ;;  %v2733_v3 = vld [vmem:[#allocation8 + $0x80] sm:$0xff] }
 0x67d   :  { %v3000_v36 = vmul.f32 -1.442695, %v2429_v33  ;;  %v2430_v9 = vadd.f32 %v4974_v15, %v2341_v35  ;;  %v2432_v46 = vadd.f32 %v4975_v57, %v2412_v51  ;;  %v2742_v33 = vld [vmem:[#allocation8 + $0xc8] sm:$0xff]  ;;  %v2744_v35 = vld [vmem:[#allocation8 + $0xd8] sm:$0xff]  ;;  %v2743_v15 = vld [vmem:[#allocation8 + $0xd0] sm:$0xff] }
 0x67e   :  { %v2739_v51 = vld [vmem:[#allocation8 + $0xb0] sm:$0xff]  ;;  %v2734_v57 = vld [vmem:[#allocation8 + $0x88] sm:$0xff] }
 0x67f   :  { %3097 = vpow2.f32 %v3000_v36  ;;  %v3001_v27 = vmul.f32 -1.442695, %v2430_v9  ;;  %v3002_v54 = vmul.f32 -1.442695, %v2432_v46  ;;  %v2741_v36 = vld [vmem:[#allocation8 + $0xc0] sm:$0xff]  ;;  %v2738_v9 = vld [vmem:[#allocation8 + $0xa8] sm:$0xff] }
 0x680   :  { %v2736_v46 = vld [vmem:[#allocation8 + $0x98] sm:$0xff] }
 0x681   :  { %3099 = vpow2.f32 %v3001_v27  ;;  %v2737_v27 = vld [vmem:[#allocation8 + $0xa0] sm:$0xff] }
 0x682   :  { %3101 = vtanh.f32 %v2431_v16  ;;  %v2735_v16 = vld [vmem:[#allocation8 + $0x90] sm:$0xff] }
 0x683   :  { %3103 = vpow2.f32 %v3002_v54  ;;  %v2730_v54 = vld [vmem:[#allocation8 + $0x68] sm:$0xff] }
 0x68c   :  { %v3098_v43 = vpop.eup %3097 }
 0x68d   :  { %v2437_v48 = vadd.f32 1.0, %v3098_v43  ;;  %v2732_v43 = vld [vmem:[#allocation8 + $0x78] sm:$0xff] }
 0x68e   :  { %v3100_v34 = vpop.eup %3099 }
 0x68f   :  { %3105 = vrcp.f32 %v2437_v48  ;;  %v2443_v8 = vadd.f32 1.0, %v3100_v34  ;;  %v3102_v44 = vpop.eup %3101  ;;  %v2729_v48 = vld [vmem:[#allocation8 + $0x60] sm:$0xff]  ;;  %v2731_v34 = vld [vmem:[#allocation8 + $0x70] sm:$0xff] }
 0x690   :  { %v3104_v55 = vpop.eup %3103 }
 0x691   :  { %3107 = vrcp.f32 %v2443_v8  ;;  %v2450_v17 = vadd.f32 1.0, %v3104_v55  ;;  %v2726_v8 = vld [vmem:[#allocation8 + $0x48] sm:$0xff]  ;;  %v2725_v55 = vld [vmem:[#allocation8 + $0x40] sm:$0xff] }
 0x693   :  { %3109 = vrcp.f32 %v2450_v17  ;;  %v2721_v17 = vld [vmem:[#allocation8 + $0x20] sm:$0xff] }
 0x69c   :  { %v3106_v14 = vpop.eup %3105 }
 0x69d   :  { %v2454_v19 = vmul.f32 %v3106_v14, %v3102_v44  ;;  %v2728_v44 = vld [vmem:[#allocation8 + $0x58] sm:$0xff]  ;;  %v2727_v14 = vld [vmem:[#allocation8 + $0x50] sm:$0xff] }
 0x69e   :  { %v3108_v50 = vpop.eup %3107 }
 0x69f   :  { %v2453_v13 = vmul.f32 %v3108_v50, %v4571_v37  ;;  %v2766_v37 = vld [vmem:[#allocation8 + $0x188] sm:$0xff]  ;;  %v2724_v50 = vld [vmem:[#allocation8 + $0x38] sm:$0xff] }
 0x6a0   :  { %v3110_v24 = vpop.eup %3109 }
 0x6a1   :  { %v4646_v11 = vadd.f32 %v2454_v19, %v2453_v13  ;;  %v2722_v19 = vld [vmem:[#allocation8 + $0x28] sm:$0xff]  ;;  %v2723_v13 = vld [vmem:[#allocation8 + $0x30] sm:$0xff] }
 0x6a3   :  { %3111 = vtanh.f32 %v4646_v11 }
 0x6b0   :  { %v3112_v1 = vpop.eup %3111 }
 0x6b1   :  { %v2457_v7 = vmul.f32 %v3112_v1, %v3110_v24  ;;  %v2718_v24 = vld [vmem:[#allocation8 + $0x8] sm:$0xff]  ;;  %v2720_v1 = vld [vmem:[#allocation8 + $0x18] sm:$0xff] }
 0x6b3   :  { %3003 = vst [vmem:[%s4675_s6 + $0x28] sm:$0xff] %v2457_v7  ;;  %2592 = vmatmul.mubr.f32.vlgmr.msra.gmra.mxu0 %v2457_v7  ;;  %2663 = vmatmul.mubr.f32.vlgmr.msra.gmra.mxu1 %v2457_v7  ;;  %v2717_v7 = vld [vmem:[#allocation8] sm:$0xff] }
 0x6b4   :  { %2845 = vmatprep.mubr.f32.mxu0 %v4971_v28  ;;  %2916 = vmatprep.mubr.f32.mxu1 %v4971_v28  ;;  %v2746_v28 = vld [vmem:[#allocation8 + $0xe8] sm:$0xff] }
 0x6b5   :  { %2782 = vmatpush1.msra.mxu0 %v2777_v58  ;;  %2853 = vmatpush1.msra.mxu1 %v2779_v4  ;;  %v4977_v58 = vld [vmem:[#allocation64_spill] sm:$0xff] }
 0x6b6   :  { %2783 = vmatprep.subr.mxu0 %v2774_v47  ;;  %2854 = vmatprep.subr.mxu1 %v2776_v49 }
 0x6b7   :  { %2784 = vmatpush1.msra.mxu0 %v2773_v63  ;;  %2855 = vmatpush1.msra.mxu1 %v2775_v59  ;;  %v4978_v63 = vld [vmem:[#allocation66_spill] sm:$0xff] }
 0x6b8   :  { %2785 = vmatprep.subr.mxu0 %v2770_v18  ;;  %2856 = vmatprep.subr.mxu1 %v2772_v61 }
 0x6b9   :  { %2786 = vmatpush1.msra.mxu0 %v2769_v56  ;;  %2857 = vmatpush1.msra.mxu1 %v2771_v12  ;;  %v4979_v12 = vld [vmem:[#allocation67_spill] sm:$0xff] }
 0x6ba   :  { %2787 = vmatprep.subr.mxu0 %v2766_v37  ;;  %2858 = vmatprep.subr.mxu1 %v2768_v6  ;;  %v4980_v6 = vld [vmem:[#allocation65_spill] sm:$0xff] }
 0x6bb   :  { %2788 = vmatpush1.msra.mxu0 %v2765_v31  ;;  %2859 = vmatpush1.msra.mxu1 %v2767_v60 }
 0x6bc   :  { %2789 = vmatprep.subr.mxu0 %v2762_v52  ;;  %2860 = vmatprep.subr.mxu1 %v2764_v39 }
 0x6bd   :  { %2790 = vmatpush1.msra.mxu0 %v2761_v53  ;;  %2861 = vmatpush1.msra.mxu1 %v2763_v0 }
 0x6be   :  { %2791 = vmatprep.subr.mxu0 %v2758_v20  ;;  %2862 = vmatprep.subr.mxu1 %v2760_v2 }
 0x6bf   :  { %2792 = vmatpush1.msra.mxu0 %v2757_v41  ;;  %2863 = vmatpush1.msra.mxu1 %v2759_v40 }
 0x6c0   :  { %2793 = vmatprep.subr.mxu0 %v2754_v62  ;;  %2864 = vmatprep.subr.mxu1 %v2756_v42 }
 0x6c1   :  { %2794 = vmatpush1.msra.mxu0 %v2753_v38  ;;  %2865 = vmatpush1.msra.mxu1 %v2755_v21 }
 0x6c2   :  { %2795 = vmatprep.subr.mxu0 %v2750_v22  ;;  %2866 = vmatprep.subr.mxu1 %v2752_v23 }
 0x6c3   :  { %2796 = vmatpush1.msra.mxu0 %v2749_v25  ;;  %2867 = vmatpush1.msra.mxu1 %v2751_v26 }
 0x6c4   :  { %2797 = vmatprep.subr.mxu0 %v2746_v28  ;;  %2868 = vmatprep.subr.mxu1 %v2748_v29  ;;  %v4981_v28 = vld [vmem:[#allocation60_spill] sm:$0xff] }
 0x6c5   :  { %2798 = vmatpush1.msra.mxu0 %v2745_v30  ;;  %2869 = vmatpush1.msra.mxu1 %v2747_v32 }
 0x6c6   :  { %2799 = vmatprep.subr.mxu0 %v2742_v33  ;;  %2870 = vmatprep.subr.mxu1 %v2744_v35  ;;  %v4982_v33 = vld [vmem:[#allocation62_spill] sm:$0xff] }
 0x6c7   :  { %2800 = vmatpush1.msra.mxu0 %v2741_v36  ;;  %2871 = vmatpush1.msra.mxu1 %v2743_v15 }
 0x6c8   :  { %2801 = vmatprep.subr.mxu0 %v2738_v9  ;;  %2872 = vmatprep.subr.mxu1 %v2740_v5  ;;  %v4983_v9 = vld [vmem:[#allocation63_spill] sm:$0xff] }
 0x6c9   :  { %2802 = vmatpush1.msra.mxu0 %v2737_v27  ;;  %2873 = vmatpush1.msra.mxu1 %v2739_v51  ;;  %v4984_v27 = vld [vmem:[#allocation61_spill] sm:$0xff] }
 0x6ca   :  { %2803 = vmatprep.subr.mxu0 %v2734_v57  ;;  %2874 = vmatprep.subr.mxu1 %v2736_v46 }
 0x6cb   :  { %2804 = vmatpush1.msra.mxu0 %v2733_v3  ;;  %2875 = vmatpush1.msra.mxu1 %v2735_v16 }
 0x6cc   :  { %2805 = vmatprep.subr.mxu0 %v2730_v54  ;;  %2876 = vmatprep.subr.mxu1 %v2732_v43 }
 0x6cd   :  { %2806 = vmatpush1.msra.mxu0 %v2729_v48  ;;  %2877 = vmatpush1.msra.mxu1 %v2731_v34 }
 0x6ce   :  { %2807 = vmatprep.subr.mxu0 %v2726_v8  ;;  %2878 = vmatprep.subr.mxu1 %v2728_v44 }
 0x6cf   :  { %2808 = vmatpush1.msra.mxu0 %v2725_v55  ;;  %2879 = vmatpush1.msra.mxu1 %v2727_v14 }
 0x6d0   :  { %2809 = vmatprep.subr.mxu0 %v2722_v19  ;;  %2880 = vmatprep.subr.mxu1 %v2724_v50 }
 0x6d1   :  { %2810 = vmatpush1.msra.mxu0 %v2721_v17  ;;  %2881 = vmatpush1.msra.mxu1 %v2723_v13 }
 0x6d2   :  { %2811 = vmatprep.subr.mxu0 %v2718_v24  ;;  %2882 = vmatprep.subr.mxu1 %v2720_v1 }
 0x6d3   :  { %2812 = vmatpush1.msra.mxu0 %v2717_v7  ;;  %2883 = vmatpush1.msra.mxu1 %v2719_v10 }
 0x773   :  { %v2593_v45 = vpop.f32.mrf.mxu0  ;;  %v2664_v18 = vpop.f32.mrf.mxu1 }
 0x774   :  { %v2683_v4 = vadd.f32 %v4977_v58, %v2593_v45  ;;  %v2685_v31 = vadd.f32 %v4980_v6, %v2664_v18 }
 0x775   :  { %v2595_v47 = vpop.f32.mrf.mxu0  ;;  %v2666_v56 = vpop.f32.mrf.mxu1 }
 0x776   :  { %v3004_v49 = vmul.f32 -1.442695, %v2683_v4  ;;  %v2684_v59 = vadd.f32 %v4978_v63, %v2595_v47  ;;  %v2686_v37 = vadd.f32 %v4979_v12, %v2666_v56 }
 0x778   :  { %3113 = vpow2.f32 %v3004_v49  ;;  %v3005_v61 = vmul.f32 -1.442695, %v2684_v59  ;;  %v3006_v60 = vmul.f32 -1.442695, %v2686_v37 }
 0x77a   :  { %3115 = vpow2.f32 %v3005_v61 }
 0x77b   :  { %3117 = vtanh.f32 %v2685_v31 }
 0x77c   :  { %3119 = vpow2.f32 %v3006_v60 }
 0x785   :  { %v3114_v52 = vpop.eup %3113 }
 0x786   :  { %v2691_v39 = vadd.f32 1.0, %v3114_v52 }
 0x787   :  { %v3116_v53 = vpop.eup %3115 }
 0x788   :  { %3121 = vrcp.f32 %v2691_v39  ;;  %v2697_v0 = vadd.f32 1.0, %v3116_v53  ;;  %v3118_v20 = vpop.eup %3117 }
 0x789   :  { %v3120_v2 = vpop.eup %3119 }
 0x78a   :  { %3123 = vrcp.f32 %v2697_v0  ;;  %v2704_v42 = vadd.f32 1.0, %v3120_v2 }
 0x78c   :  { %3125 = vrcp.f32 %v2704_v42 }
 0x795   :  { %v3122_v41 = vpop.eup %3121 }
 0x796   :  { %v2708_v40 = vmul.f32 %v3122_v41, %v3118_v20 }
 0x797   :  { %v3124_v62 = vpop.eup %3123 }
 0x798   :  { %v2707_v38 = vmul.f32 %v3124_v62, %v4646_v11 }
 0x799   :  { %v3126_v22 = vpop.eup %3125 }
 0x79a   :  { %v2709_v21 = vadd.f32 %v2708_v40, %v2707_v38 }
 0x79c   :  { %3127 = vtanh.f32 %v2709_v21 }
 0x7a9   :  { %v3128_v23 = vpop.eup %3127 }
 0x7aa   :  { %v2711_v25 = vmul.f32 %v3128_v23, %v3126_v22 }
 0x7ac   :  { %3007 = vst [vmem:[%s4675_s6 + $0x30] sm:$0xff] %v2711_v25  ;;  %2846 = vmatmul.mubr.f32.vlgmr.msra.gmra.mxu0 %v2711_v25  ;;  %2917 = vmatmul.mubr.f32.vlgmr.msra.gmra.mxu1 %v2711_v25 }
 0x86c   :  { %v2847_v26 = vpop.f32.mrf.mxu0  ;;  %v2918_v11 = vpop.f32.mrf.mxu1 }
 0x86d   :  { %v2936_v29 = vadd.f32 %v4981_v28, %v2847_v26  ;;  %v2938_v51 = vadd.f32 %v4984_v27, %v2918_v11 }
 0x86e   :  { %v2849_v30 = vpop.f32.mrf.mxu0  ;;  %v2920_v15 = vpop.f32.mrf.mxu1 }
 0x86f   :  { %v3008_v32 = vmul.f32 -1.442695, %v2936_v29  ;;  %v2937_v35 = vadd.f32 %v4982_v33, %v2849_v30  ;;  %v2939_v5 = vadd.f32 %v4983_v9, %v2920_v15 }
 0x871   :  { %3129 = vpow2.f32 %v3008_v32  ;;  %v3009_v36 = vmul.f32 -1.442695, %v2937_v35  ;;  %v3010_v57 = vmul.f32 -1.442695, %v2939_v5 }
 0x873   :  { %3131 = vpow2.f32 %v3009_v36 }
 0x874   :  { %3133 = vtanh.f32 %v2938_v51 }
 0x875   :  { %3135 = vpow2.f32 %v3010_v57 }
 0x87e   :  { %v3130_v46 = vpop.eup %3129 }
 0x87f   :  { %v2944_v3 = vadd.f32 1.0, %v3130_v46 }
 0x880   :  { %v3132_v16 = vpop.eup %3131 }
 0x881   :  { %3137 = vrcp.f32 %v2944_v3  ;;  %v2950_v54 = vadd.f32 1.0, %v3132_v16  ;;  %v3134_v43 = vpop.eup %3133 }
 0x882   :  { %v3136_v48 = vpop.eup %3135 }
 0x883   :  { %3139 = vrcp.f32 %v2950_v54  ;;  %v2957_v55 = vadd.f32 1.0, %v3136_v48 }
 0x885   :  { %3141 = vrcp.f32 %v2957_v55 }
 0x88e   :  { %v3138_v34 = vpop.eup %3137 }
 0x88f   :  { %v2961_v8 = vmul.f32 %v3138_v34, %v3134_v43 }
 0x890   :  { %v3140_v44 = vpop.eup %3139 }
 0x891   :  { %v2960_v14 = vmul.f32 %v3140_v44, %v2709_v21 }
 0x892   :  { %v3142_v50 = vpop.eup %3141 }
 0x893   :  { %v2962_v19 = vadd.f32 %v2961_v8, %v2960_v14 }
 0x895   :  { %3143 = vtanh.f32 %v2962_v19 }
 0x8a2   :  { %v3144_v17 = vpop.eup %3143 }
 0x8a3   :  { %v2964_v13 = vmul.f32 %v3144_v17, %v3142_v50 }
 0x8a5   :  { %3011 = vst [vmem:[%s4675_s6 + $0x38] sm:$0xff] %v2964_v13 }
 0x8a6   :  { %2973 = vsyncpa [#allocation7], 1 }
 0x8a7   :  { %2974 = vsyncpa [#allocation9], 1 }

// kernel: imdb_forward_pallas.3
= control target key start
LH: loop header
LB: loop body
LE: loop exit
PB: predicated region body
PF: predicated region fallthrough
CT: control target
= control target key end

     0   :  { %v5387_v3 = vmov 0.0   ;;  %vm3246_vm0 = vmmov 0   ;;  %vm2904_vm1 = vcmask 523264   ;;  %s5376_s2 = inlined_call_operand.vmem [shape: f32[128,512], index: 2, kind: input, shape index: {}]   ;;  %s5377_s0 = inlined_call_operand.vmem [shape: f32[8,8,128], index: 0, kind: input, shape index: {}, may-alias: {0,1}]   ;;  %s5378_s3 = inlined_call_operand.vmem [shape: f32[128,512], index: 3, kind: input, shape index: {}]   ;;  %s5379_s1 = inlined_call_operand.vmem [shape: f32[8,8,128], index: 1, kind: input, shape index: {}, may-alias: {0,1}]   ;;  %s5380_s4 = inlined_call_operand.vmem [shape: f32[128,512], index: 4, kind: input, shape index: {}]   ;;  %s5381_s5 = inlined_call_operand.vmem [shape: f32[1,512], index: 5, kind: input, shape index: {}]   ;;  %s5382_s6 = inlined_call_operand.vmem [shape: f32[128,64], index: 6, kind: input, shape index: {}]   ;;  %s5383_s8 = inlined_call_operand.vmem [shape: f32[64,128], index: 8, kind: input, shape index: {}]   ;;  %s5384_s7 = inlined_call_operand.vmem [shape: f32[1,64], index: 7, kind: input, shape index: {}]   ;;  %s5385_s9 = inlined_call_operand.vmem [shape: f32[1,128], index: 9, kind: input, shape index: {}]   ;;  %s5386_s10 = inlined_call_operand.vmem [shape: f32[8,128], index: 10, kind: output, shape index: {}]  }
   0x1   :  { %v132_v0 = vld [vmem:[%s5376_s2 + $0x1e8] sm:$0xff]  ;;  %v134_v1 = vld [vmem:[%s5376_s2 + $0x1f8] sm:$0xff]  ;;  %v131_v2 = vld [vmem:[%s5376_s2 + $0x1e0] sm:$0xff]  ;;  %199 = vmatprep.mubr.f32.mxu0 %v5387_v3  ;;  %312 = vmatprep.mubr.f32.mxu1 %v5387_v3 }
   0x2   :  { %135 = vmatprep.subr.mxu0 %v132_v0  ;;  %248 = vmatprep.subr.mxu1 %v134_v1  ;;  %v133_v4 = vld [vmem:[%s5376_s2 + $0x1f0] sm:$0xff]  ;;  %v128_v5 = vld [vmem:[%s5376_s2 + $0x1c8] sm:$0xff]  ;;  %v130_v6 = vld [vmem:[%s5376_s2 + $0x1d8] sm:$0xff] }
   0x3   :  { %136 = vmatpush1.msra.mxu0 %v131_v2  ;;  %249 = vmatpush1.msra.mxu1 %v133_v4  ;;  %v127_v7 = vld [vmem:[%s5376_s2 + $0x1c0] sm:$0xff]  ;;  %v129_v8 = vld [vmem:[%s5376_s2 + $0x1d0] sm:$0xff]  ;;  %v124_v9 = vld [vmem:[%s5376_s2 + $0x1a8] sm:$0xff] }
   0x4   :  { %137 = vmatprep.subr.mxu0 %v128_v5  ;;  %250 = vmatprep.subr.mxu1 %v130_v6  ;;  %v126_v10 = vld [vmem:[%s5376_s2 + $0x1b8] sm:$0xff]  ;;  %v123_v11 = vld [vmem:[%s5376_s2 + $0x1a0] sm:$0xff]  ;;  %v125_v12 = vld [vmem:[%s5376_s2 + $0x1b0] sm:$0xff] }
   0x5   :  { %138 = vmatpush1.msra.mxu0 %v127_v7  ;;  %251 = vmatpush1.msra.mxu1 %v129_v8  ;;  %v120_v13 = vld [vmem:[%s5376_s2 + $0x188] sm:$0xff]  ;;  %v122_v14 = vld [vmem:[%s5376_s2 + $0x198] sm:$0xff]  ;;  %v119_v15 = vld [vmem:[%s5376_s2 + $0x180] sm:$0xff] }
   0x6   :  { %139 = vmatprep.subr.mxu0 %v124_v9  ;;  %252 = vmatprep.subr.mxu1 %v126_v10  ;;  %v121_v16 = vld [vmem:[%s5376_s2 + $0x190] sm:$0xff]  ;;  %v116_v17 = vld [vmem:[%s5376_s2 + $0x168] sm:$0xff]  ;;  %v118_v18 = vld [vmem:[%s5376_s2 + $0x178] sm:$0xff] }
   0x7   :  { %140 = vmatpush1.msra.mxu0 %v123_v11  ;;  %253 = vmatpush1.msra.mxu1 %v125_v12  ;;  %v115_v19 = vld [vmem:[%s5376_s2 + $0x160] sm:$0xff]  ;;  %v117_v20 = vld [vmem:[%s5376_s2 + $0x170] sm:$0xff]  ;;  %v112_v21 = vld [vmem:[%s5376_s2 + $0x148] sm:$0xff] }
   0x8   :  { %141 = vmatprep.subr.mxu0 %v120_v13  ;;  %254 = vmatprep.subr.mxu1 %v122_v14  ;;  %v114_v22 = vld [vmem:[%s5376_s2 + $0x158] sm:$0xff]  ;;  %v111_v23 = vld [vmem:[%s5376_s2 + $0x140] sm:$0xff]  ;;  %v113_v24 = vld [vmem:[%s5376_s2 + $0x150] sm:$0xff] }
   0x9   :  { %142 = vmatpush1.msra.mxu0 %v119_v15  ;;  %255 = vmatpush1.msra.mxu1 %v121_v16  ;;  %v108_v25 = vld [vmem:[%s5376_s2 + $0x128] sm:$0xff]  ;;  %v110_v26 = vld [vmem:[%s5376_s2 + $0x138] sm:$0xff]  ;;  %v107_v27 = vld [vmem:[%s5376_s2 + $0x120] sm:$0xff] }
   0xa   :  { %143 = vmatprep.subr.mxu0 %v116_v17  ;;  %256 = vmatprep.subr.mxu1 %v118_v18  ;;  %v109_v28 = vld [vmem:[%s5376_s2 + $0x130] sm:$0xff]  ;;  %v104_v29 = vld [vmem:[%s5376_s2 + $0x108] sm:$0xff]  ;;  %v106_v30 = vld [vmem:[%s5376_s2 + $0x118] sm:$0xff] }
   0xb   :  { %144 = vmatpush1.msra.mxu0 %v115_v19  ;;  %257 = vmatpush1.msra.mxu1 %v117_v20  ;;  %v103_v31 = vld [vmem:[%s5376_s2 + $0x100] sm:$0xff]  ;;  %v105_v32 = vld [vmem:[%s5376_s2 + $0x110] sm:$0xff]  ;;  %v100_v33 = vld [vmem:[%s5376_s2 + $0xe8] sm:$0xff] }
   0xc   :  { %145 = vmatprep.subr.mxu0 %v112_v21  ;;  %258 = vmatprep.subr.mxu1 %v114_v22  ;;  %v102_v34 = vld [vmem:[%s5376_s2 + $0xf8] sm:$0xff]  ;;  %v99_v35 = vld [vmem:[%s5376_s2 + $0xe0] sm:$0xff]  ;;  %v101_v36 = vld [vmem:[%s5376_s2 + $0xf0] sm:$0xff] }
   0xd   :  { %146 = vmatpush1.msra.mxu0 %v111_v23  ;;  %259 = vmatpush1.msra.mxu1 %v113_v24  ;;  %v96_v37 = vld [vmem:[%s5376_s2 + $0xc8] sm:$0xff]  ;;  %v98_v38 = vld [vmem:[%s5376_s2 + $0xd8] sm:$0xff]  ;;  %v95_v39 = vld [vmem:[%s5376_s2 + $0xc0] sm:$0xff] }
   0xe   :  { %147 = vmatprep.subr.mxu0 %v108_v25  ;;  %260 = vmatprep.subr.mxu1 %v110_v26  ;;  %v97_v40 = vld [vmem:[%s5376_s2 + $0xd0] sm:$0xff]  ;;  %v92_v41 = vld [vmem:[%s5376_s2 + $0xa8] sm:$0xff]  ;;  %v94_v42 = vld [vmem:[%s5376_s2 + $0xb8] sm:$0xff] }
   0xf   :  { %148 = vmatpush1.msra.mxu0 %v107_v27  ;;  %261 = vmatpush1.msra.mxu1 %v109_v28  ;;  %v91_v43 = vld [vmem:[%s5376_s2 + $0xa0] sm:$0xff]  ;;  %v93_v44 = vld [vmem:[%s5376_s2 + $0xb0] sm:$0xff]  ;;  %v88_v45 = vld [vmem:[%s5376_s2 + $0x88] sm:$0xff] }
  0x10   :  { %149 = vmatprep.subr.mxu0 %v104_v29  ;;  %262 = vmatprep.subr.mxu1 %v106_v30  ;;  %v90_v46 = vld [vmem:[%s5376_s2 + $0x98] sm:$0xff]  ;;  %v87_v47 = vld [vmem:[%s5376_s2 + $0x80] sm:$0xff]  ;;  %v89_v48 = vld [vmem:[%s5376_s2 + $0x90] sm:$0xff] }
  0x11   :  { %150 = vmatpush1.msra.mxu0 %v103_v31  ;;  %263 = vmatpush1.msra.mxu1 %v105_v32  ;;  %v84_v49 = vld [vmem:[%s5376_s2 + $0x68] sm:$0xff]  ;;  %v86_v50 = vld [vmem:[%s5376_s2 + $0x78] sm:$0xff]  ;;  %v83_v51 = vld [vmem:[%s5376_s2 + $0x60] sm:$0xff] }
  0x12   :  { %151 = vmatprep.subr.mxu0 %v100_v33  ;;  %264 = vmatprep.subr.mxu1 %v102_v34  ;;  %v85_v52 = vld [vmem:[%s5376_s2 + $0x70] sm:$0xff]  ;;  %v80_v53 = vld [vmem:[%s5376_s2 + $0x48] sm:$0xff]  ;;  %v82_v54 = vld [vmem:[%s5376_s2 + $0x58] sm:$0xff] }
  0x13   :  { %152 = vmatpush1.msra.mxu0 %v99_v35  ;;  %265 = vmatpush1.msra.mxu1 %v101_v36  ;;  %v79_v55 = vld [vmem:[%s5376_s2 + $0x40] sm:$0xff]  ;;  %v81_v56 = vld [vmem:[%s5376_s2 + $0x50] sm:$0xff]  ;;  %v76_v57 = vld [vmem:[%s5376_s2 + $0x28] sm:$0xff] }
  0x14   :  { %153 = vmatprep.subr.mxu0 %v96_v37  ;;  %266 = vmatprep.subr.mxu1 %v98_v38  ;;  %v78_v58 = vld [vmem:[%s5376_s2 + $0x38] sm:$0xff]  ;;  %v75_v59 = vld [vmem:[%s5376_s2 + $0x20] sm:$0xff]  ;;  %v77_v60 = vld [vmem:[%s5376_s2 + $0x30] sm:$0xff] }
  0x15   :  { %154 = vmatpush1.msra.mxu0 %v95_v39  ;;  %267 = vmatpush1.msra.mxu1 %v97_v40  ;;  %v72_v61 = vld [vmem:[%s5376_s2 + $0x8] sm:$0xff]  ;;  %v74_v62 = vld [vmem:[%s5376_s2 + $0x18] sm:$0xff]  ;;  %v71_v63 = vld [vmem:[%s5376_s2] sm:$0xff] }
  0x16   :  { %155 = vmatprep.subr.mxu0 %v92_v41  ;;  %268 = vmatprep.subr.mxu1 %v94_v42  ;;  %v73_v0 = vld [vmem:[%s5376_s2 + $0x10] sm:$0xff]  ;;  %v63_v1 = vld [vmem:[%s5377_s0] sm:$0xff]  ;;  %v516_v2 = vld [vmem:[%s5378_s3 + $0x1e8] sm:$0xff] }
  0x17   :  { %156 = vmatpush1.msra.mxu0 %v91_v43  ;;  %269 = vmatpush1.msra.mxu1 %v93_v44  ;;  %v518_v4 = vld [vmem:[%s5378_s3 + $0x1f8] sm:$0xff]  ;;  %v515_v5 = vld [vmem:[%s5378_s3 + $0x1e0] sm:$0xff]  ;;  %v517_v6 = vld [vmem:[%s5378_s3 + $0x1f0] sm:$0xff] }
  0x18   :  { %157 = vmatprep.subr.mxu0 %v88_v45  ;;  %270 = vmatprep.subr.mxu1 %v90_v46  ;;  %v512_v7 = vld [vmem:[%s5378_s3 + $0x1c8] sm:$0xff]  ;;  %v514_v8 = vld [vmem:[%s5378_s3 + $0x1d8] sm:$0xff]  ;;  %v511_v9 = vld [vmem:[%s5378_s3 + $0x1c0] sm:$0xff] }
  0x19   :  { %158 = vmatpush1.msra.mxu0 %v87_v47  ;;  %271 = vmatpush1.msra.mxu1 %v89_v48  ;;  %v513_v10 = vld [vmem:[%s5378_s3 + $0x1d0] sm:$0xff]  ;;  %v64_v11 = vld [vmem:[%s5377_s0 + $0x8] sm:$0xff]  ;;  %v510_v13 = vld [vmem:[%s5378_s3 + $0x1b8] sm:$0xff] }
  0x1a   :  { %159 = vmatprep.subr.mxu0 %v84_v49  ;;  %272 = vmatprep.subr.mxu1 %v86_v50  ;;  %v508_v12 = vld [vmem:[%s5378_s3 + $0x1a8] sm:$0xff]  ;;  %v507_v14 = vld [vmem:[%s5378_s3 + $0x1a0] sm:$0xff]  ;;  %v509_v15 = vld [vmem:[%s5378_s3 + $0x1b0] sm:$0xff] }
  0x1b   :  { %160 = vmatpush1.msra.mxu0 %v83_v51  ;;  %273 = vmatpush1.msra.mxu1 %v85_v52  ;;  %v504_v16 = vld [vmem:[%s5378_s3 + $0x188] sm:$0xff]  ;;  %v506_v17 = vld [vmem:[%s5378_s3 + $0x198] sm:$0xff]  ;;  %v503_v18 = vld [vmem:[%s5378_s3 + $0x180] sm:$0xff] }
  0x1c   :  { %161 = vmatprep.subr.mxu0 %v80_v53  ;;  %274 = vmatprep.subr.mxu1 %v82_v54  ;;  %v505_v19 = vld [vmem:[%s5378_s3 + $0x190] sm:$0xff]  ;;  %v500_v21 = vld [vmem:[%s5378_s3 + $0x168] sm:$0xff]  ;;  %v502_v22 = vld [vmem:[%s5378_s3 + $0x178] sm:$0xff] }
  0x1d   :  { %162 = vmatpush1.msra.mxu0 %v79_v55  ;;  %275 = vmatpush1.msra.mxu1 %v81_v56  ;;  %v65_v20 = vld [vmem:[%s5377_s0 + $0x10] sm:$0xff]  ;;  %v499_v23 = vld [vmem:[%s5378_s3 + $0x160] sm:$0xff]  ;;  %v496_v25 = vld [vmem:[%s5378_s3 + $0x148] sm:$0xff] }
  0x1e   :  { %163 = vmatprep.subr.mxu0 %v76_v57  ;;  %276 = vmatprep.subr.mxu1 %v78_v58  ;;  %v501_v24 = vld [vmem:[%s5378_s3 + $0x170] sm:$0xff]  ;;  %v498_v26 = vld [vmem:[%s5378_s3 + $0x158] sm:$0xff]  ;;  %v495_v27 = vld [vmem:[%s5378_s3 + $0x140] sm:$0xff] }
  0x1f   :  { %164 = vmatpush1.msra.mxu0 %v75_v59  ;;  %277 = vmatpush1.msra.mxu1 %v77_v60  ;;  %v497_v28 = vld [vmem:[%s5378_s3 + $0x150] sm:$0xff]  ;;  %v66_v29 = vld [vmem:[%s5377_s0 + $0x18] sm:$0xff]  ;;  %v492_v30 = vld [vmem:[%s5378_s3 + $0x128] sm:$0xff] }
  0x20   :  { %165 = vmatprep.subr.mxu0 %v72_v61  ;;  %278 = vmatprep.subr.mxu1 %v74_v62  ;;  %v494_v31 = vld [vmem:[%s5378_s3 + $0x138] sm:$0xff]  ;;  %v491_v32 = vld [vmem:[%s5378_s3 + $0x120] sm:$0xff]  ;;  %v493_v33 = vld [vmem:[%s5378_s3 + $0x130] sm:$0xff] }
  0x21   :  { %166 = vmatpush1.msra.mxu0 %v71_v63  ;;  %279 = vmatpush1.msra.mxu1 %v73_v0  ;;  %v488_v34 = vld [vmem:[%s5378_s3 + $0x108] sm:$0xff]  ;;  %v490_v35 = vld [vmem:[%s5378_s3 + $0x118] sm:$0xff]  ;;  %v487_v36 = vld [vmem:[%s5378_s3 + $0x100] sm:$0xff] }
  0x22   :  { %200 = vmatmul.mubr.f32.vlgmr.msra.gmra.mxu0 %v63_v1  ;;  %313 = vmatmul.mubr.f32.vlgmr.msra.gmra.mxu1 %v63_v1  ;;  %v489_v37 = vld [vmem:[%s5378_s3 + $0x110] sm:$0xff]  ;;  %v67_v38 = vld [vmem:[%s5377_s0 + $0x20] sm:$0xff]  ;;  %v484_v39 = vld [vmem:[%s5378_s3 + $0xe8] sm:$0xff] }
  0x23   :  { %519 = vmatprep.subr.mxu0 %v516_v2  ;;  %632 = vmatprep.subr.mxu1 %v518_v4  ;;  %v486_v40 = vld [vmem:[%s5378_s3 + $0xf8] sm:$0xff]  ;;  %v483_v41 = vld [vmem:[%s5378_s3 + $0xe0] sm:$0xff]  ;;  %v485_v42 = vld [vmem:[%s5378_s3 + $0xf0] sm:$0xff] }
  0x24   :  { %520 = vmatpush1.msra.mxu0 %v515_v5  ;;  %633 = vmatpush1.msra.mxu1 %v517_v6  ;;  %v480_v43 = vld [vmem:[%s5378_s3 + $0xc8] sm:$0xff]  ;;  %v482_v44 = vld [vmem:[%s5378_s3 + $0xd8] sm:$0xff]  ;;  %v479_v45 = vld [vmem:[%s5378_s3 + $0xc0] sm:$0xff] }
  0x25   :  { %521 = vmatprep.subr.mxu0 %v512_v7  ;;  %634 = vmatprep.subr.mxu1 %v514_v8  ;;  %v481_v46 = vld [vmem:[%s5378_s3 + $0xd0] sm:$0xff]  ;;  %v68_v47 = vld [vmem:[%s5377_s0 + $0x28] sm:$0xff]  ;;  %v478_v49 = vld [vmem:[%s5378_s3 + $0xb8] sm:$0xff] }
  0x26   :  { %205 = vmatprep.mubr.f32.mxu0 %v5387_v3  ;;  %318 = vmatprep.mubr.f32.mxu1 %v5387_v3  ;;  %v476_v48 = vld [vmem:[%s5378_s3 + $0xa8] sm:$0xff]  ;;  %v475_v50 = vld [vmem:[%s5378_s3 + $0xa0] sm:$0xff]  ;;  %v477_v51 = vld [vmem:[%s5378_s3 + $0xb0] sm:$0xff] }
  0x27   :  { %522 = vmatpush1.msra.mxu0 %v511_v9  ;;  %635 = vmatpush1.msra.mxu1 %v513_v10  ;;  %v472_v52 = vld [vmem:[%s5378_s3 + $0x88] sm:$0xff]  ;;  %v474_v53 = vld [vmem:[%s5378_s3 + $0x98] sm:$0xff]  ;;  %v471_v54 = vld [vmem:[%s5378_s3 + $0x80] sm:$0xff] }
  0x28   :  { %206 = vmatmul.mubr.f32.gmra.mxu0 %v64_v11  ;;  %319 = vmatmul.mubr.f32.gmra.mxu1 %v64_v11  ;;  %v473_v55 = vld [vmem:[%s5378_s3 + $0x90] sm:$0xff]  ;;  %v468_v57 = vld [vmem:[%s5378_s3 + $0x68] sm:$0xff]  ;;  %v470_v58 = vld [vmem:[%s5378_s3 + $0x78] sm:$0xff] }
  0x29   :  { %523 = vmatprep.subr.mxu0 %v508_v12  ;;  %636 = vmatprep.subr.mxu1 %v510_v13  ;;  %v69_v56 = vld [vmem:[%s5377_s0 + $0x30] sm:$0xff]  ;;  %v467_v59 = vld [vmem:[%s5378_s3 + $0x60] sm:$0xff]  ;;  %v464_v61 = vld [vmem:[%s5378_s3 + $0x48] sm:$0xff] }
  0x2a   :  { %524 = vmatpush1.msra.mxu0 %v507_v14  ;;  %637 = vmatpush1.msra.mxu1 %v509_v15  ;;  %v469_v60 = vld [vmem:[%s5378_s3 + $0x70] sm:$0xff]  ;;  %v466_v62 = vld [vmem:[%s5378_s3 + $0x58] sm:$0xff]  ;;  %v463_v63 = vld [vmem:[%s5378_s3 + $0x40] sm:$0xff] }
  0x2b   :  { %525 = vmatprep.subr.mxu0 %v504_v16  ;;  %638 = vmatprep.subr.mxu1 %v506_v17  ;;  %v465_v0 = vld [vmem:[%s5378_s3 + $0x50] sm:$0xff]  ;;  %v70_v1 = vld [vmem:[%s5377_s0 + $0x38] sm:$0xff]  ;;  %v460_v2 = vld [vmem:[%s5378_s3 + $0x28] sm:$0xff] }
  0x2c   :  { %211 = vmatprep.mubr.f32.mxu0 %v5387_v3  ;;  %324 = vmatprep.mubr.f32.mxu1 %v5387_v3  ;;  %v462_v4 = vld [vmem:[%s5378_s3 + $0x38] sm:$0xff]  ;;  %v459_v5 = vld [vmem:[%s5378_s3 + $0x20] sm:$0xff]  ;;  %v461_v6 = vld [vmem:[%s5378_s3 + $0x30] sm:$0xff] }
  0x2d   :  { %526 = vmatpush1.msra.mxu0 %v503_v18  ;;  %639 = vmatpush1.msra.mxu1 %v505_v19  ;;  %v456_v7 = vld [vmem:[%s5378_s3 + $0x8] sm:$0xff]  ;;  %v458_v8 = vld [vmem:[%s5378_s3 + $0x18] sm:$0xff]  ;;  %v455_v9 = vld [vmem:[%s5378_s3] sm:$0xff] }
  0x2e   :  { %212 = vmatmul.mubr.f32.gmra.mxu0 %v65_v20  ;;  %325 = vmatmul.mubr.f32.gmra.mxu1 %v65_v20  ;;  %v457_v10 = vld [vmem:[%s5378_s3 + $0x10] sm:$0xff]  ;;  %v447_v11 = vld [vmem:[%s5379_s1] sm:$0xff]  ;;  %v3733_v12 = vld [vmem:[%s5380_s4 + $0x1e8] sm:$0xff] }
  0x2f   :  { %527 = vmatprep.subr.mxu0 %v500_v21  ;;  %640 = vmatprep.subr.mxu1 %v502_v22  ;;  %v3738_v13 = vld [vmem:[%s5380_s4 + $0x1f8] sm:$0xff]  ;;  %v3744_v14 = vld [vmem:[%s5380_s4 + $0x1e0] sm:$0xff]  ;;  %v3749_v15 = vld [vmem:[%s5380_s4 + $0x1f0] sm:$0xff] }
  0x30   :  { %528 = vmatpush1.msra.mxu0 %v499_v23  ;;  %641 = vmatpush1.msra.mxu1 %v501_v24  ;;  %v3754_v16 = vld [vmem:[%s5380_s4 + $0x1c8] sm:$0xff]  ;;  %v3759_v17 = vld [vmem:[%s5380_s4 + $0x1d8] sm:$0xff]  ;;  %v3768_v18 = vld [vmem:[%s5380_s4 + $0x1c0] sm:$0xff] }
  0x31   :  { %529 = vmatprep.subr.mxu0 %v496_v25  ;;  %642 = vmatprep.subr.mxu1 %v498_v26  ;;  %v3773_v19 = vld [vmem:[%s5380_s4 + $0x1d0] sm:$0xff]  ;;  %v448_v20 = vld [vmem:[%s5379_s1 + $0x8] sm:$0xff]  ;;  %v3790_v22 = vld [vmem:[%s5380_s4 + $0x1b8] sm:$0xff] }
  0x32   :  { %217 = vmatprep.mubr.f32.mxu0 %v5387_v3  ;;  %330 = vmatprep.mubr.f32.mxu1 %v5387_v3  ;;  %v3785_v21 = vld [vmem:[%s5380_s4 + $0x1a8] sm:$0xff]  ;;  %v3797_v23 = vld [vmem:[%s5380_s4 + $0x1a0] sm:$0xff]  ;;  %v3802_v24 = vld [vmem:[%s5380_s4 + $0x1b0] sm:$0xff] }
  0x33   :  { %530 = vmatpush1.msra.mxu0 %v495_v27  ;;  %643 = vmatpush1.msra.mxu1 %v497_v28  ;;  %v3807_v25 = vld [vmem:[%s5380_s4 + $0x188] sm:$0xff]  ;;  %v3812_v26 = vld [vmem:[%s5380_s4 + $0x198] sm:$0xff]  ;;  %v3821_v27 = vld [vmem:[%s5380_s4 + $0x180] sm:$0xff] }
  0x34   :  { %218 = vmatmul.mubr.f32.gmra.mxu0 %v66_v29  ;;  %331 = vmatmul.mubr.f32.gmra.mxu1 %v66_v29  ;;  %v3826_v28 = vld [vmem:[%s5380_s4 + $0x190] sm:$0xff] }
  0x35   :  { %531 = vmatprep.subr.mxu0 %v492_v30  ;;  %644 = vmatprep.subr.mxu1 %v494_v31  ;;  %5482 = vst [vmem:[#allocation6_spill] sm:$0xff] %v3826_v28  ;;  %v449_v29 = vld [vmem:[%s5379_s1 + $0x10] sm:$0xff]  ;;  %v3838_v30 = vld [vmem:[%s5380_s4 + $0x168] sm:$0xff]  ;;  %v3843_v31 = vld [vmem:[%s5380_s4 + $0x178] sm:$0xff] }
  0x36   :  { %532 = vmatpush1.msra.mxu0 %v491_v32  ;;  %645 = vmatpush1.msra.mxu1 %v493_v33  ;;  %5483 = vst [vmem:[#allocation7_spill] sm:$0xff] %v3838_v30  ;;  %5484 = vst [vmem:[#allocation8_spill] sm:$0xff] %v3843_v31  ;;  %v3850_v32 = vld [vmem:[%s5380_s4 + $0x160] sm:$0xff]  ;;  %v3855_v33 = vld [vmem:[%s5380_s4 + $0x170] sm:$0xff] }
  0x37   :  { %533 = vmatprep.subr.mxu0 %v488_v34  ;;  %646 = vmatprep.subr.mxu1 %v490_v35  ;;  %5485 = vst [vmem:[#allocation9_spill] sm:$0xff] %v3850_v32  ;;  %5486 = vst [vmem:[#allocation10_spill] sm:$0xff] %v3855_v33  ;;  %v3860_v34 = vld [vmem:[%s5380_s4 + $0x148] sm:$0xff]  ;;  %v3865_v35 = vld [vmem:[%s5380_s4 + $0x158] sm:$0xff] }
  0x38   :  { %223 = vmatprep.mubr.f32.mxu0 %v5387_v3  ;;  %336 = vmatprep.mubr.f32.mxu1 %v5387_v3  ;;  %5487 = vst [vmem:[#allocation11_spill] sm:$0xff] %v3860_v34  ;;  %5488 = vst [vmem:[#allocation12_spill] sm:$0xff] %v3865_v35 }
  0x39   :  { %534 = vmatpush1.msra.mxu0 %v487_v36  ;;  %647 = vmatpush1.msra.mxu1 %v489_v37  ;;  %v3874_v36 = vld [vmem:[%s5380_s4 + $0x140] sm:$0xff]  ;;  %v3879_v37 = vld [vmem:[%s5380_s4 + $0x150] sm:$0xff] }
  0x3a   :  { %224 = vmatmul.mubr.f32.gmra.mxu0 %v67_v38  ;;  %337 = vmatmul.mubr.f32.gmra.mxu1 %v67_v38  ;;  %5489 = vst [vmem:[#allocation13_spill] sm:$0xff] %v3874_v36  ;;  %5490 = vst [vmem:[#allocation14_spill] sm:$0xff] %v3879_v37  ;;  %v450_v38 = vld [vmem:[%s5379_s1 + $0x18] sm:$0xff] }
  0x3b   :  { %535 = vmatprep.subr.mxu0 %v484_v39  ;;  %648 = vmatprep.subr.mxu1 %v486_v40  ;;  %v3891_v39 = vld [vmem:[%s5380_s4 + $0x128] sm:$0xff]  ;;  %v3896_v40 = vld [vmem:[%s5380_s4 + $0x138] sm:$0xff] }
  0x3c   :  { %536 = vmatpush1.msra.mxu0 %v483_v41  ;;  %649 = vmatpush1.msra.mxu1 %v485_v42  ;;  %5491 = vst [vmem:[#allocation15_spill] sm:$0xff] %v3891_v39  ;;  %5492 = vst [vmem:[#allocation16_spill] sm:$0xff] %v3896_v40  ;;  %v3903_v41 = vld [vmem:[%s5380_s4 + $0x120] sm:$0xff]  ;;  %v3908_v42 = vld [vmem:[%s5380_s4 + $0x130] sm:$0xff] }
  0x3d   :  { %537 = vmatprep.subr.mxu0 %v480_v43  ;;  %650 = vmatprep.subr.mxu1 %v482_v44  ;;  %5493 = vst [vmem:[#allocation17_spill] sm:$0xff] %v3903_v41  ;;  %5494 = vst [vmem:[#allocation18_spill] sm:$0xff] %v3908_v42  ;;  %v3913_v43 = vld [vmem:[%s5380_s4 + $0x108] sm:$0xff]  ;;  %v3918_v44 = vld [vmem:[%s5380_s4 + $0x118] sm:$0xff] }
  0x3e   :  { %229 = vmatprep.mubr.f32.mxu0 %v5387_v3  ;;  %342 = vmatprep.mubr.f32.mxu1 %v5387_v3  ;;  %5495 = vst [vmem:[#allocation19_spill] sm:$0xff] %v3913_v43  ;;  %5496 = vst [vmem:[#allocation20_spill] sm:$0xff] %v3918_v44 }
  0x3f   :  { %538 = vmatpush1.msra.mxu0 %v479_v45  ;;  %651 = vmatpush1.msra.mxu1 %v481_v46  ;;  %v3927_v45 = vld [vmem:[%s5380_s4 + $0x100] sm:$0xff]  ;;  %v3932_v46 = vld [vmem:[%s5380_s4 + $0x110] sm:$0xff] }
  0x40   :  { %230 = vmatmul.mubr.f32.gmra.mxu0 %v68_v47  ;;  %343 = vmatmul.mubr.f32.gmra.mxu1 %v68_v47  ;;  %5497 = vst [vmem:[#allocation21_spill] sm:$0xff] %v3927_v45  ;;  %5498 = vst [vmem:[#allocation22_spill] sm:$0xff] %v3932_v46  ;;  %v451_v47 = vld [vmem:[%s5379_s1 + $0x20] sm:$0xff] }
  0x41   :  { %539 = vmatprep.subr.mxu0 %v476_v48  ;;  %652 = vmatprep.subr.mxu1 %v478_v49  ;;  %v3944_v48 = vld [vmem:[%s5380_s4 + $0xe8] sm:$0xff]  ;;  %v3949_v49 = vld [vmem:[%s5380_s4 + $0xf8] sm:$0xff] }
  0x42   :  { %540 = vmatpush1.msra.mxu0 %v475_v50  ;;  %653 = vmatpush1.msra.mxu1 %v477_v51  ;;  %5499 = vst [vmem:[#allocation23_spill] sm:$0xff] %v3944_v48  ;;  %5500 = vst [vmem:[#allocation24_spill] sm:$0xff] %v3949_v49  ;;  %v3956_v50 = vld [vmem:[%s5380_s4 + $0xe0] sm:$0xff]  ;;  %v3961_v51 = vld [vmem:[%s5380_s4 + $0xf0] sm:$0xff] }
  0x43   :  { %541 = vmatprep.subr.mxu0 %v472_v52  ;;  %654 = vmatprep.subr.mxu1 %v474_v53  ;;  %5501 = vst [vmem:[#allocation25_spill] sm:$0xff] %v3956_v50  ;;  %5502 = vst [vmem:[#allocation26_spill] sm:$0xff] %v3961_v51  ;;  %v3966_v52 = vld [vmem:[%s5380_s4 + $0xc8] sm:$0xff]  ;;  %v3971_v53 = vld [vmem:[%s5380_s4 + $0xd8] sm:$0xff] }
  0x44   :  { %235 = vmatprep.mubr.f32.mxu0 %v5387_v3  ;;  %348 = vmatprep.mubr.f32.mxu1 %v5387_v3  ;;  %5503 = vst [vmem:[#allocation27_spill] sm:$0xff] %v3966_v52  ;;  %5504 = vst [vmem:[#allocation28_spill] sm:$0xff] %v3971_v53 }
  0x45   :  { %542 = vmatpush1.msra.mxu0 %v471_v54  ;;  %655 = vmatpush1.msra.mxu1 %v473_v55  ;;  %v3980_v54 = vld [vmem:[%s5380_s4 + $0xc0] sm:$0xff]  ;;  %v3985_v55 = vld [vmem:[%s5380_s4 + $0xd0] sm:$0xff] }
  0x46   :  { %236 = vmatmul.mubr.f32.gmra.mxu0 %v69_v56  ;;  %349 = vmatmul.mubr.f32.gmra.mxu1 %v69_v56  ;;  %5505 = vst [vmem:[#allocation29_spill] sm:$0xff] %v3980_v54  ;;  %5506 = vst [vmem:[#allocation30_spill] sm:$0xff] %v3985_v55  ;;  %v452_v56 = vld [vmem:[%s5379_s1 + $0x28] sm:$0xff] }
  0x47   :  { %543 = vmatprep.subr.mxu0 %v468_v57  ;;  %656 = vmatprep.subr.mxu1 %v470_v58  ;;  %v3997_v57 = vld [vmem:[%s5380_s4 + $0xa8] sm:$0xff]  ;;  %v4002_v58 = vld [vmem:[%s5380_s4 + $0xb8] sm:$0xff] }
  0x48   :  { %544 = vmatpush1.msra.mxu0 %v467_v59  ;;  %657 = vmatpush1.msra.mxu1 %v469_v60  ;;  %5507 = vst [vmem:[#allocation31_spill] sm:$0xff] %v3997_v57  ;;  %5508 = vst [vmem:[#allocation32_spill] sm:$0xff] %v4002_v58  ;;  %v4009_v59 = vld [vmem:[%s5380_s4 + $0xa0] sm:$0xff]  ;;  %v4014_v60 = vld [vmem:[%s5380_s4 + $0xb0] sm:$0xff] }
  0x49   :  { %545 = vmatprep.subr.mxu0 %v464_v61  ;;  %658 = vmatprep.subr.mxu1 %v466_v62  ;;  %5509 = vst [vmem:[#allocation33_spill] sm:$0xff] %v4009_v59  ;;  %5510 = vst [vmem:[#allocation34_spill] sm:$0xff] %v4014_v60  ;;  %v4019_v61 = vld [vmem:[%s5380_s4 + $0x88] sm:$0xff]  ;;  %v4024_v62 = vld [vmem:[%s5380_s4 + $0x98] sm:$0xff] }
  0x4a   :  { %241 = vmatprep.mubr.f32.mxu0 %v5387_v3  ;;  %354 = vmatprep.mubr.f32.mxu1 %v5387_v3  ;;  %5511 = vst [vmem:[#allocation35_spill] sm:$0xff] %v4019_v61  ;;  %5512 = vst [vmem:[#allocation36_spill] sm:$0xff] %v4024_v62 }
  0x4b   :  { %546 = vmatpush1.msra.mxu0 %v463_v63  ;;  %659 = vmatpush1.msra.mxu1 %v465_v0  ;;  %v4033_v63 = vld [vmem:[%s5380_s4 + $0x80] sm:$0xff]  ;;  %v4038_v0 = vld [vmem:[%s5380_s4 + $0x90] sm:$0xff] }
  0x4c   :  { %242 = vmatmul.mubr.f32.gmra.mxu0 %v70_v1  ;;  %355 = vmatmul.mubr.f32.gmra.mxu1 %v70_v1  ;;  %5513 = vst [vmem:[#allocation37_spill] sm:$0xff] %v4033_v63  ;;  %5514 = vst [vmem:[#allocation38_spill] sm:$0xff] %v4038_v0  ;;  %v453_v1 = vld [vmem:[%s5379_s1 + $0x30] sm:$0xff] }
  0x4d   :  { %547 = vmatprep.subr.mxu0 %v460_v2  ;;  %660 = vmatprep.subr.mxu1 %v462_v4  ;;  %v4050_v2 = vld [vmem:[%s5380_s4 + $0x68] sm:$0xff]  ;;  %v4055_v4 = vld [vmem:[%s5380_s4 + $0x78] sm:$0xff] }
  0x4e   :  { %548 = vmatpush1.msra.mxu0 %v459_v5  ;;  %661 = vmatpush1.msra.mxu1 %v461_v6  ;;  %5515 = vst [vmem:[#allocation39_spill] sm:$0xff] %v4050_v2  ;;  %5516 = vst [vmem:[#allocation40_spill] sm:$0xff] %v4055_v4  ;;  %v4062_v5 = vld [vmem:[%s5380_s4 + $0x60] sm:$0xff]  ;;  %v4067_v6 = vld [vmem:[%s5380_s4 + $0x70] sm:$0xff] }
  0x4f   :  { %549 = vmatprep.subr.mxu0 %v456_v7  ;;  %662 = vmatprep.subr.mxu1 %v458_v8  ;;  %5517 = vst [vmem:[#allocation41_spill] sm:$0xff] %v4062_v5  ;;  %5518 = vst [vmem:[#allocation42_spill] sm:$0xff] %v4067_v6  ;;  %v4072_v7 = vld [vmem:[%s5380_s4 + $0x48] sm:$0xff]  ;;  %v4077_v8 = vld [vmem:[%s5380_s4 + $0x58] sm:$0xff] }
  0x50   :  { %550 = vmatpush1.msra.mxu0 %v455_v9  ;;  %583 = vmatprep.mubr.f32.mxu0 %v5387_v3  ;;  %5519 = vst [vmem:[#allocation43_spill] sm:$0xff] %v4072_v7  ;;  %5520 = vst [vmem:[#allocation44_spill] sm:$0xff] %v4077_v8  ;;  %v4086_v9 = vld [vmem:[%s5380_s4 + $0x40] sm:$0xff] }
  0x51   :  { %663 = vmatpush1.msra.mxu1 %v457_v10  ;;  %696 = vmatprep.mubr.f32.mxu1 %v5387_v3  ;;  %5521 = vst [vmem:[#allocation45_spill] sm:$0xff] %v4086_v9  ;;  %v4091_v10 = vld [vmem:[%s5380_s4 + $0x50] sm:$0xff] }
  0x52   :  { %584 = vmatmul.mubr.f32.vlgmr.msra.gmra.mxu0 %v447_v11  ;;  %697 = vmatmul.mubr.f32.vlgmr.msra.gmra.mxu1 %v447_v11  ;;  %5522 = vst [vmem:[#allocation46_spill] sm:$0xff] %v4091_v10  ;;  %v454_v11 = vld [vmem:[%s5379_s1 + $0x38] sm:$0xff] }
  0x53   :  { %842 = vmatprep.subr.mxu0 %v3733_v12  ;;  %913 = vmatprep.subr.mxu1 %v3738_v13 }
  0x54   :  { %843 = vmatpush1.msra.mxu0 %v3744_v14  ;;  %914 = vmatpush1.msra.mxu1 %v3749_v15 }
  0x55   :  { %844 = vmatprep.subr.mxu0 %v3754_v16  ;;  %915 = vmatprep.subr.mxu1 %v3759_v17 }
  0x56   :  { %589 = vmatprep.mubr.f32.mxu0 %v5387_v3  ;;  %702 = vmatprep.mubr.f32.mxu1 %v5387_v3 }
  0x57   :  { %845 = vmatpush1.msra.mxu0 %v3768_v18  ;;  %916 = vmatpush1.msra.mxu1 %v3773_v19 }
  0x58   :  { %590 = vmatmul.mubr.f32.gmra.mxu0 %v448_v20  ;;  %703 = vmatmul.mubr.f32.gmra.mxu1 %v448_v20  ;;  %v4103_v20 = vld [vmem:[%s5380_s4 + $0x28] sm:$0xff] }
  0x59   :  { %846 = vmatprep.subr.mxu0 %v3785_v21  ;;  %917 = vmatprep.subr.mxu1 %v3790_v22  ;;  %5523 = vst [vmem:[#allocation47_spill] sm:$0xff] %v4103_v20 }
  0x5a   :  { %847 = vmatpush1.msra.mxu0 %v3797_v23  ;;  %918 = vmatpush1.msra.mxu1 %v3802_v24 }
  0x5b   :  { %848 = vmatprep.subr.mxu0 %v3807_v25  ;;  %919 = vmatprep.subr.mxu1 %v3812_v26 }
  0x5c   :  { %595 = vmatprep.mubr.f32.mxu0 %v5387_v3  ;;  %708 = vmatprep.mubr.f32.mxu1 %v5387_v3 }
  0x5d   :  { %849 = vmatpush1.msra.mxu0 %v3821_v27  ;;  %920 = vmatpush1.msra.mxu1 %v3826_v28 }
  0x5e   :  { %596 = vmatmul.mubr.f32.gmra.mxu0 %v449_v29  ;;  %709 = vmatmul.mubr.f32.gmra.mxu1 %v449_v29  ;;  %v4108_v29 = vld [vmem:[%s5380_s4 + $0x38] sm:$0xff] }
  0x5f   :  { %850 = vmatprep.subr.mxu0 %v3838_v30  ;;  %921 = vmatprep.subr.mxu1 %v3843_v31  ;;  %5524 = vst [vmem:[#allocation48_spill] sm:$0xff] %v4108_v29 }
  0x60   :  { %851 = vmatpush1.msra.mxu0 %v3850_v32  ;;  %922 = vmatpush1.msra.mxu1 %v3855_v33 }
  0x61   :  { %852 = vmatprep.subr.mxu0 %v3860_v34  ;;  %923 = vmatprep.subr.mxu1 %v3865_v35 }
  0x62   :  { %601 = vmatprep.mubr.f32.mxu0 %v5387_v3  ;;  %714 = vmatprep.mubr.f32.mxu1 %v5387_v3 }
  0x63   :  { %853 = vmatpush1.msra.mxu0 %v3874_v36  ;;  %924 = vmatpush1.msra.mxu1 %v3879_v37 }
  0x64   :  { %602 = vmatmul.mubr.f32.gmra.mxu0 %v450_v38  ;;  %715 = vmatmul.mubr.f32.gmra.mxu1 %v450_v38  ;;  %v4115_v38 = vld [vmem:[%s5380_s4 + $0x20] sm:$0xff] }
  0x65   :  { %854 = vmatprep.subr.mxu0 %v3891_v39  ;;  %925 = vmatprep.subr.mxu1 %v3896_v40  ;;  %5525 = vst [vmem:[#allocation49_spill] sm:$0xff] %v4115_v38 }
  0x66   :  { %855 = vmatpush1.msra.mxu0 %v3903_v41  ;;  %926 = vmatpush1.msra.mxu1 %v3908_v42 }
  0x67   :  { %856 = vmatprep.subr.mxu0 %v3913_v43  ;;  %927 = vmatprep.subr.mxu1 %v3918_v44 }
  0x68   :  { %607 = vmatprep.mubr.f32.mxu0 %v5387_v3  ;;  %720 = vmatprep.mubr.f32.mxu1 %v5387_v3 }
  0x69   :  { %857 = vmatpush1.msra.mxu0 %v3927_v45  ;;  %928 = vmatpush1.msra.mxu1 %v3932_v46 }
  0x6a   :  { %608 = vmatmul.mubr.f32.gmra.mxu0 %v451_v47  ;;  %721 = vmatmul.mubr.f32.gmra.mxu1 %v451_v47  ;;  %v4120_v47 = vld [vmem:[%s5380_s4 + $0x30] sm:$0xff] }
  0x6b   :  { %858 = vmatprep.subr.mxu0 %v3944_v48  ;;  %929 = vmatprep.subr.mxu1 %v3949_v49  ;;  %5526 = vst [vmem:[#allocation50_spill] sm:$0xff] %v4120_v47 }
  0x6c   :  { %859 = vmatpush1.msra.mxu0 %v3956_v50  ;;  %930 = vmatpush1.msra.mxu1 %v3961_v51 }
  0x6d   :  { %860 = vmatprep.subr.mxu0 %v3966_v52  ;;  %931 = vmatprep.subr.mxu1 %v3971_v53 }
  0x6e   :  { %613 = vmatprep.mubr.f32.mxu0 %v5387_v3  ;;  %726 = vmatprep.mubr.f32.mxu1 %v5387_v3 }
  0x6f   :  { %861 = vmatpush1.msra.mxu0 %v3980_v54  ;;  %932 = vmatpush1.msra.mxu1 %v3985_v55 }
  0x70   :  { %614 = vmatmul.mubr.f32.gmra.mxu0 %v452_v56  ;;  %727 = vmatmul.mubr.f32.gmra.mxu1 %v452_v56  ;;  %v4125_v56 = vld [vmem:[%s5380_s4 + $0x8] sm:$0xff] }
  0x71   :  { %862 = vmatprep.subr.mxu0 %v3997_v57  ;;  %933 = vmatprep.subr.mxu1 %v4002_v58  ;;  %5527 = vst [vmem:[#allocation51_spill] sm:$0xff] %v4125_v56 }
  0x72   :  { %863 = vmatpush1.msra.mxu0 %v4009_v59  ;;  %934 = vmatpush1.msra.mxu1 %v4014_v60 }
  0x73   :  { %864 = vmatprep.subr.mxu0 %v4019_v61  ;;  %935 = vmatprep.subr.mxu1 %v4024_v62 }
  0x74   :  { %619 = vmatprep.mubr.f32.mxu0 %v5387_v3  ;;  %732 = vmatprep.mubr.f32.mxu1 %v5387_v3 }
  0x75   :  { %865 = vmatpush1.msra.mxu0 %v4033_v63  ;;  %936 = vmatpush1.msra.mxu1 %v4038_v0 }
  0x76   :  { %620 = vmatmul.mubr.f32.gmra.mxu0 %v453_v1  ;;  %733 = vmatmul.mubr.f32.gmra.mxu1 %v453_v1  ;;  %v4130_v1 = vld [vmem:[%s5380_s4 + $0x18] sm:$0xff] }
  0x77   :  { %866 = vmatprep.subr.mxu0 %v4050_v2  ;;  %937 = vmatprep.subr.mxu1 %v4055_v4  ;;  %5528 = vst [vmem:[#allocation52_spill] sm:$0xff] %v4130_v1 }
  0x78   :  { %867 = vmatpush1.msra.mxu0 %v4062_v5  ;;  %938 = vmatpush1.msra.mxu1 %v4067_v6 }
  0x79   :  { %868 = vmatprep.subr.mxu0 %v4072_v7  ;;  %939 = vmatprep.subr.mxu1 %v4077_v8 }
  0x7a   :  { %625 = vmatprep.mubr.f32.mxu0 %v5387_v3  ;;  %738 = vmatprep.mubr.f32.mxu1 %v5387_v3  ;;  %v4137_v3 = vld [vmem:[%s5380_s4] sm:$0xff] }
  0x7b   :  { %869 = vmatpush1.msra.mxu0 %v4086_v9  ;;  %940 = vmatpush1.msra.mxu1 %v4091_v10  ;;  %5529 = vst [vmem:[#allocation53_spill] sm:$0xff] %v4137_v3 }
  0x7c   :  { %626 = vmatmul.mubr.f32.gmra.mxu0 %v454_v11  ;;  %739 = vmatmul.mubr.f32.gmra.mxu1 %v454_v11  ;;  %v4144_v11 = vld [vmem:[%s5380_s4 + $0x10] sm:$0xff] }
  0x7d   :  { %870 = vmatprep.subr.mxu0 %v4103_v20  ;;  %941 = vmatprep.subr.mxu1 %v4108_v29  ;;  %5530 = vst [vmem:[#allocation54_spill] sm:$0xff] %v4144_v11  ;;  %v5531_v29 = vmov 0.0  }
  0x7e   :  { %871 = vmatpush1.msra.mxu0 %v4115_v38  ;;  %942 = vmatpush1.msra.mxu1 %v4120_v47 }
  0x7f   :  { %872 = vmatprep.subr.mxu0 %v4125_v56  ;;  %943 = vmatprep.subr.mxu1 %v4130_v1 }
  0x80   :  { %873 = vmatpush1.msra.mxu0 %v4137_v3  ;;  %906 = vmatprep.mubr.f32.mxu0 %v5531_v29 }
  0x81   :  { %944 = vmatpush1.msra.mxu1 %v4144_v11  ;;  %977 = vmatprep.mubr.f32.mxu1 %v5531_v29 }
  0x82   :  { %907 = vmatmul.mubr.f32.vlgmr.msra.gmra.mxu0 %v5531_v29  ;;  %978 = vmatmul.mubr.f32.vlgmr.msra.gmra.mxu1 %v5531_v29 }
  0x83   :  { %1093 = vmatprep.subr.mxu0 %v3733_v12  ;;  %1164 = vmatprep.subr.mxu1 %v3738_v13 }
  0x84   :  { %1094 = vmatpush1.msra.mxu0 %v3744_v14  ;;  %1165 = vmatpush1.msra.mxu1 %v3749_v15 }
  0x85   :  { %1095 = vmatprep.subr.mxu0 %v3754_v16  ;;  %1166 = vmatprep.subr.mxu1 %v3759_v17 }
  0x86   :  { %1096 = vmatpush1.msra.mxu0 %v3768_v18  ;;  %1167 = vmatpush1.msra.mxu1 %v3773_v19 }
  0x87   :  { %1097 = vmatprep.subr.mxu0 %v3785_v21  ;;  %1168 = vmatprep.subr.mxu1 %v3790_v22 }
  0x88   :  { %1098 = vmatpush1.msra.mxu0 %v3797_v23  ;;  %1169 = vmatpush1.msra.mxu1 %v3802_v24 }
  0x89   :  { %1099 = vmatprep.subr.mxu0 %v3807_v25  ;;  %1170 = vmatprep.subr.mxu1 %v3812_v26 }
  0x8a   :  { %1100 = vmatpush1.msra.mxu0 %v3821_v27  ;;  %1171 = vmatpush1.msra.mxu1 %v3826_v28 }
  0x8b   :  { %1101 = vmatprep.subr.mxu0 %v3838_v30  ;;  %1172 = vmatprep.subr.mxu1 %v3843_v31 }
  0x8c   :  { %1102 = vmatpush1.msra.mxu0 %v3850_v32  ;;  %1173 = vmatpush1.msra.mxu1 %v3855_v33 }
  0x8d   :  { %1103 = vmatprep.subr.mxu0 %v3860_v34  ;;  %1174 = vmatprep.subr.mxu1 %v3865_v35 }
  0x8e   :  { %1104 = vmatpush1.msra.mxu0 %v3874_v36  ;;  %1175 = vmatpush1.msra.mxu1 %v3879_v37 }
  0x8f   :  { %1105 = vmatprep.subr.mxu0 %v3891_v39  ;;  %1176 = vmatprep.subr.mxu1 %v3896_v40 }
  0x90   :  { %1106 = vmatpush1.msra.mxu0 %v3903_v41  ;;  %1177 = vmatpush1.msra.mxu1 %v3908_v42 }
  0x91   :  { %1107 = vmatprep.subr.mxu0 %v3913_v43  ;;  %1178 = vmatprep.subr.mxu1 %v3918_v44 }
  0x92   :  { %1108 = vmatpush1.msra.mxu0 %v3927_v45  ;;  %1179 = vmatpush1.msra.mxu1 %v3932_v46 }
  0x93   :  { %1109 = vmatprep.subr.mxu0 %v3944_v48  ;;  %1180 = vmatprep.subr.mxu1 %v3949_v49 }
  0x94   :  { %1110 = vmatpush1.msra.mxu0 %v3956_v50  ;;  %1181 = vmatpush1.msra.mxu1 %v3961_v51 }
  0x95   :  { %1111 = vmatprep.subr.mxu0 %v3966_v52  ;;  %1182 = vmatprep.subr.mxu1 %v3971_v53 }
  0x96   :  { %1112 = vmatpush1.msra.mxu0 %v3980_v54  ;;  %1183 = vmatpush1.msra.mxu1 %v3985_v55 }
  0x97   :  { %1113 = vmatprep.subr.mxu0 %v3997_v57  ;;  %1184 = vmatprep.subr.mxu1 %v4002_v58 }
  0x98   :  { %1114 = vmatpush1.msra.mxu0 %v4009_v59  ;;  %1185 = vmatpush1.msra.mxu1 %v4014_v60 }
  0x99   :  { %1115 = vmatprep.subr.mxu0 %v4019_v61  ;;  %1186 = vmatprep.subr.mxu1 %v4024_v62 }
  0x9a   :  { %1116 = vmatpush1.msra.mxu0 %v4033_v63  ;;  %1187 = vmatpush1.msra.mxu1 %v4038_v0  ;;  %v5532_v63 = vld [vmem:[#allocation48_spill] sm:$0xff] }
  0x9b   :  { %1117 = vmatprep.subr.mxu0 %v4050_v2  ;;  %1188 = vmatprep.subr.mxu1 %v4055_v4 }
  0x9c   :  { %1118 = vmatpush1.msra.mxu0 %v4062_v5  ;;  %1189 = vmatpush1.msra.mxu1 %v4067_v6 }
  0x9d   :  { %1119 = vmatprep.subr.mxu0 %v4072_v7  ;;  %1190 = vmatprep.subr.mxu1 %v4077_v8 }
  0x9e   :  { %1120 = vmatpush1.msra.mxu0 %v4086_v9  ;;  %1191 = vmatpush1.msra.mxu1 %v4091_v10 }
  0x9f   :  { %1121 = vmatprep.subr.mxu0 %v4103_v20  ;;  %1192 = vmatprep.subr.mxu1 %v5532_v63  ;;  %v5402_v63 = vlaneseq }
  0xa0   :  { %1122 = vmatpush1.msra.mxu0 %v4115_v38  ;;  %1193 = vmatpush1.msra.mxu1 %v4120_v47 }
  0xa1   :  { %1123 = vmatprep.subr.mxu0 %v4125_v56  ;;  %1194 = vmatprep.subr.mxu1 %v4130_v1  ;;  %v364_v38 = vshrl.u32 %v5402_v63, 7 }
  0xa2   :  { %1124 = vmatpush1.msra.mxu0 %v4137_v3  ;;  %1157 = vmatprep.mubr.f32.mxu0 %v5531_v29  ;;  %v361_v3 = vld [vmem:[%s5381_s5] sm:$0xf] }
  0xa3   :  { %1195 = vmatpush1.msra.mxu1 %v4144_v11  ;;  %1228 = vmatprep.mubr.f32.mxu1 %v5531_v29  ;;  %v365_v1 = vsub.s32 0, %v364_v38  ;;  %v373_v20 = vsub.s32 2, %v364_v38  ;;  %v377_v10 = vsub.s32 3, %v364_v38 }
  0xa4   :  { %1345 = vmatprep.subr.mxu0 %v3733_v12  ;;  %1416 = vmatprep.subr.mxu1 %v3738_v13  ;;  %v369_v12 = vsub.s32 1, %v364_v38 }
  0xa5   :  { %v4234_v13 = vrot.slane %v361_v3, %v365_v1  ;;  %v4236_v9 = vrot.slane %v361_v3, %v373_v20  ;;  %v4240_v6 = vrot.slane %v361_v3, %v377_v10 }
  0xa6   :  { %v4238_v7 = vrot.slane %v361_v3, %v369_v12 }
  0xe2   :  { %v4223_v47 = vpop.f32.mrf.mxu0  ;;  %v4225_v56 = vpop.f32.mrf.mxu1 }
  0xe4   :  { %v4230_v11 = vpop.f32.mrf.mxu0  ;;  %v4232_v29 = vpop.f32.mrf.mxu1 }
  0xe8   :  { %v207_v63 = vpop.f32.mrf.mxu0  ;;  %v320_v8 = vpop.f32.mrf.mxu1 }
  0xe9   :  { %v4243_v5 = vadd.f32 %v4234_v13, %v207_v63  ;;  %v4246_v4 = vadd.f32 %v4236_v9, %v320_v8 }
  0xea   :  { %v209_v2 = vpop.f32.mrf.mxu0  ;;  %v322_v0 = vpop.f32.mrf.mxu1 }
  0xeb   :  { %v4249_v38 = vadd.f32 %v4238_v7, %v209_v2  ;;  %v4252_v20 = vadd.f32 %v4240_v6, %v322_v0 }
  0xee   :  { %v213_v1 = vpop.f32.mrf.mxu0  ;;  %v326_v62 = vpop.f32.mrf.mxu1 }
  0xef   :  { %v4255_v12 = vadd.f32 %v4234_v13, %v213_v1  ;;  %v4258_v3 = vadd.f32 %v4236_v9, %v326_v62 }
  0xf0   :  { %v215_v63 = vpop.f32.mrf.mxu0  ;;  %v328_v10 = vpop.f32.mrf.mxu1 }
  0xf1   :  { %v4261_v8 = vadd.f32 %v4238_v7, %v215_v63  ;;  %v4264_v61 = vadd.f32 %v4240_v6, %v328_v10 }
  0xf4   :  { %v219_v2 = vpop.f32.mrf.mxu0  ;;  %v332_v60 = vpop.f32.mrf.mxu1 }
  0xf5   :  { %v4267_v0 = vadd.f32 %v4234_v13, %v219_v2  ;;  %v4270_v59 = vadd.f32 %v4236_v9, %v332_v60 }
  0xf6   :  { %v221_v1 = vpop.f32.mrf.mxu0  ;;  %v334_v58 = vpop.f32.mrf.mxu1 }
  0xf7   :  { %v4273_v62 = vadd.f32 %v4238_v7, %v221_v1  ;;  %v4276_v57 = vadd.f32 %v4240_v6, %v334_v58 }
  0xfa   :  { %v225_v63 = vpop.f32.mrf.mxu0  ;;  %v338_v55 = vpop.f32.mrf.mxu1 }
  0xfb   :  { %v399_v10 = vadd.f32 %v4234_v13, %v225_v63  ;;  %v401_v54 = vadd.f32 %v4236_v9, %v338_v55 }
  0xfc   :  { %v227_v53 = vpop.f32.mrf.mxu0  ;;  %v340_v2 = vpop.f32.mrf.mxu1 }
  0xfd   :  { %v400_v52 = vadd.f32 %v4238_v7, %v227_v53  ;;  %v402_v60 = vadd.f32 %v4240_v6, %v340_v2 }
 0x100   :  { %v231_v51 = vpop.f32.mrf.mxu0  ;;  %v344_v50 = vpop.f32.mrf.mxu1 }
 0x101   :  { %v403_v1 = vadd.f32 %v4234_v13, %v231_v51  ;;  %v405_v49 = vadd.f32 %v4236_v9, %v344_v50 }
 0x102   :  { %v233_v58 = vpop.f32.mrf.mxu0  ;;  %v346_v48 = vpop.f32.mrf.mxu1 }
 0x103   :  { %v404_v46 = vadd.f32 %v4238_v7, %v233_v58  ;;  %v406_v63 = vadd.f32 %v4240_v6, %v346_v48 }
 0x106   :  { %v237_v45 = vpop.f32.mrf.mxu0  ;;  %v350_v55 = vpop.f32.mrf.mxu1 }
 0x107   :  { %v407_v44 = vadd.f32 %v4234_v13, %v237_v45  ;;  %v409_v53 = vadd.f32 %v4236_v9, %v350_v55 }
 0x108   :  { %v239_v43 = vpop.f32.mrf.mxu0  ;;  %v352_v2 = vpop.f32.mrf.mxu1 }
 0x109   :  { %v408_v42 = vadd.f32 %v4238_v7, %v239_v43  ;;  %v410_v51 = vadd.f32 %v4240_v6, %v352_v2 }
 0x10c   :  { %v243_v41 = vpop.f32.mrf.mxu0  ;;  %v356_v50 = vpop.f32.mrf.mxu1 }
 0x10d   :  { %v411_v40 = vadd.f32 %v4234_v13, %v243_v41  ;;  %v413_v58 = vadd.f32 %v4236_v9, %v356_v50 }
 0x10e   :  { %v245_v39 = vpop.f32.mrf.mxu0  ;;  %v358_v48 = vpop.f32.mrf.mxu1 }
 0x10f   :  { %v412_v37 = vadd.f32 %v4238_v7, %v245_v39  ;;  %v414_v45 = vadd.f32 %v4240_v6, %v358_v48 }
 0x112   :  { %v585_v36 = vpop.f32.mrf.mxu0  ;;  %v698_v55 = vpop.f32.mrf.mxu1 }
 0x113   :  { %v4294_v35 = vadd.f32 %v585_v36, %v411_v40  ;;  %v4296_v34 = vadd.f32 %v698_v55, %v413_v58 }
 0x114   :  { %v587_v43 = vpop.f32.mrf.mxu0  ;;  %v700_v2 = vpop.f32.mrf.mxu1 }
 0x115   :  { %5533 = vst [vmem:[#allocation55_spill] sm:$0xff] %v4294_v35  ;;  %5534 = vst [vmem:[#allocation56_spill] sm:$0xff] %v4296_v34  ;;  %v4298_v33 = vadd.f32 %v587_v43, %v412_v37  ;;  %v4300_v32 = vadd.f32 %v700_v2, %v414_v45  ;;  %v386_v34 = vadd.f32 %v4240_v6, %v4232_v29  ;;  %v4691_v35 = vld [vmem:[%s5380_s4 + $0xb8] sm:$0xff] }
 0x117   :  { %5535 = vst [vmem:[#allocation57_spill] sm:$0xff] %v4298_v33  ;;  %5536 = vst [vmem:[#allocation58_spill] sm:$0xff] %v4300_v32  ;;  %v4686_v33 = vld [vmem:[%s5380_s4 + $0xa8] sm:$0xff] }
 0x118   :  { %v591_v41 = vpop.f32.mrf.mxu0  ;;  %v704_v50 = vpop.f32.mrf.mxu1 }
 0x119   :  { %v4302_v31 = vadd.f32 %v591_v41, %v407_v44  ;;  %v4304_v30 = vadd.f32 %v704_v50, %v409_v53 }
 0x11a   :  { %v593_v39 = vpop.f32.mrf.mxu0  ;;  %v706_v48 = vpop.f32.mrf.mxu1 }
 0x11b   :  { %5537 = vst [vmem:[#allocation59_spill] sm:$0xff] %v4302_v31  ;;  %5538 = vst [vmem:[#allocation60_spill] sm:$0xff] %v4304_v30  ;;  %v4306_v28 = vadd.f32 %v593_v39, %v408_v42  ;;  %v4308_v36 = vadd.f32 %v706_v48, %v410_v51  ;;  %v4698_v30 = vld [vmem:[%s5380_s4 + $0xa0] sm:$0xff]  ;;  %v4715_v31 = vld [vmem:[%s5380_s4 + $0x98] sm:$0xff] }
 0x11d   :  { %5539 = vst [vmem:[#allocation61_spill] sm:$0xff] %v4306_v28  ;;  %5540 = vst [vmem:[#allocation62_spill] sm:$0xff] %v4308_v36  ;;  %v4703_v36 = vld [vmem:[%s5380_s4 + $0xb0] sm:$0xff]  ;;  %v4710_v28 = vld [vmem:[%s5380_s4 + $0x88] sm:$0xff] }
 0x11e   :  { %v597_v40 = vpop.f32.mrf.mxu0  ;;  %v710_v58 = vpop.f32.mrf.mxu1 }
 0x11f   :  { %v4310_v55 = vadd.f32 %v597_v40, %v403_v1  ;;  %v4312_v37 = vadd.f32 %v710_v58, %v405_v49 }
 0x120   :  { %v599_v45 = vpop.f32.mrf.mxu0  ;;  %v712_v43 = vpop.f32.mrf.mxu1 }
 0x121   :  { %5541 = vst [vmem:[#allocation63_spill] sm:$0xff] %v4310_v55  ;;  %5542 = vst [vmem:[#allocation64_spill] sm:$0xff] %v4312_v37  ;;  %v4314_v2 = vadd.f32 %v599_v45, %v404_v46  ;;  %v4316_v44 = vadd.f32 %v712_v43, %v406_v63  ;;  %v4722_v37 = vld [vmem:[%s5380_s4 + $0x80] sm:$0xff]  ;;  %v4739_v55 = vld [vmem:[%s5380_s4 + $0x78] sm:$0xff] }
 0x123   :  { %5543 = vst [vmem:[#allocation65_spill] sm:$0xff] %v4314_v2  ;;  %5544 = vst [vmem:[#allocation66_spill] sm:$0xff] %v4316_v44  ;;  %v4727_v44 = vld [vmem:[%s5380_s4 + $0x90] sm:$0xff]  ;;  %v4734_v2 = vld [vmem:[%s5380_s4 + $0x68] sm:$0xff] }
 0x124   :  { %v603_v53 = vpop.f32.mrf.mxu0  ;;  %v716_v41 = vpop.f32.mrf.mxu1 }
 0x125   :  { %v4318_v50 = vadd.f32 %v603_v53, %v399_v10  ;;  %v4320_v42 = vadd.f32 %v716_v41, %v401_v54 }
 0x126   :  { %v605_v51 = vpop.f32.mrf.mxu0  ;;  %v718_v39 = vpop.f32.mrf.mxu1 }
 0x127   :  { %5545 = vst [vmem:[#allocation67_spill] sm:$0xff] %v4318_v50  ;;  %5546 = vst [vmem:[#allocation68_spill] sm:$0xff] %v4320_v42  ;;  %v4322_v48 = vadd.f32 %v605_v51, %v400_v52  ;;  %v4324_v1 = vadd.f32 %v718_v39, %v402_v60  ;;  %v4746_v42 = vld [vmem:[%s5380_s4 + $0x60] sm:$0xff]  ;;  %v4763_v50 = vld [vmem:[%s5380_s4 + $0x58] sm:$0xff] }
 0x129   :  { %5547 = vst [vmem:[#allocation69_spill] sm:$0xff] %v4322_v48  ;;  %5548 = vst [vmem:[#allocation70_spill] sm:$0xff] %v4324_v1  ;;  %v4751_v1 = vld [vmem:[%s5380_s4 + $0x70] sm:$0xff]  ;;  %v4758_v48 = vld [vmem:[%s5380_s4 + $0x48] sm:$0xff] }
 0x12a   :  { %v609_v49 = vpop.f32.mrf.mxu0  ;;  %v722_v40 = vpop.f32.mrf.mxu1 }
 0x12b   :  { %v4327_v58 = vadd.f32 %v609_v49, %v4267_v0  ;;  %v4330_v46 = vadd.f32 %v722_v40, %v4270_v59 }
 0x12c   :  { %v611_v63 = vpop.f32.mrf.mxu0  ;;  %v724_v45 = vpop.f32.mrf.mxu1 }
 0x12d   :  { %5549 = vst [vmem:[#allocation71_spill] sm:$0xff] %v4327_v58  ;;  %5550 = vst [vmem:[#allocation72_spill] sm:$0xff] %v4330_v46  ;;  %v4333_v10 = vadd.f32 %v611_v63, %v4273_v62  ;;  %v4336_v54 = vadd.f32 %v724_v45, %v4276_v57  ;;  %v4770_v46 = vld [vmem:[%s5380_s4 + $0x40] sm:$0xff]  ;;  %v4787_v58 = vld [vmem:[%s5380_s4 + $0x38] sm:$0xff] }
 0x12f   :  { %5551 = vst [vmem:[#allocation73_spill] sm:$0xff] %v4333_v10  ;;  %5552 = vst [vmem:[#allocation74_spill] sm:$0xff] %v4336_v54  ;;  %v4775_v54 = vld [vmem:[%s5380_s4 + $0x50] sm:$0xff]  ;;  %v4782_v10 = vld [vmem:[%s5380_s4 + $0x28] sm:$0xff] }
 0x130   :  { %v615_v52 = vpop.f32.mrf.mxu0  ;;  %v728_v43 = vpop.f32.mrf.mxu1 }
 0x131   :  { %v4339_v60 = vadd.f32 %v615_v52, %v4255_v12  ;;  %v4342_v53 = vadd.f32 %v728_v43, %v4258_v3 }
 0x132   :  { %v617_v0 = vpop.f32.mrf.mxu0  ;;  %v730_v41 = vpop.f32.mrf.mxu1 }
 0x133   :  { %v4345_v59 = vadd.f32 %v617_v0, %v4261_v8  ;;  %v4348_v51 = vadd.f32 %v730_v41, %v4264_v61  ;;  %v383_v61 = vadd.f32 %v4234_v13, %v4223_v47 }
 0x136   :  { %v621_v62 = vpop.f32.mrf.mxu0  ;;  %v734_v39 = vpop.f32.mrf.mxu1 }
 0x137   :  { %v4351_v57 = vadd.f32 %v621_v62, %v4243_v5  ;;  %v4354_v49 = vadd.f32 %v734_v39, %v4246_v4  ;;  %v384_v5 = vadd.f32 %v4238_v7, %v4230_v11  ;;  %v385_v7 = vadd.f32 %v4236_v9, %v4225_v56 }
 0x138   :  { %v623_v12 = vpop.f32.mrf.mxu0  ;;  %v736_v40 = vpop.f32.mrf.mxu1 }
 0x139   :  { %v4357_v3 = vadd.f32 %v623_v12, %v4249_v38  ;;  %v4360_v63 = vadd.f32 %v736_v40, %v4252_v20 }
 0x13c   :  { %v627_v8 = vpop.f32.mrf.mxu0  ;;  %v740_v52 = vpop.f32.mrf.mxu1 }
 0x13d   :  { %v993_v43 = vadd.f32 %v627_v8, %v383_v61  ;;  %v995_v11 = vadd.f32 %v740_v52, %v385_v7  ;;  %v5566_v52 = vld [vmem:[#allocation19_spill] sm:$0xff]  ;;  %v5572_v7 = vld [vmem:[#allocation25_spill] sm:$0xff] }
 0x13e   :  { %v629_v45 = vpop.f32.mrf.mxu0  ;;  %v742_v41 = vpop.f32.mrf.mxu1 }
 0x13f   :  { %v994_v0 = vadd.f32 %v629_v45, %v384_v5  ;;  %v996_v13 = vadd.f32 %v742_v41, %v386_v34 }
 0x142   :  { %v908_v4 = vpop.f32.mrf.mxu0  ;;  %v979_v20 = vpop.f32.mrf.mxu1 }
 0x143   :  { %v997_v62 = vadd.f32 %v993_v43, %v908_v4  ;;  %v999_v61 = vadd.f32 %v995_v11, %v979_v20  ;;  %v5568_v20 = vld [vmem:[#allocation21_spill] sm:$0xff]  ;;  %v5573_v11 = vld [vmem:[#allocation26_spill] sm:$0xff] }
 0x144   :  { %v910_v39 = vpop.f32.mrf.mxu0  ;;  %v981_v47 = vpop.f32.mrf.mxu1 }
 0x145   :  { %v3004_v38 = vmul.f32 -1.442695, %v997_v62  ;;  %v998_v12 = vadd.f32 %v994_v0, %v910_v39  ;;  %v1000_v32 = vadd.f32 %v996_v13, %v981_v47  ;;  %v5570_v47 = vld [vmem:[#allocation23_spill] sm:$0xff]  ;;  %v5571_v13 = vld [vmem:[#allocation24_spill] sm:$0xff] }
 0x147   :  { %3113 = vpow2.f32 %v3004_v38  ;;  %v3005_v40 = vmul.f32 -1.442695, %v998_v12  ;;  %v3006_v8 = vmul.f32 -1.442695, %v1000_v32  ;;  %v5567_v12 = vld [vmem:[#allocation20_spill] sm:$0xff] }
 0x149   :  { %3115 = vpow2.f32 %v3005_v40  ;;  %v5569_v40 = vld [vmem:[#allocation22_spill] sm:$0xff] }
 0x14a   :  { %3117 = vpow2.f32 %v3006_v8  ;;  %v5574_v8 = vld [vmem:[#allocation27_spill] sm:$0xff] }
 0x154   :  { %v3114_v45 = vpop.eup %3113 }
 0x155   :  { %v1005_v5 = vadd.f32 1.0, %v3114_v45  ;;  %v5575_v45 = vld [vmem:[#allocation28_spill] sm:$0xff] }
 0x156   :  { %v3116_v43 = vpop.eup %3115 }
 0x157   :  { %3119 = vrcp.f32 %v1005_v5  ;;  %v1011_v4 = vadd.f32 1.0, %v3116_v43  ;;  %v3118_v0 = vpop.eup %3117  ;;  %v5577_v5 = vld [vmem:[#allocation30_spill] sm:$0xff]  ;;  %v5578_v43 = vld [vmem:[#allocation31_spill] sm:$0xff] }
 0x158   :  { %3121 = vtanh.f32 %v999_v61  ;;  %v1018_v34 = vadd.f32 1.0, %v3118_v0  ;;  %v5576_v61 = vld [vmem:[#allocation29_spill] sm:$0xff] }
 0x159   :  { %3123 = vrcp.f32 %v1011_v4  ;;  %v5579_v4 = vld [vmem:[#allocation32_spill] sm:$0xff]  ;;  %v5580_v0 = vld [vmem:[#allocation33_spill] sm:$0xff] }
 0x15a   :  { %3125 = vrcp.f32 %v1018_v34  ;;  %v5584_v34 = vld [vmem:[#allocation37_spill] sm:$0xff] }
 0x164   :  { %v3120_v62 = vpop.eup %3119 }
 0x165   :  { %v3122_v6 = vpop.eup %3121 }
 0x166   :  { %v3124_v29 = vpop.eup %3123  ;;  %v1022_v39 = vmul.f32 %v3122_v6, %v3120_v62  ;;  %v5581_v62 = vld [vmem:[#allocation34_spill] sm:$0xff]  ;;  %v5582_v6 = vld [vmem:[#allocation35_spill] sm:$0xff] }
 0x167   :  { %v1021_v41 = vmul.f32 0.0, %v3124_v29  ;;  %v3126_v32 = vpop.eup %3125  ;;  %v5583_v29 = vld [vmem:[#allocation36_spill] sm:$0xff] }
 0x169   :  { %v4370_v38 = vadd.f32 %v1022_v39, %v1021_v41  ;;  %v5585_v41 = vld [vmem:[#allocation38_spill] sm:$0xff]  ;;  %v5586_v39 = vld [vmem:[#allocation39_spill] sm:$0xff] }
 0x16b   :  { %3127 = vtanh.f32 %v4370_v38 }
 0x178   :  { %v3128_v9 = vpop.eup %3127 }
 0x179   :  { %v1025_v56 = vmul.f32 %v3128_v9, %v3126_v32  ;;  %v5587_v32 = vld [vmem:[#allocation40_spill] sm:$0xff]  ;;  %v5588_v9 = vld [vmem:[#allocation41_spill] sm:$0xff] }
 0x17b   :  { %1158 = vmatmul.mubr.f32.vlgmr.msra.gmra.mxu0 %v1025_v56  ;;  %1229 = vmatmul.mubr.f32.vlgmr.msra.gmra.mxu1 %v1025_v56  ;;  %v5589_v56 = vld [vmem:[#allocation42_spill] sm:$0xff] }
 0x17c   :  { %1346 = vmatpush1.msra.mxu0 %v3744_v14  ;;  %1417 = vmatpush1.msra.mxu1 %v3749_v15  ;;  %v5553_v14 = vld [vmem:[#allocation6_spill] sm:$0xff]  ;;  %v5554_v15 = vld [vmem:[#allocation7_spill] sm:$0xff] }
 0x17d   :  { %1347 = vmatprep.subr.mxu0 %v3754_v16  ;;  %1418 = vmatprep.subr.mxu1 %v3759_v17  ;;  %v5555_v16 = vld [vmem:[#allocation8_spill] sm:$0xff]  ;;  %v5556_v17 = vld [vmem:[#allocation9_spill] sm:$0xff] }
 0x17e   :  { %1348 = vmatpush1.msra.mxu0 %v3768_v18  ;;  %1419 = vmatpush1.msra.mxu1 %v3773_v19  ;;  %v5557_v18 = vld [vmem:[#allocation10_spill] sm:$0xff]  ;;  %v5558_v19 = vld [vmem:[#allocation11_spill] sm:$0xff]  ;;  %5605 = vst [vmem:[#allocation8_spill] sm:$0xff] %v4727_v44  ;;  %5606 = vst [vmem:[#allocation9_spill] sm:$0xff] %v4734_v2 }
 0x17f   :  { %1349 = vmatprep.subr.mxu0 %v3785_v21  ;;  %1420 = vmatprep.subr.mxu1 %v3790_v22  ;;  %v5559_v21 = vld [vmem:[#allocation12_spill] sm:$0xff]  ;;  %v5560_v22 = vld [vmem:[#allocation13_spill] sm:$0xff]  ;;  %5607 = vst [vmem:[#allocation10_spill] sm:$0xff] %v4739_v55  ;;  %5608 = vst [vmem:[#allocation11_spill] sm:$0xff] %v4746_v42 }
 0x180   :  { %1350 = vmatpush1.msra.mxu0 %v3797_v23  ;;  %1421 = vmatpush1.msra.mxu1 %v3802_v24  ;;  %v5561_v23 = vld [vmem:[#allocation14_spill] sm:$0xff]  ;;  %v5562_v24 = vld [vmem:[#allocation15_spill] sm:$0xff]  ;;  %5609 = vst [vmem:[#allocation12_spill] sm:$0xff] %v4751_v1  ;;  %5610 = vst [vmem:[#allocation13_spill] sm:$0xff] %v4758_v48 }
 0x181   :  { %1351 = vmatprep.subr.mxu0 %v3807_v25  ;;  %1422 = vmatprep.subr.mxu1 %v3812_v26  ;;  %v5563_v25 = vld [vmem:[#allocation16_spill] sm:$0xff]  ;;  %v5564_v26 = vld [vmem:[#allocation17_spill] sm:$0xff]  ;;  %5611 = vst [vmem:[#allocation14_spill] sm:$0xff] %v4763_v50  ;;  %5612 = vst [vmem:[#allocation15_spill] sm:$0xff] %v4770_v46 }
 0x182   :  { %1352 = vmatpush1.msra.mxu0 %v3821_v27  ;;  %1423 = vmatpush1.msra.mxu1 %v5553_v14  ;;  %v5565_v27 = vld [vmem:[#allocation18_spill] sm:$0xff]  ;;  %v5590_v14 = vld [vmem:[#allocation43_spill] sm:$0xff]  ;;  %5613 = vst [vmem:[#allocation16_spill] sm:$0xff] %v4775_v54  ;;  %5614 = vst [vmem:[#allocation17_spill] sm:$0xff] %v4782_v10 }
 0x183   :  { %1353 = vmatprep.subr.mxu0 %v5554_v15  ;;  %1424 = vmatprep.subr.mxu1 %v5555_v16  ;;  %v5591_v15 = vld [vmem:[#allocation44_spill] sm:$0xff]  ;;  %v5592_v16 = vld [vmem:[#allocation45_spill] sm:$0xff]  ;;  %5615 = vst [vmem:[#allocation18_spill] sm:$0xff] %v4787_v58 }
 0x184   :  { %1354 = vmatpush1.msra.mxu0 %v5556_v17  ;;  %1425 = vmatpush1.msra.mxu1 %v5557_v18  ;;  %v5593_v17 = vld [vmem:[#allocation46_spill] sm:$0xff]  ;;  %v5594_v18 = vld [vmem:[#allocation47_spill] sm:$0xff] }
 0x185   :  { %1355 = vmatprep.subr.mxu0 %v5558_v19  ;;  %1426 = vmatprep.subr.mxu1 %v5559_v21  ;;  %v5595_v19 = vld [vmem:[#allocation48_spill] sm:$0xff]  ;;  %v5596_v21 = vld [vmem:[#allocation49_spill] sm:$0xff] }
 0x186   :  { %1356 = vmatpush1.msra.mxu0 %v5560_v22  ;;  %1427 = vmatpush1.msra.mxu1 %v5561_v23  ;;  %v5597_v22 = vld [vmem:[#allocation50_spill] sm:$0xff]  ;;  %v5598_v23 = vld [vmem:[#allocation51_spill] sm:$0xff] }
 0x187   :  { %1357 = vmatprep.subr.mxu0 %v5562_v24  ;;  %1428 = vmatprep.subr.mxu1 %v5563_v25  ;;  %v5599_v24 = vld [vmem:[#allocation52_spill] sm:$0xff]  ;;  %v5600_v25 = vld [vmem:[#allocation53_spill] sm:$0xff] }
 0x188   :  { %1358 = vmatpush1.msra.mxu0 %v5564_v26  ;;  %1429 = vmatpush1.msra.mxu1 %v5565_v27  ;;  %v5601_v26 = vmov 0.0   ;;  %v5602_v27 = vld [vmem:[#allocation54_spill] sm:$0xff] }
 0x189   :  { %1359 = vmatprep.subr.mxu0 %v5566_v52  ;;  %1430 = vmatprep.subr.mxu1 %v5567_v12 }
 0x18a   :  { %1360 = vmatpush1.msra.mxu0 %v5568_v20  ;;  %1431 = vmatpush1.msra.mxu1 %v5569_v40 }
 0x18b   :  { %1361 = vmatprep.subr.mxu0 %v5570_v47  ;;  %1432 = vmatprep.subr.mxu1 %v5571_v13 }
 0x18c   :  { %1362 = vmatpush1.msra.mxu0 %v5572_v7  ;;  %1433 = vmatpush1.msra.mxu1 %v5573_v11 }
 0x18d   :  { %1363 = vmatprep.subr.mxu0 %v5574_v8  ;;  %1434 = vmatprep.subr.mxu1 %v5575_v45 }
 0x18e   :  { %1364 = vmatpush1.msra.mxu0 %v5576_v61  ;;  %1435 = vmatpush1.msra.mxu1 %v5577_v5 }
 0x18f   :  { %1365 = vmatprep.subr.mxu0 %v5578_v43  ;;  %1436 = vmatprep.subr.mxu1 %v5579_v4 }
 0x190   :  { %1366 = vmatpush1.msra.mxu0 %v5580_v0  ;;  %1437 = vmatpush1.msra.mxu1 %v5581_v62 }
 0x191   :  { %1367 = vmatprep.subr.mxu0 %v5582_v6  ;;  %1438 = vmatprep.subr.mxu1 %v5583_v29 }
 0x192   :  { %1368 = vmatpush1.msra.mxu0 %v5584_v34  ;;  %1439 = vmatpush1.msra.mxu1 %v5585_v41 }
 0x193   :  { %1369 = vmatprep.subr.mxu0 %v5586_v39  ;;  %1440 = vmatprep.subr.mxu1 %v5587_v32 }
 0x194   :  { %1370 = vmatpush1.msra.mxu0 %v5588_v9  ;;  %1441 = vmatpush1.msra.mxu1 %v5589_v56  ;;  %v4450_v9 = vld [vmem:[%s5380_s4 + $0x1e8] sm:$0xff]  ;;  %v4462_v56 = vld [vmem:[%s5380_s4 + $0x1e0] sm:$0xff] }
 0x195   :  { %1371 = vmatprep.subr.mxu0 %v5590_v14  ;;  %1442 = vmatprep.subr.mxu1 %v5591_v15  ;;  %5603 = vst [vmem:[#allocation6_spill] sm:$0xff] %v4450_v9  ;;  %v4467_v14 = vld [vmem:[%s5380_s4 + $0x1f0] sm:$0xff]  ;;  %v4474_v15 = vld [vmem:[%s5380_s4 + $0x1c8] sm:$0xff] }
 0x196   :  { %1372 = vmatpush1.msra.mxu0 %v5592_v16  ;;  %1443 = vmatpush1.msra.mxu1 %v5593_v17  ;;  %v4479_v16 = vld [vmem:[%s5380_s4 + $0x1d8] sm:$0xff]  ;;  %v4486_v17 = vld [vmem:[%s5380_s4 + $0x1c0] sm:$0xff] }
 0x197   :  { %1373 = vmatprep.subr.mxu0 %v5594_v18  ;;  %1444 = vmatprep.subr.mxu1 %v5595_v19  ;;  %v4491_v18 = vld [vmem:[%s5380_s4 + $0x1d0] sm:$0xff]  ;;  %v4498_v19 = vld [vmem:[%s5380_s4 + $0x1a8] sm:$0xff] }
 0x198   :  { %1374 = vmatpush1.msra.mxu0 %v5596_v21  ;;  %1445 = vmatpush1.msra.mxu1 %v5597_v22  ;;  %v4503_v21 = vld [vmem:[%s5380_s4 + $0x1b8] sm:$0xff]  ;;  %v4510_v22 = vld [vmem:[%s5380_s4 + $0x1a0] sm:$0xff] }
 0x199   :  { %1375 = vmatprep.subr.mxu0 %v5598_v23  ;;  %1446 = vmatprep.subr.mxu1 %v5599_v24  ;;  %v4515_v23 = vld [vmem:[%s5380_s4 + $0x1b0] sm:$0xff]  ;;  %v4522_v24 = vld [vmem:[%s5380_s4 + $0x188] sm:$0xff] }
 0x19a   :  { %1376 = vmatpush1.msra.mxu0 %v5600_v25  ;;  %1409 = vmatprep.mubr.f32.mxu0 %v5601_v26  ;;  %v4527_v25 = vld [vmem:[%s5380_s4 + $0x198] sm:$0xff] }
 0x19b   :  { %1447 = vmatpush1.msra.mxu1 %v5602_v27  ;;  %1480 = vmatprep.mubr.f32.mxu1 %v5601_v26  ;;  %v4534_v27 = vld [vmem:[%s5380_s4 + $0x180] sm:$0xff] }
 0x19c   :  { %1597 = vmatprep.subr.mxu0 %v4450_v9 }
 0x23b   :  { %v1159_v52 = vpop.f32.mrf.mxu0  ;;  %v1230_v13 = vpop.f32.mrf.mxu1 }
 0x23c   :  { %v1249_v12 = vadd.f32 %v4351_v57, %v1159_v52  ;;  %v1251_v45 = vadd.f32 %v4354_v49, %v1230_v13  ;;  %v4539_v52 = vld [vmem:[%s5380_s4 + $0x190] sm:$0xff]  ;;  %v4570_v13 = vld [vmem:[%s5380_s4 + $0x148] sm:$0xff] }
 0x23d   :  { %v1161_v20 = vpop.f32.mrf.mxu0  ;;  %v1232_v11 = vpop.f32.mrf.mxu1 }
 0x23e   :  { %v3007_v40 = vmul.f32 -1.442695, %v1249_v12  ;;  %v1250_v47 = vadd.f32 %v4357_v3, %v1161_v20  ;;  %v1252_v8 = vadd.f32 %v4360_v63, %v1232_v11  ;;  %v4546_v12 = vld [vmem:[%s5380_s4 + $0x168] sm:$0xff]  ;;  %v4551_v20 = vld [vmem:[%s5380_s4 + $0x178] sm:$0xff]  ;;  %v4582_v11 = vld [vmem:[%s5380_s4 + $0x140] sm:$0xff] }
 0x240   :  { %3129 = vpow2.f32 %v3007_v40  ;;  %v3008_v7 = vmul.f32 -1.442695, %v1250_v47  ;;  %v3009_v61 = vmul.f32 -1.442695, %v1252_v8  ;;  %v4558_v40 = vld [vmem:[%s5380_s4 + $0x160] sm:$0xff]  ;;  %v4563_v47 = vld [vmem:[%s5380_s4 + $0x170] sm:$0xff] }
 0x241   :  { %v4587_v8 = vld [vmem:[%s5380_s4 + $0x150] sm:$0xff] }
 0x242   :  { %3131 = vpow2.f32 %v3008_v7  ;;  %v4575_v7 = vld [vmem:[%s5380_s4 + $0x158] sm:$0xff] }
 0x243   :  { %3133 = vtanh.f32 %v1251_v45  ;;  %v4594_v45 = vld [vmem:[%s5380_s4 + $0x128] sm:$0xff] }
 0x244   :  { %3135 = vpow2.f32 %v3009_v61  ;;  %v4599_v61 = vld [vmem:[%s5380_s4 + $0x138] sm:$0xff] }
 0x24d   :  { %v3130_v5 = vpop.eup %3129 }
 0x24e   :  { %v1257_v43 = vadd.f32 1.0, %v3130_v5  ;;  %v4606_v5 = vld [vmem:[%s5380_s4 + $0x120] sm:$0xff] }
 0x24f   :  { %v3132_v4 = vpop.eup %3131 }
 0x250   :  { %3137 = vrcp.f32 %v1257_v43  ;;  %v1263_v57 = vadd.f32 1.0, %v3132_v4  ;;  %v3134_v0 = vpop.eup %3133  ;;  %v4611_v43 = vld [vmem:[%s5380_s4 + $0x130] sm:$0xff]  ;;  %v4618_v4 = vld [vmem:[%s5380_s4 + $0x108] sm:$0xff] }
 0x251   :  { %v3136_v3 = vpop.eup %3135 }
 0x252   :  { %3139 = vrcp.f32 %v1263_v57  ;;  %v1270_v34 = vadd.f32 1.0, %v3136_v3  ;;  %v4623_v57 = vld [vmem:[%s5380_s4 + $0x118] sm:$0xff]  ;;  %v4635_v3 = vld [vmem:[%s5380_s4 + $0x110] sm:$0xff] }
 0x254   :  { %3141 = vrcp.f32 %v1270_v34  ;;  %v4657_v34 = vld [vmem:[%s5380_s4 + $0xf0] sm:$0xff] }
 0x25d   :  { %v3138_v62 = vpop.eup %3137 }
 0x25e   :  { %v1274_v6 = vmul.f32 %v3138_v62, %v3134_v0  ;;  %v4628_v0 = vld [vmem:[%s5380_s4 + $0x100] sm:$0xff]  ;;  %v4640_v62 = vld [vmem:[%s5380_s4 + $0xe8] sm:$0xff] }
 0x25f   :  { %v3140_v29 = vpop.eup %3139 }
 0x260   :  { %v1273_v41 = vmul.f32 %v3140_v29, %v4370_v38  ;;  %v4455_v38 = vld [vmem:[%s5380_s4 + $0x1f8] sm:$0xff]  ;;  %v4652_v29 = vld [vmem:[%s5380_s4 + $0xe0] sm:$0xff] }
 0x261   :  { %v3142_v49 = vpop.eup %3141  ;;  %5604 = vst [vmem:[#allocation7_spill] sm:$0xff] %v4455_v38  ;;  %1668 = vmatprep.subr.mxu1 %v4455_v38 }
 0x262   :  { %v4442_v63 = vadd.f32 %v1274_v6, %v1273_v41  ;;  %v4645_v6 = vld [vmem:[%s5380_s4 + $0xf8] sm:$0xff]  ;;  %v4662_v41 = vld [vmem:[%s5380_s4 + $0xc8] sm:$0xff] }
 0x264   :  { %3143 = vtanh.f32 %v4442_v63 }
 0x271   :  { %v3144_v39 = vpop.eup %3143 }
 0x272   :  { %v1277_v32 = vmul.f32 %v3144_v39, %v3142_v49  ;;  %v4669_v49 = vld [vmem:[%s5380_s4 + $0xd8] sm:$0xff]  ;;  %v4674_v39 = vld [vmem:[%s5380_s4 + $0xc0] sm:$0xff] }
 0x274   :  { %1410 = vmatmul.mubr.f32.vlgmr.msra.gmra.mxu0 %v1277_v32  ;;  %1481 = vmatmul.mubr.f32.vlgmr.msra.gmra.mxu1 %v1277_v32  ;;  %v4679_v32 = vld [vmem:[%s5380_s4 + $0xd0] sm:$0xff] }
 0x275   :  { %1661 = vmatprep.mubr.f32.mxu0 %v5601_v26  ;;  %1732 = vmatprep.mubr.f32.mxu1 %v5601_v26  ;;  %v4794_v26 = vld [vmem:[%s5380_s4 + $0x20] sm:$0xff] }
 0x276   :  { %1598 = vmatpush1.msra.mxu0 %v4462_v56  ;;  %1669 = vmatpush1.msra.mxu1 %v4467_v14  ;;  %5616 = vst [vmem:[#allocation19_spill] sm:$0xff] %v4794_v26 }
 0x277   :  { %1599 = vmatprep.subr.mxu0 %v4474_v15  ;;  %1670 = vmatprep.subr.mxu1 %v4479_v16 }
 0x278   :  { %1600 = vmatpush1.msra.mxu0 %v4486_v17  ;;  %1671 = vmatpush1.msra.mxu1 %v4491_v18 }
 0x279   :  { %1601 = vmatprep.subr.mxu0 %v4498_v19  ;;  %1672 = vmatprep.subr.mxu1 %v4503_v21 }
 0x27a   :  { %1602 = vmatpush1.msra.mxu0 %v4510_v22  ;;  %1673 = vmatpush1.msra.mxu1 %v4515_v23 }
 0x27b   :  { %1603 = vmatprep.subr.mxu0 %v4522_v24  ;;  %1674 = vmatprep.subr.mxu1 %v4527_v25 }
 0x27c   :  { %1604 = vmatpush1.msra.mxu0 %v4534_v27  ;;  %1675 = vmatpush1.msra.mxu1 %v4539_v52 }
 0x27d   :  { %1605 = vmatprep.subr.mxu0 %v4546_v12  ;;  %1676 = vmatprep.subr.mxu1 %v4551_v20 }
 0x27e   :  { %1606 = vmatpush1.msra.mxu0 %v4558_v40  ;;  %1677 = vmatpush1.msra.mxu1 %v4563_v47 }
 0x27f   :  { %1607 = vmatprep.subr.mxu0 %v4570_v13  ;;  %1678 = vmatprep.subr.mxu1 %v4575_v7 }
 0x280   :  { %1608 = vmatpush1.msra.mxu0 %v4582_v11  ;;  %1679 = vmatpush1.msra.mxu1 %v4587_v8 }
 0x281   :  { %1609 = vmatprep.subr.mxu0 %v4594_v45  ;;  %1680 = vmatprep.subr.mxu1 %v4599_v61 }
 0x282   :  { %1610 = vmatpush1.msra.mxu0 %v4606_v5  ;;  %1681 = vmatpush1.msra.mxu1 %v4611_v43 }
 0x283   :  { %1611 = vmatprep.subr.mxu0 %v4618_v4  ;;  %1682 = vmatprep.subr.mxu1 %v4623_v57 }
 0x284   :  { %1612 = vmatpush1.msra.mxu0 %v4628_v0  ;;  %1683 = vmatpush1.msra.mxu1 %v4635_v3 }
 0x285   :  { %1613 = vmatprep.subr.mxu0 %v4640_v62  ;;  %1684 = vmatprep.subr.mxu1 %v4645_v6 }
 0x286   :  { %1614 = vmatpush1.msra.mxu0 %v4652_v29  ;;  %1685 = vmatpush1.msra.mxu1 %v4657_v34 }
 0x287   :  { %1615 = vmatprep.subr.mxu0 %v4662_v41  ;;  %1686 = vmatprep.subr.mxu1 %v4669_v49 }
 0x288   :  { %1616 = vmatpush1.msra.mxu0 %v4674_v39  ;;  %1687 = vmatpush1.msra.mxu1 %v4679_v32 }
 0x289   :  { %1617 = vmatprep.subr.mxu0 %v4686_v33  ;;  %1688 = vmatprep.subr.mxu1 %v4691_v35 }
 0x28a   :  { %1618 = vmatpush1.msra.mxu0 %v4698_v30  ;;  %1689 = vmatpush1.msra.mxu1 %v4703_v36 }
 0x28b   :  { %1619 = vmatprep.subr.mxu0 %v4710_v28  ;;  %1690 = vmatprep.subr.mxu1 %v4715_v31 }
 0x28c   :  { %1620 = vmatpush1.msra.mxu0 %v4722_v37  ;;  %1691 = vmatpush1.msra.mxu1 %v4727_v44 }
 0x28d   :  { %1621 = vmatprep.subr.mxu0 %v4734_v2  ;;  %1692 = vmatprep.subr.mxu1 %v4739_v55 }
 0x28e   :  { %1622 = vmatpush1.msra.mxu0 %v4746_v42  ;;  %1693 = vmatpush1.msra.mxu1 %v4751_v1  ;;  %v4799_v1 = vld [vmem:[%s5380_s4 + $0x30] sm:$0xff] }
 0x28f   :  { %1623 = vmatprep.subr.mxu0 %v4758_v48  ;;  %1694 = vmatprep.subr.mxu1 %v4763_v50  ;;  %5617 = vst [vmem:[#allocation20_spill] sm:$0xff] %v4799_v1  ;;  %v4806_v48 = vld [vmem:[%s5380_s4 + $0x8] sm:$0xff]  ;;  %v4811_v50 = vld [vmem:[%s5380_s4 + $0x18] sm:$0xff] }
 0x290   :  { %1624 = vmatpush1.msra.mxu0 %v4770_v46  ;;  %1695 = vmatpush1.msra.mxu1 %v4775_v54  ;;  %5618 = vst [vmem:[#allocation21_spill] sm:$0xff] %v4806_v48  ;;  %5619 = vst [vmem:[#allocation22_spill] sm:$0xff] %v4811_v50  ;;  %v4818_v46 = vld [vmem:[%s5380_s4] sm:$0xff]  ;;  %v4823_v54 = vld [vmem:[%s5380_s4 + $0x10] sm:$0xff] }
 0x291   :  { %1625 = vmatprep.subr.mxu0 %v4782_v10  ;;  %1696 = vmatprep.subr.mxu1 %v4787_v58  ;;  %5620 = vst [vmem:[#allocation23_spill] sm:$0xff] %v4818_v46  ;;  %5621 = vst [vmem:[#allocation24_spill] sm:$0xff] %v4823_v54 }
 0x292   :  { %1626 = vmatpush1.msra.mxu0 %v4794_v26  ;;  %1697 = vmatpush1.msra.mxu1 %v4799_v1 }
 0x293   :  { %1627 = vmatprep.subr.mxu0 %v4806_v48  ;;  %1698 = vmatprep.subr.mxu1 %v4811_v50 }
 0x294   :  { %1628 = vmatpush1.msra.mxu0 %v4818_v46  ;;  %1699 = vmatpush1.msra.mxu1 %v4823_v54 }
 0x295   :  { %1849 = vmatprep.subr.mxu0 %v4450_v9  ;;  %1920 = vmatprep.subr.mxu1 %v4455_v38 }
 0x334   :  { %v1411_v58 = vpop.f32.mrf.mxu0  ;;  %v1482_v1 = vpop.f32.mrf.mxu1 }
 0x335   :  { %v1501_v10 = vadd.f32 %v4339_v60, %v1411_v58  ;;  %v1503_v54 = vadd.f32 %v4342_v53, %v1482_v1  ;;  %v5624_v53 = vld [vmem:[#allocation10_spill] sm:$0xff] }
 0x336   :  { %v1413_v42 = vpop.f32.mrf.mxu0  ;;  %v1484_v50 = vpop.f32.mrf.mxu1 }
 0x337   :  { %v3010_v55 = vmul.f32 -1.442695, %v1501_v10  ;;  %v1502_v26 = vadd.f32 %v4345_v59, %v1413_v42  ;;  %v1504_v46 = vadd.f32 %v4348_v51, %v1484_v50  ;;  %v5625_v51 = vld [vmem:[#allocation11_spill] sm:$0xff] }
 0x339   :  { %3145 = vpow2.f32 %v3010_v55  ;;  %v3011_v48 = vmul.f32 -1.442695, %v1502_v26  ;;  %v3012_v2 = vmul.f32 -1.442695, %v1504_v46 }
 0x33b   :  { %3147 = vpow2.f32 %v3011_v48 }
 0x33c   :  { %3149 = vtanh.f32 %v1503_v54 }
 0x33d   :  { %3151 = vpow2.f32 %v3012_v2  ;;  %v5622_v2 = vld [vmem:[#allocation8_spill] sm:$0xff] }
 0x346   :  { %v3146_v9 = vpop.eup %3145 }
 0x347   :  { %v1509_v44 = vadd.f32 1.0, %v3146_v9  ;;  %v5627_v9 = vld [vmem:[#allocation13_spill] sm:$0xff] }
 0x348   :  { %v3148_v38 = vpop.eup %3147 }
 0x349   :  { %3153 = vrcp.f32 %v1509_v44  ;;  %v1515_v58 = vadd.f32 1.0, %v3148_v38  ;;  %v3150_v10 = vpop.eup %3149  ;;  %v5623_v44 = vld [vmem:[#allocation9_spill] sm:$0xff]  ;;  %v5628_v38 = vld [vmem:[#allocation14_spill] sm:$0xff] }
 0x34a   :  { %v3152_v42 = vpop.eup %3151 }
 0x34b   :  { %3155 = vrcp.f32 %v1515_v58  ;;  %v1522_v48 = vadd.f32 1.0, %v3152_v42  ;;  %v5629_v58 = vld [vmem:[#allocation15_spill] sm:$0xff]  ;;  %v5631_v42 = vld [vmem:[#allocation17_spill] sm:$0xff] }
 0x34d   :  { %3157 = vrcp.f32 %v1522_v48  ;;  %v5635_v48 = vld [vmem:[#allocation21_spill] sm:$0xff] }
 0x356   :  { %v3154_v55 = vpop.eup %3153 }
 0x357   :  { %v1526_v60 = vmul.f32 %v3154_v55, %v3150_v10  ;;  %v5630_v10 = vld [vmem:[#allocation16_spill] sm:$0xff]  ;;  %v5632_v55 = vld [vmem:[#allocation18_spill] sm:$0xff] }
 0x358   :  { %v3156_v59 = vpop.eup %3155 }
 0x359   :  { %v1525_v26 = vmul.f32 %v3156_v59, %v4442_v63  ;;  %v5626_v63 = vld [vmem:[#allocation12_spill] sm:$0xff] }
 0x35a   :  { %v3158_v1 = vpop.eup %3157  ;;  %v5634_v59 = vld [vmem:[#allocation20_spill] sm:$0xff] }
 0x35b   :  { %v4838_v50 = vadd.f32 %v1526_v60, %v1525_v26  ;;  %v5633_v60 = vld [vmem:[#allocation19_spill] sm:$0xff]  ;;  %v5636_v26 = vld [vmem:[#allocation22_spill] sm:$0xff] }
 0x35d   :  { %3159 = vtanh.f32 %v4838_v50 }
 0x36a   :  { %v3160_v46 = vpop.eup %3159 }
 0x36b   :  { %v1529_v54 = vmul.f32 %v3160_v46, %v3158_v1  ;;  %v5637_v1 = vld [vmem:[#allocation23_spill] sm:$0xff]  ;;  %v5638_v46 = vmov 0.0  }
 0x36d   :  { %1662 = vmatmul.mubr.f32.vlgmr.msra.gmra.mxu0 %v1529_v54  ;;  %1733 = vmatmul.mubr.f32.vlgmr.msra.gmra.mxu1 %v1529_v54  ;;  %v5639_v54 = vld [vmem:[#allocation24_spill] sm:$0xff] }
 0x36e   :  { %1850 = vmatpush1.msra.mxu0 %v4462_v56  ;;  %1921 = vmatpush1.msra.mxu1 %v4467_v14 }
 0x36f   :  { %1851 = vmatprep.subr.mxu0 %v4474_v15  ;;  %1922 = vmatprep.subr.mxu1 %v4479_v16 }
 0x370   :  { %1852 = vmatpush1.msra.mxu0 %v4486_v17  ;;  %1923 = vmatpush1.msra.mxu1 %v4491_v18 }
 0x371   :  { %1853 = vmatprep.subr.mxu0 %v4498_v19  ;;  %1924 = vmatprep.subr.mxu1 %v4503_v21 }
 0x372   :  { %1854 = vmatpush1.msra.mxu0 %v4510_v22  ;;  %1925 = vmatpush1.msra.mxu1 %v4515_v23 }
 0x373   :  { %1855 = vmatprep.subr.mxu0 %v4522_v24  ;;  %1926 = vmatprep.subr.mxu1 %v4527_v25 }
 0x374   :  { %1856 = vmatpush1.msra.mxu0 %v4534_v27  ;;  %1927 = vmatpush1.msra.mxu1 %v4539_v52 }
 0x375   :  { %1857 = vmatprep.subr.mxu0 %v4546_v12  ;;  %1928 = vmatprep.subr.mxu1 %v4551_v20 }
 0x376   :  { %1858 = vmatpush1.msra.mxu0 %v4558_v40  ;;  %1929 = vmatpush1.msra.mxu1 %v4563_v47 }
 0x377   :  { %1859 = vmatprep.subr.mxu0 %v4570_v13  ;;  %1930 = vmatprep.subr.mxu1 %v4575_v7 }
 0x378   :  { %1860 = vmatpush1.msra.mxu0 %v4582_v11  ;;  %1931 = vmatpush1.msra.mxu1 %v4587_v8 }
 0x379   :  { %1861 = vmatprep.subr.mxu0 %v4594_v45  ;;  %1932 = vmatprep.subr.mxu1 %v4599_v61 }
 0x37a   :  { %1862 = vmatpush1.msra.mxu0 %v4606_v5  ;;  %1933 = vmatpush1.msra.mxu1 %v4611_v43 }
 0x37b   :  { %1863 = vmatprep.subr.mxu0 %v4618_v4  ;;  %1934 = vmatprep.subr.mxu1 %v4623_v57 }
 0x37c   :  { %1864 = vmatpush1.msra.mxu0 %v4628_v0  ;;  %1935 = vmatpush1.msra.mxu1 %v4635_v3 }
 0x37d   :  { %1865 = vmatprep.subr.mxu0 %v4640_v62  ;;  %1936 = vmatprep.subr.mxu1 %v4645_v6 }
 0x37e   :  { %1866 = vmatpush1.msra.mxu0 %v4652_v29  ;;  %1937 = vmatpush1.msra.mxu1 %v4657_v34 }
 0x37f   :  { %1867 = vmatprep.subr.mxu0 %v4662_v41  ;;  %1938 = vmatprep.subr.mxu1 %v4669_v49 }
 0x380   :  { %1868 = vmatpush1.msra.mxu0 %v4674_v39  ;;  %1939 = vmatpush1.msra.mxu1 %v4679_v32 }
 0x381   :  { %1869 = vmatprep.subr.mxu0 %v4686_v33  ;;  %1940 = vmatprep.subr.mxu1 %v4691_v35 }
 0x382   :  { %1870 = vmatpush1.msra.mxu0 %v4698_v30  ;;  %1941 = vmatpush1.msra.mxu1 %v4703_v36 }
 0x383   :  { %1871 = vmatprep.subr.mxu0 %v4710_v28  ;;  %1942 = vmatprep.subr.mxu1 %v4715_v31 }
 0x384   :  { %1872 = vmatpush1.msra.mxu0 %v4722_v37  ;;  %1943 = vmatpush1.msra.mxu1 %v5622_v2 }
 0x385   :  { %1873 = vmatprep.subr.mxu0 %v5623_v44  ;;  %1944 = vmatprep.subr.mxu1 %v5624_v53  ;;  %v5645_v53 = vld [vmem:[#allocation72_spill] sm:$0xff] }
 0x386   :  { %1874 = vmatpush1.msra.mxu0 %v5625_v51  ;;  %1945 = vmatpush1.msra.mxu1 %v5626_v63  ;;  %v5644_v51 = vld [vmem:[#allocation74_spill] sm:$0xff] }
 0x387   :  { %1875 = vmatprep.subr.mxu0 %v5627_v9  ;;  %1946 = vmatprep.subr.mxu1 %v5628_v38 }
 0x388   :  { %1876 = vmatpush1.msra.mxu0 %v5629_v58  ;;  %1947 = vmatpush1.msra.mxu1 %v5630_v10  ;;  %v5640_v10 = vld [vmem:[#allocation6_spill] sm:$0xff] }
 0x389   :  { %1877 = vmatprep.subr.mxu0 %v5631_v42  ;;  %1948 = vmatprep.subr.mxu1 %v5632_v55  ;;  %v5641_v42 = vld [vmem:[#allocation7_spill] sm:$0xff] }
 0x38a   :  { %1878 = vmatpush1.msra.mxu0 %v5633_v60  ;;  %1949 = vmatpush1.msra.mxu1 %v5634_v59  ;;  %v5642_v60 = vld [vmem:[#allocation71_spill] sm:$0xff] }
 0x38b   :  { %1879 = vmatprep.subr.mxu0 %v5635_v48  ;;  %1950 = vmatprep.subr.mxu1 %v5636_v26  ;;  %v5643_v48 = vld [vmem:[#allocation73_spill] sm:$0xff] }
 0x38c   :  { %1880 = vmatpush1.msra.mxu0 %v5637_v1  ;;  %1913 = vmatprep.mubr.f32.mxu0 %v5638_v46 }
 0x38d   :  { %1951 = vmatpush1.msra.mxu1 %v5639_v54  ;;  %1984 = vmatprep.mubr.f32.mxu1 %v5638_v46 }
 0x38e   :  { %2101 = vmatprep.subr.mxu0 %v5640_v10  ;;  %2172 = vmatprep.subr.mxu1 %v5641_v42 }
 0x42d   :  { %v1663_v55 = vpop.f32.mrf.mxu0  ;;  %v1734_v26 = vpop.f32.mrf.mxu1 }
 0x42e   :  { %v1753_v58 = vadd.f32 %v5642_v60, %v1663_v55  ;;  %v1755_v46 = vadd.f32 %v5645_v53, %v1734_v26  ;;  %v5650_v26 = vld [vmem:[#allocation12_spill] sm:$0xff] }
 0x42f   :  { %v1665_v59 = vpop.f32.mrf.mxu0  ;;  %v1736_v63 = vpop.f32.mrf.mxu1 }
 0x430   :  { %v3013_v38 = vmul.f32 -1.442695, %v1753_v58  ;;  %v1754_v9 = vadd.f32 %v5643_v48, %v1665_v59  ;;  %v1756_v54 = vadd.f32 %v5644_v51, %v1736_v63 }
 0x432   :  { %3161 = vpow2.f32 %v3013_v38  ;;  %v3014_v1 = vmul.f32 -1.442695, %v1754_v9  ;;  %v3015_v44 = vmul.f32 -1.442695, %v1756_v54  ;;  %v5652_v54 = vld [vmem:[#allocation14_spill] sm:$0xff] }
 0x434   :  { %3163 = vpow2.f32 %v3014_v1 }
 0x435   :  { %3165 = vtanh.f32 %v1755_v46  ;;  %v5651_v46 = vld [vmem:[#allocation13_spill] sm:$0xff] }
 0x436   :  { %3167 = vpow2.f32 %v3015_v44  ;;  %v5648_v44 = vld [vmem:[#allocation10_spill] sm:$0xff] }
 0x43f   :  { %v3162_v10 = vpop.eup %3161 }
 0x440   :  { %v1761_v2 = vadd.f32 1.0, %v3162_v10 }
 0x441   :  { %v3164_v42 = vpop.eup %3163 }
 0x442   :  { %3169 = vrcp.f32 %v1761_v2  ;;  %v1767_v55 = vadd.f32 1.0, %v3164_v42  ;;  %v3166_v58 = vpop.eup %3165  ;;  %v5647_v2 = vld [vmem:[#allocation9_spill] sm:$0xff]  ;;  %v5649_v42 = vld [vmem:[#allocation11_spill] sm:$0xff] }
 0x443   :  { %v3168_v60 = vpop.eup %3167 }
 0x444   :  { %3171 = vrcp.f32 %v1767_v55  ;;  %v1774_v48 = vadd.f32 1.0, %v3168_v60  ;;  %v5653_v55 = vld [vmem:[#allocation15_spill] sm:$0xff]  ;;  %v5655_v60 = vld [vmem:[#allocation17_spill] sm:$0xff] }
 0x446   :  { %3173 = vrcp.f32 %v1774_v48  ;;  %v5659_v48 = vld [vmem:[#allocation21_spill] sm:$0xff] }
 0x44f   :  { %v3170_v38 = vpop.eup %3169 }
 0x450   :  { %v1778_v59 = vmul.f32 %v3170_v38, %v3166_v58  ;;  %v5654_v58 = vld [vmem:[#allocation16_spill] sm:$0xff]  ;;  %v5656_v38 = vld [vmem:[#allocation18_spill] sm:$0xff] }
 0x451   :  { %v3172_v9 = vpop.eup %3171 }
 0x452   :  { %v1777_v1 = vmul.f32 %v3172_v9, %v4838_v50  ;;  %v5646_v50 = vld [vmem:[#allocation8_spill] sm:$0xff] }
 0x453   :  { %v3174_v53 = vpop.eup %3173  ;;  %v5658_v9 = vld [vmem:[#allocation20_spill] sm:$0xff] }
 0x454   :  { %v4912_v51 = vadd.f32 %v1778_v59, %v1777_v1  ;;  %v5657_v59 = vld [vmem:[#allocation19_spill] sm:$0xff]  ;;  %v5660_v1 = vld [vmem:[#allocation22_spill] sm:$0xff] }
 0x456   :  { %3175 = vtanh.f32 %v4912_v51 }
 0x463   :  { %v3176_v63 = vpop.eup %3175 }
 0x464   :  { %v1781_v10 = vmul.f32 %v3176_v63, %v3174_v53  ;;  %v5661_v53 = vld [vmem:[#allocation23_spill] sm:$0xff]  ;;  %v5662_v63 = vmov 0.0  }
 0x466   :  { %1914 = vmatmul.mubr.f32.vlgmr.msra.gmra.mxu0 %v1781_v10  ;;  %1985 = vmatmul.mubr.f32.vlgmr.msra.gmra.mxu1 %v1781_v10  ;;  %v5663_v10 = vld [vmem:[#allocation24_spill] sm:$0xff] }
 0x467   :  { %2102 = vmatpush1.msra.mxu0 %v4462_v56  ;;  %2173 = vmatpush1.msra.mxu1 %v4467_v14 }
 0x468   :  { %2103 = vmatprep.subr.mxu0 %v4474_v15  ;;  %2174 = vmatprep.subr.mxu1 %v4479_v16 }
 0x469   :  { %2104 = vmatpush1.msra.mxu0 %v4486_v17  ;;  %2175 = vmatpush1.msra.mxu1 %v4491_v18 }
 0x46a   :  { %2105 = vmatprep.subr.mxu0 %v4498_v19  ;;  %2176 = vmatprep.subr.mxu1 %v4503_v21 }
 0x46b   :  { %2106 = vmatpush1.msra.mxu0 %v4510_v22  ;;  %2177 = vmatpush1.msra.mxu1 %v4515_v23 }
 0x46c   :  { %2107 = vmatprep.subr.mxu0 %v4522_v24  ;;  %2178 = vmatprep.subr.mxu1 %v4527_v25 }
 0x46d   :  { %2108 = vmatpush1.msra.mxu0 %v4534_v27  ;;  %2179 = vmatpush1.msra.mxu1 %v4539_v52 }
 0x46e   :  { %2109 = vmatprep.subr.mxu0 %v4546_v12  ;;  %2180 = vmatprep.subr.mxu1 %v4551_v20 }
 0x46f   :  { %2110 = vmatpush1.msra.mxu0 %v4558_v40  ;;  %2181 = vmatpush1.msra.mxu1 %v4563_v47 }
 0x470   :  { %2111 = vmatprep.subr.mxu0 %v4570_v13  ;;  %2182 = vmatprep.subr.mxu1 %v4575_v7 }
 0x471   :  { %2112 = vmatpush1.msra.mxu0 %v4582_v11  ;;  %2183 = vmatpush1.msra.mxu1 %v4587_v8 }
 0x472   :  { %2113 = vmatprep.subr.mxu0 %v4594_v45  ;;  %2184 = vmatprep.subr.mxu1 %v4599_v61 }
 0x473   :  { %2114 = vmatpush1.msra.mxu0 %v4606_v5  ;;  %2185 = vmatpush1.msra.mxu1 %v4611_v43 }
 0x474   :  { %2115 = vmatprep.subr.mxu0 %v4618_v4  ;;  %2186 = vmatprep.subr.mxu1 %v4623_v57 }
 0x475   :  { %2116 = vmatpush1.msra.mxu0 %v4628_v0  ;;  %2187 = vmatpush1.msra.mxu1 %v4635_v3 }
 0x476   :  { %2117 = vmatprep.subr.mxu0 %v4640_v62  ;;  %2188 = vmatprep.subr.mxu1 %v4645_v6 }
 0x477   :  { %2118 = vmatpush1.msra.mxu0 %v4652_v29  ;;  %2189 = vmatpush1.msra.mxu1 %v4657_v34 }
 0x478   :  { %2119 = vmatprep.subr.mxu0 %v4662_v41  ;;  %2190 = vmatprep.subr.mxu1 %v4669_v49 }
 0x479   :  { %2120 = vmatpush1.msra.mxu0 %v4674_v39  ;;  %2191 = vmatpush1.msra.mxu1 %v4679_v32 }
 0x47a   :  { %2121 = vmatprep.subr.mxu0 %v4686_v33  ;;  %2192 = vmatprep.subr.mxu1 %v4691_v35 }
 0x47b   :  { %2122 = vmatpush1.msra.mxu0 %v4698_v30  ;;  %2193 = vmatpush1.msra.mxu1 %v4703_v36 }
 0x47c   :  { %2123 = vmatprep.subr.mxu0 %v4710_v28  ;;  %2194 = vmatprep.subr.mxu1 %v4715_v31 }
 0x47d   :  { %2124 = vmatpush1.msra.mxu0 %v4722_v37  ;;  %2195 = vmatpush1.msra.mxu1 %v5646_v50 }
 0x47e   :  { %2125 = vmatprep.subr.mxu0 %v5647_v2  ;;  %2196 = vmatprep.subr.mxu1 %v5648_v44  ;;  %v5669_v44 = vld [vmem:[#allocation68_spill] sm:$0xff] }
 0x47f   :  { %2126 = vmatpush1.msra.mxu0 %v5649_v42  ;;  %2197 = vmatpush1.msra.mxu1 %v5650_v26  ;;  %v5668_v42 = vld [vmem:[#allocation70_spill] sm:$0xff] }
 0x480   :  { %2127 = vmatprep.subr.mxu0 %v5651_v46  ;;  %2198 = vmatprep.subr.mxu1 %v5652_v54 }
 0x481   :  { %2128 = vmatpush1.msra.mxu0 %v5653_v55  ;;  %2199 = vmatpush1.msra.mxu1 %v5654_v58  ;;  %v5664_v58 = vld [vmem:[#allocation6_spill] sm:$0xff] }
 0x482   :  { %2129 = vmatprep.subr.mxu0 %v5655_v60  ;;  %2200 = vmatprep.subr.mxu1 %v5656_v38  ;;  %v5665_v60 = vld [vmem:[#allocation7_spill] sm:$0xff] }
 0x483   :  { %2130 = vmatpush1.msra.mxu0 %v5657_v59  ;;  %2201 = vmatpush1.msra.mxu1 %v5658_v9  ;;  %v5666_v59 = vld [vmem:[#allocation67_spill] sm:$0xff] }
 0x484   :  { %2131 = vmatprep.subr.mxu0 %v5659_v48  ;;  %2202 = vmatprep.subr.mxu1 %v5660_v1  ;;  %v5667_v48 = vld [vmem:[#allocation69_spill] sm:$0xff] }
 0x485   :  { %2132 = vmatpush1.msra.mxu0 %v5661_v53  ;;  %2165 = vmatprep.mubr.f32.mxu0 %v5662_v63 }
 0x486   :  { %2203 = vmatpush1.msra.mxu1 %v5663_v10  ;;  %2236 = vmatprep.mubr.f32.mxu1 %v5662_v63 }
 0x487   :  { %2353 = vmatprep.subr.mxu0 %v5664_v58  ;;  %2424 = vmatprep.subr.mxu1 %v5665_v60 }
 0x526   :  { %v1915_v38 = vpop.f32.mrf.mxu0  ;;  %v1986_v1 = vpop.f32.mrf.mxu1 }
 0x527   :  { %v2005_v55 = vadd.f32 %v5666_v59, %v1915_v38  ;;  %v2007_v63 = vadd.f32 %v5669_v44, %v1986_v1 }
 0x528   :  { %v1917_v9 = vpop.f32.mrf.mxu0  ;;  %v1988_v26 = vpop.f32.mrf.mxu1 }
 0x529   :  { %v3016_v54 = vmul.f32 -1.442695, %v2005_v55  ;;  %v2006_v46 = vadd.f32 %v5667_v48, %v1917_v9  ;;  %v2008_v10 = vadd.f32 %v5668_v42, %v1988_v26 }
 0x52b   :  { %3177 = vpow2.f32 %v3016_v54  ;;  %v3017_v53 = vmul.f32 -1.442695, %v2006_v46  ;;  %v3018_v2 = vmul.f32 -1.442695, %v2008_v10  ;;  %v2604_v10 = vld [vmem:[%s5380_s4 + $0x1f8] sm:$0xff] }
 0x52d   :  { %3179 = vpow2.f32 %v3017_v53 }
 0x52e   :  { %3181 = vtanh.f32 %v2007_v63  ;;  %v2602_v63 = vld [vmem:[%s5380_s4 + $0x1e8] sm:$0xff] }
 0x52f   :  { %3183 = vpow2.f32 %v3018_v2 }
 0x538   :  { %v3178_v58 = vpop.eup %3177 }
 0x539   :  { %v2013_v50 = vadd.f32 1.0, %v3178_v58  ;;  %v2601_v58 = vld [vmem:[%s5380_s4 + $0x1e0] sm:$0xff] }
 0x53a   :  { %v3180_v60 = vpop.eup %3179 }
 0x53b   :  { %3185 = vrcp.f32 %v2013_v50  ;;  %v2019_v38 = vadd.f32 1.0, %v3180_v60  ;;  %v3182_v55 = vpop.eup %3181  ;;  %v2603_v60 = vld [vmem:[%s5380_s4 + $0x1f0] sm:$0xff] }
 0x53c   :  { %v3184_v59 = vpop.eup %3183 }
 0x53d   :  { %3187 = vrcp.f32 %v2019_v38  ;;  %v2026_v48 = vadd.f32 1.0, %v3184_v59  ;;  %v2598_v38 = vld [vmem:[%s5380_s4 + $0x1c8] sm:$0xff]  ;;  %v2597_v59 = vld [vmem:[%s5380_s4 + $0x1c0] sm:$0xff] }
 0x53f   :  { %3189 = vrcp.f32 %v2026_v48  ;;  %v2593_v48 = vld [vmem:[%s5380_s4 + $0x1a0] sm:$0xff] }
 0x548   :  { %v3186_v54 = vpop.eup %3185 }
 0x549   :  { %v2030_v9 = vmul.f32 %v3186_v54, %v3182_v55  ;;  %v2600_v55 = vld [vmem:[%s5380_s4 + $0x1d8] sm:$0xff]  ;;  %v2599_v54 = vld [vmem:[%s5380_s4 + $0x1d0] sm:$0xff] }
 0x54a   :  { %v3188_v46 = vpop.eup %3187 }
 0x54b   :  { %v2029_v53 = vmul.f32 %v3188_v46, %v4912_v51  ;;  %v2596_v46 = vld [vmem:[%s5380_s4 + $0x1b8] sm:$0xff] }
 0x54c   :  { %v3190_v44 = vpop.eup %3189 }
 0x54d   :  { %v4986_v42 = vadd.f32 %v2030_v9, %v2029_v53  ;;  %v2594_v9 = vld [vmem:[%s5380_s4 + $0x1a8] sm:$0xff]  ;;  %v2595_v53 = vld [vmem:[%s5380_s4 + $0x1b0] sm:$0xff] }
 0x54f   :  { %3191 = vtanh.f32 %v4986_v42 }
 0x55c   :  { %v3192_v26 = vpop.eup %3191 }
 0x55d   :  { %v2033_v1 = vmul.f32 %v3192_v26, %v3190_v44  ;;  %v2592_v44 = vld [vmem:[%s5380_s4 + $0x198] sm:$0xff]  ;;  %v2589_v26 = vld [vmem:[%s5380_s4 + $0x180] sm:$0xff] }
 0x55f   :  { %2166 = vmatmul.mubr.f32.vlgmr.msra.gmra.mxu0 %v2033_v1  ;;  %2237 = vmatmul.mubr.f32.vlgmr.msra.gmra.mxu1 %v2033_v1  ;;  %v2591_v1 = vld [vmem:[%s5380_s4 + $0x190] sm:$0xff] }
 0x560   :  { %2354 = vmatpush1.msra.mxu0 %v4462_v56  ;;  %2425 = vmatpush1.msra.mxu1 %v4467_v14  ;;  %v5670_v56 = vld [vmem:[#allocation8_spill] sm:$0xff]  ;;  %v5671_v14 = vld [vmem:[#allocation9_spill] sm:$0xff] }
 0x561   :  { %2355 = vmatprep.subr.mxu0 %v4474_v15  ;;  %2426 = vmatprep.subr.mxu1 %v4479_v16  ;;  %v5672_v15 = vld [vmem:[#allocation10_spill] sm:$0xff]  ;;  %v5673_v16 = vld [vmem:[#allocation11_spill] sm:$0xff] }
 0x562   :  { %2356 = vmatpush1.msra.mxu0 %v4486_v17  ;;  %2427 = vmatpush1.msra.mxu1 %v4491_v18  ;;  %v5681_v17 = vld [vmem:[#allocation19_spill] sm:$0xff]  ;;  %v5682_v18 = vld [vmem:[#allocation20_spill] sm:$0xff] }
 0x563   :  { %2357 = vmatprep.subr.mxu0 %v4498_v19  ;;  %2428 = vmatprep.subr.mxu1 %v4503_v21  ;;  %v5683_v19 = vld [vmem:[#allocation21_spill] sm:$0xff]  ;;  %v5684_v21 = vld [vmem:[#allocation22_spill] sm:$0xff] }
 0x564   :  { %2358 = vmatpush1.msra.mxu0 %v4510_v22  ;;  %2429 = vmatpush1.msra.mxu1 %v4515_v23  ;;  %v5685_v22 = vld [vmem:[#allocation23_spill] sm:$0xff]  ;;  %v5686_v23 = vmov 0.0  }
 0x565   :  { %2359 = vmatprep.subr.mxu0 %v4522_v24  ;;  %2430 = vmatprep.subr.mxu1 %v4527_v25  ;;  %v5687_v24 = vld [vmem:[#allocation24_spill] sm:$0xff] }
 0x566   :  { %2360 = vmatpush1.msra.mxu0 %v4534_v27  ;;  %2431 = vmatpush1.msra.mxu1 %v4539_v52  ;;  %v5688_v27 = vld [vmem:[#allocation63_spill] sm:$0xff] }
 0x567   :  { %2361 = vmatprep.subr.mxu0 %v4546_v12  ;;  %2432 = vmatprep.subr.mxu1 %v4551_v20 }
 0x568   :  { %2362 = vmatpush1.msra.mxu0 %v4558_v40  ;;  %2433 = vmatpush1.msra.mxu1 %v4563_v47  ;;  %v5689_v40 = vld [vmem:[#allocation65_spill] sm:$0xff] }
 0x569   :  { %2363 = vmatprep.subr.mxu0 %v4570_v13  ;;  %2434 = vmatprep.subr.mxu1 %v4575_v7 }
 0x56a   :  { %2364 = vmatpush1.msra.mxu0 %v4582_v11  ;;  %2435 = vmatpush1.msra.mxu1 %v4587_v8  ;;  %v5690_v8 = vld [vmem:[#allocation66_spill] sm:$0xff] }
 0x56b   :  { %2365 = vmatprep.subr.mxu0 %v4594_v45  ;;  %2436 = vmatprep.subr.mxu1 %v4599_v61  ;;  %v5691_v61 = vld [vmem:[#allocation64_spill] sm:$0xff] }
 0x56c   :  { %2366 = vmatpush1.msra.mxu0 %v4606_v5  ;;  %2437 = vmatpush1.msra.mxu1 %v4611_v43 }
 0x56d   :  { %2367 = vmatprep.subr.mxu0 %v4618_v4  ;;  %2438 = vmatprep.subr.mxu1 %v4623_v57 }
 0x56e   :  { %2368 = vmatpush1.msra.mxu0 %v4628_v0  ;;  %2439 = vmatpush1.msra.mxu1 %v4635_v3 }
 0x56f   :  { %2369 = vmatprep.subr.mxu0 %v4640_v62  ;;  %2440 = vmatprep.subr.mxu1 %v4645_v6 }
 0x570   :  { %2370 = vmatpush1.msra.mxu0 %v4652_v29  ;;  %2441 = vmatpush1.msra.mxu1 %v4657_v34 }
 0x571   :  { %2371 = vmatprep.subr.mxu0 %v4662_v41  ;;  %2442 = vmatprep.subr.mxu1 %v4669_v49 }
 0x572   :  { %2372 = vmatpush1.msra.mxu0 %v4674_v39  ;;  %2443 = vmatpush1.msra.mxu1 %v4679_v32 }
 0x573   :  { %2373 = vmatprep.subr.mxu0 %v4686_v33  ;;  %2444 = vmatprep.subr.mxu1 %v4691_v35  ;;  %v5674_v33 = vld [vmem:[#allocation12_spill] sm:$0xff]  ;;  %v5675_v35 = vld [vmem:[#allocation13_spill] sm:$0xff] }
 0x574   :  { %2374 = vmatpush1.msra.mxu0 %v4698_v30  ;;  %2445 = vmatpush1.msra.mxu1 %v4703_v36  ;;  %v5676_v30 = vld [vmem:[#allocation14_spill] sm:$0xff]  ;;  %v5677_v36 = vld [vmem:[#allocation15_spill] sm:$0xff] }
 0x575   :  { %2375 = vmatprep.subr.mxu0 %v4710_v28  ;;  %2446 = vmatprep.subr.mxu1 %v4715_v31  ;;  %v5678_v28 = vld [vmem:[#allocation16_spill] sm:$0xff]  ;;  %v5679_v31 = vld [vmem:[#allocation17_spill] sm:$0xff] }
 0x576   :  { %2376 = vmatpush1.msra.mxu0 %v4722_v37  ;;  %2447 = vmatpush1.msra.mxu1 %v5670_v56  ;;  %v5680_v37 = vld [vmem:[#allocation18_spill] sm:$0xff]  ;;  %v2586_v56 = vld [vmem:[%s5380_s4 + $0x168] sm:$0xff] }
 0x577   :  { %2377 = vmatprep.subr.mxu0 %v5671_v14  ;;  %2448 = vmatprep.subr.mxu1 %v5672_v15  ;;  %v2588_v14 = vld [vmem:[%s5380_s4 + $0x178] sm:$0xff]  ;;  %v2585_v15 = vld [vmem:[%s5380_s4 + $0x160] sm:$0xff] }
 0x578   :  { %2378 = vmatpush1.msra.mxu0 %v5673_v16  ;;  %2449 = vmatpush1.msra.mxu1 %v5674_v33  ;;  %v2587_v16 = vld [vmem:[%s5380_s4 + $0x170] sm:$0xff]  ;;  %v2582_v33 = vld [vmem:[%s5380_s4 + $0x148] sm:$0xff] }
 0x579   :  { %2379 = vmatprep.subr.mxu0 %v5675_v35  ;;  %2450 = vmatprep.subr.mxu1 %v5676_v30  ;;  %v2584_v35 = vld [vmem:[%s5380_s4 + $0x158] sm:$0xff]  ;;  %v2581_v30 = vld [vmem:[%s5380_s4 + $0x140] sm:$0xff] }
 0x57a   :  { %2380 = vmatpush1.msra.mxu0 %v5677_v36  ;;  %2451 = vmatpush1.msra.mxu1 %v5678_v28  ;;  %v2583_v36 = vld [vmem:[%s5380_s4 + $0x150] sm:$0xff]  ;;  %v2578_v28 = vld [vmem:[%s5380_s4 + $0x128] sm:$0xff] }
 0x57b   :  { %2381 = vmatprep.subr.mxu0 %v5679_v31  ;;  %2452 = vmatprep.subr.mxu1 %v5680_v37  ;;  %v2580_v31 = vld [vmem:[%s5380_s4 + $0x138] sm:$0xff]  ;;  %v2577_v37 = vld [vmem:[%s5380_s4 + $0x120] sm:$0xff] }
 0x57c   :  { %2382 = vmatpush1.msra.mxu0 %v5681_v17  ;;  %2453 = vmatpush1.msra.mxu1 %v5682_v18  ;;  %v2579_v17 = vld [vmem:[%s5380_s4 + $0x130] sm:$0xff]  ;;  %v2574_v18 = vld [vmem:[%s5380_s4 + $0x108] sm:$0xff] }
 0x57d   :  { %2383 = vmatprep.subr.mxu0 %v5683_v19  ;;  %2454 = vmatprep.subr.mxu1 %v5684_v21  ;;  %v2576_v19 = vld [vmem:[%s5380_s4 + $0x118] sm:$0xff]  ;;  %v2573_v21 = vld [vmem:[%s5380_s4 + $0x100] sm:$0xff] }
 0x57e   :  { %2384 = vmatpush1.msra.mxu0 %v5685_v22  ;;  %2417 = vmatprep.mubr.f32.mxu0 %v5686_v23  ;;  %v2575_v22 = vld [vmem:[%s5380_s4 + $0x110] sm:$0xff] }
 0x57f   :  { %2455 = vmatpush1.msra.mxu1 %v5687_v24  ;;  %2488 = vmatprep.mubr.f32.mxu1 %v5686_v23  ;;  %v2570_v24 = vld [vmem:[%s5380_s4 + $0xe8] sm:$0xff] }
 0x580   :  { %2605 = vmatprep.subr.mxu0 %v2602_v63  ;;  %2676 = vmatprep.subr.mxu1 %v2604_v10  ;;  %v2541_v63 = vld [vmem:[%s5380_s4] sm:$0xff]  ;;  %v2543_v10 = vld [vmem:[%s5380_s4 + $0x10] sm:$0xff] }
 0x61f   :  { %v2167_v25 = vpop.f32.mrf.mxu0  ;;  %v2238_v13 = vpop.f32.mrf.mxu1 }
 0x620   :  { %v2257_v52 = vadd.f32 %v5688_v27, %v2167_v25  ;;  %v2259_v5 = vadd.f32 %v5691_v61, %v2238_v13  ;;  %v2572_v25 = vld [vmem:[%s5380_s4 + $0xf8] sm:$0xff]  ;;  %v2569_v27 = vld [vmem:[%s5380_s4 + $0xe0] sm:$0xff]  ;;  %v2562_v13 = vld [vmem:[%s5380_s4 + $0xa8] sm:$0xff] }
 0x621   :  { %v2169_v12 = vpop.f32.mrf.mxu0  ;;  %v2240_v11 = vpop.f32.mrf.mxu1  ;;  %v2560_v61 = vld [vmem:[%s5380_s4 + $0x98] sm:$0xff] }
 0x622   :  { %v3019_v20 = vmul.f32 -1.442695, %v2257_v52  ;;  %v2258_v47 = vadd.f32 %v5689_v40, %v2169_v12  ;;  %v2260_v45 = vadd.f32 %v5690_v8, %v2240_v11  ;;  %v2571_v52 = vld [vmem:[%s5380_s4 + $0xf0] sm:$0xff]  ;;  %v2566_v12 = vld [vmem:[%s5380_s4 + $0xc8] sm:$0xff]  ;;  %v2565_v40 = vld [vmem:[%s5380_s4 + $0xc0] sm:$0xff] }
 0x623   :  { %v2561_v11 = vld [vmem:[%s5380_s4 + $0xa0] sm:$0xff]  ;;  %v2563_v8 = vld [vmem:[%s5380_s4 + $0xb0] sm:$0xff] }
 0x624   :  { %3193 = vpow2.f32 %v3019_v20  ;;  %v3020_v7 = vmul.f32 -1.442695, %v2258_v47  ;;  %v3021_v43 = vmul.f32 -1.442695, %v2260_v45  ;;  %v2568_v20 = vld [vmem:[%s5380_s4 + $0xd8] sm:$0xff]  ;;  %v2567_v47 = vld [vmem:[%s5380_s4 + $0xd0] sm:$0xff] }
 0x625   :  { %v2558_v45 = vld [vmem:[%s5380_s4 + $0x88] sm:$0xff] }
 0x626   :  { %3195 = vpow2.f32 %v3020_v7  ;;  %v2564_v7 = vld [vmem:[%s5380_s4 + $0xb8] sm:$0xff] }
 0x627   :  { %3197 = vtanh.f32 %v2259_v5  ;;  %v2557_v5 = vld [vmem:[%s5380_s4 + $0x80] sm:$0xff] }
 0x628   :  { %3199 = vpow2.f32 %v3021_v43  ;;  %v2559_v43 = vld [vmem:[%s5380_s4 + $0x90] sm:$0xff] }
 0x631   :  { %v3194_v4 = vpop.eup %3193 }
 0x632   :  { %v2265_v57 = vadd.f32 1.0, %v3194_v4  ;;  %v2554_v4 = vld [vmem:[%s5380_s4 + $0x68] sm:$0xff] }
 0x633   :  { %v3196_v0 = vpop.eup %3195 }
 0x634   :  { %3201 = vrcp.f32 %v2265_v57  ;;  %v2271_v3 = vadd.f32 1.0, %v3196_v0  ;;  %v3198_v62 = vpop.eup %3197  ;;  %v2556_v57 = vld [vmem:[%s5380_s4 + $0x78] sm:$0xff]  ;;  %v2553_v0 = vld [vmem:[%s5380_s4 + $0x60] sm:$0xff] }
 0x635   :  { %v3200_v6 = vpop.eup %3199 }
 0x636   :  { %3203 = vrcp.f32 %v2271_v3  ;;  %v2278_v49 = vadd.f32 1.0, %v3200_v6  ;;  %v2555_v3 = vld [vmem:[%s5380_s4 + $0x70] sm:$0xff]  ;;  %v2552_v6 = vld [vmem:[%s5380_s4 + $0x58] sm:$0xff] }
 0x638   :  { %3205 = vrcp.f32 %v2278_v49  ;;  %v2548_v49 = vld [vmem:[%s5380_s4 + $0x38] sm:$0xff] }
 0x641   :  { %v3202_v29 = vpop.eup %3201 }
 0x642   :  { %v2282_v34 = vmul.f32 %v3202_v29, %v3198_v62  ;;  %v2550_v62 = vld [vmem:[%s5380_s4 + $0x48] sm:$0xff]  ;;  %v2549_v29 = vld [vmem:[%s5380_s4 + $0x40] sm:$0xff] }
 0x643   :  { %v3204_v41 = vpop.eup %3203 }
 0x644   :  { %v2281_v39 = vmul.f32 %v3204_v41, %v4986_v42  ;;  %v2590_v42 = vld [vmem:[%s5380_s4 + $0x188] sm:$0xff] }
 0x645   :  { %v3206_v51 = vpop.eup %3205  ;;  %v2546_v41 = vld [vmem:[%s5380_s4 + $0x28] sm:$0xff] }
 0x646   :  { %v5058_v32 = vadd.f32 %v2282_v34, %v2281_v39  ;;  %v2551_v34 = vld [vmem:[%s5380_s4 + $0x50] sm:$0xff]  ;;  %v2545_v39 = vld [vmem:[%s5380_s4 + $0x20] sm:$0xff] }
 0x648   :  { %3207 = vtanh.f32 %v5058_v32 }
 0x655   :  { %v3208_v50 = vpop.eup %3207 }
 0x656   :  { %v2285_v2 = vmul.f32 %v3208_v50, %v3206_v51  ;;  %v2547_v51 = vld [vmem:[%s5380_s4 + $0x30] sm:$0xff]  ;;  %v2542_v50 = vld [vmem:[%s5380_s4 + $0x8] sm:$0xff] }
 0x658   :  { %2418 = vmatmul.mubr.f32.vlgmr.msra.gmra.mxu0 %v2285_v2  ;;  %2489 = vmatmul.mubr.f32.vlgmr.msra.gmra.mxu1 %v2285_v2  ;;  %v2544_v2 = vld [vmem:[%s5380_s4 + $0x18] sm:$0xff] }
 0x659   :  { %2669 = vmatprep.mubr.f32.mxu0 %v5686_v23  ;;  %2740 = vmatprep.mubr.f32.mxu1 %v5686_v23 }
 0x65a   :  { %2606 = vmatpush1.msra.mxu0 %v2601_v58  ;;  %2677 = vmatpush1.msra.mxu1 %v2603_v60  ;;  %v5692_v60 = vld [vmem:[#allocation59_spill] sm:$0xff] }
 0x65b   :  { %2607 = vmatprep.subr.mxu0 %v2598_v38  ;;  %2678 = vmatprep.subr.mxu1 %v2600_v55 }
 0x65c   :  { %2608 = vmatpush1.msra.mxu0 %v2597_v59  ;;  %2679 = vmatpush1.msra.mxu1 %v2599_v54  ;;  %v5693_v54 = vld [vmem:[#allocation61_spill] sm:$0xff] }
 0x65d   :  { %2609 = vmatprep.subr.mxu0 %v2594_v9  ;;  %2680 = vmatprep.subr.mxu1 %v2596_v46 }
 0x65e   :  { %2610 = vmatpush1.msra.mxu0 %v2593_v48  ;;  %2681 = vmatpush1.msra.mxu1 %v2595_v53 }
 0x65f   :  { %2611 = vmatprep.subr.mxu0 %v2590_v42  ;;  %2682 = vmatprep.subr.mxu1 %v2592_v44  ;;  %v5694_v42 = vld [vmem:[#allocation62_spill] sm:$0xff] }
 0x660   :  { %2612 = vmatpush1.msra.mxu0 %v2589_v26  ;;  %2683 = vmatpush1.msra.mxu1 %v2591_v1  ;;  %v5695_v26 = vld [vmem:[#allocation60_spill] sm:$0xff] }
 0x661   :  { %2613 = vmatprep.subr.mxu0 %v2586_v56  ;;  %2684 = vmatprep.subr.mxu1 %v2588_v14 }
 0x662   :  { %2614 = vmatpush1.msra.mxu0 %v2585_v15  ;;  %2685 = vmatpush1.msra.mxu1 %v2587_v16 }
 0x663   :  { %2615 = vmatprep.subr.mxu0 %v2582_v33  ;;  %2686 = vmatprep.subr.mxu1 %v2584_v35 }
 0x664   :  { %2616 = vmatpush1.msra.mxu0 %v2581_v30  ;;  %2687 = vmatpush1.msra.mxu1 %v2583_v36 }
 0x665   :  { %2617 = vmatprep.subr.mxu0 %v2578_v28  ;;  %2688 = vmatprep.subr.mxu1 %v2580_v31 }
 0x666   :  { %2618 = vmatpush1.msra.mxu0 %v2577_v37  ;;  %2689 = vmatpush1.msra.mxu1 %v2579_v17 }
 0x667   :  { %2619 = vmatprep.subr.mxu0 %v2574_v18  ;;  %2690 = vmatprep.subr.mxu1 %v2576_v19 }
 0x668   :  { %2620 = vmatpush1.msra.mxu0 %v2573_v21  ;;  %2691 = vmatpush1.msra.mxu1 %v2575_v22 }
 0x669   :  { %2621 = vmatprep.subr.mxu0 %v2570_v24  ;;  %2692 = vmatprep.subr.mxu1 %v2572_v25  ;;  %v2810_v24 = vld [vmem:[%s5382_s6 + $0x78] sm:$0xff]  ;;  %v2808_v25 = vld [vmem:[%s5382_s6 + $0x68] sm:$0xff] }
 0x66a   :  { %2622 = vmatpush1.msra.mxu0 %v2569_v27  ;;  %2693 = vmatpush1.msra.mxu1 %v2571_v52  ;;  %v2807_v27 = vld [vmem:[%s5382_s6 + $0x60] sm:$0xff]  ;;  %v2806_v52 = vld [vmem:[%s5382_s6 + $0x58] sm:$0xff] }
 0x66b   :  { %2623 = vmatprep.subr.mxu0 %v2566_v12  ;;  %2694 = vmatprep.subr.mxu1 %v2568_v20  ;;  %v2805_v12 = vld [vmem:[%s5382_s6 + $0x50] sm:$0xff]  ;;  %v2804_v20 = vld [vmem:[%s5382_s6 + $0x48] sm:$0xff] }
 0x66c   :  { %2624 = vmatpush1.msra.mxu0 %v2565_v40  ;;  %2695 = vmatpush1.msra.mxu1 %v2567_v47  ;;  %v2803_v40 = vld [vmem:[%s5382_s6 + $0x40] sm:$0xff]  ;;  %v2802_v47 = vld [vmem:[%s5382_s6 + $0x38] sm:$0xff] }
 0x66d   :  { %2625 = vmatprep.subr.mxu0 %v2562_v13  ;;  %2696 = vmatprep.subr.mxu1 %v2564_v7  ;;  %v2801_v13 = vld [vmem:[%s5382_s6 + $0x30] sm:$0xff]  ;;  %v2800_v7 = vld [vmem:[%s5382_s6 + $0x28] sm:$0xff] }
 0x66e   :  { %2626 = vmatpush1.msra.mxu0 %v2561_v11  ;;  %2697 = vmatpush1.msra.mxu1 %v2563_v8  ;;  %v2799_v11 = vld [vmem:[%s5382_s6 + $0x20] sm:$0xff]  ;;  %v2798_v8 = vld [vmem:[%s5382_s6 + $0x18] sm:$0xff] }
 0x66f   :  { %2627 = vmatprep.subr.mxu0 %v2558_v45  ;;  %2698 = vmatprep.subr.mxu1 %v2560_v61  ;;  %v2797_v45 = vld [vmem:[%s5382_s6 + $0x10] sm:$0xff]  ;;  %v2796_v61 = vld [vmem:[%s5382_s6 + $0x8] sm:$0xff] }
 0x670   :  { %2628 = vmatpush1.msra.mxu0 %v2557_v5  ;;  %2699 = vmatpush1.msra.mxu1 %v2559_v43  ;;  %v2795_v5 = vld [vmem:[%s5382_s6] sm:$0xff]  ;;  %v2896_v43 = vld [vmem:[%s5383_s8 + $0x38] sm:$0xff] }
 0x671   :  { %2629 = vmatprep.subr.mxu0 %v2554_v4  ;;  %2700 = vmatprep.subr.mxu1 %v2556_v57  ;;  %v2895_v4 = vld [vmem:[%s5383_s8 + $0x30] sm:$0xff]  ;;  %v2894_v57 = vld [vmem:[%s5383_s8 + $0x28] sm:$0xff] }
 0x672   :  { %2630 = vmatpush1.msra.mxu0 %v2553_v0  ;;  %2701 = vmatpush1.msra.mxu1 %v2555_v3  ;;  %v2893_v0 = vld [vmem:[%s5383_s8 + $0x20] sm:$0xff]  ;;  %v2892_v3 = vld [vmem:[%s5383_s8 + $0x18] sm:$0xff] }
 0x673   :  { %2631 = vmatprep.subr.mxu0 %v2550_v62  ;;  %2702 = vmatprep.subr.mxu1 %v2552_v6  ;;  %v5696_v6 = vld [vmem:[#allocation55_spill] sm:$0xff] }
 0x674   :  { %2632 = vmatpush1.msra.mxu0 %v2549_v29  ;;  %2703 = vmatpush1.msra.mxu1 %v2551_v34 }
 0x675   :  { %2633 = vmatprep.subr.mxu0 %v2546_v41  ;;  %2704 = vmatprep.subr.mxu1 %v2548_v49  ;;  %v5697_v49 = vld [vmem:[#allocation57_spill] sm:$0xff] }
 0x676   :  { %2634 = vmatpush1.msra.mxu0 %v2545_v39  ;;  %2705 = vmatpush1.msra.mxu1 %v2547_v51 }
 0x677   :  { %2635 = vmatprep.subr.mxu0 %v2542_v50  ;;  %2706 = vmatprep.subr.mxu1 %v2544_v2 }
 0x678   :  { %2636 = vmatpush1.msra.mxu0 %v2541_v63  ;;  %2707 = vmatpush1.msra.mxu1 %v2543_v10  ;;  %v5698_v63 = vld [vmem:[#allocation58_spill] sm:$0xff] }
 0x679   :  { %3057 = vmatprep.subr.mxu0 %v5686_v23  ;;  %3092 = vmatprep.subr.mxu1 %v5686_v23 }
 0x718   :  { %v2419_v58 = vpop.f32.mrf.mxu0  ;;  %v2490_v46 = vpop.f32.mrf.mxu1 }
 0x719   :  { %v2509_v38 = vadd.f32 %v5692_v60, %v2419_v58  ;;  %v2511_v1 = vadd.f32 %v5695_v26, %v2490_v46  ;;  %v5699_v58 = vld [vmem:[#allocation56_spill] sm:$0xff] }
 0x71a   :  { %v2421_v55 = vpop.f32.mrf.mxu0  ;;  %v2492_v53 = vpop.f32.mrf.mxu1 }
 0x71b   :  { %v3022_v59 = vmul.f32 -1.442695, %v2509_v38  ;;  %v2510_v9 = vadd.f32 %v5693_v54, %v2421_v55  ;;  %v2512_v44 = vadd.f32 %v5694_v42, %v2492_v53 }
 0x71d   :  { %3209 = vpow2.f32 %v3022_v59  ;;  %v3023_v48 = vmul.f32 -1.442695, %v2510_v9  ;;  %v3024_v56 = vmul.f32 -1.442695, %v2512_v44 }
 0x71f   :  { %3211 = vpow2.f32 %v3023_v48 }
 0x720   :  { %3213 = vtanh.f32 %v2511_v1 }
 0x721   :  { %3215 = vpow2.f32 %v3024_v56 }
 0x72a   :  { %v3210_v14 = vpop.eup %3209 }
 0x72b   :  { %v2517_v15 = vadd.f32 1.0, %v3210_v14 }
 0x72c   :  { %v3212_v16 = vpop.eup %3211 }
 0x72d   :  { %3217 = vrcp.f32 %v2517_v15  ;;  %v2523_v33 = vadd.f32 1.0, %v3212_v16  ;;  %v3214_v35 = vpop.eup %3213 }
 0x72e   :  { %v3216_v30 = vpop.eup %3215 }
 0x72f   :  { %3219 = vrcp.f32 %v2523_v33  ;;  %v2530_v37 = vadd.f32 1.0, %v3216_v30  ;;  %v2891_v33 = vld [vmem:[%s5383_s8 + $0x10] sm:$0xff]  ;;  %v2889_v30 = vld [vmem:[%s5383_s8] sm:$0xff] }
 0x731   :  { %3221 = vrcp.f32 %v2530_v37 }
 0x73a   :  { %v3218_v36 = vpop.eup %3217 }
 0x73b   :  { %v2534_v28 = vmul.f32 %v3218_v36, %v3214_v35  ;;  %v2890_v35 = vld [vmem:[%s5383_s8 + $0x8] sm:$0xff]  ;;  %v3028_v36 = vld [vmem:[%s5384_s7] ss:$0 sm:$0xff] }
 0x73c   :  { %v3220_v31 = vpop.eup %3219 }
 0x73d   :  { %v2533_v17 = vmul.f32 %v3220_v31, %v5058_v32  ;;  %v2809_v32 = vld [vmem:[%s5382_s6 + $0x70] sm:$0xff] }
 0x73e   :  { %v3222_v19 = vpop.eup %3221 }
 0x73f   :  { %v5262_v18 = vadd.f32 %v2534_v28, %v2533_v17 }
 0x741   :  { %3223 = vtanh.f32 %v5262_v18 }
 0x74e   :  { %v3224_v21 = vpop.eup %3223 }
 0x74f   :  { %v2537_v22 = vmul.f32 %v3224_v21, %v3222_v19  ;;  %v3029_v21 = vld [vmem:[%s5385_s9] ss:$0 sm:$0xff] }
 0x751   :  { %2670 = vmatmul.mubr.f32.vlgmr.msra.gmra.mxu0 %v2537_v22  ;;  %2741 = vmatmul.mubr.f32.vlgmr.msra.gmra.mxu1 %v2537_v22 }
 0x752   :  { %3058 = vmatpush3.msra.mxu0 %v2810_v24  ;;  %3089 = vmatprep.mubr.msk.f32.mxu0 %vm3246_vm0, %v5686_v23 }
 0x753   :  { %3059 = vmatprep.subr.mxu0 %v5686_v23  ;;  %3108 = vmatprep.mubr.msk.f32.mxu1 %vm3246_vm0, %v5686_v23 }
 0x754   :  { %3060 = vmatpush3.msra.mxu0 %v2809_v32  ;;  %3093 = vmatpush3.msra.mxu1 %v2896_v43 }
 0x755   :  { %3061 = vmatprep.subr.mxu0 %v5686_v23  ;;  %3094 = vmatprep.subr.mxu1 %v5686_v23 }
 0x756   :  { %3062 = vmatpush3.msra.mxu0 %v2808_v25  ;;  %3095 = vmatpush3.msra.mxu1 %v2895_v4 }
 0x757   :  { %3063 = vmatprep.subr.mxu0 %v5686_v23  ;;  %3096 = vmatprep.subr.mxu1 %v5686_v23 }
 0x758   :  { %3064 = vmatpush3.msra.mxu0 %v2807_v27  ;;  %3097 = vmatpush3.msra.mxu1 %v2894_v57 }
 0x759   :  { %3065 = vmatprep.subr.mxu0 %v5686_v23  ;;  %3098 = vmatprep.subr.mxu1 %v5686_v23 }
 0x75a   :  { %3066 = vmatpush3.msra.mxu0 %v2806_v52  ;;  %3099 = vmatpush3.msra.mxu1 %v2893_v0 }
 0x75b   :  { %3067 = vmatprep.subr.mxu0 %v5686_v23  ;;  %3100 = vmatprep.subr.mxu1 %v5686_v23 }
 0x75c   :  { %3068 = vmatpush3.msra.mxu0 %v2805_v12  ;;  %3101 = vmatpush3.msra.mxu1 %v2892_v3 }
 0x75d   :  { %3069 = vmatprep.subr.mxu0 %v5686_v23  ;;  %3102 = vmatprep.subr.mxu1 %v5686_v23 }
 0x75e   :  { %3070 = vmatpush3.msra.mxu0 %v2804_v20  ;;  %3103 = vmatpush3.msra.mxu1 %v2891_v33 }
 0x75f   :  { %3071 = vmatprep.subr.mxu0 %v5686_v23  ;;  %3104 = vmatprep.subr.mxu1 %v5686_v23 }
 0x760   :  { %3072 = vmatpush3.msra.mxu0 %v2803_v40  ;;  %3105 = vmatpush3.msra.mxu1 %v2890_v35 }
 0x761   :  { %3073 = vmatprep.subr.mxu0 %v5686_v23  ;;  %3106 = vmatprep.subr.mxu1 %v5686_v23 }
 0x762   :  { %3074 = vmatpush3.msra.mxu0 %v2802_v47  ;;  %3107 = vmatpush3.msra.mxu1 %v2889_v30 }
 0x763   :  { %3075 = vmatprep.subr.mxu0 %v5686_v23 }
 0x764   :  { %3076 = vmatpush3.msra.mxu0 %v2801_v13 }
 0x765   :  { %3077 = vmatprep.subr.mxu0 %v5686_v23 }
 0x766   :  { %3078 = vmatpush3.msra.mxu0 %v2800_v7 }
 0x767   :  { %3079 = vmatprep.subr.mxu0 %v5686_v23 }
 0x768   :  { %3080 = vmatpush3.msra.mxu0 %v2799_v11 }
 0x769   :  { %3081 = vmatprep.subr.mxu0 %v5686_v23 }
 0x76a   :  { %3082 = vmatpush3.msra.mxu0 %v2798_v8 }
 0x76b   :  { %3083 = vmatprep.subr.mxu0 %v5686_v23 }
 0x76c   :  { %3084 = vmatpush3.msra.mxu0 %v2797_v45 }
 0x76d   :  { %3085 = vmatprep.subr.mxu0 %v5686_v23 }
 0x76e   :  { %3086 = vmatpush3.msra.mxu0 %v2796_v61 }
 0x76f   :  { %3087 = vmatprep.subr.mxu0 %v5686_v23 }
 0x770   :  { %3088 = vmatpush3.msra.mxu0 %v2795_v5 }
 0x811   :  { %v2671_v62 = vpop.f32.mrf.mxu0  ;;  %v2742_v51 = vpop.f32.mrf.mxu1 }
 0x812   :  { %v2760_v29 = vadd.f32 %v5696_v6, %v2671_v62  ;;  %v2762_v60 = vadd.f32 %v5699_v58, %v2742_v51 }
 0x813   :  { %v2673_v34 = vpop.f32.mrf.mxu0  ;;  %v2744_v2 = vpop.f32.mrf.mxu1 }
 0x814   :  { %v3025_v41 = vmul.f32 -1.442695, %v2760_v29  ;;  %v2761_v39 = vadd.f32 %v5697_v49, %v2673_v34  ;;  %v2763_v10 = vadd.f32 %v5698_v63, %v2744_v2 }
 0x816   :  { %3225 = vpow2.f32 %v3025_v41  ;;  %v3026_v50 = vmul.f32 -1.442695, %v2761_v39  ;;  %v3027_v38 = vmul.f32 -1.442695, %v2763_v10 }
 0x818   :  { %3227 = vpow2.f32 %v3026_v50 }
 0x819   :  { %3229 = vtanh.f32 %v2762_v60 }
 0x81a   :  { %3231 = vpow2.f32 %v3027_v38 }
 0x823   :  { %v3226_v55 = vpop.eup %3225 }
 0x824   :  { %v2768_v59 = vadd.f32 1.0, %v3226_v55 }
 0x825   :  { %v3228_v54 = vpop.eup %3227 }
 0x826   :  { %3233 = vrcp.f32 %v2768_v59  ;;  %v2774_v9 = vadd.f32 1.0, %v3228_v54  ;;  %v3230_v46 = vpop.eup %3229 }
 0x827   :  { %v3232_v48 = vpop.eup %3231 }
 0x828   :  { %3235 = vrcp.f32 %v2774_v9  ;;  %v2781_v26 = vadd.f32 1.0, %v3232_v48 }
 0x82a   :  { %3237 = vrcp.f32 %v2781_v26 }
 0x833   :  { %v3234_v53 = vpop.eup %3233 }
 0x834   :  { %v2785_v42 = vmul.f32 %v3234_v53, %v3230_v46 }
 0x835   :  { %v3236_v44 = vpop.eup %3235 }
 0x836   :  { %v2784_v1 = vmul.f32 %v3236_v44, %v5262_v18  ;;  %v5700_v18 = vlaneseq }
 0x837   :  { %v3238_v14 = vpop.eup %3237 }
 0x838   :  { %v2786_v56 = vadd.f32 %v2785_v42, %v2784_v1  ;;  %v2979_v19 = vand.u32 127, %v5700_v18 }
 0x83a   :  { %3239 = vtanh.f32 %v2786_v56  ;;  %vm2980_vm2 = vcmp.lt.s32.totalorder %v2979_v19, 2 }
 0x847   :  { %v3240_v15 = vpop.eup %3239 }
 0x848   :  { %v2788_v16 = vmul.f32 %v3240_v15, %v3238_v14 }
 0x84a   :  { %3090 = vmatmul.mubr.f32.vlgmr.msra.gmra.mxu0 %v2788_v16 }
 0x90a   :  { %v2884_v28 = vpop.f32.mrf.mxu0 }
 0x90b   :  { %v2885_v31 = vadd.f32 %v3028_v36, %v2884_v28 }
 0x90c   :  { %v3091_v37 = vpop.f32.mrf.mxu0 }
 0x90d   :  { %v2888_v17 = vmax.f32 %v2885_v31, 0.0 }
 0x90f   :  { %3109 = vmatmul.mubr.msk.f32.vlgmr.msra.gmra.mxu1 %vm2904_vm1, %v2888_v17 }
 0x9cf   :  { %v2974_v22 = vpop.f32.mrf.mxu1 }
 0x9d0   :  { %v2975_v23 = vadd.f32 %v3029_v21, %v2974_v22 }
 0x9d1   :  { %v3110_v24 = vpop.f32.mrf.mxu1 }
 0x9d2   :  { %v2981_v32 = vsel %vm2980_vm2, %v2975_v23, -1e+30 }
 0x9d3   :  { %2982 = vmax.xlane.f32.xlu0 %v2981_v32 }
 0xa5c   :  { %v2983_v25 = vpop.xlane.xlu0 %2982 }
 0xa5d   :  { %v2984_v27 = vsub.f32 %v2981_v32, %v2983_v25 }
 0xa5f   :  { %v2985_v52 = vmul.f32 1.442695, %v2984_v27 }
 0xa61   :  { %3241 = vpow2.f32 %v2985_v52 }
 0xa6e   :  { %v3242_v12 = vpop.eup %3241 }
 0xa6f   :  { %2987 = vadd.xlane.f32.xlu0 %v3242_v12 }
 0xaf8   :  { %v2988_v20 = vpop.xlane.xlu0 %2987 }
 0xaf9   :  { %3243 = vlog2.f32 %v2988_v20 }
 0xb06   :  { %v3244_v40 = vpop.eup %3243 }
 0xb07   :  { %v2990_v47 = vmul.f32 0.6931472, %v3244_v40 }
 0xb09   :  { %v2991_v13 = vadd.f32 %v2990_v47, %v2983_v25 }
 0xb0b   :  { %v2992_v7 = vsub.f32 %v2981_v32, %v2991_v13 }
 0xb0d   :  { %2993 = vst [vmem:[%s5386_s10] sm:$0xff] %v2992_v7 }

</bundles_post_ra>
